<compile_context>
chip_gen: v7x
topology: tpu7x:2x2x1
jax: 0.10.0
libtpu: 0.0.40
codegen_flags: <defaults>
</compile_context>

<pallas_src>
import jax
import jax.numpy as jnp
import numpy as np
from jax.experimental import pallas as pl
from jax.experimental.pallas import tpu as pltpu


def _conv3x3_grouped(xp, w_ref, nb, h, w, cp):
    """3x3 conv as 3 MXU dots of K=3*Cp (dw taps grouped per dh), f32 accum.

    xp:    (NB, H+2, W+2, Cp) bf16 value (zero spatial halo, zero channel pad)
    w_ref: (3, 3*Cp, Cp) bf16 ref, row dh holds taps (dh, dw=0..2) stacked on K
    returns (NB*H*W, Cp) f32
    """
    m = nb * h * w
    acc = None
    for dh in range(3):
        grp = jnp.concatenate(
            [xp[:, dh:dh + h, dw:dw + w, :].reshape(m, cp) for dw in range(3)],
            axis=-1)                                          # (M, 3*Cp) bf16
        part = jnp.dot(grp, w_ref[dh], preferred_element_type=jnp.float32)
        acc = part if acc is None else acc + part
    return acc


def basic_block_kernel(xpad_ref, res_ref, w1_ref, s1_ref, t1_ref,
                       w2_ref, s2_ref, t2_ref, out_ref, ypad_ref):
    NB, Hp2, Wp2, Cp = xpad_ref.shape
    H, W = Hp2 - 2, Wp2 - 2
    M = NB * H * W

    xpad = xpad_ref[...]                                      # (NB, H+2, W+2, Cp) bf16

    # ---- conv1 (3 dots of K=3*Cp) + bn1 (folded affine) + relu, all f32 ----
    acc1 = _conv3x3_grouped(xpad, w1_ref, NB, H, W, Cp)       # (M, Cp) f32
    y = jnp.maximum(acc1 * s1_ref[...] + t1_ref[...], 0.0)

    # ---- stage zero-padded intermediate (bf16) in persistent VMEM scratch ----
    # Left/right zero columns are folded into the interior store (full-width
    # rows -> no width-1 masked column stores).  Top/bottom halo rows are
    # re-zeroed every step (cheap, and correct when the batch grid axis is
    # split "parallel" across TensorCores).
    y4 = y.reshape(NB, H, W, Cp).astype(jnp.bfloat16)
    zc = jnp.zeros((NB, H, 1, Cp), jnp.bfloat16)
    y_rows = jnp.concatenate([zc, y4, zc], axis=2)            # (NB, H, W+2, Cp)
    zrow = jnp.zeros((NB, 1, Wp2, Cp), jnp.bfloat16)
    ypad_ref[:, 0:1, :, :] = zrow
    ypad_ref[:, H + 1:H + 2, :, :] = zrow
    ypad_ref[:, 1:H + 1, :, :] = y_rows
    ypad = ypad_ref[...]

    # ---- conv2 (same grouped dots) ----
    acc2 = _conv3x3_grouped(ypad, w2_ref, NB, H, W, Cp)       # (M, Cp) f32

    # ---- bn2 + residual (exact f32, unsliced lane-dense input) + relu ----
    identity = res_ref[...].reshape(M, Cp)                    # f32
    out = jnp.maximum(acc2 * s2_ref[...] + t2_ref[...] + identity, 0.0)
    out_ref[...] = out.reshape(NB, H * W, Cp).astype(out_ref.dtype)   # bf16 writeback


def _fold_bn(gamma, beta, mean, var, eps, cp):
    scale = gamma / jnp.sqrt(var + eps)
    shift = beta - mean * scale
    pad = cp - gamma.shape[0]
    scale = jnp.pad(scale, (0, pad))
    shift = jnp.pad(shift, (0, pad))
    return (scale.reshape(1, cp).astype(jnp.float32),
            shift.reshape(1, cp).astype(jnp.float32))


def _prep_weight(w, cin, cout, cp):
    # torch conv weight (O, I, kh, kw) -> (kh, kw, I, O), zero-pad channels to
    # cp, group the three kw taps per kh along K: (3, 3*cp, cp), bf16.
    wk = jnp.transpose(w, (2, 3, 1, 0)).astype(jnp.float32)   # (3, 3, I, O)
    wk = jnp.pad(wk, ((0, 0), (0, 0), (0, cp - cin), (0, cp - cout)))
    return wk.reshape(3, 3 * cp, cp).astype(jnp.bfloat16)


def _pick_nb(n, h, w, target_rows=2048):
    """Largest divisor of n such that nb*h*w stays near the target M."""
    nb = 1
    for cand in range(1, n + 1):
        if n % cand == 0 and cand * h * w <= max(target_rows, h * w):
            nb = cand
    return nb


def _vmem_budget(nb, h, w, cp):
    in_tile = nb * (h + 2) * (w + 2) * cp * 2          # bf16 input block
    res_tile = nb * h * w * cp * 4                     # f32 residual block
    out_tile = nb * h * w * cp * 2                     # bf16 output block
    w_tiles = 2 * 3 * (3 * cp) * cp * 2                # both conv weights, bf16
    bn_tiles = 4 * cp * 4
    scratch = nb * (h + 2) * (w + 2) * cp * 2          # ypad scratch, bf16
    interm = nb * h * w * (3 * cp * 2 + 2 * cp * 4)    # dw-group slab + f32 accumulators
    est = 2 * (in_tile + res_tile + out_tile + w_tiles + bn_tiles) + scratch + interm
    return int(min(64 * 1024 * 1024, max(32 * 1024 * 1024, 2 * est)))


def basic_block_pallas(x_nchw, params, eps=1e-5):
    """x_nchw: (N, C, H, W) float32, PyTorch layout.  Returns (N, C, H, W) f32."""
    w1, g1, b1, m1, v1, w2, g2, b2, m2, v2 = params
    N, Cin, H, W = x_nchw.shape
    Cout = w1.shape[0]
    # stride=1 / downsample=None BasicBlock requires inplanes == planes
    assert Cin == Cout
    Cp = ((Cin + 127) // 128) * 128                    # lane-dense channel count

    NB = _pick_nb(N, H, W)                             # images per grid step
    grid = (N // NB,)

    # NHWC, channels zero-padded to Cp.
    x_nhwc = jnp.transpose(x_nchw, (0, 2, 3, 1)).astype(jnp.float32)
    x_cpad = jnp.pad(x_nhwc, ((0, 0), (0, 0), (0, 0), (0, Cp - Cin)))
    # bf16 spatially-padded conv input (halo of 1); exact f32 residual input.
    xpad = jnp.pad(x_cpad, ((0, 0), (1, 1), (1, 1), (0, 0))).astype(jnp.bfloat16)
    res = x_cpad.reshape(N, H * W, Cp)                 # f32, lane-dense, unsliced

    w1k = _prep_weight(w1, Cin, Cout, Cp)              # (3, 3*Cp, Cp) bf16
    w2k = _prep_weight(w2, Cout, Cout, Cp)
    s1, t1 = _fold_bn(g1, b1, m1, v1, eps, Cp)         # (1, Cp) f32
    s2, t2 = _fold_bn(g2, b2, m2, v2, eps, Cp)

    grid_spec = pltpu.PrefetchScalarGridSpec(
        num_scalar_prefetch=0,
        grid=grid,  # NB images per step; whole working set fits VMEM
        in_specs=[
            pl.BlockSpec((NB, H + 2, W + 2, Cp), lambda n: (n, 0, 0, 0)),
            pl.BlockSpec((NB, H * W, Cp), lambda n: (n, 0, 0)),
            pl.BlockSpec((3, 3 * Cp, Cp), lambda n: (0, 0, 0)),
            pl.BlockSpec((1, Cp), lambda n: (0, 0)),
            pl.BlockSpec((1, Cp), lambda n: (0, 0)),
            pl.BlockSpec((3, 3 * Cp, Cp), lambda n: (0, 0, 0)),
            pl.BlockSpec((1, Cp), lambda n: (0, 0)),
            pl.BlockSpec((1, Cp), lambda n: (0, 0)),
        ],
        out_specs=pl.BlockSpec((NB, H * W, Cp), lambda n: (n, 0, 0)),
        scratch_shapes=[pltpu.VMEM((NB, H + 2, W + 2, Cp), jnp.bfloat16)],
    )

    out = pl.pallas_call(
        basic_block_kernel,
        out_shape=jax.ShapeDtypeStruct((N, H * W, Cp), jnp.bfloat16),
        grid_spec=grid_spec,
        compiler_params=pltpu.CompilerParams(
            dimension_semantics=("parallel",),          # batch blocks are independent
            vmem_limit_bytes=_vmem_budget(NB, H, W, Cp)),
    )(xpad, res, w1k, s1, t1, w2k, s2, t2)

    out_nhwc = out.astype(jnp.float32).reshape(N, H, W, Cp)[..., :Cout]
    return jnp.transpose(out_nhwc, (0, 3, 1, 2))       # back to NCHW


def basic_block_ref(x, params, eps=1e-5):
    """Pure-JAX reference of the PyTorch forward (eval-mode BN)."""
    w1, g1, b1, m1, v1, w2, g2, b2, m2, v2 = params

    def conv(x, w):
        return jax.lax.conv_general_dilated(
            x, w, window_strides=(1, 1), padding=((1, 1), (1, 1)),
            dimension_numbers=("NCHW", "OIHW", "NCHW"),
            precision=jax.lax.Precision.HIGHEST)

    def bn(x, g, b, m, v):
        g, b, m, v = (a[None, :, None, None] for a in (g, b, m, v))
        return (x - m) / jnp.sqrt(v + eps) * g + b

    out = jax.nn.relu(bn(conv(x, w1), g1, b1, m1, v1))
    out = bn(conv(out, w2), g2, b2, m2, v2)
    return jax.nn.relu(out + x)


if __name__ == "__main__":
    # Small shapes consistent with BasicBlock(inplanes=8, planes=8, stride=1).
    N, C, H, W = 2, 8, 16, 16
    key = jax.random.PRNGKey(0)
    ks = jax.random.split(key, 11)

    x = jax.random.normal(ks[0], (N, C, H, W), jnp.float32)
    w1 = 0.1 * jax.random.normal(ks[1], (C, C, 3, 3), jnp.float32)
    g1 = 1.0 + 0.1 * jax.random.normal(ks[2], (C,), jnp.float32)
    b1 = 0.1 * jax.random.normal(ks[3], (C,), jnp.float32)
    m1 = 0.1 * jax.random.normal(ks[4], (C,), jnp.float32)
    v1 = 0.5 + jnp.abs(jax.random.normal(ks[5], (C,), jnp.float32))
    w2 = 0.1 * jax.random.normal(ks[6], (C, C, 3, 3), jnp.float32)
    g2 = 1.0 + 0.1 * jax.random.normal(ks[7], (C,), jnp.float32)
    b2 = 0.1 * jax.random.normal(ks[8], (C,), jnp.float32)
    m2 = 0.1 * jax.random.normal(ks[9], (C,), jnp.float32)
    v2 = 0.5 + jnp.abs(jax.random.normal(ks[10], (C,), jnp.float32))

    params = (w1, g1, b1, m1, v1, w2, g2, b2, m2, v2)

    out = jax.block_until_ready(basic_block_pallas(x, params))
    ref = jax.block_until_ready(basic_block_ref(x, params))
    np.testing.assert_allclose(np.asarray(out), np.asarray(ref),
                               rtol=2e-2, atol=2e-2)
    print("KERNEL_OK")
</pallas_src>

<mosaic_0001>
module attributes {stable_mosaic.version = 11 : i64} {
  func.func @basic_block_kernel(%arg0: i32, %arg1: memref<2x18x18x128xbf16, #tpu.memory_space<vmem>>, %arg2: memref<2x256x128xf32, #tpu.memory_space<vmem>>, %arg3: memref<3x384x128xbf16, #tpu.memory_space<vmem>>, %arg4: memref<1x128xf32, #tpu.memory_space<vmem>>, %arg5: memref<1x128xf32, #tpu.memory_space<vmem>>, %arg6: memref<3x384x128xbf16, #tpu.memory_space<vmem>>, %arg7: memref<1x128xf32, #tpu.memory_space<vmem>>, %arg8: memref<1x128xf32, #tpu.memory_space<vmem>>, %arg9: memref<2x256x128xbf16, #tpu.memory_space<vmem>>, %arg10: memref<2x18x18x128xbf16, #tpu.memory_space<vmem>>) attributes {dimension_semantics = [#tpu.dimension_semantics<parallel>], iteration_bounds = array<i64: 1>, scalar_prefetch = 0 : i64, scratch_operands = 1 : i64, tpu.core_type = #tpu.core_type<tc>, window_params = [{transform_indices = @transform_0, window_bounds = array<i64: 2, 18, 18, 128>}, {transform_indices = @transform_1, window_bounds = array<i64: 2, 256, 128>}, {pipeline_mode = #tpu.pipeline_mode<synchronous>, transform_indices = @transform_2, window_bounds = array<i64: 3, 384, 128>}, {pipeline_mode = #tpu.pipeline_mode<synchronous>, transform_indices = @transform_3, window_bounds = array<i64: 1, 128>}, {pipeline_mode = #tpu.pipeline_mode<synchronous>, transform_indices = @transform_4, window_bounds = array<i64: 1, 128>}, {pipeline_mode = #tpu.pipeline_mode<synchronous>, transform_indices = @transform_5, window_bounds = array<i64: 3, 384, 128>}, {pipeline_mode = #tpu.pipeline_mode<synchronous>, transform_indices = @transform_6, window_bounds = array<i64: 1, 128>}, {pipeline_mode = #tpu.pipeline_mode<synchronous>, transform_indices = @transform_7, window_bounds = array<i64: 1, 128>}, {transform_indices = @transform_8, window_bounds = array<i64: 2, 256, 128>}]} {
    %c0 = arith.constant 0 : index
    %c0_0 = arith.constant 0 : index
    %c0_1 = arith.constant 0 : index
    %c0_2 = arith.constant 0 : index
    %0 = vector.load %arg1[%c0, %c0_0, %c0_1, %c0_2] : memref<2x18x18x128xbf16, #tpu.memory_space<vmem>>, vector<2x18x18x128xbf16>
    %1 = vector.extract_strided_slice %0 {offsets = [0, 0, 0, 0], sizes = [2, 16, 16, 128], strides = [1, 1, 1, 1]} : vector<2x18x18x128xbf16> to vector<2x16x16x128xbf16>
    %2 = vector.shape_cast %1 : vector<2x16x16x128xbf16> to vector<512x128xbf16>
    %3 = vector.extract_strided_slice %0 {offsets = [0, 0, 1, 0], sizes = [2, 16, 16, 128], strides = [1, 1, 1, 1]} : vector<2x18x18x128xbf16> to vector<2x16x16x128xbf16>
    %4 = vector.shape_cast %3 : vector<2x16x16x128xbf16> to vector<512x128xbf16>
    %5 = vector.extract_strided_slice %0 {offsets = [0, 0, 2, 0], sizes = [2, 16, 16, 128], strides = [1, 1, 1, 1]} : vector<2x18x18x128xbf16> to vector<2x16x16x128xbf16>
    %6 = vector.shape_cast %5 : vector<2x16x16x128xbf16> to vector<512x128xbf16>
    %7 = tpu.concatenate %2, %4, %6 in 1 : vector<512x128xbf16>, vector<512x128xbf16>, vector<512x128xbf16> -> vector<512x384xbf16>
    %c0_3 = arith.constant 0 : index
    %c0_4 = arith.constant 0 : index
    %c0_5 = arith.constant 0 : index
    %8 = vector.load %arg3[%c0_3, %c0_4, %c0_5] : memref<3x384x128xbf16, #tpu.memory_space<vmem>>, vector<1x384x128xbf16>
    %9 = vector.shape_cast %8 : vector<1x384x128xbf16> to vector<384x128xbf16>
    %cst = arith.constant dense<0.000000e+00> : vector<512x128xf32>
    %10 = tpu.matmul %7, %9, %cst {dimension_numbers = #tpu.dot_dimension_numbers<[1], [0], [0], [1], [0, 0, 1, 1], [], []>} : vector<512x384xbf16>, vector<384x128xbf16>, vector<512x128xf32> -> vector<512x128xf32>
    %11 = vector.extract_strided_slice %0 {offsets = [0, 1, 0, 0], sizes = [2, 16, 16, 128], strides = [1, 1, 1, 1]} : vector<2x18x18x128xbf16> to vector<2x16x16x128xbf16>
    %12 = vector.shape_cast %11 : vector<2x16x16x128xbf16> to vector<512x128xbf16>
    %13 = vector.extract_strided_slice %0 {offsets = [0, 1, 1, 0], sizes = [2, 16, 16, 128], strides = [1, 1, 1, 1]} : vector<2x18x18x128xbf16> to vector<2x16x16x128xbf16>
    %14 = vector.shape_cast %13 : vector<2x16x16x128xbf16> to vector<512x128xbf16>
    %15 = vector.extract_strided_slice %0 {offsets = [0, 1, 2, 0], sizes = [2, 16, 16, 128], strides = [1, 1, 1, 1]} : vector<2x18x18x128xbf16> to vector<2x16x16x128xbf16>
    %16 = vector.shape_cast %15 : vector<2x16x16x128xbf16> to vector<512x128xbf16>
    %17 = tpu.concatenate %12, %14, %16 in 1 : vector<512x128xbf16>, vector<512x128xbf16>, vector<512x128xbf16> -> vector<512x384xbf16>
    %c1 = arith.constant 1 : index
    %c0_6 = arith.constant 0 : index
    %c0_7 = arith.constant 0 : index
    %18 = vector.load %arg3[%c1, %c0_6, %c0_7] : memref<3x384x128xbf16, #tpu.memory_space<vmem>>, vector<1x384x128xbf16>
    %19 = vector.shape_cast %18 : vector<1x384x128xbf16> to vector<384x128xbf16>
    %cst_8 = arith.constant dense<0.000000e+00> : vector<512x128xf32>
    %20 = tpu.matmul %17, %19, %cst_8 {dimension_numbers = #tpu.dot_dimension_numbers<[1], [0], [0], [1], [0, 0, 1, 1], [], []>} : vector<512x384xbf16>, vector<384x128xbf16>, vector<512x128xf32> -> vector<512x128xf32>
    %21 = arith.addf %10, %20 : vector<512x128xf32>
    %22 = vector.extract_strided_slice %0 {offsets = [0, 2, 0, 0], sizes = [2, 16, 16, 128], strides = [1, 1, 1, 1]} : vector<2x18x18x128xbf16> to vector<2x16x16x128xbf16>
    %23 = vector.shape_cast %22 : vector<2x16x16x128xbf16> to vector<512x128xbf16>
    %24 = vector.extract_strided_slice %0 {offsets = [0, 2, 1, 0], sizes = [2, 16, 16, 128], strides = [1, 1, 1, 1]} : vector<2x18x18x128xbf16> to vector<2x16x16x128xbf16>
    %25 = vector.shape_cast %24 : vector<2x16x16x128xbf16> to vector<512x128xbf16>
    %26 = vector.extract_strided_slice %0 {offsets = [0, 2, 2, 0], sizes = [2, 16, 16, 128], strides = [1, 1, 1, 1]} : vector<2x18x18x128xbf16> to vector<2x16x16x128xbf16>
    %27 = vector.shape_cast %26 : vector<2x16x16x128xbf16> to vector<512x128xbf16>
    %28 = tpu.concatenate %23, %25, %27 in 1 : vector<512x128xbf16>, vector<512x128xbf16>, vector<512x128xbf16> -> vector<512x384xbf16>
    %c2 = arith.constant 2 : index
    %c0_9 = arith.constant 0 : index
    %c0_10 = arith.constant 0 : index
    %29 = vector.load %arg3[%c2, %c0_9, %c0_10] : memref<3x384x128xbf16, #tpu.memory_space<vmem>>, vector<1x384x128xbf16>
    %30 = vector.shape_cast %29 : vector<1x384x128xbf16> to vector<384x128xbf16>
    %cst_11 = arith.constant dense<0.000000e+00> : vector<512x128xf32>
    %31 = tpu.matmul %28, %30, %cst_11 {dimension_numbers = #tpu.dot_dimension_numbers<[1], [0], [0], [1], [0, 0, 1, 1], [], []>} : vector<512x384xbf16>, vector<384x128xbf16>, vector<512x128xf32> -> vector<512x128xf32>
    %32 = arith.addf %21, %31 : vector<512x128xf32>
    %c0_12 = arith.constant 0 : index
    %c0_13 = arith.constant 0 : index
    %33 = vector.load %arg4[%c0_12, %c0_13] : memref<1x128xf32, #tpu.memory_space<vmem>>, vector<1x128xf32>
    %34 = vector.broadcast %33 : vector<1x128xf32> to vector<512x128xf32>
    %35 = arith.mulf %32, %34 : vector<512x128xf32>
    %c0_14 = arith.constant 0 : index
    %c0_15 = arith.constant 0 : index
    %36 = vector.load %arg5[%c0_14, %c0_15] : memref<1x128xf32, #tpu.memory_space<vmem>>, vector<1x128xf32>
    %37 = vector.broadcast %36 : vector<1x128xf32> to vector<512x128xf32>
    %38 = arith.addf %35, %37 : vector<512x128xf32>
    %cst_16 = arith.constant 0.000000e+00 : f32
    %39 = vector.broadcast %cst_16 : f32 to vector<512x128xf32>
    %40 = arith.maximumf %38, %39 : vector<512x128xf32>
    %41 = vector.shape_cast %40 : vector<512x128xf32> to vector<2x16x16x128xf32>
    %42 = arith.truncf %41 : vector<2x16x16x128xf32> to vector<2x16x16x128xbf16>
    %cst_17 = arith.constant 0.000000e+00 : bf16
    %43 = vector.broadcast %cst_17 : bf16 to vector<2x16x1x128xbf16>
    %44 = tpu.concatenate %43, %42, %43 in 2 : vector<2x16x1x128xbf16>, vector<2x16x16x128xbf16>, vector<2x16x1x128xbf16> -> vector<2x16x18x128xbf16>
    %cst_18 = arith.constant 0.000000e+00 : bf16
    %45 = vector.broadcast %cst_18 : bf16 to vector<2x1x18x128xbf16>
    %c0_19 = arith.constant 0 : index
    %c0_20 = arith.constant 0 : index
    %c0_21 = arith.constant 0 : index
    %c0_22 = arith.constant 0 : index
    %46 = vector.load %arg10[%c0_19, %c0_20, %c0_21, %c0_22] : memref<2x18x18x128xbf16, #tpu.memory_space<vmem>>, vector<2x1x18x128xbf16>
    tpu.vector_store %arg10[%c0_19, %c0_20, %c0_21, %c0_22], %45 {strides = array<i32>} : memref<2x18x18x128xbf16, #tpu.memory_space<vmem>>, vector<2x1x18x128xbf16>,
    %c0_23 = arith.constant 0 : index
    %c17 = arith.constant 17 : index
    %c0_24 = arith.constant 0 : index
    %c0_25 = arith.constant 0 : index
    %47 = vector.load %arg10[%c0_23, %c17, %c0_24, %c0_25] : memref<2x18x18x128xbf16, #tpu.memory_space<vmem>>, vector<2x1x18x128xbf16>
    tpu.vector_store %arg10[%c0_23, %c17, %c0_24, %c0_25], %45 {strides = array<i32>} : memref<2x18x18x128xbf16, #tpu.memory_space<vmem>>, vector<2x1x18x128xbf16>,
    %c0_26 = arith.constant 0 : index
    %c1_27 = arith.constant 1 : index
    %c0_28 = arith.constant 0 : index
    %c0_29 = arith.constant 0 : index
    %48 = vector.load %arg10[%c0_26, %c1_27, %c0_28, %c0_29] : memref<2x18x18x128xbf16, #tpu.memory_space<vmem>>, vector<2x16x18x128xbf16>
    tpu.vector_store %arg10[%c0_26, %c1_27, %c0_28, %c0_29], %44 {strides = array<i32>} : memref<2x18x18x128xbf16, #tpu.memory_space<vmem>>, vector<2x16x18x128xbf16>,
    %c0_30 = arith.constant 0 : index
    %c0_31 = arith.constant 0 : index
    %c0_32 = arith.constant 0 : index
    %c0_33 = arith.constant 0 : index
    %49 = vector.load %arg10[%c0_30, %c0_31, %c0_32, %c0_33] : memref<2x18x18x128xbf16, #tpu.memory_space<vmem>>, vector<2x18x18x128xbf16>
    %50 = vector.extract_strided_slice %49 {offsets = [0, 0, 0, 0], sizes = [2, 16, 16, 128], strides = [1, 1, 1, 1]} : vector<2x18x18x128xbf16> to vector<2x16x16x128xbf16>
    %51 = vector.shape_cast %50 : vector<2x16x16x128xbf16> to vector<512x128xbf16>
    %52 = vector.extract_strided_slice %49 {offsets = [0, 0, 1, 0], sizes = [2, 16, 16, 128], strides = [1, 1, 1, 1]} : vector<2x18x18x128xbf16> to vector<2x16x16x128xbf16>
    %53 = vector.shape_cast %52 : vector<2x16x16x128xbf16> to vector<512x128xbf16>
    %54 = vector.extract_strided_slice %49 {offsets = [0, 0, 2, 0], sizes = [2, 16, 16, 128], strides = [1, 1, 1, 1]} : vector<2x18x18x128xbf16> to vector<2x16x16x128xbf16>
    %55 = vector.shape_cast %54 : vector<2x16x16x128xbf16> to vector<512x128xbf16>
    %56 = tpu.concatenate %51, %53, %55 in 1 : vector<512x128xbf16>, vector<512x128xbf16>, vector<512x128xbf16> -> vector<512x384xbf16>
    %c0_34 = arith.constant 0 : index
    %c0_35 = arith.constant 0 : index
    %c0_36 = arith.constant 0 : index
    %57 = vector.load %arg6[%c0_34, %c0_35, %c0_36] : memref<3x384x128xbf16, #tpu.memory_space<vmem>>, vector<1x384x128xbf16>
    %58 = vector.shape_cast %57 : vector<1x384x128xbf16> to vector<384x128xbf16>
    %cst_37 = arith.constant dense<0.000000e+00> : vector<512x128xf32>
    %59 = tpu.matmul %56, %58, %cst_37 {dimension_numbers = #tpu.dot_dimension_numbers<[1], [0], [0], [1], [0, 0, 1, 1], [], []>} : vector<512x384xbf16>, vector<384x128xbf16>, vector<512x128xf32> -> vector<512x128xf32>
    %60 = vector.extract_strided_slice %49 {offsets = [0, 1, 0, 0], sizes = [2, 16, 16, 128], strides = [1, 1, 1, 1]} : vector<2x18x18x128xbf16> to vector<2x16x16x128xbf16>
    %61 = vector.shape_cast %60 : vector<2x16x16x128xbf16> to vector<512x128xbf16>
    %62 = vector.extract_strided_slice %49 {offsets = [0, 1, 1, 0], sizes = [2, 16, 16, 128], strides = [1, 1, 1, 1]} : vector<2x18x18x128xbf16> to vector<2x16x16x128xbf16>
    %63 = vector.shape_cast %62 : vector<2x16x16x128xbf16> to vector<512x128xbf16>
    %64 = vector.extract_strided_slice %49 {offsets = [0, 1, 2, 0], sizes = [2, 16, 16, 128], strides = [1, 1, 1, 1]} : vector<2x18x18x128xbf16> to vector<2x16x16x128xbf16>
    %65 = vector.shape_cast %64 : vector<2x16x16x128xbf16> to vector<512x128xbf16>
    %66 = tpu.concatenate %61, %63, %65 in 1 : vector<512x128xbf16>, vector<512x128xbf16>, vector<512x128xbf16> -> vector<512x384xbf16>
    %c1_38 = arith.constant 1 : index
    %c0_39 = arith.constant 0 : index
    %c0_40 = arith.constant 0 : index
    %67 = vector.load %arg6[%c1_38, %c0_39, %c0_40] : memref<3x384x128xbf16, #tpu.memory_space<vmem>>, vector<1x384x128xbf16>
    %68 = vector.shape_cast %67 : vector<1x384x128xbf16> to vector<384x128xbf16>
    %cst_41 = arith.constant dense<0.000000e+00> : vector<512x128xf32>
    %69 = tpu.matmul %66, %68, %cst_41 {dimension_numbers = #tpu.dot_dimension_numbers<[1], [0], [0], [1], [0, 0, 1, 1], [], []>} : vector<512x384xbf16>, vector<384x128xbf16>, vector<512x128xf32> -> vector<512x128xf32>
    %70 = arith.addf %59, %69 : vector<512x128xf32>
    %71 = vector.extract_strided_slice %49 {offsets = [0, 2, 0, 0], sizes = [2, 16, 16, 128], strides = [1, 1, 1, 1]} : vector<2x18x18x128xbf16> to vector<2x16x16x128xbf16>
    %72 = vector.shape_cast %71 : vector<2x16x16x128xbf16> to vector<512x128xbf16>
    %73 = vector.extract_strided_slice %49 {offsets = [0, 2, 1, 0], sizes = [2, 16, 16, 128], strides = [1, 1, 1, 1]} : vector<2x18x18x128xbf16> to vector<2x16x16x128xbf16>
    %74 = vector.shape_cast %73 : vector<2x16x16x128xbf16> to vector<512x128xbf16>
    %75 = vector.extract_strided_slice %49 {offsets = [0, 2, 2, 0], sizes = [2, 16, 16, 128], strides = [1, 1, 1, 1]} : vector<2x18x18x128xbf16> to vector<2x16x16x128xbf16>
    %76 = vector.shape_cast %75 : vector<2x16x16x128xbf16> to vector<512x128xbf16>
    %77 = tpu.concatenate %72, %74, %76 in 1 : vector<512x128xbf16>, vector<512x128xbf16>, vector<512x128xbf16> -> vector<512x384xbf16>
    %c2_42 = arith.constant 2 : index
    %c0_43 = arith.constant 0 : index
    %c0_44 = arith.constant 0 : index
    %78 = vector.load %arg6[%c2_42, %c0_43, %c0_44] : memref<3x384x128xbf16, #tpu.memory_space<vmem>>, vector<1x384x128xbf16>
    %79 = vector.shape_cast %78 : vector<1x384x128xbf16> to vector<384x128xbf16>
    %cst_45 = arith.constant dense<0.000000e+00> : vector<512x128xf32>
    %80 = tpu.matmul %77, %79, %cst_45 {dimension_numbers = #tpu.dot_dimension_numbers<[1], [0], [0], [1], [0, 0, 1, 1], [], []>} : vector<512x384xbf16>, vector<384x128xbf16>, vector<512x128xf32> -> vector<512x128xf32>
    %81 = arith.addf %70, %80 : vector<512x128xf32>
    %c0_46 = arith.constant 0 : index
    %c0_47 = arith.constant 0 : index
    %c0_48 = arith.constant 0 : index
    %82 = vector.load %arg2[%c0_46, %c0_47, %c0_48] : memref<2x256x128xf32, #tpu.memory_space<vmem>>, vector<2x256x128xf32>
    %83 = vector.shape_cast %82 : vector<2x256x128xf32> to vector<512x128xf32>
    %c0_49 = arith.constant 0 : index
    %c0_50 = arith.constant 0 : index
    %84 = vector.load %arg7[%c0_49, %c0_50] : memref<1x128xf32, #tpu.memory_space<vmem>>, vector<1x128xf32>
    %85 = vector.broadcast %84 : vector<1x128xf32> to vector<512x128xf32>
    %86 = arith.mulf %81, %85 : vector<512x128xf32>
    %c0_51 = arith.constant 0 : index
    %c0_52 = arith.constant 0 : index
    %87 = vector.load %arg8[%c0_51, %c0_52] : memref<1x128xf32, #tpu.memory_space<vmem>>, vector<1x128xf32>
    %88 = vector.broadcast %87 : vector<1x128xf32> to vector<512x128xf32>
    %89 = arith.addf %86, %88 : vector<512x128xf32>
    %90 = arith.addf %89, %83 : vector<512x128xf32>
    %cst_53 = arith.constant 0.000000e+00 : f32
    %91 = vector.broadcast %cst_53 : f32 to vector<512x128xf32>
    %92 = arith.maximumf %90, %91 : vector<512x128xf32>
    %93 = vector.shape_cast %92 : vector<512x128xf32> to vector<2x256x128xf32>
    %94 = arith.truncf %93 : vector<2x256x128xf32> to vector<2x256x128xbf16>
    %c0_54 = arith.constant 0 : index
    %c0_55 = arith.constant 0 : index
    %c0_56 = arith.constant 0 : index
    %95 = vector.load %arg9[%c0_54, %c0_55, %c0_56] : memref<2x256x128xbf16, #tpu.memory_space<vmem>>, vector<2x256x128xbf16>
    tpu.vector_store %arg9[%c0_54, %c0_55, %c0_56], %94 {strides = array<i32>} : memref<2x256x128xbf16, #tpu.memory_space<vmem>>, vector<2x256x128xbf16>,
    return
  }
  func.func @transform_0(%arg0: i32) -> (i32, i32, i32, i32) {
    %c0_i32 = arith.constant 0 : i32
    %c0_i32_0 = arith.constant 0 : i32
    %c0_i32_1 = arith.constant 0 : i32
    %c0_i32_2 = arith.constant 0 : i32
    return %arg0, %c0_i32, %c0_i32_0, %c0_i32_1 : i32, i32, i32, i32
  }
  func.func @transform_1(%arg0: i32) -> (i32, i32, i32) {
    %c0_i32 = arith.constant 0 : i32
    %c0_i32_0 = arith.constant 0 : i32
    %c0_i32_1 = arith.constant 0 : i32
    return %arg0, %c0_i32, %c0_i32_0 : i32, i32, i32
  }
  func.func @transform_2(%arg0: i32) -> (i32, i32, i32) {
    %c0_i32 = arith.constant 0 : i32
    %c0_i32_0 = arith.constant 0 : i32
    %c0_i32_1 = arith.constant 0 : i32
    %c0_i32_2 = arith.constant 0 : i32
    return %c0_i32, %c0_i32_0, %c0_i32_1 : i32, i32, i32
  }
  func.func @transform_3(%arg0: i32) -> (i32, i32) {
    %c0_i32 = arith.constant 0 : i32
    %c0_i32_0 = arith.constant 0 : i32
    %c0_i32_1 = arith.constant 0 : i32
    return %c0_i32, %c0_i32_0 : i32, i32
  }
  func.func @transform_4(%arg0: i32) -> (i32, i32) {
    %c0_i32 = arith.constant 0 : i32
    %c0_i32_0 = arith.constant 0 : i32
    %c0_i32_1 = arith.constant 0 : i32
    return %c0_i32, %c0_i32_0 : i32, i32
  }
  func.func @transform_5(%arg0: i32) -> (i32, i32, i32) {
    %c0_i32 = arith.constant 0 : i32
    %c0_i32_0 = arith.constant 0 : i32
    %c0_i32_1 = arith.constant 0 : i32
    %c0_i32_2 = arith.constant 0 : i32
    return %c0_i32, %c0_i32_0, %c0_i32_1 : i32, i32, i32
  }
  func.func @transform_6(%arg0: i32) -> (i32, i32) {
    %c0_i32 = arith.constant 0 : i32
    %c0_i32_0 = arith.constant 0 : i32
    %c0_i32_1 = arith.constant 0 : i32
    return %c0_i32, %c0_i32_0 : i32, i32
  }
  func.func @transform_7(%arg0: i32) -> (i32, i32) {
    %c0_i32 = arith.constant 0 : i32
    %c0_i32_0 = arith.constant 0 : i32
    %c0_i32_1 = arith.constant 0 : i32
    return %c0_i32, %c0_i32_0 : i32, i32
  }
  func.func @transform_8(%arg0: i32) -> (i32, i32, i32) {
    %c0_i32 = arith.constant 0 : i32
    %c0_i32_0 = arith.constant 0 : i32
    %c0_i32_1 = arith.constant 0 : i32
    return %arg0, %c0_i32, %c0_i32_0 : i32, i32, i32
  }
}

</mosaic_0001>

<bundles_post_ra>
// kernel: tpu_custom_call.1
= control target key start
LH: loop header
LB: loop body
LE: loop exit
PB: predicated region body
PF: predicated region fallthrough
CT: control target
= control target key end

     0   :  { %13 = vsyncpa [#allocation4], 0  ;;  %s18153_s0 = inlined_call_operand.vmem [shape: bf16[2,18,18,128], index: 0, kind: input, shape index: {}]   ;;  %s18154_s1 = inlined_call_operand.hbm [shape: f32[2,256,128], index: 1, kind: input, shape index: {}]   ;;  %s18155_s2 = inlined_call_operand.vmem [shape: bf16[3,384,128], index: 2, kind: input, shape index: {}]   ;;  %s18156_s3 = inlined_call_operand.vmem [shape: f32[1,128], index: 3, kind: input, shape index: {}]   ;;  %s18157_s4 = inlined_call_operand.vmem [shape: f32[1,128], index: 4, kind: input, shape index: {}]   ;;  %s18158_s5 = inlined_call_operand.hbm [shape: bf16[3,384,128], index: 5, kind: input, shape index: {}]   ;;  %s18159_s6 = inlined_call_operand.vmem [shape: f32[1,128], index: 6, kind: input, shape index: {}]   ;;  %s18160_s7 = inlined_call_operand.vmem [shape: f32[1,128], index: 7, kind: input, shape index: {}]   ;;  %s18161_s8 = inlined_call_operand.hbm [shape: bf16[2,256,128], index: 8, kind: output, shape index: {}]  }
   0x1   :  { %14 = vsyncpa [#allocation7], 0 }
   0x2   :  { %15 = vsyncpa [#allocation5], 0  ;;  %s12115_s27 = smov [#allocation3]   ;;  %s12043_s9 = scalar_lea.hbm %s18154_s1, 8192 }
   0x3   :  { %s23_s28 = sshll.u32 %s12115_s27, 4  ;;  %p12044_p0 = scmp.ne.s32.totalorder %s18154_s1, %s12043_s9  ;;  %s24_s28 = int_to_ptr.vmem [resolvable:$true] %s23_s28 }
   0x4   :  { %p12047_p1 = scmp.lt.u32.totalorder %s12043_s9, %s18154_s1 }
   0x6   :  { %p12049_p2 = pnand %p12047_p1, %p12044_p0 }
   0x8   :  { %12052 = shalt.err (!%p12049_p2)
}
   0x9   :  { %s12053_s14 = scalar_lea.vmem %s24_s28, 8192  ;;  %p12058_p4 = scmp.lt.s32.totalorder %s24_s28, %s24_s28 }
   0xa   :  { %p12054_p3 = scmp.ne.s32.totalorder %s24_s28, %s12053_s14  ;;  %p12059_p5 = scmp.lt.s32.totalorder %s12053_s14, %s12053_s14 }
   0xc   :  { %p12060_p6 = por %p12059_p5, %p12058_p4 }
   0xe   :  { %p12061_p7 = pnand %p12060_p6, %p12054_p3 }
  0x10   :  { %12064 = shalt.err (!%p12061_p7)
}
  0x11   :  { %s12116_s15 = smov 128   ;;  %s12117_s16 = smov 8  }
  0x12   :  { %29 = dma.hbm_to_vmem [thread:$0]  %s18154_s1, 8192, %s24_s28, [#allocation4], %s12116_s15, %s12116_s15, %s12117_s16  }
  0x13   :  { %s12118_s19 = smov [#allocation6]   ;;  %s12065_s23 = scalar_lea.hbm %s18158_s5, 9216 }
  0x14   :  { %s41_s20 = sshll.u32 %s12118_s19, 4  ;;  %p12066_p8 = scmp.ne.s32.totalorder %s18158_s5, %s12065_s23  ;;  %s42_s20 = int_to_ptr.vmem [resolvable:$true] %s41_s20 }
  0x15   :  { %p12069_p9 = scmp.lt.u32.totalorder %s12065_s23, %s18158_s5 }
  0x17   :  { %p12071_p10 = pnand %p12069_p9, %p12066_p8 }
  0x19   :  { %12074 = shalt.err (!%p12071_p10)
}
  0x1a   :  { %s12075_s29 = scalar_lea.vmem %s42_s20, 9216  ;;  %p12080_p12 = scmp.lt.s32.totalorder %s42_s20, %s42_s20 }
  0x1b   :  { %p12076_p11 = scmp.ne.s32.totalorder %s42_s20, %s12075_s29  ;;  %p12081_p13 = scmp.lt.s32.totalorder %s12075_s29, %s12075_s29 }
  0x1d   :  { %p12082_p0 = por %p12081_p13, %p12080_p12 }
  0x1f   :  { %p12083_p1 = pnand %p12082_p0, %p12076_p11 }
  0x21   :  { %12086 = shalt.err (!%p12083_p1)
}
  0x22   :  { %s12119_s1 = smov 64   ;;  %s12120_s28 = smov 4  }
  0x23   :  { %47 = dma.hbm_to_vmem [thread:$0]  %s18158_s5, 9216, %s42_s20, [#allocation7], %s12119_s1, %s12119_s1, %s12120_s28  }
  0x24   :  { %12109 = dma.done.wait [#allocation4], 8192  }
  0x25   :  { %12110 = vsyncadd [#allocation4], 4294959104 }
  0x26   :  { %12111 = dma.done.wait [#allocation7], 9216  }
  0x27   :  { %12112 = vsyncadd [#allocation7], 4294958080  ;;  %v18162_v0 = vmov 0   ;;  %v11747_v1 = vld [vmem:[%s18155_s2 + $0xc0] sm:$0xff]   ;;  %v11749_v3 = vld [vmem:[%s18155_s2 + $0xc8] sm:$0xff]   ;;  %vm1034_vm0 = vcmask 1042432  }
  0x28   :  { %1978 = vmatprep.subr.bf16.mxu0 %v18162_v0  ;;  %4798 = vst [vmem:[#allocation2] sm:$0xf] %v18162_v0  ;;  %4799 = vst [vmem:[#allocation2 + $0x4] sm:$0xf] %v18162_v0  ;;  %v11748_v2 = vld [vmem:[%s18155_s2 + $0x140] sm:$0xff]   ;;  %v11750_v4 = vld [vmem:[%s18155_s2 + $0x148] sm:$0xff]  }
  0x29   :  { %4800 = vst [vmem:[#allocation2 + $0x8] sm:$0x1] %v18162_v0  ;;  %4801 = vst [vmem:[#allocation2 + $0xd8] sm:$0xf] %v18162_v0  ;;  %1979 = vmatpush1.bf16.msra.mxu0 %v11747_v1  ;;  %11259 = vmatprep.subr.bf16.mxu1 %v11748_v2  ;;  %v11752_v5 = vld [vmem:[%s18155_s2 + $0x150] sm:$0xff]   ;;  %v11754_v7 = vld [vmem:[%s18155_s2 + $0x158] sm:$0xff]  }
  0x2a   :  { %4802 = vst [vmem:[#allocation2 + $0xdc] sm:$0xf] %v18162_v0  ;;  %4803 = vst [vmem:[#allocation2 + $0xe0] sm:$0x1] %v18162_v0  ;;  %1980 = vmatprep.subr.bf16.mxu0 %v18162_v0  ;;  %11260 = vmatpush3.bf16.msra.mxu1 %v11748_v2  ;;  %v11751_v6 = vld [vmem:[%s18155_s2 + $0xd0] sm:$0xff]   ;;  %v11753_v8 = vld [vmem:[%s18155_s2 + $0xd8] sm:$0xff]  }
  0x2b   :  { %4805 = vst [vmem:[#allocation2 + $0xcc] sm:$0xf] %v18162_v0  ;;  %4806 = vst [vmem:[#allocation2 + $0xd0] sm:$0xf] %v18162_v0  ;;  %11261 = vmatprep.subr.bf16.mxu1 %v11750_v4  ;;  %vm1035_vm1 = vcmask 1046532   ;;  %v11756_v9 = vld [vmem:[%s18155_s2 + $0x160] sm:$0xff]  }
  0x2c   :  { %4807 = vst [vmem:[#allocation2 + $0xd4] sm:$0x1] %v18162_v0  ;;  %4808 = vst [vmem:[#allocation2 + $0x1a4] sm:$0xf] %v18162_v0  ;;  %v11755_v10 = vld [vmem:[%s18155_s2 + $0xe0] sm:$0xff]   ;;  %v18500_v11 = vmov 0 }
  0x2d   :  { %4809 = vst [vmem:[#allocation2 + $0x1a8] sm:$0xf] %v18162_v0  ;;  %4810 = vst [vmem:[#allocation2 + $0x1ac] sm:$0x1] %v18162_v0  ;;  %1981 = vmatpush1.bf16.msra.mxu0 %v11749_v3  ;;  %v12249_v12 = vld [vmem:[%s18153_s0 + $0xc] sm:$0xf] }
  0x2e   :  { %1982 = vmatprep.subr.bf16.mxu0 %v18162_v0  ;;  %11262 = vmatpush3.bf16.msra.mxu1 %v11750_v4  ;;  %vm12242_vm2 = vmor %vm1034_vm0, %vm1035_vm1  ;;  %v12254_v13 = vld [vmem:[%s18153_s0 + $0x10] sm:$0xf]  ;;  %v12259_v14 = vld [vmem:[%s18153_s0 + $0x14] sm:$0x1]  ;;  %v10073_v16 = vrot.slane %v12249_v12, 9  ;;  %vm4731_vm6 = vcmask 1040384  }
  0x2f   :  { %11263 = vmatprep.subr.bf16.mxu1 %v11752_v5  ;;  %v18501_v11 = vsel %vm12242_vm2, 4294967295, %v18500_v11  ;;  %v11758_v15 = vld [vmem:[%s18155_s2 + $0x168] sm:$0xff]   ;;  %v1046_v17 = vrot.slane %v12254_v13, 5  ;;  %v1049_v18 = vrot.slane %v12259_v14, 5  ;;  %v12273_v20 = vld [vmem:[%s18153_s0 + $0x1c] sm:$0xf] }
  0x30   :  { %18502 = vst [vmem:[#allocation12_spill] sm:$0xff] %v18501_v11  ;;  %v11757_v19 = vld [vmem:[%s18155_s2 + $0xe8] sm:$0xff]   ;;  %v12281_v23 = vld [vmem:[%s18153_s0 + $0x18] sm:$0xf]  ;;  %v1053_v24 = vrot.slane %v12273_v20, 5  ;;  %v11759_v25 = vld [vmem:[%s18155_s2 + $0xf0] sm:$0xff]  }
  0x31   :  { %1983 = vmatpush1.bf16.msra.mxu0 %v11751_v6  ;;  %v1047_v21 = vsel %vm12242_vm2, %v10073_v16, %v1046_v17  ;;  %v1048_v22 = vrot.slane %v1046_v17, 4  ;;  %v12290_v26 = vld [vmem:[%s18153_s0 + $0x20] sm:$0x1]  ;;  %v11760_v27 = vld [vmem:[%s18155_s2 + $0x170] sm:$0xff]   ;;  %v12300_v29 = vld [vmem:[%s18153_s0 + $0x24] sm:$0xf] }
  0x32   :  { %1984 = vmatprep.subr.bf16.mxu0 %v18162_v0  ;;  %11264 = vmatpush3.bf16.msra.mxu1 %v11752_v5  ;;  %v12305_v30 = vld [vmem:[%s18153_s0 + $0x28] sm:$0xf]  ;;  %v10074_v32 = vrot.slane %v12281_v23, 9  ;;  %v12313_v33 = vld [vmem:[%s18153_s0 + $0x2c] sm:$0x1]  ;;  %v11762_v35 = vld [vmem:[%s18155_s2 + $0x178] sm:$0xff]  }
  0x33   :  { %11265 = vmatprep.subr.bf16.mxu1 %v11754_v7  ;;  %v1050_v28 = vsel %vm12242_vm2, %v1048_v22, %v1049_v18  ;;  %v1060_v34 = vrot.slane %v12305_v30, 5  ;;  %v1055_v36 = vrot.slane %v1053_v24, 4  ;;  %v1056_v37 = vrot.slane %v12290_v26, 5  ;;  %v11761_v40 = vld [vmem:[%s18155_s2 + $0xf8] sm:$0xff]   ;;  %v12330_v41 = vld [vmem:[%s18153_s0 + $0x30] sm:$0xf] }
  0x34   :  { %v12307_v31 = vcombine.low %v1047_v21, %v1050_v28  ;;  %v10075_v38 = vrot.slane %v12300_v29, 9  ;;  %v1063_v39 = vrot.slane %v12313_v33, 5  ;;  %v12335_v42 = vld [vmem:[%s18153_s0 + $0x34] sm:$0xf]  ;;  %v12340_v43 = vld [vmem:[%s18153_s0 + $0x38] sm:$0x1]  ;;  %v1054_v49 = vsel %vm12242_vm2, %v10074_v32, %v1053_v24 }
  0x35   :  { %1985 = vmatpush1.bf16.msra.mxu0 %v11753_v8  ;;  %v1062_v44 = vrot.slane %v1060_v34, 4  ;;  %v1067_v45 = vrot.slane %v12335_v42, 5  ;;  %v12346_v46 = vld [vmem:[%s18153_s0 + $0x3c] sm:$0xf]  ;;  %v12351_v47 = vld [vmem:[%s18153_s0 + $0x40] sm:$0xf]  ;;  %v1057_v50 = vsel %vm12242_vm2, %v1055_v36, %v1056_v37 }
  0x36   :  { %1986 = vmatprep.subr.bf16.mxu0 %v18162_v0  ;;  %11266 = vmatpush3.bf16.msra.mxu1 %v11754_v7  ;;  %18503 = vst [vmem:[#allocation13_spill] sm:$0xff] %v12307_v31  ;;  %v12356_v48 = vld [vmem:[%s18153_s0 + $0x44] sm:$0x1]  ;;  %v1061_v51 = vsel %vm12242_vm2, %v10075_v38, %v1060_v34  ;;  %v10076_v52 = vrot.slane %v12330_v41, 9  ;;  %v1070_v53 = vrot.slane %v12340_v43, 5  ;;  %v1074_v54 = vrot.slane %v12351_v47, 5 }
  0x37   :  { %11267 = vmatprep.subr.bf16.mxu1 %v11756_v9  ;;  %11275 = vmatprep.mubr.bf16.mxu1 %v12307_v31  ;;  %v12371_v55 = vld [vmem:[%s18153_s0 + $0x4c] sm:$0xf]  ;;  %v11763_v56 = vld [vmem:[%s18155_s2 + $0x100] sm:$0xff]   ;;  %v1064_v57 = vsel %vm12242_vm2, %v1062_v44, %v1063_v39  ;;  %v1069_v58 = vrot.slane %v1067_v45, 4  ;;  %v10077_v59 = vrot.slane %v12346_v46, 9  ;;  %v1077_v60 = vrot.slane %v12356_v48, 5 }
  0x38   :  { %v12383_v61 = vld [vmem:[%s18153_s0 + $0x48] sm:$0xf]  ;;  %v12388_v62 = vld [vmem:[%s18153_s0 + $0x50] sm:$0x1]  ;;  %vm167_vm3 = vsmask.f32 3328  ;;  %v12391_v63 = vcombine.low %v1054_v49, %v1057_v50  ;;  %v12407_v6 = vcombine.low %v1061_v51, %v1064_v57  ;;  %v1068_v8 = vsel %vm12242_vm2, %v10076_v52, %v1067_v45 }
  0x39   :  { %1987 = vmatpush1.bf16.msra.mxu0 %v11755_v10  ;;  %v1076_v1 = vrot.slane %v1074_v54, 4  ;;  %v1081_v2 = vrot.slane %v12371_v55, 5  ;;  %v12397_v3 = vld [vmem:[%s18153_s0 + $0x54] sm:$0xf]  ;;  %v12402_v4 = vld [vmem:[%s18153_s0 + $0x58] sm:$0xf]  ;;  %v1071_v16 = vsel %vm12242_vm2, %v1069_v58, %v1070_v53  ;;  %v1075_v17 = vsel %vm12242_vm2, %v10077_v59, %v1074_v54 }
  0x3a   :  { %1988 = vmatprep.subr.bf16.mxu0 %v18162_v0  ;;  %11268 = vmatpush3.bf16.msra.mxu1 %v11756_v9  ;;  %18504 = vst [vmem:[#allocation14_spill] sm:$0xff] %v12391_v63  ;;  %v11764_v5 = vld [vmem:[%s18155_s2 + $0x108] sm:$0xff]   ;;  %18505 = vst [vmem:[#allocation15_spill] sm:$0xff] %v12407_v6  ;;  %vm168_vm4 = vsmask.f32 7440  ;;  %v12411_v7 = vcombine.low %v12397_v3, %v12402_v4  ;;  %v1088_v10 = vrot.slane %v12402_v4, 5  ;;  %v12463_v44 = vcombine.low %v12249_v12, %v12254_v13 }
  0x3b   :  { %11269 = vmatprep.subr.bf16.mxu1 %v11758_v15  ;;  %v12418_v9 = vld [vmem:[%s18153_s0 + $0x5c] sm:$0x1]  ;;  %v10078_v18 = vrot.slane %v12383_v61, 9  ;;  %v12432_v21 = vld [vmem:[%s18153_s0 + $0x60] sm:$0xf]  ;;  %v1078_v24 = vsel %vm12242_vm2, %v1076_v1, %v1077_v60  ;;  %v11765_v32 = vld [vmem:[%s18155_s2 + $0x110] sm:$0xff]   ;;  %v12473_v53 = vcombine.low %v1068_v8, %v1071_v16 }
  0x3c   :  { %18506 = vst [vmem:[#allocation16_spill] sm:$0xff] %v12411_v7  ;;  %v12437_v22 = vld [vmem:[%s18153_s0 + $0x64] sm:$0xf]  ;;  %v1091_v34 = vrot.slane %v12418_v9, 5  ;;  %v198_v36 = vshll.u32 %v12249_v12, 16  ;;  %v204_v37 = vshll.u32 %v12254_v13, 16  ;;  %v12475_v54 = vcombine.low %v1075_v17, %v1078_v24  ;;  %vm12498_vm5 = vmor %vm167_vm3, %vm168_vm4 }
  0x3d   :  { %1989 = vmatpush1.bf16.msra.mxu0 %v11757_v19  ;;  %v1084_v19 = vrot.slane %v12388_v62, 5  ;;  %v12446_v28 = vcombine.low %v12432_v21, %v12437_v22  ;;  %v1090_v38 = vrot.slane %v1088_v10, 4  ;;  %v12458_v39 = vld [vmem:[%s18153_s0 + $0x68] sm:$0x1]  ;;  %v12468_v45 = vld [vmem:[%s18153_s0 + $0x70] sm:$0xf] }
  0x3e   :  { %1990 = vmatprep.subr.bf16.mxu0 %v18162_v0  ;;  %11270 = vmatpush3.bf16.msra.mxu1 %v11758_v15  ;;  %v195_v15 = vshrl.u32 %v12249_v12, 16  ;;  %v1095_v49 = vrot.slane %v12437_v22, 5  ;;  %v200_v50 = vrot.slane %v198_v36, 5  ;;  %v206_v51 = vrot.slane %v204_v37, 5  ;;  %18508 = vst [vmem:[#allocation18_spill] sm:$0xff] %v12473_v53  ;;  %18509 = vst [vmem:[#allocation19_spill] sm:$0xff] %v12475_v54 }
  0x3f   :  { %11271 = vmatprep.subr.bf16.mxu1 %v11760_v27  ;;  %18507 = vst [vmem:[#allocation17_spill] sm:$0xff] %v12446_v28  ;;  %v214_v52 = vshll.u32 %v12259_v14, 16  ;;  %v1082_v12 = vsel %vm12242_vm2, %v10078_v18, %v1081_v2  ;;  %v11766_v57 = vld [vmem:[%s18155_s2 + $0x118] sm:$0xff]   ;;  %v10080_v14 = vrot.slane %v12432_v21, 9  ;;  %v12489_v59 = vld [vmem:[%s18153_s0 + $0x6c] sm:$0xf] }
  0x40   :  { %v1102_v60 = vrot.slane %v12468_v45, 5  ;;  %v219_v1 = vshrl.u32 %v12281_v23, 16  ;;  %v18510_v8 = vmov 0  ;;  %v12505_v17 = vld [vmem:[%s18153_s0 + $0x74] sm:$0x1]  ;;  %v1097_v24 = vrot.slane %v1095_v49, 4 }
  0x41   :  { %1991 = vmatpush1.bf16.msra.mxu0 %v11759_v25  ;;  %v1083_v25 = vrot.slane %v1081_v2, 4  ;;  %v18511_v8 = vsel %vm12498_vm5, 4294967295, %v18510_v8  ;;  %v216_v16 = vrot.slane %v214_v52, 5  ;;  %v10081_v36 = vrot.slane %v12489_v59, 9  ;;  %v11767_v37 = vld [vmem:[%s18155_s2 + $0x120] sm:$0xff]  }
  0x42   :  { %1992 = vmatprep.subr.bf16.mxu0 %v18162_v0  ;;  %11272 = vmatpush3.bf16.msra.mxu1 %v11760_v27  ;;  %v10079_v27 = vrot.slane %v12397_v3, 9  ;;  %18512 = vst [vmem:[#allocation20_spill] sm:$0xff] %v18511_v8  ;;  %v12535_v52 = vld [vmem:[%s18153_s0 + $0x78] sm:$0xf]  ;;  %vm4732_vm7 = vsmask.f32 256 }
  0x43   :  { %11273 = vmatprep.subr.bf16.mxu1 %v11762_v35  ;;  %v1085_v2 = vsel %vm12242_vm2, %v1083_v25, %v1084_v19  ;;  %v1092_v19 = vsel %vm12242_vm2, %v1090_v38, %v1091_v34  ;;  %v11775_v34 = vld [vmem:[%s18155_s2 + $0x8] sm:$0xff]   ;;  %vm15180_vm8 = vmand %vm4731_vm6, %vm4732_vm7 }
  0x44   :  { %v1089_v18 = vsel %vm12242_vm2, %v10079_v27, %v1088_v10  ;;  %v222_v10 = vshll.u32 %v12281_v23, 16  ;;  %v228_v27 = vshll.u32 %v12273_v20, 16 }
  0x45   :  { %1993 = vmatpush1.bf16.msra.mxu0 %v11761_v40  ;;  %v208_v40 = vshrl.u32 %v12254_v13, 16 }
  0x46   :  { %1994 = vmatprep.subr.bf16.mxu0 %v18162_v0  ;;  %11274 = vmatpush3.bf16.msra.mxu1 %v11762_v35  ;;  %v197_v35 = vrot.slane %v195_v15, 4 }
  0x47   :  { %2700 = vmatprep.subr.bf16.mxu1 %v18162_v0  ;;  %v210_v13 = vrot.slane %v208_v40, 4  ;;  %v1104_v40 = vrot.slane %v1102_v60, 4 }
  0x48   :  { %v201_v58 = vor.u32 %v200_v50, %v197_v35  ;;  %v12514_v35 = vld [vmem:[%s18153_s0 + $0x7c] sm:$0xf]  ;;  %v1105_v50 = vrot.slane %v12505_v17, 5 }
  0x49   :  { %1995 = vmatpush1.bf16.msra.mxu0 %v11763_v56  ;;  %11276 = vmatmul.mubr.bf16.vlgmr.msra.gmra.mrb[0].mxu1 %v12391_v63  ;;  %v11773_v56 = vld [vmem:[%s18155_s2] sm:$0xff]   ;;  %v211_v15 = vor.u32 %v210_v13, %v206_v51  ;;  %v221_v13 = vrot.slane %v219_v1, 4  ;;  %v12549_v1 = vcombine.low %v1082_v12, %v1085_v2  ;;  %v12570_v12 = vld [vmem:[%s18153_s0 + $0x8c] sm:$0x1]  ;;  %v12578_v2 = vrot.slane %v228_v27, 5 }
  0x4a   :  { %1996 = vmatprep.subr.bf16.mxu0 %v18162_v0  ;;  %11279 = vmatprep.mubr.bf16.mxu1 %v12407_v6  ;;  %v202_v25 = vrot.slane %v201_v58, 4  ;;  %v12542_v58 = vld [vmem:[%s18153_s0 + $0x80] sm:$0x1]  ;;  %18518 = vst [vmem:[#allocation26_spill] sm:$0xff] %v12570_v12  ;;  %v11768_v27 = vld [vmem:[%s18155_s2 + $0x128] sm:$0xff]   ;;  %v12628_v63 = vcombine.low %v12300_v29, %v12305_v30 }
  0x4b   :  { %2701 = vmatpush1.bf16.msra.mxu1 %v11773_v56  ;;  %18513 = vst [vmem:[#allocation21_spill] sm:$0xff] %v12542_v58  ;;  %18514 = vst [vmem:[#allocation22_spill] sm:$0xff] %v12549_v1 }
  0x4c   :  { %2702 = vmatprep.subr.bf16.mxu1 %v18162_v0  ;;  %v207_v38 = vsel %vm12498_vm5, %v202_v25, %v206_v51  ;;  %v224_v51 = vrot.slane %v222_v10, 5  ;;  %v232_v25 = vshrl.u32 %v12273_v20, 16  ;;  %v12565_v10 = vld [vmem:[%s18153_s0 + $0x88] sm:$0xf]  ;;  %18524 = vst [vmem:[#allocation30_spill] sm:$0xff] %v12628_v63 }
  0x4d   :  { %1997 = vmatpush1.bf16.msra.mxu0 %v11764_v5  ;;  %v1098_v5 = vrot.slane %v12458_v39, 5  ;;  %18517 = vst [vmem:[#allocation25_spill] sm:$0xff] %v12565_v10 }
  0x4e   :  { %1998 = vmatprep.subr.bf16.mxu0 %v18162_v0 }
  0x4f   :  { %2703 = vmatpush1.bf16.msra.mxu1 %v11775_v34  ;;  %v234_v34 = vrot.slane %v232_v25, 4 }
  0x51   :  { %1999 = vmatpush1.bf16.msra.mxu0 %v11765_v32  ;;  %11280 = vmatmul.mubr.bf16.gmra.mrb[4].mxu1 %v12473_v53  ;;  %v212_v32 = vrot.slane %v211_v15, 4  ;;  %v10082_v15 = vrot.slane %v12535_v52, 9  ;;  %v225_v53 = vor.u32 %v224_v51, %v221_v13  ;;  %v238_v13 = vshll.u32 %v12290_v26, 16 }
  0x52   :  { %2000 = vmatprep.subr.bf16.mxu0 %v18162_v0  ;;  %11283 = vmatprep.mubr.bf16.mxu1 %v12475_v54  ;;  %v11777_v0 = vld [vmem:[%s18155_s2 + $0x10] sm:$0xff]   ;;  %v243_v51 = vshrl.u32 %v12300_v29, 16 }
  0x53   :  { %v217_v56 = vsel %vm12498_vm5, %v212_v32, %v216_v16  ;;  %v12555_v16 = vcombine.low %v12281_v23, %v12273_v20  ;;  %v12560_v32 = vld [vmem:[%s18153_s0 + $0x84] sm:$0xf]  ;;  %v12574_v20 = vcombine.low %v1089_v18, %v1092_v19  ;;  %v1096_v23 = vsel %vm12242_vm2, %v10080_v14, %v1095_v49  ;;  %v12589_v18 = vld [vmem:[%s18153_s0 + $0x90] sm:$0xf]  ;;  %v12594_v49 = vld [vmem:[%s18153_s0 + $0x94] sm:$0xf] }
  0x54   :  { %v12551_v54 = vcombine.low %v207_v38, %v217_v56  ;;  %v1099_v38 = vsel %vm12242_vm2, %v1097_v24, %v1098_v5  ;;  %v1103_v56 = vsel %vm12242_vm2, %v10081_v36, %v1102_v60  ;;  %18521 = vst [vmem:[#allocation28_spill] sm:$0xff] %v12589_v18  ;;  %18522 = vst [vmem:[#allocation29_spill] sm:$0xff] %v12594_v49  ;;  %v18523_v5 = vrot.slane %v12514_v35, 5  ;;  %v11779_v36 = vld [vmem:[%s18155_s2 + $0x18] sm:$0xff]  }
  0x55   :  { %2001 = vmatpush1.bf16.msra.mxu0 %v11766_v57  ;;  %18516 = vst [vmem:[#allocation24_spill] sm:$0xff] %v12555_v16  ;;  %v18519_v57 = vmov 0   ;;  %18520 = vst [vmem:[#allocation27_spill] sm:$0xff] %v12574_v20  ;;  %v1106_v14 = vsel %vm12242_vm2, %v1104_v40, %v1105_v50  ;;  %v1112_v60 = vrot.slane %v12542_v58, 5  ;;  %v1116_v24 = vrot.slane %v12565_v10, 5 }
  0x56   :  { %18515 = vst [vmem:[#allocation23_spill] sm:$0xff] %v12551_v54  ;;  %2704 = vmatprep.subr.bf16.mxu1 %v18519_v57  ;;  %2002 = vmatprep.subr.bf16.mxu0 %v18519_v57  ;;  %v1111_v19 = vrot.slane %v18523_v5, 4  ;;  %v10083_v40 = vrot.slane %v12560_v32, 9  ;;  %v1119_v50 = vrot.slane %v12570_v12, 5  ;;  %v10084_v26 = vrot.slane %v12589_v18, 9 }
  0x57   :  { %2010 = vmatprep.mubr.bf16.mxu0 %v12551_v54  ;;  %2705 = vmatpush1.bf16.msra.mxu1 %v11777_v0  ;;  %v235_v0 = vor.u32 %v234_v34, %v12578_v2  ;;  %v1123_v25 = vrot.slane %v12594_v49, 5  ;;  %v246_v5 = vshll.u32 %v12300_v29, 16  ;;  %v12623_v6 = vrot.slane %v225_v53, 4  ;;  %v12638_v53 = vld [vmem:[%s18153_s0 + $0xa0] sm:$0xf]  ;;  %v11769_v29 = vld [vmem:[%s18155_s2 + $0x130] sm:$0xff]  }
  0x58   :  { %2706 = vmatprep.subr.bf16.mxu1 %v18519_v57  ;;  %v12632_v34 = vcombine.low %v12330_v41, %v12335_v42  ;;  %v1118_v31 = vrot.slane %v1116_v24, 4  ;;  %v245_v54 = vrot.slane %v243_v51, 4  ;;  %v256_v49 = vshrl.u32 %v12305_v30, 16 }
  0x59   :  { %2003 = vmatpush1.bf16.msra.mxu0 %v11767_v37  ;;  %11284 = vmatmul.mubr.bf16.gmra.mrb[8].mxu1 %v12549_v1  ;;  %v97_v37 = vld [vmem:[%s18153_s0 + $0x98] sm:$0x1]  ;;  %v252_v1 = vshll.u32 %v12305_v30, 16  ;;  %v248_v18 = vrot.slane %v246_v5, 5  ;;  %v12645_v28 = vcombine.low %v1103_v56, %v1106_v14  ;;  %v240_v12 = vrot.slane %v238_v13, 5  ;;  %v11782_v30 = vld [vmem:[%s18155_s2 + $0x20] sm:$0xff]  }
  0x5a   :  { %2004 = vmatprep.subr.bf16.mxu0 %v18519_v57  ;;  %11287 = vmatprep.mubr.bf16.mxu1 %v12574_v20  ;;  %18525 = vst [vmem:[#allocation31_spill] sm:$0xff] %v12632_v34  ;;  %v12643_v20 = vcombine.low %v1096_v23, %v1099_v38  ;;  %v1126_v5 = vrot.slane %v97_v37, 5  ;;  %v258_v10 = vrot.slane %v256_v49, 4  ;;  %v11770_v23 = vld [vmem:[%s18155_s2 + $0x138] sm:$0xff]   ;;  %v18528_v38 = vrot.slane %v12514_v35, 5  ;;  %v11784_v37 = vld [vmem:[%s18155_s2 + $0x28] sm:$0xff]  }
  0x5b   :  { %2707 = vmatpush1.bf16.msra.mxu1 %v11779_v36  ;;  %18527 = vst [vmem:[#allocation33_spill] sm:$0xff] %v12645_v28  ;;  %v12647_v51 = vrot.slane %v252_v1, 5  ;;  %v236_v36 = vrot.slane %v235_v0, 4  ;;  %v1113_v56 = vsel %vm12242_vm2, %v1111_v19, %v1112_v60  ;;  %v1117_v14 = vsel %vm12242_vm2, %v10083_v40, %v1116_v24  ;;  %v12668_v13 = vld [vmem:[%s18153_s0 + $0x9c] sm:$0xf] }
  0x5c   :  { %18526 = vst [vmem:[#allocation32_spill] sm:$0xff] %v12643_v20  ;;  %2708 = vmatprep.subr.bf16.mxu1 %v18519_v57  ;;  %v1110_v1 = vsel %vm12242_vm2, %v10082_v15, %v18528_v38  ;;  %18529 = vst [vmem:[#allocation34_spill] sm:$0xff] %v12668_v13  ;;  %v100_v49 = vld [vmem:[%s18153_s0 + $0xa4] sm:$0x1]  ;;  %v1130_v0 = vrot.slane %v12638_v53, 5  ;;  %v231_v15 = vsel %vm12498_vm5, %v12623_v6, %v12578_v2  ;;  %v262_v2 = vshll.u32 %v12313_v33, 16 }
  0x5d   :  { %2005 = vmatpush1.bf16.msra.mxu0 %v11768_v27  ;;  %v1125_v27 = vrot.slane %v1123_v25, 4  ;;  %v1120_v19 = vsel %vm12242_vm2, %v1118_v31, %v1119_v50  ;;  %v1124_v60 = vsel %vm12242_vm2, %v10084_v26, %v1123_v25  ;;  %v249_v24 = vor.u32 %v248_v18, %v245_v54  ;;  %v101_v40 = vld [vmem:[%s18153_s0 + $0xa8] sm:$0xf]  ;;  %v11772_v6 = vld [vmem:[%s18155_s2 + $0x80] sm:$0xff]   ;;  %v102_v33 = vld [vmem:[%s18153_s0 + $0xac] sm:$0xf] }
  0x5e   :  { %2006 = vmatprep.subr.bf16.mxu0 %v18519_v57  ;;  %v259_v31 = vor.u32 %v258_v10, %v12647_v51  ;;  %v267_v54 = vshrl.u32 %v12330_v41, 16  ;;  %v270_v18 = vshll.u32 %v12330_v41, 16  ;;  %v241_v50 = vsel %vm12498_vm5, %v236_v36, %v240_v12  ;;  %v12709_v41 = vld [vmem:[%s18153_s0 + $0xb0] sm:$0x1] }
  0x5f   :  { %2709 = vmatpush1.bf16.msra.mxu1 %v11782_v30  ;;  %v1127_v26 = vsel %vm12242_vm2, %v1125_v27, %v1126_v5  ;;  %v10085_v10 = vrot.slane %v12668_v13, 9  ;;  %v276_v25 = vshll.u32 %v12335_v42, 16  ;;  %v1132_v53 = vrot.slane %v1130_v0, 4 }
  0x60   :  { %2710 = vmatprep.subr.bf16.mxu1 %v18519_v57  ;;  %v1133_v12 = vrot.slane %v100_v49, 5  ;;  %v272_v30 = vrot.slane %v270_v18, 5  ;;  %v12713_v36 = vcombine.low %v1110_v1, %v1113_v56  ;;  %v250_v27 = vrot.slane %v249_v24, 4  ;;  %v11781_v1 = vld [vmem:[%s18155_s2 + $0x88] sm:$0xff]  }
  0x61   :  { %2007 = vmatpush1.bf16.msra.mxu0 %v11769_v29  ;;  %11288 = vmatmul.mubr.bf16.gmra.mrb[12].mxu1 %v12643_v20  ;;  %v269_v29 = vrot.slane %v267_v54, 4  ;;  %v10086_v5 = vrot.slane %v101_v40, 9  ;;  %v280_v38 = vshrl.u32 %v12335_v42, 16  ;;  %v11786_v20 = vld [vmem:[%s18155_s2 + $0x30] sm:$0xff]   ;;  %v12719_v13 = vcombine.low %v231_v15, %v241_v50 }
  0x62   :  { %2008 = vmatprep.subr.bf16.mxu0 %v18519_v57  ;;  %11291 = vmatprep.mubr.bf16.mxu1 %v12645_v28  ;;  %18530 = vst [vmem:[#allocation35_spill] sm:$0xff] %v12713_v36  ;;  %v260_v58 = vrot.slane %v259_v31, 4  ;;  %v264_v28 = vrot.slane %v262_v2, 5  ;;  %v12721_v7 = vrot.slane %v276_v25, 5  ;;  %v12727_v42 = vcombine.low %v1117_v14, %v1120_v19  ;;  %v104_v14 = vld [vmem:[%s18153_s0 + $0xb4] sm:$0xf] }
  0x63   :  { %2711 = vmatpush1.bf16.msra.mxu1 %v11784_v37  ;;  %18531 = vst [vmem:[#allocation36_spill] sm:$0xff] %v12719_v13  ;;  %v12729_v56 = vcombine.low %v1124_v60, %v1127_v26  ;;  %v1137_v49 = vrot.slane %v102_v33, 5  ;;  %v282_v24 = vrot.slane %v280_v38, 4  ;;  %v1131_v15 = vsel %vm12242_vm2, %v10085_v10, %v1130_v0  ;;  %v106_v2 = vld [vmem:[%s18153_s0 + $0xbc] sm:$0x1] }
  0x64   :  { %2712 = vmatprep.subr.bf16.mxu1 %v18519_v57  ;;  %18532 = vst [vmem:[#allocation37_spill] sm:$0xff] %v12727_v42  ;;  %v1134_v40 = vsel %vm12242_vm2, %v1132_v53, %v1133_v12  ;;  %v1140_v37 = vrot.slane %v12709_v41, 5  ;;  %v273_v31 = vor.u32 %v272_v30, %v269_v29  ;;  %v255_v19 = vsel %vm12498_vm5, %v250_v27, %v12647_v51  ;;  %v12767_v26 = vld [vmem:[%s18153_s0 + $0xc4] sm:$0xf]  ;;  %v12782_v41 = vld [vmem:[%s18153_s0 + $0xe8] sm:$0xf] }
  0x65   :  { %2009 = vmatpush1.bf16.msra.mxu0 %v11770_v23  ;;  %18533 = vst [vmem:[#allocation38_spill] sm:$0xff] %v12729_v56  ;;  %v105_v23 = vld [vmem:[%s18153_s0 + $0xb8] sm:$0xf]  ;;  %v12748_v60 = vsel %vm12242_vm2, %v10086_v5, %v1137_v49  ;;  %v286_v0 = vshll.u32 %v12340_v43, 16  ;;  %v291_v54 = vshrl.u32 %v12346_v46, 16  ;;  %v265_v18 = vsel %vm12498_vm5, %v260_v58, %v264_v28 }
  0x66   :  { %11339 = vmatprep.subr.bf16.mxu0 %v11772_v6  ;;  %v283_v51 = vor.u32 %v282_v24, %v12721_v7  ;;  %v1144_v50 = vrot.slane %v105_v23, 5  ;;  %v12762_v43 = vld [vmem:[%s18153_s0 + $0xc0] sm:$0xf]  ;;  %v294_v28 = vshll.u32 %v12346_v46, 16  ;;  %v12776_v58 = vcombine.low %v1131_v15, %v1134_v40  ;;  %v11788_v25 = vld [vmem:[%s18155_s2 + $0x38] sm:$0xff]  }
  0x67   :  { %2713 = vmatpush1.bf16.msra.mxu1 %v11786_v20  ;;  %v12772_v20 = vld [vmem:[%s18153_s0 + $0xc8] sm:$0x1]  ;;  %v10087_v10 = vrot.slane %v104_v14, 9  ;;  %v300_v33 = vshll.u32 %v12351_v47, 16  ;;  %v12788_v53 = vrot.slane %v273_v31, 4  ;;  %v293_v12 = vrot.slane %v291_v54, 4 }
  0x68   :  { %2011 = vmatmul.mubr.bf16.vlgmr.msra.gmra.mrb[0].mxu0 %v12463_v44  ;;  %18534 = vst [vmem:[#allocation39_spill] sm:$0xff] %v12776_v58  ;;  %v296_v29 = vrot.slane %v294_v28, 5  ;;  %v304_v30 = vshrl.u32 %v12351_v47, 16  ;;  %2714 = vmatprep.subr.bf16.mxu1 %v18519_v57  ;;  %v12792_v27 = vcombine.low %v255_v19, %v265_v18  ;;  %v288_v5 = vrot.slane %v286_v0, 5  ;;  %v120_v31 = vld [vmem:[%s18153_s0 + $0xf4] sm:$0xf] }
  0x69   :  { %11340 = vmatpush3.bf16.msra.mxu0 %v11772_v6  ;;  %2018 = vmatprep.mubr.bf16.mxu0 %v12719_v13  ;;  %v1139_v6 = vrot.slane %v1137_v49, 4  ;;  %v1147_v38 = vrot.slane %v106_v2, 5  ;;  %v12794_v49 = vrot.slane %v300_v33, 5  ;;  %v284_v24 = vrot.slane %v283_v51, 4  ;;  %v116_v54 = vld [vmem:[%s18153_s0 + $0xe4] sm:$0xf] }
  0x6a   :  { %11292 = vmatmul.mubr.bf16.gmra.mrb[16].mxu1 %v12713_v36  ;;  %11341 = vmatprep.subr.bf16.mxu0 %v11781_v1  ;;  %18535 = vst [vmem:[#allocation40_spill] sm:$0xff] %v12792_v27  ;;  %v1146_v23 = vrot.slane %v1144_v50, 4  ;;  %v1749_v15 = vrot.slane %v12767_v26, 5  ;;  %v306_v40 = vrot.slane %v304_v30, 4  ;;  %v10200_v19 = vrot.slane %v12762_v43, 9  ;;  %v11790_v26 = vld [vmem:[%s18155_s2 + $0x90] sm:$0xff]  }
  0x6b   :  { %11295 = vmatprep.mubr.bf16.mxu1 %v12727_v42  ;;  %2715 = vmatpush1.bf16.msra.mxu1 %v11788_v25  ;;  %v1141_v14 = vsel %vm12242_vm2, %v1139_v6, %v1140_v37  ;;  %v1752_v0 = vrot.slane %v12772_v20, 5  ;;  %v310_v2 = vshll.u32 %v12356_v48, 16  ;;  %v1145_v18 = vsel %vm12242_vm2, %v10087_v10, %v1144_v50  ;;  %v118_v37 = vld [vmem:[%s18153_s0 + $0xec] sm:$0x1]  ;;  %v119_v48 = vld [vmem:[%s18153_s0 + $0xf0] sm:$0xf] }
  0x6c   :  { %2716 = vmatprep.subr.bf16.mxu1 %v18519_v57  ;;  %v297_v51 = vor.u32 %v296_v29, %v293_v12  ;;  %v1158_v43 = vrot.slane %v12782_v41, 5  ;;  %v121_v50 = vld [vmem:[%s18153_s0 + $0xf8] sm:$0x1]  ;;  %v1165_v20 = vrot.slane %v120_v31, 5  ;;  %v315_v28 = vshrl.u32 %v12383_v61, 16  ;;  %v11791_v10 = vld [vmem:[%s18155_s2 + $0x40] sm:$0xff]  }
  0x6d   :  { %11342 = vmatpush3.bf16.msra.mxu0 %v11781_v1  ;;  %v279_v1 = vsel %vm12498_vm5, %v12788_v53, %v12721_v7  ;;  %v307_v7 = vor.u32 %v306_v40, %v12794_v49  ;;  %v318_v6 = vshll.u32 %v12383_v61, 16  ;;  %v289_v33 = vsel %vm12498_vm5, %v284_v24, %v288_v5 }
  0x6e   :  { %v1148_v41 = vsel %vm12242_vm2, %v1146_v23, %v1147_v38  ;;  %v1751_v25 = vrot.slane %v1749_v15, 4  ;;  %v10089_v53 = vrot.slane %v116_v54, 9  ;;  %11343 = vmatprep.subr.bf16.mxu0 %v11790_v26  ;;  %v12841_v12 = vrot.slane %v310_v2, 5  ;;  %v11792_v38 = vld [vmem:[%s18155_s2 + $0x48] sm:$0xff]  }
  0x6f   :  { %v317_v29 = vrot.slane %v315_v28, 4  ;;  %v320_v30 = vrot.slane %v318_v6, 5  ;;  %v324_v40 = vshll.u32 %v12371_v55, 16  ;;  %v298_v31 = vrot.slane %v297_v51, 4  ;;  %2717 = vmatpush1.bf16.msra.mxu1 %v11791_v10 }
  0x70   :  { %2019 = vmatmul.mubr.bf16.gmra.mrb[4].mxu0 %v12555_v16  ;;  %v1161_v42 = vrot.slane %v118_v37, 5  ;;  %v10090_v5 = vrot.slane %v119_v48, 9  ;;  %v328_v24 = vshrl.u32 %v12371_v55, 16  ;;  %v308_v23 = vrot.slane %v307_v7, 4  ;;  %2718 = vmatprep.subr.bf16.mxu1 %v18519_v57 }
  0x71   :  { %2026 = vmatprep.mubr.bf16.mxu0 %v12792_v27  ;;  %11344 = vmatpush3.bf16.msra.mxu0 %v11790_v26  ;;  %v1160_v2 = vrot.slane %v1158_v43, 4  ;;  %v1167_v54 = vrot.slane %v1165_v20, 4  ;;  %v1168_v28 = vrot.slane %v121_v50, 5  ;;  %v123_v26 = vld [vmem:[%s18153_s0 + $0x100] sm:$0xf]  ;;  %v12854_v51 = vcombine.low %v12748_v60, %v1141_v14 }
  0x72   :  { %11296 = vmatmul.mubr.bf16.gmra.mrb[20].mxu1 %v12729_v56  ;;  %v12856_v37 = vcombine.low %v279_v1, %v289_v33  ;;  %v1750_v48 = vsel %vm12242_vm2, %v10200_v19, %v1749_v15  ;;  %v321_v6 = vor.u32 %v320_v30, %v317_v29  ;;  %v12860_v10 = vcombine.low %v1145_v18, %v1148_v41  ;;  %v122_v56 = vld [vmem:[%s18153_s0 + $0xfc] sm:$0xf]  ;;  %v124_v19 = vld [vmem:[%s18153_s0 + $0x104] sm:$0x1]  ;;  %v11794_v1 = vld [vmem:[%s18155_s2 + $0x50] sm:$0xff]  }
  0x73   :  { %11299 = vmatprep.mubr.bf16.mxu1 %v12776_v58  ;;  %18536 = vst [vmem:[#allocation41_spill] sm:$0xff] %v12854_v51  ;;  %v1753_v7 = vsel %vm12242_vm2, %v1751_v25, %v1752_v0  ;;  %v12864_v50 = vrot.slane %v324_v40, 5  ;;  %v330_v58 = vrot.slane %v328_v24, 4  ;;  %v303_v60 = vsel %vm12498_vm5, %v298_v31, %v12794_v49  ;;  %2719 = vmatpush1.bf16.msra.mxu1 %v11792_v38  ;;  %v125_v33 = vld [vmem:[%s18153_s0 + $0x108] sm:$0xf] }
  0x74   :  { %18537 = vst [vmem:[#allocation42_spill] sm:$0xff] %v12856_v37  ;;  %18538 = vst [vmem:[#allocation43_spill] sm:$0xff] %v12860_v10  ;;  %v1159_v15 = vsel %vm12242_vm2, %v10089_v53, %v1158_v43  ;;  %v1166_v14 = vsel %vm12242_vm2, %v10090_v5, %v1165_v20  ;;  %v1172_v0 = vrot.slane %v123_v26, 5  ;;  %v313_v49 = vsel %vm12498_vm5, %v308_v23, %v12841_v12  ;;  %v126_v41 = vld [vmem:[%s18153_s0 + $0x10c] sm:$0xf] }
  0x75   :  { %v1162_v18 = vsel %vm12242_vm2, %v1160_v2, %v1161_v42  ;;  %v1169_v43 = vsel %vm12242_vm2, %v1167_v54, %v1168_v28  ;;  %v334_v20 = vshll.u32 %v12388_v62, 16  ;;  %2720 = vmatprep.subr.bf16.mxu1 %v18519_v57  ;;  %v12899_v25 = vrot.slane %v321_v6, 4 }
  0x76   :  { %v10091_v42 = vrot.slane %v122_v56, 9  ;;  %v339_v53 = vshrl.u32 %v12397_v3, 16  ;;  %v342_v12 = vshll.u32 %v12397_v3, 16  ;;  %v331_v62 = vor.u32 %v330_v58, %v12864_v50  ;;  %v11795_v3 = vld [vmem:[%s18155_s2 + $0x58] sm:$0xff]  }
  0x77   :  { %v1175_v29 = vrot.slane %v124_v19, 5  ;;  %v348_v30 = vshll.u32 %v12402_v4, 16  ;;  %v352_v40 = vshrl.u32 %v12402_v4, 16  ;;  %v1174_v31 = vrot.slane %v1172_v0, 4  ;;  %2721 = vmatpush1.bf16.msra.mxu1 %v11794_v1  ;;  %v127_v4 = vld [vmem:[%s18153_s0 + $0x110] sm:$0x1] }
  0x78   :  { %2027 = vmatmul.mubr.bf16.gmra.mrb[8].mxu0 %v12628_v63  ;;  %v10092_v5 = vrot.slane %v125_v33, 9  ;;  %v341_v24 = vrot.slane %v339_v53, 4  ;;  %v344_v38 = vrot.slane %v342_v12, 5  ;;  %v12913_v56 = vcombine.low %v12346_v46, %v12351_v47  ;;  %2722 = vmatprep.subr.bf16.mxu1 %v18519_v57  ;;  %v128_v47 = vld [vmem:[%s18153_s0 + $0x114] sm:$0xf] }
  0x79   :  { %2034 = vmatprep.mubr.bf16.mxu0 %v12856_v37  ;;  %v12917_v58 = vcombine.low %v12383_v61, %v12371_v55  ;;  %v12922_v23 = vrot.slane %v348_v30, 5  ;;  %v354_v2 = vrot.slane %v352_v40, 4  ;;  %v12925_v54 = vcombine.low %v1750_v48, %v1753_v7  ;;  %v129_v55 = vld [vmem:[%s18153_s0 + $0x118] sm:$0xf]  ;;  %v12944_v7 = vld [vmem:[%s18153_s0 + $0x11c] sm:$0x1] }
  0x7a   :  { %11300 = vmatmul.mubr.bf16.gmra.mrb[24].mxu1 %v12854_v51  ;;  %18539 = vst [vmem:[#allocation44_spill] sm:$0xff] %v12913_v56  ;;  %v12927_v28 = vcombine.low %v303_v60, %v313_v49  ;;  %v12929_v26 = vcombine.low %v1159_v15, %v1162_v18  ;;  %v1179_v46 = vrot.slane %v126_v41, 5  ;;  %v12937_v61 = vcombine.low %v1166_v14, %v1169_v43  ;;  %v11803_v49 = vld [vmem:[%s18155_s2 + $0x98] sm:$0xff]   ;;  %v12973_v33 = vld [vmem:[%s18153_s0 + $0x124] sm:$0xf] }
  0x7b   :  { %11303 = vmatprep.mubr.bf16.mxu1 %v12860_v10  ;;  %18540 = vst [vmem:[#allocation45_spill] sm:$0xff] %v12917_v58  ;;  %18541 = vst [vmem:[#allocation46_spill] sm:$0xff] %v12925_v54  ;;  %v332_v6 = vrot.slane %v331_v62, 4  ;;  %v336_v19 = vrot.slane %v334_v20, 5  ;;  %v1173_v48 = vsel %vm12242_vm2, %v10091_v42, %v1172_v0  ;;  %v327_v60 = vsel %vm12498_vm5, %v12899_v25, %v12864_v50  ;;  %v11797_v0 = vld [vmem:[%s18155_s2 + $0x60] sm:$0xff]  }
  0x7c   :  { %18542 = vst [vmem:[#allocation47_spill] sm:$0xff] %v12927_v28  ;;  %18543 = vst [vmem:[#allocation48_spill] sm:$0xff] %v12929_v26  ;;  %v1176_v15 = vsel %vm12242_vm2, %v1174_v31, %v1175_v29  ;;  %v12954_v14 = vsel %vm12242_vm2, %v10092_v5, %v1179_v46  ;;  %v345_v1 = vor.u32 %v344_v38, %v341_v24  ;;  %2723 = vmatpush1.bf16.msra.mxu1 %v11795_v3  ;;  %v12968_v20 = vld [vmem:[%s18153_s0 + $0x120] sm:$0xf]  ;;  %v12986_v62 = vld [vmem:[%s18153_s0 + $0x130] sm:$0xf] }
  0x7d   :  { %18544 = vst [vmem:[#allocation49_spill] sm:$0xff] %v12937_v61  ;;  %v355_v50 = vor.u32 %v354_v2, %v12922_v23  ;;  %v358_v18 = vshll.u32 %v12418_v9, 16  ;;  %v1186_v43 = vrot.slane %v129_v55, 5  ;;  %v363_v41 = vshrl.u32 %v12432_v21, 16  ;;  %2724 = vmatprep.subr.bf16.mxu1 %v18519_v57  ;;  %v11809_v25 = vld [vmem:[%s18155_s2 + $0xa0] sm:$0xff]   ;;  %11345 = vmatprep.subr.bf16.mxu0 %v11803_v49  ;;  %v11798_v24 = vld [vmem:[%s18155_s2 + $0x68] sm:$0xff]  }
  0x7e   :  { %v1181_v9 = vrot.slane %v1179_v46, 4  ;;  %v1182_v42 = vrot.slane %v127_v4, 5  ;;  %v366_v53 = vshll.u32 %v12432_v21, 16  ;;  %v372_v12 = vshll.u32 %v12437_v22, 16  ;;  %v12996_v21 = vld [vmem:[%s18153_s0 + $0x128] sm:$0x1]  ;;  %11346 = vmatpush3.bf16.msra.mxu0 %v11803_v49 }
  0x7f   :  { %v337_v29 = vsel %vm12498_vm5, %v332_v6, %v336_v19  ;;  %v12991_v30 = vcombine.low %v1173_v48, %v1176_v15  ;;  %v10093_v40 = vrot.slane %v128_v47, 9  ;;  %v365_v31 = vrot.slane %v363_v41, 4  ;;  %v13001_v5 = vld [vmem:[%s18153_s0 + $0x13c] sm:$0xf]  ;;  %11347 = vmatprep.subr.bf16.mxu0 %v11809_v25 }
  0x80   :  { %2035 = vmatmul.mubr.bf16.gmra.mrb[12].mxu0 %v12632_v34  ;;  %v346_v38 = vrot.slane %v345_v1, 4  ;;  %v1189_v3 = vrot.slane %v12944_v7, 5  ;;  %v18200_v4 = vrot.slane %v12973_v33, 5  ;;  %v368_v2 = vrot.slane %v366_v53, 5  ;;  %2725 = vmatpush1.bf16.msra.mxu1 %v11797_v0  ;;  %v134_v1 = vld [vmem:[%s18153_s0 + $0x12c] sm:$0xf] }
  0x81   :  { %2042 = vmatprep.mubr.bf16.mxu0 %v12927_v28  ;;  %18545 = vst [vmem:[#allocation50_spill] sm:$0xff] %v12991_v30  ;;  %v356_v46 = vrot.slane %v355_v50, 4  ;;  %v360_v47 = vrot.slane %v358_v18, 5  ;;  %v1188_v55 = vrot.slane %v1186_v43, 4  ;;  %v376_v6 = vshrl.u32 %v12437_v22, 16  ;;  %2726 = vmatprep.subr.bf16.mxu1 %v18519_v57 }
  0x82   :  { %11304 = vmatmul.mubr.bf16.gmra.mrb[28].mxu1 %v12925_v54  ;;  %v13011_v19 = vcombine.low %v327_v60, %v337_v29  ;;  %v1183_v48 = vsel %vm12242_vm2, %v1181_v9, %v1182_v42  ;;  %v10094_v15 = vrot.slane %v12968_v20, 9  ;;  %v13016_v7 = vrot.slane %v372_v12, 5  ;;  %v136_v60 = vld [vmem:[%s18153_s0 + $0x134] sm:$0x1]  ;;  %11348 = vmatpush3.bf16.msra.mxu0 %v11809_v25  ;;  %v139_v53 = vld [vmem:[%s18153_s0 + $0x140] sm:$0x1] }
  0x83   :  { %11307 = vmatprep.mubr.bf16.mxu1 %v12929_v26  ;;  %v1187_v0 = vsel %vm12242_vm2, %v10093_v40, %v1186_v43  ;;  %v369_v22 = vor.u32 %v368_v2, %v365_v31  ;;  %v378_v49 = vrot.slane %v376_v6, 4  ;;  %v1200_v50 = vrot.slane %v12986_v62, 5  ;;  %v137_v43 = vld [vmem:[%s18153_s0 + $0x138] sm:$0xf]  ;;  %v11800_v25 = vld [vmem:[%s18155_s2 + $0x70] sm:$0xff]  }
  0x84   :  { %18546 = vst [vmem:[#allocation51_spill] sm:$0xff] %v13011_v19  ;;  %v351_v18 = vsel %vm12498_vm5, %v346_v38, %v12922_v23  ;;  %v1195_v20 = vrot.slane %v18200_v4, 4  ;;  %v1196_v41 = vrot.slane %v12996_v21, 5  ;;  %v1207_v9 = vrot.slane %v13001_v5, 5  ;;  %2727 = vmatpush1.bf16.msra.mxu1 %v11798_v24  ;;  %v11816_v5 = vld [vmem:[%s18155_s2 + $0xa8] sm:$0xff]  }
  0x85   :  { %v361_v23 = vsel %vm12498_vm5, %v356_v46, %v360_v47  ;;  %v1190_v42 = vsel %vm12242_vm2, %v1188_v55, %v1189_v3  ;;  %v387_v12 = vshrl.u32 %v12489_v59, 16  ;;  %v390_v62 = vshll.u32 %v12489_v59, 16  ;;  %2728 = vmatprep.subr.bf16.mxu1 %v18519_v57  ;;  %v141_v6 = vld [vmem:[%s18153_s0 + $0x148] sm:$0xf]  ;;  %11349 = vmatprep.subr.bf16.mxu0 %v11816_v5 }
  0x86   :  { %v379_v29 = vor.u32 %v378_v49, %v13016_v7  ;;  %v382_v40 = vshll.u32 %v12458_v39, 16  ;;  %v10095_v21 = vrot.slane %v134_v1, 9  ;;  %v396_v31 = vshll.u32 %v12468_v45, 16  ;;  %v11801_v1 = vld [vmem:[%s18155_s2 + $0x78] sm:$0xff]   ;;  %11350 = vmatpush3.bf16.msra.mxu0 %v11816_v5 }
  0x87   :  { %v370_v24 = vrot.slane %v369_v22, 4  ;;  %v1202_v38 = vrot.slane %v1200_v50, 4  ;;  %v1203_v3 = vrot.slane %v136_v60, 5  ;;  %v10096_v2 = vrot.slane %v137_v43, 9 }
  0x88   :  { %2043 = vmatmul.mubr.bf16.gmra.mrb[16].mxu0 %v12913_v56  ;;  %v1209_v46 = vrot.slane %v1207_v9, 4  ;;  %v1210_v47 = vrot.slane %v139_v53, 5  ;;  %v400_v55 = vshrl.u32 %v12468_v45, 16  ;;  %v13063_v39 = vcombine.low %v12489_v59, %v12468_v45  ;;  %2729 = vmatpush1.bf16.msra.mxu1 %v11800_v25 }
  0x89   :  { %2050 = vmatprep.mubr.bf16.mxu0 %v13011_v19  ;;  %v13072_v22 = vcombine.low %v12954_v14, %v1183_v48  ;;  %v13074_v49 = vcombine.low %v351_v18, %v361_v23  ;;  %v389_v60 = vrot.slane %v387_v12, 4  ;;  %v392_v43 = vrot.slane %v390_v62, 5  ;;  %2730 = vmatprep.subr.bf16.mxu1 %v18519_v57  ;;  %v140_v23 = vld [vmem:[%s18153_s0 + $0x144] sm:$0xf] }
  0x8a   :  { %11308 = vmatmul.mubr.bf16.gmra.mrb[32].mxu1 %v12937_v61  ;;  %18547 = vst [vmem:[#allocation52_spill] sm:$0xff] %v13063_v39  ;;  %v380_v45 = vrot.slane %v379_v29, 4  ;;  %v384_v59 = vrot.slane %v382_v40, 5  ;;  %v13077_v53 = vrot.slane %v396_v31, 5  ;;  %v402_v4 = vrot.slane %v400_v55, 4 }
  0x8b   :  { %11311 = vmatprep.mubr.bf16.mxu1 %v12991_v30  ;;  %18548 = vst [vmem:[#allocation53_spill] sm:$0xff] %v13072_v22  ;;  %18549 = vst [vmem:[#allocation54_spill] sm:$0xff] %v13074_v49  ;;  %v13079_v25 = vcombine.low %v1187_v0, %v1190_v42  ;;  %v18551_v54 = vrot.slane %v12973_v33, 5  ;;  %v1197_v48 = vsel %vm12242_vm2, %v1195_v20, %v1196_v41  ;;  %v1214_v41 = vrot.slane %v141_v6, 5  ;;  %v142_v29 = vld [vmem:[%s18153_s0 + $0x14c] sm:$0x1] }
  0x8c   :  { %v1201_v18 = vsel %vm12242_vm2, %v10095_v21, %v1200_v50  ;;  %v375_v0 = vsel %vm12498_vm5, %v370_v24, %v13016_v7  ;;  %v1204_v33 = vsel %vm12242_vm2, %v1202_v38, %v1203_v3  ;;  %2731 = vmatpush1.bf16.msra.mxu1 %v11801_v1  ;;  %v1211_v50 = vsel %vm12242_vm2, %v1209_v46, %v1210_v47  ;;  %v144_v7 = vld [vmem:[%s18153_s0 + $0x154] sm:$0xf]  ;;  %v145_v21 = vld [vmem:[%s18153_s0 + $0x158] sm:$0x1] }
  0x8d   :  { %18550 = vst [vmem:[#allocation55_spill] sm:$0xff] %v13079_v25  ;;  %v1194_v14 = vsel %vm12242_vm2, %v10094_v15, %v18551_v54  ;;  %v1208_v54 = vsel %vm12242_vm2, %v10096_v2, %v1207_v9  ;;  %v411_v15 = vshrl.u32 %v12535_v52, 16  ;;  %v393_v20 = vor.u32 %v392_v43, %v389_v60  ;;  %3563 = vmatprep.subr.bf16.mxu1 %v18519_v57  ;;  %v147_v43 = vld [vmem:[%s18153_s0 + $0x160] sm:$0xf] }
  0x8e   :  { %v414_v42 = vshll.u32 %v12535_v52, 16  ;;  %v385_v9 = vsel %vm12498_vm5, %v380_v45, %v384_v59  ;;  %v403_v12 = vor.u32 %v402_v4, %v13077_v53  ;;  %v406_v62 = vshll.u32 %v12505_v17, 16  ;;  %v143_v52 = vld [vmem:[%s18153_s0 + $0x150] sm:$0xf] }
  0x8f   :  { %v10097_v40 = vrot.slane %v140_v23, 9  ;;  %v413_v31 = vrot.slane %v411_v15, 4  ;;  %v420_v4 = vshll.u32 %v12514_v35, 16  ;;  %v424_v17 = vshrl.u32 %v12514_v35, 16  ;;  %v146_v35 = vld [vmem:[%s18153_s0 + $0x15c] sm:$0xf] }
  0x90   :  { %2051 = vmatmul.mubr.bf16.gmra.mrb[20].mxu0 %v12917_v58  ;;  %v416_v5 = vrot.slane %v414_v42, 5  ;;  %v13126_v24 = vcombine.low %v1194_v14, %v1197_v48  ;;  %v1221_v38 = vrot.slane %v144_v7, 5  ;;  %v13128_v3 = vcombine.low %v1201_v18, %v1204_v33  ;;  %v150_v18 = vld [vmem:[%s18153_s0 + $0x16c] sm:$0xf]  ;;  %v18556_v15 = vld [vmem:[#allocation16_spill] sm:$0xff] }
  0x91   :  { %2058 = vmatprep.mubr.bf16.mxu0 %v13074_v49  ;;  %v394_v2 = vrot.slane %v393_v20, 4  ;;  %v1216_v46 = vrot.slane %v1214_v41, 4  ;;  %v1217_v47 = vrot.slane %v142_v29, 5  ;;  %v13130_v55 = vcombine.low %v375_v0, %v385_v9  ;;  %v148_v42 = vld [vmem:[%s18153_s0 + $0x164] sm:$0x1] }
  0x92   :  { %11312 = vmatmul.mubr.bf16.gmra.mrb[36].mxu1 %v13072_v22  ;;  %18552 = vst [vmem:[#allocation56_spill] sm:$0xff] %v13126_v24  ;;  %18553 = vst [vmem:[#allocation57_spill] sm:$0xff] %v13128_v3  ;;  %v13132_v6 = vcombine.low %v1208_v54, %v1211_v50  ;;  %v408_v1 = vrot.slane %v406_v62, 5  ;;  %v417_v60 = vor.u32 %v416_v5, %v413_v31  ;;  %v404_v45 = vrot.slane %v403_v12, 4  ;;  %v149_v12 = vld [vmem:[%s18153_s0 + $0x168] sm:$0xf] }
  0x93   :  { %11315 = vmatprep.mubr.bf16.mxu1 %v13079_v25  ;;  %18554 = vst [vmem:[#allocation58_spill] sm:$0xff] %v13130_v55  ;;  %v1215_v59 = vsel %vm12242_vm2, %v10097_v40, %v1214_v41  ;;  %v13142_v14 = vrot.slane %v420_v4, 5  ;;  %v426_v48 = vrot.slane %v424_v17, 4  ;;  %v10098_v23 = vrot.slane %v143_v52, 9  ;;  %v18557_v41 = vld [vmem:[#allocation21_spill] sm:$0xff] }
  0x94   :  { %18555 = vst [vmem:[#allocation59_spill] sm:$0xff] %v13132_v6  ;;  %v1223_v0 = vrot.slane %v1221_v38, 4  ;;  %v1224_v33 = vrot.slane %v145_v21, 5  ;;  %v435_v54 = vshrl.u32 %v12560_v32, 16  ;;  %v399_v50 = vsel %vm12498_vm5, %v394_v2, %v13077_v53  ;;  %v151_v53 = vld [vmem:[%s18153_s0 + $0x170] sm:$0x1] }
  0x95   :  { %v1218_v20 = vsel %vm12242_vm2, %v1216_v46, %v1217_v47  ;;  %v430_v7 = vshll.u32 %v18557_v41, 16  ;;  %v10099_v9 = vrot.slane %v146_v35, 9  ;;  %v13162_v62 = vrot.slane %v417_v60, 4  ;;  %v18558_v52 = vld [vmem:[#allocation25_spill] sm:$0xff]  ;;  %v13177_v2 = vld [vmem:[%s18153_s0 + $0x174] sm:$0xf] }
  0x96   :  { %v1228_v29 = vrot.slane %v147_v43, 5  ;;  %v438_v40 = vshll.u32 %v12560_v32, 16  ;;  %v444_v21 = vshll.u32 %v18558_v52, 16  ;;  %v409_v31 = vsel %vm12498_vm5, %v404_v45, %v408_v1  ;;  %v153_v1 = vld [vmem:[%s18153_s0 + $0x178] sm:$0xf] }
  0x97   :  { %v427_v5 = vor.u32 %v426_v48, %v13142_v14  ;;  %v1235_v4 = vrot.slane %v150_v18, 5  ;;  %v448_v17 = vshrl.u32 %v18558_v52, 16  ;;  %v13180_v32 = vcombine.low %v1215_v59, %v1218_v20  ;;  %v13190_v35 = vld [vmem:[%s18153_s0 + $0x17c] sm:$0x1]  ;;  %v18560_v48 = vld [vmem:[#allocation26_spill] sm:$0xff] }
  0x98   :  { %2059 = vmatmul.mubr.bf16.gmra.mrb[24].mxu0 %v18556_v15  ;;  %v1222_v46 = vsel %vm12242_vm2, %v10098_v23, %v1221_v38  ;;  %v437_v47 = vrot.slane %v435_v54, 4  ;;  %v440_v60 = vrot.slane %v438_v40, 5  ;;  %v1225_v43 = vsel %vm12242_vm2, %v1223_v0, %v1224_v33 }
  0x99   :  { %2066 = vmatprep.mubr.bf16.mxu0 %v13130_v55  ;;  %18559 = vst [vmem:[#allocation21_spill] sm:$0xff] %v13180_v32  ;;  %v13194_v45 = vrot.slane %v444_v21, 5  ;;  %v450_v59 = vrot.slane %v448_v17, 4  ;;  %v454_v18 = vshll.u32 %v18560_v48, 16  ;;  %v13197_v38 = vcombine.low %v399_v50, %v409_v31  ;;  %v13209_v50 = vld [vmem:[%s18153_s0 + $0x184] sm:$0xf] }
  0x9a   :  { %11316 = vmatmul.mubr.bf16.gmra.mrb[40].mxu1 %v13126_v24  ;;  %v1230_v23 = vrot.slane %v1228_v29, 4  ;;  %v1231_v54 = vrot.slane %v148_v42, 5  ;;  %v10100_v20 = vrot.slane %v149_v12, 9  ;;  %v428_v41 = vrot.slane %v427_v5, 4  ;;  %v18562_v42 = vld [vmem:[#allocation17_spill] sm:$0xff]  ;;  %v18563_v5 = vld [vmem:[#allocation28_spill] sm:$0xff] }
  0x9b   :  { %11319 = vmatprep.mubr.bf16.mxu1 %v13128_v3  ;;  %18561 = vst [vmem:[#allocation25_spill] sm:$0xff] %v13197_v38  ;;  %v432_v40 = vrot.slane %v430_v7, 5  ;;  %v1237_v52 = vrot.slane %v1235_v4, 4  ;;  %v1238_v3 = vrot.slane %v151_v53, 5  ;;  %v423_v24 = vsel %vm12498_vm5, %v13162_v62, %v13142_v14  ;;  %v13227_v31 = vld [vmem:[%s18153_s0 + $0x188] sm:$0x1] }
  0x9c   :  { %v1229_v0 = vsel %vm12242_vm2, %v10099_v9, %v1228_v29  ;;  %v441_v33 = vor.u32 %v440_v60, %v437_v47  ;;  %v10101_v21 = vrot.slane %v13177_v2, 9  ;;  %v451_v7 = vor.u32 %v450_v59, %v13194_v45  ;;  %v155_v29 = vld [vmem:[%s18153_s0 + $0x180] sm:$0xf]  ;;  %v11963_v59 = vld [vmem:[%s18153_s0 + $0x7c] sm:$0xf] }
  0x9d   :  { %v13213_v12 = vrot.slane %v454_v18, 5  ;;  %v1242_v53 = vrot.slane %v153_v1, 5  ;;  %v1245_v14 = vrot.slane %v13190_v35, 5  ;;  %v1232_v9 = vsel %vm12242_vm2, %v1230_v23, %v1231_v54  ;;  %v18564_v1 = vld [vmem:[#allocation29_spill] sm:$0xff] }
  0x9e   :  { %v1236_v62 = vsel %vm12242_vm2, %v10100_v20, %v1235_v4  ;;  %v459_v17 = vshrl.u32 %v18563_v5, 16  ;;  %v462_v2 = vshll.u32 %v18563_v5, 16  ;;  %v433_v47 = vsel %vm12498_vm5, %v428_v41, %v432_v40  ;;  %v11964_v48 = vld [vmem:[%s18153_s0 + $0x78] sm:$0xf] }
  0x9f   :  { %v1239_v4 = vsel %vm12242_vm2, %v1237_v52, %v1238_v3  ;;  %v1249_v60 = vrot.slane %v13209_v50, 5  ;;  %v468_v35 = vshll.u32 %v18564_v1, 16  ;;  %v13245_v18 = vcombine.low %v11964_v48, %v11963_v59  ;;  %v13255_v52 = vld [vmem:[%s18153_s0 + $0x18c] sm:$0xf] }
  0xa0   :  { %2067 = vmatmul.mubr.bf16.gmra.mrb[28].mxu0 %v18562_v42  ;;  %v442_v23 = vrot.slane %v441_v33, 4  ;;  %v472_v54 = vshrl.u32 %v18564_v1, 16  ;;  %v13248_v3 = vcombine.low %v1222_v46, %v1225_v43  ;;  %v13250_v20 = vcombine.low %v1229_v0, %v1232_v9  ;;  %v13264_v46 = vld [vmem:[%s18153_s0 + $0x190] sm:$0xf]  ;;  %v11966_v9 = vld [vmem:[%s18153_s0 + $0x88] sm:$0xf] }
  0xa1   :  { %2074 = vmatprep.mubr.bf16.mxu0 %v13197_v38  ;;  %18565 = vst [vmem:[#allocation26_spill] sm:$0xff] %v13245_v18  ;;  %v452_v41 = vrot.slane %v451_v7, 4  ;;  %v1244_v40 = vrot.slane %v1242_v53, 4  ;;  %v13257_v50 = vcombine.low %v423_v24, %v433_v47  ;;  %v13259_v5 = vcombine.low %v1236_v62, %v1239_v4  ;;  %v11965_v24 = vld [vmem:[%s18153_s0 + $0x84] sm:$0xf] }
  0xa2   :  { %11320 = vmatmul.mubr.bf16.gmra.mrb[44].mxu1 %v13132_v6  ;;  %18566 = vst [vmem:[#allocation28_spill] sm:$0xff] %v13248_v3  ;;  %18567 = vst [vmem:[#allocation29_spill] sm:$0xff] %v13250_v20  ;;  %v461_v59 = vrot.slane %v459_v17, 4  ;;  %v464_v48 = vrot.slane %v462_v2, 5  ;;  %v10102_v43 = vrot.slane %v155_v29, 9  ;;  %v1252_v0 = vrot.slane %v13227_v31, 5 }
  0xa3   :  { %11323 = vmatprep.mubr.bf16.mxu1 %v13180_v32  ;;  %18568 = vst [vmem:[#allocation60_spill] sm:$0xff] %v13257_v50  ;;  %18569 = vst [vmem:[#allocation61_spill] sm:$0xff] %v13259_v5  ;;  %v13267_v33 = vrot.slane %v468_v35, 5  ;;  %v474_v7 = vrot.slane %v472_v54, 4  ;;  %v13275_v62 = vcombine.low %v11965_v24, %v11966_v9  ;;  %v1243_v17 = vsel %vm12242_vm2, %v10101_v21, %v1242_v53  ;;  %v13282_v29 = vld [vmem:[%s18153_s0 + $0x194] sm:$0x1] }
  0xa4   :  { %v1251_v2 = vrot.slane %v1249_v60, 4  ;;  %v18571_v31 = vld [vmem:[#allocation34_spill] sm:$0xff]  ;;  %v447_v4 = vsel %vm12498_vm5, %v442_v23, %v13194_v45  ;;  %v457_v1 = vsel %vm12498_vm5, %v452_v41, %v13213_v12  ;;  %v1246_v21 = vsel %vm12242_vm2, %v1244_v40, %v1245_v14  ;;  %v11823_v45 = vld [vmem:[%s18155_s2 + $0xb0] sm:$0xff]   ;;  %v11967_v14 = vld [vmem:[%s18153_s0 + $0x98] sm:$0x1] }
  0xa5   :  { %18570 = vst [vmem:[#allocation62_spill] sm:$0xff] %v13275_v62  ;;  %v483_v47 = vshrl.u32 %v18571_v31, 16  ;;  %v486_v53 = vshll.u32 %v18571_v31, 16  ;;  %v13298_v35 = vld [vmem:[%s18153_s0] sm:$0xf]  ;;  %v465_v12 = vor.u32 %v464_v48, %v461_v59  ;;  %v478_v23 = vshll.u32 %v11967_v14, 16  ;;  %11351 = vmatprep.subr.bf16.mxu0 %v11823_v45 }
  0xa6   :  { %v13303_v54 = vld [vmem:[%s18153_s0 + $0x4] sm:$0xf]  ;;  %v10103_v41 = vrot.slane %v13255_v52, 9  ;;  %v13316_v40 = vld [vmem:[%s18153_s0 + $0xa0] sm:$0xf]  ;;  %v475_v9 = vor.u32 %v474_v7, %v13267_v33  ;;  %v1256_v59 = vrot.slane %v13264_v46, 5  ;;  %v13329_v14 = vcombine.low %v1243_v17, %v1246_v21  ;;  %11352 = vmatpush3.bf16.msra.mxu0 %v11823_v45 }
  0xa7   :  { %v492_v24 = vshll.u32 %v13316_v40, 16  ;;  %v13325_v48 = vld [vmem:[%s18153_s0 + $0x19c] sm:$0xf]  ;;  %v485_v31 = vrot.slane %v483_v47, 4  ;;  %v496_v52 = vshrl.u32 %v13316_v40, 16  ;;  %v488_v32 = vrot.slane %v486_v53, 5 }
  0xa8   :  { %2075 = vmatmul.mubr.bf16.gmra.mrb[32].mxu0 %v13063_v39  ;;  %18572 = vst [vmem:[#allocation34_spill] sm:$0xff] %v13329_v14  ;;  %v13335_v46 = vcombine.low %v447_v4, %v457_v1  ;;  %v1253_v6 = vsel %vm12242_vm2, %v1251_v2, %v1252_v0  ;;  %v1259_v47 = vrot.slane %v13282_v29, 5  ;;  %v466_v22 = vrot.slane %v465_v12, 4  ;;  %v11969_v2 = vld [vmem:[%s18153_s0 + $0xa4] sm:$0x1] }
  0xa9   :  { %2082 = vmatprep.mubr.bf16.mxu0 %v13257_v50  ;;  %v13333_v7 = vrot.slane %v492_v24, 5  ;;  %v498_v25 = vrot.slane %v496_v52, 4  ;;  %v174_v17 = vshll.u32 %v13298_v35, 16  ;;  %v180_v21 = vshll.u32 %v13303_v54, 16  ;;  %v61_v12 = vld [vmem:[%s18153_s0 + $0x8] sm:$0x1] }
  0xaa   :  { %11324 = vmatmul.mubr.bf16.gmra.mrb[48].mxu1 %v13248_v3  ;;  %v1250_v3 = vsel %vm12242_vm2, %v10102_v43, %v1249_v60  ;;  %18573 = vst [vmem:[#allocation63_spill] sm:$0xff] %v13335_v46  ;;  %v476_v60 = vrot.slane %v475_v9, 4  ;;  %v480_v43 = vrot.slane %v478_v23, 5  ;;  %v1258_v53 = vrot.slane %v1256_v59, 4 }
  0xab   :  { %11327 = vmatprep.mubr.bf16.mxu1 %v13250_v20  ;;  %v171_v20 = vshrl.u32 %v13298_v35, 16  ;;  %v184_v45 = vshrl.u32 %v13303_v54, 16  ;;  %v489_v1 = vor.u32 %v488_v32, %v485_v31  ;;  %v499_v0 = vor.u32 %v498_v25, %v13333_v7  ;;  %v161_v32 = vld [vmem:[%s18153_s0 + $0x198] sm:$0xf]  ;;  %v163_v31 = vld [vmem:[%s18153_s0 + $0x1a0] sm:$0x1] }
  0xac   :  { %v502_v29 = vshll.u32 %v11969_v2, 16  ;;  %v176_v24 = vrot.slane %v174_v17, 5  ;;  %v13353_v9 = vrot.slane %v180_v21, 5  ;;  %v1257_v25 = vsel %vm12242_vm2, %v10103_v41, %v1256_v59  ;;  %v13374_v41 = vld [vmem:[%s18153_s0 + $0xac] sm:$0xf] }
  0xad   :  { %v173_v23 = vrot.slane %v171_v20, 4  ;;  %v186_v52 = vrot.slane %v184_v45, 4  ;;  %v13367_v20 = vld [vmem:[%s18153_s0 + $0xa8] sm:$0xf]  ;;  %v516_v59 = vshll.u32 %v13374_v41, 16  ;;  %v471_v45 = vsel %vm12498_vm5, %v466_v22, %v13267_v33 }
  0xae   :  { %v507_v17 = vshrl.u32 %v13367_v20, 16  ;;  %v510_v21 = vshll.u32 %v13367_v20, 16  ;;  %v481_v2 = vsel %vm12498_vm5, %v476_v60, %v480_v43  ;;  %v1260_v4 = vsel %vm12242_vm2, %v1258_v53, %v1259_v47 }
  0xaf   :  { %v520_v30 = vshrl.u32 %v13374_v41, 16  ;;  %v490_v61 = vrot.slane %v489_v1, 4  ;;  %v500_v26 = vrot.slane %v499_v0, 4  ;;  %v504_v10 = vrot.slane %v502_v29, 5 }
  0xb0   :  { %2083 = vmatmul.mubr.bf16.gmra.mrb[36].mxu0 %v13245_v18  ;;  %v190_v51 = vshll.u32 %v61_v12, 16  ;;  %v177_v36 = vor.u32 %v176_v24, %v173_v23  ;;  %v512_v18 = vrot.slane %v510_v21, 5  ;;  %v13388_v22 = vcombine.low %v471_v45, %v481_v2 }
  0xb1   :  { %2090 = vmatprep.mubr.bf16.mxu0 %v13335_v46  ;;  %v509_v46 = vrot.slane %v507_v17, 4  ;;  %v13390_v33 = vrot.slane %v516_v59, 5  ;;  %v522_v60 = vrot.slane %v520_v30, 4  ;;  %v13392_v43 = vcombine.low %v1250_v3, %v1253_v6  ;;  %v11972_v3 = vld [vmem:[%s18153_s0 + $0xb0] sm:$0x1] }
  0xb2   :  { %11328 = vmatmul.mubr.bf16.gmra.mrb[52].mxu1 %v13259_v5  ;;  %v187_v5 = vor.u32 %v186_v52, %v13353_v9  ;;  %18574 = vst [vmem:[#allocation64_spill] sm:$0xff] %v13388_v22  ;;  %v10201_v47 = vrot.slane %v161_v32, 9  ;;  %v1759_v53 = vrot.slane %v163_v31, 5  ;;  %v13394_v50 = vcombine.low %v1257_v25, %v1260_v4 }
  0xb3   :  { %11331 = vmatprep.mubr.bf16.mxu1 %v13329_v14  ;;  %18575 = vst [vmem:[#allocation65_spill] sm:$0xff] %v13392_v43  ;;  %v18577_v1 = vrot.slane %v13325_v48, 5  ;;  %v495_v29 = vsel %vm12498_vm5, %v490_v61, %v13333_v7  ;;  %v192_v12 = vrot.slane %v190_v51, 5  ;;  %v505_v23 = vsel %vm12498_vm5, %v500_v26, %v504_v10  ;;  %v13412_v51 = vld [vmem:[%s18153_s0 + $0xb4] sm:$0xf] }
  0xb4   :  { %18576 = vst [vmem:[#allocation66_spill] sm:$0xff] %v13394_v50  ;;  %v178_v30 = vrot.slane %v177_v36, 4  ;;  %v188_v6 = vrot.slane %v187_v5, 4  ;;  %v526_v4 = vshll.u32 %v11972_v3, 16  ;;  %v513_v24 = vor.u32 %v512_v18, %v509_v46  ;;  %v13420_v10 = vld [vmem:[%s18153_s0 + $0xb8] sm:$0xf] }
  0xb5   :  { %v1758_v0 = vrot.slane %v18577_v1, 4  ;;  %v523_v52 = vor.u32 %v522_v60, %v13390_v33  ;;  %v531_v61 = vshrl.u32 %v13412_v51, 16  ;;  %v534_v36 = vshll.u32 %v13412_v51, 16  ;;  %v11975_v5 = vld [vmem:[%s18153_s0 + $0x90] sm:$0xf] }
  0xb6   :  { %v540_v26 = vshll.u32 %v13420_v10, 16  ;;  %v544_v18 = vshrl.u32 %v13420_v10, 16  ;;  %v11976_v7 = vld [vmem:[%s18153_s0 + $0x94] sm:$0xf]  ;;  %v18579_v25 = vmov %v18577_v1  ;;  %v13439_v17 = vcombine.low %v495_v29, %v505_v23  ;;  %v13461_v23 = vld [vmem:[%s18153_s0 + $0xc0] sm:$0xf] }
  0xb7   :  { %v13430_v46 = vcombine.low %v11975_v5, %v11976_v7  ;;  %v1757_v32 = vsel %vm12242_vm2, %v10201_v47, %v18579_v25  ;;  %v1760_v31 = vsel %vm12242_vm2, %v1758_v0, %v1759_v53  ;;  %v183_v21 = vsel %vm12498_vm5, %v178_v30, %v13353_v9  ;;  %v11977_v53 = vld [vmem:[%s18153_s0 + $0xbc] sm:$0x1] }
  0xb8   :  { %2091 = vmatmul.mubr.bf16.gmra.mrb[40].mxu0 %v13275_v62  ;;  %18580 = vst [vmem:[#allocation68_spill] sm:$0xff] %v13439_v17  ;;  %v193_v59 = vsel %vm12498_vm5, %v188_v6, %v192_v12  ;;  %v528_v45 = vrot.slane %v526_v4, 5  ;;  %v514_v2 = vrot.slane %v513_v24, 4  ;;  %v524_v60 = vrot.slane %v523_v52, 4 }
  0xb9   :  { %2098 = vmatprep.mubr.bf16.mxu0 %v13388_v22  ;;  %18578 = vst [vmem:[#allocation67_spill] sm:$0xff] %v13430_v46  ;;  %v533_v1 = vrot.slane %v531_v61, 4  ;;  %v536_v48 = vrot.slane %v534_v36, 5  ;;  %v13446_v3 = vcombine.low %v1757_v32, %v1760_v31  ;;  %v542_v47 = vrot.slane %v540_v26, 5  ;;  %v11980_v61 = vld [vmem:[%s18153_s0 + $0x9c] sm:$0xf] }
  0xba   :  { %11332 = vmatmul.mubr.bf16.gmra.mrb[56].mxu1 %v13392_v43  ;;  %v546_v5 = vrot.slane %v544_v18, 4  ;;  %v10136_v7 = vcombine.low %v183_v21, %v193_v59  ;;  %v550_v9 = vshll.u32 %v11977_v53, 16  ;;  %v519_v0 = vsel %vm12498_vm5, %v514_v2, %v13390_v33  ;;  %v13469_v33 = vld [vmem:[%s18153_s0 + $0xc4] sm:$0xf] }
  0xbb   :  { %11335 = vmatprep.mubr.bf16.mxu1 %v13394_v50  ;;  %18581 = vst [vmem:[#allocation69_spill] sm:$0xff] %v13446_v3  ;;  %v529_v29 = vsel %vm12498_vm5, %v524_v60, %v528_v45  ;;  %v537_v12 = vor.u32 %v536_v48, %v533_v1  ;;  %v1694_v30 = vshrl.u32 %v13461_v23, 16  ;;  %v1697_v4 = vshll.u32 %v13461_v23, 16  ;;  %v11810_v21 = vld [vmem:[%s18155_s2 + $0x180] sm:$0xff]   ;;  %v11830_v1 = vld [vmem:[%s18155_s2 + $0xb8] sm:$0xff]  }
  0xbc   :  { %v547_v6 = vor.u32 %v546_v5, %v542_v47  ;;  %v1703_v24 = vshll.u32 %v13469_v33, 16  ;;  %v1707_v52 = vshrl.u32 %v13469_v33, 16  ;;  %v13477_v36 = vcombine.low %v11980_v61, %v13316_v40  ;;  %v13489_v40 = vld [vmem:[%s18153_s0 + $0xe4] sm:$0xf]  ;;  %v13503_v5 = vld [vmem:[%s18153_s0 + $0xe8] sm:$0xf]  ;;  %11353 = vmatprep.subr.bf16.mxu0 %v11830_v1 }
  0xbd   :  { %v10104_v26 = vcombine.low %v13298_v35, %v13303_v54  ;;  %v13481_v18 = vcombine.low %v519_v0, %v529_v29  ;;  %v538_v25 = vrot.slane %v537_v12, 4  ;;  %v552_v32 = vrot.slane %v550_v9, 5  ;;  %v11983_v12 = vld [vmem:[%s18153_s0 + $0xc8] sm:$0x1]  ;;  %11354 = vmatpush3.bf16.msra.mxu0 %v11830_v1  ;;  %v13540_v1 = vld [vmem:[%s18153_s0 + $0xf4] sm:$0xf] }
  0xbe   :  { %18582 = vst [vmem:[#allocation70_spill] sm:$0xff] %v13477_v36  ;;  %v1696_v31 = vrot.slane %v1694_v30, 4  ;;  %v548_v59 = vrot.slane %v547_v6, 4  ;;  %v1699_v45 = vrot.slane %v1697_v4, 5  ;;  %v1705_v2 = vrot.slane %v1703_v24, 5  ;;  %v11813_v30 = vld [vmem:[%s18155_s2 + $0x188] sm:$0xff]  }
  0xbf   :  { %18583 = vst [vmem:[#allocation71_spill] sm:$0xff] %v13481_v18  ;;  %v1709_v60 = vrot.slane %v1707_v52, 4  ;;  %v579_v35 = vshrl.u32 %v13489_v40, 16  ;;  %v582_v54 = vshll.u32 %v13489_v40, 16  ;;  %v543_v48 = vsel %vm12498_vm5, %v538_v25, %v542_v47  ;;  %v18584_v6 = vld [vmem:[#allocation23_spill] sm:$0xff] }
  0xc0   :  { %2099 = vmatmul.mubr.bf16.gmra.mrb[44].mxu0 %v13430_v46  ;;  %v592_v53 = vshrl.u32 %v13503_v5, 16  ;;  %v553_v9 = vsel %vm12498_vm5, %v548_v59, %v552_v32  ;;  %v1700_v0 = vor.u32 %v1699_v45, %v1696_v31  ;;  %v1713_v47 = vshll.u32 %v11983_v12, 16  ;;  %v11817_v45 = vld [vmem:[%s18155_s2 + $0x190] sm:$0xff]  }
  0xc1   :  { %2106 = vmatprep.mubr.bf16.mxu0 %v13439_v17  ;;  %v1710_v29 = vor.u32 %v1709_v60, %v1705_v2  ;;  %v581_v4 = vrot.slane %v579_v35, 4  ;;  %v584_v24 = vrot.slane %v582_v54, 5  ;;  %v13518_v52 = vcombine.low %v13367_v20, %v13374_v41  ;;  %v11984_v20 = vld [vmem:[%s18153_s0 + $0xec] sm:$0x1] }
  0xc2   :  { %11336 = vmatmul.mubr.bf16.gmra.mrb[60].mxu1 %v13446_v3  ;;  %v13521_v61 = vcombine.low %v543_v48, %v553_v9  ;;  %v594_v25 = vrot.slane %v592_v53, 4  ;;  %v1701_v32 = vrot.slane %v1700_v0, 4  ;;  %v1715_v59 = vrot.slane %v1713_v47, 5 }
  0xc3   :  { %2732 = vmatprep.mubr.bf16.mxu1 %v10136_v7  ;;  %v588_v7 = vshll.u32 %v13503_v5, 16  ;;  %18585 = vst [vmem:[#allocation23_spill] sm:$0xff] %v13518_v52  ;;  %v1711_v31 = vrot.slane %v1710_v29, 4  ;;  %v585_v60 = vor.u32 %v584_v24, %v581_v4  ;;  %v598_v41 = vshll.u32 %v11984_v20, 16  ;;  %v13578_v20 = vld [vmem:[%s18153_s0 + $0xfc] sm:$0xf] }
  0xc4   :  { %18586 = vst [vmem:[#allocation72_spill] sm:$0xff] %v13521_v61  ;;  %v612_v48 = vshll.u32 %v13540_v1, 16  ;;  %v616_v53 = vshrl.u32 %v13540_v1, 16  ;;  %v1706_v9 = vsel %vm12498_vm5, %v1701_v32, %v1705_v2  ;;  %v11824_v32 = vld [vmem:[%s18155_s2 + $0x1a0] sm:$0xff]  }
  0xc5   :  { %v1716_v0 = vsel %vm12498_vm5, %v1711_v31, %v1715_v59  ;;  %v586_v29 = vrot.slane %v585_v60, 4  ;;  %v600_v12 = vrot.slane %v598_v41, 5  ;;  %v630_v41 = vshll.u32 %v13578_v20, 16 }
  0xc6   :  { %v614_v4 = vrot.slane %v612_v48, 5  ;;  %v13560_v2 = vcombine.low %v1706_v9, %v1716_v0 }
  0xc8   :  { %2107 = vmatmul.mubr.bf16.gmra.mrb[48].mxu0 %v13477_v36  ;;  %18588 = vst [vmem:[#allocation74_spill] sm:$0xff] %v13560_v2 }
  0xc9   :  { %2114 = vmatprep.mubr.bf16.mxu0 %v13481_v18 }
  0xca   :  { %2733 = vmatmul.mubr.bf16.vlgmr.msra.gmra.mrb[64].mxu1 %v10104_v26  ;;  %v590_v26 = vrot.slane %v588_v7, 5 }
  0xcb   :  { %2740 = vmatprep.mubr.bf16.mxu1 %v18584_v6  ;;  %3564 = vmatpush1.bf16.msra.mxu1 %v11810_v21  ;;  %v13532_v21 = vld [vmem:[%s18153_s0 + $0xf0] sm:$0xf]  ;;  %v13557_v6 = vcombine.low %v13412_v51, %v13420_v10  ;;  %v11987_v10 = vld [vmem:[%s18153_s0 + $0xf8] sm:$0x1] }
  0xcc   :  { %3565 = vmatprep.subr.bf16.mxu1 %v18519_v57  ;;  %v603_v35 = vshrl.u32 %v13532_v21, 16  ;;  %v606_v54 = vshll.u32 %v13532_v21, 16  ;;  %v595_v7 = vor.u32 %v594_v25, %v590_v26  ;;  %v618_v25 = vrot.slane %v616_v53, 4 }
  0xcd   :  { %18587 = vst [vmem:[#allocation73_spill] sm:$0xff] %v13557_v6  ;;  %v591_v31 = vsel %vm12498_vm5, %v586_v29, %v590_v26  ;;  %v622_v59 = vshll.u32 %v11987_v10, 16  ;;  %v627_v26 = vshrl.u32 %v13578_v20, 16  ;;  %v13596_v53 = vcombine.low %v13461_v23, %v13469_v33  ;;  %v11990_v23 = vld [vmem:[%s18153_s0 + $0x104] sm:$0x1] }
  0xce   :  { %v605_v47 = vrot.slane %v603_v35, 4  ;;  %v596_v24 = vrot.slane %v595_v7, 4  ;;  %v619_v60 = vor.u32 %v618_v25, %v614_v4  ;;  %v13586_v35 = vld [vmem:[%s18153_s0 + $0x100] sm:$0xf]  ;;  %v11827_v7 = vld [vmem:[%s18155_s2 + $0x1a8] sm:$0xff]   ;;  %v11832_v25 = vld [vmem:[%s18155_s2 + $0x1b0] sm:$0xff]  }
  0xcf   :  { %3566 = vmatpush1.bf16.msra.mxu1 %v11813_v30  ;;  %v11820_v30 = vld [vmem:[%s18155_s2 + $0x198] sm:$0xff]   ;;  %v640_v48 = vshrl.u32 %v13586_v35, 16  ;;  %18589 = vst [vmem:[#allocation75_spill] sm:$0xff] %v13596_v53  ;;  %v624_v0 = vrot.slane %v622_v59, 5  ;;  %v646_v33 = vshll.u32 %v11990_v23, 16 }
  0xd0   :  { %2115 = vmatmul.mubr.bf16.gmra.mrb[52].mxu0 %v13518_v52  ;;  %3567 = vmatprep.subr.bf16.mxu1 %v18519_v57 }
  0xd1   :  { %2122 = vmatprep.mubr.bf16.mxu0 %v13521_v61 }
  0xd2   :  { %2741 = vmatmul.mubr.bf16.gmra.mrb[68].mxu1 %v12463_v44  ;;  %v608_v44 = vrot.slane %v606_v54, 5  ;;  %v636_v54 = vshll.u32 %v13586_v35, 16 }
  0xd3   :  { %2748 = vmatprep.mubr.bf16.mxu1 %v12719_v13  ;;  %3568 = vmatpush1.bf16.msra.mxu1 %v11817_v45  ;;  %v601_v45 = vsel %vm12498_vm5, %v596_v24, %v600_v12  ;;  %v620_v12 = vrot.slane %v619_v60, 4  ;;  %v642_v24 = vrot.slane %v640_v48, 4  ;;  %v13635_v48 = vcombine.low %v13489_v40, %v13503_v5  ;;  %v13647_v5 = vld [vmem:[%s18153_s0 + $0x114] sm:$0xf] }
  0xd4   :  { %3569 = vmatprep.subr.bf16.mxu1 %v18519_v57  ;;  %v609_v51 = vor.u32 %v608_v44, %v605_v47  ;;  %v13598_v9 = vcombine.low %v591_v31, %v601_v45  ;;  %v629_v47 = vrot.slane %v627_v26, 4  ;;  %v638_v44 = vrot.slane %v636_v54, 5  ;;  %v11835_v54 = vld [vmem:[%s18155_s2 + $0x1b8] sm:$0xff]  }
  0xd5   :  { %v625_v45 = vsel %vm12498_vm5, %v620_v12, %v624_v0  ;;  %v648_v0 = vrot.slane %v646_v33, 5  ;;  %v675_v33 = vshrl.u32 %v13647_v5, 16 }
  0xd6   :  { %v610_v29 = vrot.slane %v609_v51, 4  ;;  %v13615_v51 = vld [vmem:[%s18153_s0 + $0x108] sm:$0xf]  ;;  %v643_v60 = vor.u32 %v642_v24, %v638_v44 }
  0xd7   :  { %3570 = vmatpush1.bf16.msra.mxu1 %v11820_v30  ;;  %v632_v30 = vrot.slane %v630_v41, 5  ;;  %v651_v10 = vshrl.u32 %v13615_v51, 16  ;;  %v654_v59 = vshll.u32 %v13615_v51, 16  ;;  %v677_v3 = vrot.slane %v675_v33, 4 }
  0xd8   :  { %2123 = vmatmul.mubr.bf16.gmra.mrb[56].mxu0 %v13557_v6  ;;  %3571 = vmatprep.subr.bf16.mxu1 %v18519_v57 }
  0xd9   :  { %2130 = vmatprep.mubr.bf16.mxu0 %v13560_v2  ;;  %v633_v31 = vor.u32 %v632_v30, %v629_v47  ;;  %v656_v12 = vrot.slane %v654_v59, 5  ;;  %v644_v30 = vrot.slane %v643_v60, 4  ;;  %v13659_v59 = vld [vmem:[%s18153_s0 + $0x118] sm:$0xf] }
  0xda   :  { %2749 = vmatmul.mubr.bf16.gmra.mrb[72].mxu1 %v12555_v16 }
  0xdb   :  { %2756 = vmatprep.mubr.bf16.mxu1 %v12792_v27  ;;  %3572 = vmatpush1.bf16.msra.mxu1 %v11824_v32  ;;  %v615_v32 = vsel %vm12498_vm5, %v610_v29, %v614_v4  ;;  %v13625_v4 = vld [vmem:[%s18153_s0 + $0x10c] sm:$0xf]  ;;  %v653_v29 = vrot.slane %v651_v10, 4  ;;  %v634_v47 = vrot.slane %v633_v31, 4  ;;  %v678_v10 = vshll.u32 %v13647_v5, 16 }
  0xdc   :  { %3573 = vmatprep.subr.bf16.mxu1 %v18519_v57  ;;  %v660_v26 = vshll.u32 %v13625_v4, 16  ;;  %v664_v41 = vshrl.u32 %v13625_v4, 16 }
  0xdd   :  { %v657_v31 = vor.u32 %v656_v12, %v653_v29  ;;  %v639_v60 = vsel %vm12498_vm5, %v634_v47, %v638_v44  ;;  %v11838_v29 = vld [vmem:[%s18155_s2 + $0x1c0] sm:$0xff]   ;;  %v13674_v12 = vcombine.low %v13532_v21, %v13540_v1  ;;  %v680_v47 = vrot.slane %v678_v10, 5 }
  0xde   :  { %v662_v24 = vrot.slane %v660_v26, 5  ;;  %v666_v23 = vrot.slane %v664_v41, 4  ;;  %v649_v26 = vsel %vm12498_vm5, %v644_v30, %v648_v0 }
  0xdf   :  { %3574 = vmatpush1.bf16.msra.mxu1 %v11827_v7  ;;  %v13638_v7 = vcombine.low %v615_v32, %v625_v45  ;;  %v11837_v32 = vld [vmem:[%s18155_s2 + $0x200] sm:$0xff]   ;;  %v684_v45 = vshll.u32 %v13659_v59, 16  ;;  %18591 = vst [vmem:[#allocation77_spill] sm:$0xff] %v13674_v12  ;;  %v13676_v44 = vcombine.low %v639_v60, %v649_v26  ;;  %v658_v0 = vrot.slane %v657_v31, 4  ;;  %v11998_v60 = vld [vmem:[%s18153_s0 + $0x11c] sm:$0x1] }
  0xe0   :  { %2131 = vmatmul.mubr.bf16.gmra.mrb[60].mxu0 %v13596_v53  ;;  %3575 = vmatprep.subr.bf16.mxu1 %v18519_v57  ;;  %v667_v41 = vor.u32 %v666_v23, %v662_v24  ;;  %v13682_v53 = vld [vmem:[%s18153_s0 + $0x120] sm:$0xf]  ;;  %v694_v26 = vshll.u32 %v11998_v60, 16 }
  0xe1   :  { %2138 = vmatprep.mubr.bf16.mxu0 %v13598_v9  ;;  %18590 = vst [vmem:[#allocation76_spill] sm:$0xff] %v13638_v7  ;;  %11419 = vmatprep.subr.bf16.mxu0 %v11837_v32  ;;  %18592 = vst [vmem:[#allocation78_spill] sm:$0xff] %v13676_v44  ;;  %v686_v30 = vrot.slane %v684_v45, 5  ;;  %v699_v21 = vshrl.u32 %v13682_v53, 16  ;;  %v702_v1 = vshll.u32 %v13682_v53, 16  ;;  %v663_v10 = vsel %vm12498_vm5, %v658_v0, %v662_v24 }
  0xe2   :  { %2757 = vmatmul.mubr.bf16.gmra.mrb[76].mxu1 %v12628_v63  ;;  %v668_v23 = vrot.slane %v667_v41, 4  ;;  %v681_v45 = vor.u32 %v680_v47, %v677_v3  ;;  %v13708_v3 = vcombine.low %v13578_v20, %v13586_v35  ;;  %v696_v47 = vrot.slane %v694_v26, 5  ;;  %v12008_v63 = vld [vmem:[%s18153_s0 + $0x140] sm:$0x1] }
  0xe3   :  { %2764 = vmatprep.mubr.bf16.mxu1 %v12856_v37  ;;  %3576 = vmatpush1.bf16.msra.mxu1 %v11832_v25  ;;  %v11993_v25 = vld [vmem:[%s18153_s0 + $0x110] sm:$0x1]  ;;  %v704_v2 = vrot.slane %v702_v1, 5  ;;  %v13718_v1 = vld [vmem:[%s18153_s0 + $0x12c] sm:$0xf]  ;;  %v766_v27 = vshll.u32 %v12008_v63, 16 }
  0xe4   :  { %3577 = vmatprep.subr.bf16.mxu1 %v18519_v57  ;;  %v670_v40 = vshll.u32 %v11993_v25, 16  ;;  %18593 = vst [vmem:[#allocation79_spill] sm:$0xff] %v13708_v3  ;;  %v682_v0 = vrot.slane %v681_v45, 4  ;;  %v726_v35 = vshll.u32 %v13718_v1, 16  ;;  %v13734_v45 = vcombine.low %v13615_v51, %v13625_v4  ;;  %v13795_v37 = vld [vmem:[%s18153_s0 + $0x150] sm:$0xf] }
  0xe6   :  { %v672_v25 = vrot.slane %v670_v40, 5  ;;  %v13689_v40 = vld [vmem:[%s18153_s0 + $0x124] sm:$0xf]  ;;  %18595 = vst [vmem:[#allocation81_spill] sm:$0xff] %v13734_v45  ;;  %v687_v60 = vsel %vm12498_vm5, %v682_v0, %v686_v30  ;;  %v728_v51 = vrot.slane %v726_v35, 5 }
  0xe7   :  { %3578 = vmatpush1.bf16.msra.mxu1 %v11835_v54  ;;  %v688_v54 = vshrl.u32 %v13659_v59, 16  ;;  %v708_v33 = vshll.u32 %v13689_v40, 16  ;;  %v712_v31 = vshrl.u32 %v13689_v40, 16  ;;  %v13766_v35 = vld [vmem:[%s18153_s0 + $0x144] sm:$0xf] }
  0xe8   :  { %2139 = vmatmul.mubr.bf16.gmra.mrb[64].mxu0 %v13635_v48  ;;  %3579 = vmatprep.subr.bf16.mxu1 %v18519_v57  ;;  %v673_v41 = vsel %vm12498_vm5, %v668_v23, %v672_v25  ;;  %v11999_v25 = vld [vmem:[%s18153_s0 + $0x128] sm:$0x1] }
  0xe9   :  { %2146 = vmatprep.mubr.bf16.mxu0 %v13638_v7  ;;  %v690_v32 = vrot.slane %v688_v54, 4  ;;  %v13704_v50 = vrot.slane %v708_v33, 5  ;;  %v13710_v24 = vcombine.low %v663_v10, %v673_v41  ;;  %v718_v23 = vshll.u32 %v11999_v25, 16 }
  0xea   :  { %2765 = vmatmul.mubr.bf16.gmra.mrb[80].mxu1 %v12632_v34  ;;  %v723_v33 = vshrl.u32 %v13718_v1, 16 }
  0xeb   :  { %2772 = vmatprep.mubr.bf16.mxu1 %v12927_v28  ;;  %3580 = vmatpush1.bf16.msra.mxu1 %v11838_v29  ;;  %v691_v54 = vor.u32 %v690_v32, %v686_v30  ;;  %v701_v29 = vrot.slane %v699_v21, 4  ;;  %v714_v28 = vrot.slane %v712_v31, 4  ;;  %18594 = vst [vmem:[#allocation80_spill] sm:$0xff] %v13710_v24  ;;  %v13726_v31 = vld [vmem:[%s18153_s0 + $0x130] sm:$0xf] }
  0xec   :  { %3581 = vmatprep.subr.bf16.mxu1 %v18519_v57  ;;  %v732_v10 = vshll.u32 %v13726_v31, 16  ;;  %v13750_v30 = vld [vmem:[%s18153_s0 + $0x138] sm:$0xf] }
  0xed   :  { %v692_v32 = vrot.slane %v691_v54, 4  ;;  %v705_v21 = vor.u32 %v704_v2, %v701_v29  ;;  %v715_v20 = vor.u32 %v714_v28, %v13704_v50  ;;  %v736_v2 = vshrl.u32 %v13726_v31, 16  ;;  %v11840_v29 = vld [vmem:[%s18155_s2 + $0x1c8] sm:$0xff]  }
  0xee   :  { %v720_v28 = vrot.slane %v718_v23, 5  ;;  %v725_v54 = vrot.slane %v723_v33, 4  ;;  %v13745_v4 = vrot.slane %v732_v10, 5  ;;  %v747_v0 = vshrl.u32 %v13750_v30, 16 }
  0xef   :  { %v697_v26 = vsel %vm12498_vm5, %v692_v32, %v696_v47  ;;  %v706_v41 = vrot.slane %v705_v21, 4  ;;  %v716_v25 = vrot.slane %v715_v20, 4  ;;  %v738_v23 = vrot.slane %v736_v2, 4  ;;  %v13757_v32 = vld [vmem:[%s18153_s0 + $0x13c] sm:$0xf]  ;;  %3582 = vmatpush1.bf16.msra.mxu1 %v11840_v29 }
  0xf0   :  { %2147 = vmatmul.mubr.bf16.gmra.mrb[68].mxu0 %v13674_v12  ;;  %v750_v47 = vshll.u32 %v13750_v30, 16  ;;  %v756_v21 = vshll.u32 %v13757_v32, 16  ;;  %v760_v33 = vshrl.u32 %v13757_v32, 16  ;;  %v13761_v20 = vcombine.low %v687_v60, %v697_v26  ;;  %3583 = vmatprep.subr.bf16.mxu1 %v18519_v57  ;;  %v13782_v29 = vld [vmem:[%s18153_s0 + $0x148] sm:$0xf] }
  0xf1   :  { %2154 = vmatprep.mubr.bf16.mxu0 %v13676_v44  ;;  %v771_v10 = vshrl.u32 %v13766_v35, 16  ;;  %v774_v2 = vshll.u32 %v13766_v35, 16  ;;  %v711_v60 = vsel %vm12498_vm5, %v706_v41, %v13704_v50  ;;  %v721_v26 = vsel %vm12498_vm5, %v716_v25, %v720_v28 }
  0xf2   :  { %2773 = vmatmul.mubr.bf16.gmra.mrb[84].mxu1 %v12913_v56  ;;  %18596 = vst [vmem:[#allocation82_spill] sm:$0xff] %v13761_v20  ;;  %v784_v56 = vshrl.u32 %v13782_v29, 16  ;;  %v729_v34 = vor.u32 %v728_v51, %v725_v54  ;;  %v749_v43 = vrot.slane %v747_v0, 4  ;;  %v752_v14 = vrot.slane %v750_v47, 5 }
  0xf3   :  { %2780 = vmatprep.mubr.bf16.mxu1 %v13011_v19  ;;  %v780_v19 = vshll.u32 %v13782_v29, 16  ;;  %v13789_v50 = vrot.slane %v756_v21, 5  ;;  %v762_v28 = vrot.slane %v760_v33, 4  ;;  %v773_v41 = vrot.slane %v771_v10, 4 }
  0xf4   :  { %v776_v25 = vrot.slane %v774_v2, 5  ;;  %v795_v54 = vshrl.u32 %v13795_v37, 16  ;;  %v798_v51 = vshll.u32 %v13795_v37, 16  ;;  %v786_v0 = vrot.slane %v784_v56, 4 }
  0xf5   :  { %v13804_v47 = vcombine.low %v13647_v5, %v13659_v59  ;;  %v13806_v21 = vcombine.low %v711_v60, %v721_v26  ;;  %v730_v33 = vrot.slane %v729_v34, 4 }
  0xf6   :  { %v777_v5 = vor.u32 %v776_v25, %v773_v41  ;;  %v797_v59 = vrot.slane %v795_v54, 4  ;;  %v800_v60 = vrot.slane %v798_v51, 5 }
  0xf7   :  { %18597 = vst [vmem:[#allocation83_spill] sm:$0xff] %v13804_v47  ;;  %18598 = vst [vmem:[#allocation84_spill] sm:$0xff] %v13806_v21 }
  0xf8   :  { %2155 = vmatmul.mubr.bf16.gmra.mrb[72].mxu0 %v13708_v3  ;;  %v778_v25 = vrot.slane %v777_v5, 4  ;;  %v801_v51 = vor.u32 %v800_v60, %v797_v59 }
  0xf9   :  { %2162 = vmatprep.mubr.bf16.mxu0 %v13710_v24 }
  0xfa   :  { %2781 = vmatmul.mubr.bf16.gmra.mrb[88].mxu1 %v12917_v58  ;;  %v802_v5 = vrot.slane %v801_v51, 4 }
  0xfb   :  { %2788 = vmatprep.mubr.bf16.mxu1 %v13074_v49  ;;  %v12005_v49 = vld [vmem:[%s18153_s0 + $0x134] sm:$0x1] }
  0xfc   :  { %v742_v58 = vshll.u32 %v12005_v49, 16  ;;  %v739_v49 = vor.u32 %v738_v23, %v13745_v4  ;;  %v13800_v23 = vrot.slane %v780_v19, 5  ;;  %v12009_v19 = vld [vmem:[%s18153_s0 + $0x14c] sm:$0x1] }
  0xfd   :  { %v790_v56 = vshll.u32 %v12009_v19, 16 }
  0xfe   :  { %v744_v10 = vrot.slane %v742_v58, 5  ;;  %v740_v2 = vrot.slane %v739_v49, 4  ;;  %v787_v34 = vor.u32 %v786_v0, %v13800_v23  ;;  %v13819_v58 = vld [vmem:[%s18153_s0 + $0x154] sm:$0xf] }
  0xff   :  { %v808_v63 = vshrl.u32 %v13819_v58, 16  ;;  %v792_v54 = vrot.slane %v790_v56, 5  ;;  %v11842_v0 = vld [vmem:[%s18155_s2 + $0x1d0] sm:$0xff]  }
 0x100   :  { %2163 = vmatmul.mubr.bf16.gmra.mrb[76].mxu0 %v13734_v45  ;;  %v745_v26 = vsel %vm12498_vm5, %v740_v2, %v744_v10  ;;  %v788_v19 = vrot.slane %v787_v34, 4  ;;  %3584 = vmatpush1.bf16.msra.mxu1 %v11842_v0  ;;  %v13849_v10 = vld [vmem:[%s18153_s0 + $0x15c] sm:$0xf]  ;;  %v18601_v34 = vld [vmem:[#allocation60_spill] sm:$0xff]  ;;  %v13891_v0 = vcombine.low %v13750_v30, %v13757_v32 }
 0x101   :  { %2170 = vmatprep.mubr.bf16.mxu0 %v13761_v20  ;;  %v819_v2 = vshrl.u32 %v13849_v10, 16  ;;  %v822_v56 = vshll.u32 %v13849_v10, 16  ;;  %3585 = vmatprep.subr.bf16.mxu1 %v18519_v57 }
 0x102   :  { %2789 = vmatmul.mubr.bf16.gmra.mrb[92].mxu1 %v18556_v15  ;;  %v753_v15 = vor.u32 %v752_v14, %v749_v43  ;;  %v804_v14 = vshll.u32 %v13819_v58, 16  ;;  %v735_v43 = vsel %vm12498_vm5, %v730_v33, %v13745_v4  ;;  %v810_v4 = vrot.slane %v808_v63, 4  ;;  %18606 = vst [vmem:[#allocation89_spill] sm:$0xff] %v13891_v0 }
 0x103   :  { %2796 = vmatprep.mubr.bf16.mxu1 %v13130_v55  ;;  %v763_v55 = vor.u32 %v762_v28, %v13789_v50  ;;  %v768_v28 = vrot.slane %v766_v27, 5  ;;  %v12011_v27 = vld [vmem:[%s18153_s0 + $0x158] sm:$0x1]  ;;  %v13844_v33 = vcombine.low %v735_v43, %v745_v26  ;;  %v821_v43 = vrot.slane %v819_v2, 4 }
 0x104   :  { %v754_v49 = vrot.slane %v753_v15, 4  ;;  %v13835_v16 = vrot.slane %v804_v14, 5  ;;  %v814_v15 = vshll.u32 %v12011_v27, 16  ;;  %v13871_v14 = vcombine.low %v13718_v1, %v13726_v31 }
 0x105   :  { %v764_v41 = vrot.slane %v763_v55, 4  ;;  %v13842_v55 = vcombine.low %v13682_v53, %v13689_v40  ;;  %18600 = vst [vmem:[#allocation86_spill] sm:$0xff] %v13844_v33  ;;  %v13857_v53 = vld [vmem:[%s18153_s0 + $0x160] sm:$0xf]  ;;  %v824_v26 = vrot.slane %v822_v56, 5  ;;  %v793_v1 = vsel %vm12498_vm5, %v788_v19, %v792_v54 }
 0x106   :  { %v828_v40 = vshll.u32 %v13857_v53, 16  ;;  %v759_v59 = vsel %vm12498_vm5, %v754_v49, %v13789_v50  ;;  %18602 = vst [vmem:[#allocation87_spill] sm:$0xff] %v13871_v14  ;;  %v811_v51 = vor.u32 %v810_v4, %v13835_v16  ;;  %v18604_v50 = vld [vmem:[#allocation26_spill] sm:$0xff]  ;;  %v783_v49 = vsel %vm12498_vm5, %v778_v25, %v13800_v23 }
 0x107   :  { %18599 = vst [vmem:[#allocation85_spill] sm:$0xff] %v13842_v55  ;;  %v769_v60 = vsel %vm12498_vm5, %v764_v41, %v768_v28  ;;  %v832_v31 = vshrl.u32 %v13857_v53, 16  ;;  %v11844_v28 = vld [vmem:[%s18155_s2 + $0x1d8] sm:$0xff]   ;;  %v18605_v41 = vld [vmem:[#allocation63_spill] sm:$0xff]  ;;  %v13893_v4 = vcombine.low %v783_v49, %v793_v1  ;;  %v816_v23 = vrot.slane %v814_v15, 5 }
 0x108   :  { %2171 = vmatmul.mubr.bf16.gmra.mrb[80].mxu0 %v13804_v47  ;;  %v13873_v63 = vcombine.low %v759_v59, %v769_v60  ;;  %3586 = vmatpush1.bf16.msra.mxu1 %v11844_v28  ;;  %v812_v27 = vrot.slane %v811_v51, 4  ;;  %v13898_v54 = vrot.slane %v828_v40, 5  ;;  %v807_v30 = vsel %vm12498_vm5, %v802_v5, %v13835_v16  ;;  %v12014_v15 = vld [vmem:[%s18153_s0 + $0x164] sm:$0x1]  ;;  %v13916_v40 = vld [vmem:[%s18153_s0 + $0xdc] sm:$0xf] }
 0x109   :  { %2178 = vmatprep.mubr.bf16.mxu0 %v13806_v21  ;;  %18607 = vst [vmem:[#allocation90_spill] sm:$0xff] %v13893_v4  ;;  %3587 = vmatprep.subr.bf16.mxu1 %v18519_v57  ;;  %v834_v19 = vrot.slane %v832_v31, 4  ;;  %v825_v32 = vor.u32 %v824_v26, %v821_v43  ;;  %v838_v59 = vshll.u32 %v12014_v15, 16  ;;  %v13924_v16 = vld [vmem:[%s18153_s0 + $0x168] sm:$0xf]  ;;  %v1151_v26 = vrot.slane %v13916_v40, 5 }
 0x10a   :  { %2797 = vmatmul.mubr.bf16.gmra.mrb[96].mxu1 %v18562_v42  ;;  %18603 = vst [vmem:[#allocation88_spill] sm:$0xff] %v13873_v63  ;;  %v817_v51 = vsel %vm12498_vm5, %v812_v27, %v816_v23  ;;  %v843_v5 = vshrl.u32 %v13924_v16, 16  ;;  %v846_v43 = vshll.u32 %v13924_v16, 16  ;;  %v13934_v1 = vld [vmem:[%s18153_s0 + $0x16c] sm:$0xf] }
 0x10b   :  { %2804 = vmatprep.mubr.bf16.mxu1 %v13197_v38  ;;  %v835_v49 = vor.u32 %v834_v19, %v13898_v54  ;;  %v852_v31 = vshll.u32 %v13934_v1, 16  ;;  %v856_v28 = vshrl.u32 %v13934_v1, 16  ;;  %v13941_v27 = vld [vmem:[%s18153_s0 + $0xd8] sm:$0xf]  ;;  %v13946_v23 = vld [vmem:[%s18153_s0 + $0xe0] sm:$0x1] }
 0x10c   :  { %v10088_v19 = vrot.slane %v13941_v27, 9  ;;  %v1153_v15 = vrot.slane %v1151_v26, 4  ;;  %v845_v38 = vrot.slane %v843_v5, 4  ;;  %v848_v42 = vrot.slane %v846_v43, 5  ;;  %v13985_v5 = vld [vmem:[%s18153_s0 + $0x178] sm:$0xf] }
 0x10d   :  { %v876_v43 = vshll.u32 %v13985_v5, 16 }
 0x110   :  { %2179 = vmatmul.mubr.bf16.gmra.mrb[84].mxu0 %v13842_v55 }
 0x111   :  { %2186 = vmatprep.mubr.bf16.mxu0 %v13844_v33 }
 0x112   :  { %2805 = vmatmul.mubr.bf16.gmra.mrb[100].mxu1 %v13063_v39  ;;  %v840_v39 = vrot.slane %v838_v59, 5  ;;  %v13978_v59 = vld [vmem:[%s18153_s0 + $0x174] sm:$0xf] }
 0x113   :  { %2812 = vmatprep.mubr.bf16.mxu1 %v18601_v34  ;;  %v826_v34 = vrot.slane %v825_v32, 4 }
 0x118   :  { %2187 = vmatmul.mubr.bf16.gmra.mrb[88].mxu0 %v13871_v14 }
 0x119   :  { %2194 = vmatprep.mubr.bf16.mxu0 %v13873_v63  ;;  %v13967_v63 = vrot.slane %v852_v31, 5  ;;  %v13995_v31 = vcombine.low %v13795_v37, %v13819_v58  ;;  %v11846_v37 = vld [vmem:[%s18155_s2 + $0x1e0] sm:$0xff]  }
 0x11a   :  { %2813 = vmatmul.mubr.bf16.gmra.mrb[104].mxu1 %v18604_v50  ;;  %v13955_v50 = vcombine.low %v807_v30, %v817_v51  ;;  %v867_v51 = vshrl.u32 %v13978_v59, 16 }
 0x11b   :  { %2820 = vmatprep.mubr.bf16.mxu1 %v18605_v41  ;;  %v13953_v41 = vcombine.low %v13766_v35, %v13782_v29  ;;  %v858_v35 = vrot.slane %v856_v28, 4  ;;  %18612 = vst [vmem:[#allocation95_spill] sm:$0xff] %v13995_v31  ;;  %v12019_v28 = vld [vmem:[%s18153_s0 + $0x170] sm:$0x1]  ;;  %3588 = vmatpush1.bf16.msra.mxu1 %v11846_v37 }
 0x11c   :  { %v13895_v25 = vpop.f32.mrb[0].mxu1  ;;  %18609 = vst [vmem:[#allocation92_spill] sm:$0xff] %v13955_v50  ;;  %v869_v58 = vrot.slane %v867_v51, 4  ;;  %3589 = vmatprep.subr.bf16.mxu1 %v18519_v57 }
 0x11d   :  { %v13900_v2 = vpop.f32.mrb[1].mxu1  ;;  %18608 = vst [vmem:[#allocation91_spill] sm:$0xff] %v13953_v41 }
 0x11e   :  { %v13902_v56 = vpop.f32.mrb[2].mxu1 }
 0x11f   :  { %v13911_v60 = vpop.f32.mrb[3].mxu1 }
 0x120   :  { %2195 = vmatmul.mubr.bf16.gmra.mrb[92].mxu0 %v13891_v0  ;;  %v836_v0 = vrot.slane %v835_v49, 4 }
 0x121   :  { %2202 = vmatprep.mubr.bf16.mxu0 %v13893_v4 }
 0x122   :  { %2821 = vmatmul.mubr.bf16.gmra.mrb[108].mxu1 %v13275_v62  ;;  %v1154_v62 = vrot.slane %v13946_v23, 5  ;;  %v841_v30 = vsel %vm12498_vm5, %v836_v0, %v840_v39  ;;  %v564_v39 = vshll.u32 %v13916_v40, 16 }
 0x123   :  { %2828 = vmatprep.mubr.bf16.mxu1 %v13388_v22  ;;  %v13961_v22 = vsel %vm12242_vm2, %v10088_v19, %v1151_v26  ;;  %v880_v26 = vshrl.u32 %v13985_v5, 16  ;;  %v862_v19 = vshll.u32 %v12019_v28, 16 }
 0x124   :  { %v13957_v13 = vpop.f32.mrb[4].mxu1  ;;  %18610 = vst [vmem:[#allocation93_spill] sm:$0xff] %v13961_v22  ;;  %v13965_v4 = vsel %vm12242_vm2, %v1153_v15, %v1154_v62  ;;  %v870_v62 = vshll.u32 %v13978_v59, 16  ;;  %v831_v15 = vsel %vm12498_vm5, %v826_v34, %v13898_v54  ;;  %v859_v22 = vor.u32 %v858_v35, %v13967_v63 }
 0x125   :  { %18611 = vst [vmem:[#allocation94_spill] sm:$0xff] %v13965_v4  ;;  %v13969_v29 = vpop.f32.mrb[5].mxu1  ;;  %v849_v4 = vor.u32 %v848_v42, %v845_v38  ;;  %v558_v34 = vshll.u32 %v13941_v27, 16  ;;  %v568_v38 = vshrl.u32 %v13916_v40, 16  ;;  %v14017_v42 = vcombine.low %v831_v15, %v841_v30 }
 0x126   :  { %v13973_v32 = vpop.f32.mrb[6].mxu1  ;;  %v872_v28 = vrot.slane %v870_v62, 5  ;;  %v860_v35 = vrot.slane %v859_v22, 4  ;;  %v864_v51 = vrot.slane %v862_v19, 5  ;;  %v14031_v33 = vrot.slane %v564_v39, 5 }
 0x127   :  { %v13990_v49 = vpop.f32.mrb[7].mxu1  ;;  %18613 = vst [vmem:[#allocation96_spill] sm:$0xff] %v14017_v42  ;;  %v850_v54 = vrot.slane %v849_v4, 4  ;;  %v560_v15 = vrot.slane %v558_v34, 5  ;;  %v570_v22 = vrot.slane %v568_v38, 4  ;;  %v14058_v38 = vcombine.low %v13849_v10, %v13857_v53 }
 0x128   :  { %2203 = vmatmul.mubr.bf16.gmra.mrb[96].mxu0 %v13953_v41  ;;  %v555_v41 = vshrl.u32 %v13941_v27, 16 }
 0x129   :  { %2210 = vmatprep.mubr.bf16.mxu0 %v13955_v50  ;;  %v14011_v50 = vrot.slane %v876_v43, 5  ;;  %v873_v43 = vor.u32 %v872_v28, %v869_v58  ;;  %v865_v58 = vsel %vm12498_vm5, %v860_v35, %v864_v51  ;;  %v14052_v28 = vld [vmem:[%s18153_s0 + $0x184] sm:$0xf]  ;;  %18614 = vst [vmem:[#allocation97_spill] sm:$0xff] %v14058_v38 }
 0x12a   :  { %2829 = vmatmul.mubr.bf16.gmra.mrb[112].mxu1 %v13430_v46  ;;  %v882_v46 = vrot.slane %v880_v26, 4  ;;  %v557_v30 = vrot.slane %v555_v41, 4  ;;  %v855_v41 = vsel %vm12498_vm5, %v850_v54, %v13967_v63  ;;  %v900_v34 = vshll.u32 %v14052_v28, 16 }
 0x12b   :  { %2836 = vmatprep.mubr.bf16.mxu1 %v13439_v17  ;;  %v12020_v17 = vld [vmem:[%s18153_s0 + $0x17c] sm:$0x1]  ;;  %v904_v39 = vshrl.u32 %v14052_v28, 16  ;;  %v574_v63 = vshll.u32 %v13946_v23, 16  ;;  %v874_v54 = vrot.slane %v873_v43, 4 }
 0x12c   :  { %v14019_v0 = vpop.f32.mrb[8].mxu1  ;;  %v883_v26 = vor.u32 %v882_v46, %v14011_v50  ;;  %v886_v14 = vshll.u32 %v12020_v17, 16  ;;  %v14039_v46 = vld [vmem:[%s18153_s0 + $0x180] sm:$0xf]  ;;  %v561_v51 = vor.u32 %v560_v15, %v557_v30  ;;  %v14067_v20 = vrot.slane %v900_v34, 5  ;;  %v11848_v34 = vld [vmem:[%s18155_s2 + $0x1e8] sm:$0xff]  }
 0x12d   :  { %v14022_v62 = vpop.f32.mrb[9].mxu1  ;;  %v891_v17 = vshrl.u32 %v14039_v46, 16  ;;  %v894_v19 = vshll.u32 %v14039_v46, 16  ;;  %v906_v10 = vrot.slane %v904_v39, 4  ;;  %v879_v23 = vsel %vm12498_vm5, %v874_v54, %v14011_v50  ;;  %3590 = vmatpush1.bf16.msra.mxu1 %v11848_v34 }
 0x12e   :  { %v14028_v37 = vpop.f32.mrb[10].mxu1  ;;  %v884_v35 = vrot.slane %v883_v26, 4  ;;  %v562_v26 = vrot.slane %v561_v51, 4  ;;  %3591 = vmatprep.subr.bf16.mxu1 %v18519_v57 }
 0x12f   :  { %v14033_v4 = vpop.f32.mrb[11].mxu1  ;;  %v893_v55 = vrot.slane %v891_v17, 4  ;;  %v896_v21 = vrot.slane %v894_v19, 5  ;;  %v12023_v17 = vld [vmem:[%s18153_s0 + $0x188] sm:$0x1] }
 0x130   :  { %2211 = vmatmul.mubr.bf16.gmra.mrb[100].mxu0 %v13995_v31  ;;  %v14063_v31 = vcombine.low %v855_v41, %v865_v58  ;;  %v910_v19 = vshll.u32 %v12023_v17, 16  ;;  %v14088_v41 = vld [vmem:[%s18153_s0 + $0x18c] sm:$0xf] }
 0x131   :  { %2218 = vmatprep.mubr.bf16.mxu0 %v14017_v42  ;;  %v571_v42 = vor.u32 %v570_v22, %v14031_v33  ;;  %v897_v22 = vor.u32 %v896_v21, %v893_v55  ;;  %v915_v50 = vshrl.u32 %v14088_v41, 16  ;;  %v14097_v21 = vld [vmem:[%s18153_s0 + $0x190] sm:$0xf] }
 0x132   :  { %2837 = vmatmul.mubr.bf16.gmra.mrb[116].mxu1 %v13477_v36  ;;  %v888_v36 = vrot.slane %v886_v14, 5  ;;  %18615 = vst [vmem:[#allocation98_spill] sm:$0xff] %v14063_v31  ;;  %v924_v55 = vshll.u32 %v14097_v21, 16  ;;  %v928_v58 = vshrl.u32 %v14097_v21, 16 }
 0x133   :  { %2844 = vmatprep.mubr.bf16.mxu1 %v13481_v18  ;;  %v576_v18 = vrot.slane %v574_v63, 5  ;;  %v572_v30 = vrot.slane %v571_v42, 4  ;;  %v907_v42 = vor.u32 %v906_v10, %v14067_v20  ;;  %v14106_v63 = vcombine.low %v13924_v16, %v13934_v1 }
 0x134   :  { %v14065_v47 = vpop.f32.mrb[12].mxu1  ;;  %v889_v43 = vsel %vm12498_vm5, %v884_v35, %v888_v36  ;;  %v918_v36 = vshll.u32 %v14088_v41, 16  ;;  %v567_v10 = vsel %vm12498_vm5, %v562_v26, %v14031_v33  ;;  %v912_v16 = vrot.slane %v910_v19, 5 }
 0x135   :  { %v14069_v53 = vpop.f32.mrb[13].mxu1  ;;  %18616 = vst [vmem:[#allocation99_spill] sm:$0xff] %v14106_v63  ;;  %v14112_v51 = vcombine.low %v879_v23, %v889_v43  ;;  %v577_v17 = vsel %vm12498_vm5, %v572_v30, %v576_v18  ;;  %v917_v1 = vrot.slane %v915_v50, 4  ;;  %v908_v43 = vrot.slane %v907_v42, 4 }
 0x136   :  { %v14071_v14 = vpop.f32.mrb[14].mxu1  ;;  %v930_v33 = vrot.slane %v928_v58, 4  ;;  %v10152_v18 = vcombine.low %v567_v10, %v577_v17  ;;  %v11849_v58 = vld [vmem:[%s18155_s2 + $0x1f0] sm:$0xff]  }
 0x137   :  { %v14079_v15 = vpop.f32.mrb[15].mxu1  ;;  %18617 = vst [vmem:[#allocation100_spill] sm:$0xff] %v14112_v51  ;;  %v913_v34 = vsel %vm12498_vm5, %v908_v43, %v912_v16  ;;  %3592 = vmatpush1.bf16.msra.mxu1 %v11849_v58  ;;  %v14167_v16 = vcombine.low %v13978_v59, %v13985_v5 }
 0x138   :  { %2219 = vmatmul.mubr.bf16.gmra.mrb[104].mxu0 %v14058_v38  ;;  %v920_v38 = vrot.slane %v918_v36, 5  ;;  %v14144_v36 = vld [vmem:[%s18153_s0 + $0x198] sm:$0xf]  ;;  %3593 = vmatprep.subr.bf16.mxu1 %v18519_v57 }
 0x139   :  { %2226 = vmatprep.mubr.bf16.mxu0 %v14063_v31  ;;  %v898_v31 = vrot.slane %v897_v22, 4  ;;  %v12026_v22 = vld [vmem:[%s18153_s0 + $0x194] sm:$0x1]  ;;  %v1718_v42 = vshrl.u32 %v14144_v36, 16  ;;  %18618 = vst [vmem:[#allocation101_spill] sm:$0xff] %v14167_v16 }
 0x13a   :  { %2845 = vmatmul.mubr.bf16.gmra.mrb[120].mxu1 %v13518_v52  ;;  %v934_v19 = vshll.u32 %v12026_v22, 16 }
 0x13b   :  { %v2012_v39 = vpop.f32.mrb[0].mxu0  ;;  %2852 = vmatprep.mubr.bf16.mxu1 %v13521_v61 }
 0x13c   :  { %v14110_v54 = vadd.f32 %v13900_v2, %v2012_v39  ;;  %v2014_v35 = vpop.f32.mrb[1].mxu0  ;;  %v14125_v39 = vrot.slane %v924_v55, 5  ;;  %v1721_v55 = vshll.u32 %v14144_v36, 16  ;;  %v936_v43 = vrot.slane %v934_v19, 5 }
 0x13d   :  { %v2015_v52 = vpop.f32.mrb[2].mxu0  ;;  %v14119_v61 = vpop.f32.mrb[16].mxu1 }
 0x13e   :  { %v14123_v2 = vadd.f32 %v13911_v60, %v2015_v52  ;;  %v2017_v23 = vpop.f32.mrb[3].mxu0  ;;  %v14127_v26 = vpop.f32.mrb[17].mxu1  ;;  %v903_v52 = vsel %vm12498_vm5, %v898_v31, %v14067_v20  ;;  %v921_v60 = vor.u32 %v920_v38, %v917_v1  ;;  %v931_v20 = vor.u32 %v930_v33, %v14125_v39  ;;  %v14158_v31 = vld [vmem:[%s18153_s0 + $0x19c] sm:$0xf] }
 0x13f   :  { %v14129_v30 = vpop.f32.mrb[18].mxu1  ;;  %v1727_v38 = vshll.u32 %v14158_v31, 16  ;;  %v1731_v35 = vshrl.u32 %v14158_v31, 16  ;;  %v10120_v23 = vcombine.low %v13941_v27, %v13916_v40  ;;  %v14172_v22 = vcombine.low %v903_v52, %v913_v34 }
 0x140   :  { %2227 = vmatmul.mubr.bf16.gmra.mrb[108].mxu0 %v14106_v63  ;;  %v14135_v50 = vpop.f32.mrb[19].mxu1  ;;  %v1723_v58 = vrot.slane %v1721_v55, 5  ;;  %v932_v40 = vrot.slane %v931_v20, 4 }
 0x141   :  { %2234 = vmatprep.mubr.bf16.mxu0 %v14112_v51  ;;  %18619 = vst [vmem:[#allocation102_spill] sm:$0xff] %v14172_v22  ;;  %v1729_v27 = vrot.slane %v1727_v38, 5  ;;  %v1733_v19 = vrot.slane %v1731_v35, 4 }
 0x142   :  { %2853 = vmatmul.mubr.bf16.gmra.mrb[124].mxu1 %v13557_v6  ;;  %v922_v6 = vrot.slane %v921_v60, 4  ;;  %v937_v34 = vsel %vm12498_vm5, %v932_v40, %v936_v43 }
 0x143   :  { %v2020_v10 = vpop.f32.mrb[4].mxu0  ;;  %2860 = vmatprep.mubr.bf16.mxu1 %v10152_v18  ;;  %v1720_v18 = vrot.slane %v1718_v42, 4  ;;  %v1734_v38 = vor.u32 %v1733_v19, %v1729_v27  ;;  %v12030_v19 = vld [vmem:[%s18153_s0 + $0x4] sm:$0xf] }
 0x144   :  { %v14163_v17 = vadd.f32 %v13895_v25, %v2020_v10  ;;  %v2022_v1 = vpop.f32.mrb[5].mxu0  ;;  %v11850_v25 = vld [vmem:[%s18155_s2 + $0x1f8] sm:$0xff]   ;;  %v927_v55 = vsel %vm12498_vm5, %v922_v6, %v14125_v39 }
 0x145   :  { %v2023_v33 = vpop.f32.mrb[6].mxu0  ;;  %v14174_v51 = vpop.f32.mrb[20].mxu1  ;;  %3594 = vmatpush1.bf16.msra.mxu1 %v11850_v25  ;;  %v1724_v20 = vor.u32 %v1723_v58, %v1720_v18  ;;  %v14204_v25 = vcombine.low %v14039_v46, %v14052_v28  ;;  %v1735_v58 = vrot.slane %v1734_v38, 4 }
 0x146   :  { %v14180_v59 = vadd.f32 %v13902_v56, %v2023_v33  ;;  %v2025_v5 = vpop.f32.mrb[7].mxu0  ;;  %v14182_v10 = vpop.f32.mrb[21].mxu1  ;;  %v12029_v56 = vld [vmem:[%s18153_s0 + $0x1a0] sm:$0x1] }
 0x147   :  { %v14184_v52 = vpop.f32.mrb[22].mxu1  ;;  %v1737_v42 = vshll.u32 %v12029_v56, 16  ;;  %18620 = vst [vmem:[#allocation103_spill] sm:$0xff] %v14204_v25  ;;  %v14206_v5 = vcombine.low %v927_v55, %v937_v34  ;;  %v1725_v18 = vrot.slane %v1724_v20, 4  ;;  %v1039_v56 = vrot.slane %v12030_v19, 5 }
 0x148   :  { %2235 = vmatmul.mubr.bf16.gmra.mrb[112].mxu0 %v14167_v16  ;;  %v14187_v60 = vpop.f32.mrb[23].mxu1 }
 0x149   :  { %2242 = vmatprep.mubr.bf16.mxu0 %v14172_v22  ;;  %18621 = vst [vmem:[#allocation104_spill] sm:$0xff] %v14206_v5 }
 0x14a   :  { %2861 = vmatmul.mubr.bf16.gmra.mrb[128].mxu1 %v10120_v23 }
 0x14b   :  { %v2028_v35 = vpop.f32.mrb[8].mxu0  ;;  %2868 = vmatprep.mubr.bf16.mxu1 %v13598_v9  ;;  %v1739_v9 = vrot.slane %v1737_v42, 5 }
 0x14c   :  { %v14200_v1 = vadd.f32 %v13969_v29, %v2028_v35  ;;  %v2030_v33 = vpop.f32.mrb[9].mxu0 }
 0x14d   :  { %v2031_v23 = vpop.f32.mrb[10].mxu0  ;;  %v14208_v6 = vpop.f32.mrb[24].mxu1  ;;  %v1740_v28 = vsel %vm12498_vm5, %v1735_v58, %v1739_v9 }
 0x14e   :  { %v14211_v39 = vadd.f32 %v13990_v49, %v2031_v23  ;;  %v2033_v43 = vpop.f32.mrb[11].mxu0  ;;  %v14213_v40 = vpop.f32.mrb[25].mxu1  ;;  %v1730_v49 = vsel %vm12498_vm5, %v1725_v18, %v1729_v27  ;;  %v12031_v23 = vld [vmem:[%s18153_s0] sm:$0xf] }
 0x14f   :  { %v14215_v29 = vpop.f32.mrb[26].mxu1  ;;  %v14237_v20 = vcombine.low %v1730_v49, %v1740_v28  ;;  %v1041_v43 = vrot.slane %v1039_v56, 4 }
 0x150   :  { %2243 = vmatmul.mubr.bf16.gmra.mrb[116].mxu0 %v14204_v25  ;;  %v14218_v46 = vpop.f32.mrb[27].mxu1 }
 0x151   :  { %2250 = vmatprep.mubr.bf16.mxu0 %v14206_v5  ;;  %18623 = vst [vmem:[#allocation106_spill] sm:$0xff] %v14237_v20 }
 0x152   :  { %2869 = vmatmul.mubr.bf16.gmra.mrb[132].mxu1 %v13635_v48  ;;  %v14235_v48 = vcombine.low %v14088_v41, %v14097_v21  ;;  %v12032_v41 = vld [vmem:[%s18153_s0 + $0x8] sm:$0x1] }
 0x153   :  { %v2036_v42 = vpop.f32.mrb[12].mxu0  ;;  %2876 = vmatprep.mubr.bf16.mxu1 %v13638_v7  ;;  %v1042_v21 = vrot.slane %v12032_v41, 5 }
 0x154   :  { %v14231_v55 = vadd.f32 %v13957_v13, %v2036_v42  ;;  %v2038_v34 = vpop.f32.mrb[13].mxu0  ;;  %18622 = vst [vmem:[#allocation105_spill] sm:$0xff] %v14235_v48  ;;  %v10072_v13 = vrot.slane %v12031_v23, 9 }
 0x155   :  { %v2039_v27 = vpop.f32.mrb[14].mxu0  ;;  %v14239_v38 = vpop.f32.mrb[28].mxu1  ;;  %v1043_v49 = vsel %vm12242_vm2, %v1041_v43, %v1042_v21  ;;  %v14269_v34 = vcombine.low %v14144_v36, %v14158_v31 }
 0x156   :  { %v14242_v35 = vadd.f32 %v13973_v32, %v2039_v27  ;;  %v2041_v33 = vpop.f32.mrb[15].mxu0  ;;  %v14250_v18 = vpop.f32.mrb[29].mxu1  ;;  %v1040_v9 = vsel %vm12242_vm2, %v10072_v13, %v1039_v56 }
 0x157   :  { %v14252_v58 = vpop.f32.mrb[30].mxu1  ;;  %18624 = vst [vmem:[#allocation107_spill] sm:$0xff] %v14269_v34  ;;  %v10168_v33 = vcombine.low %v1040_v9, %v1043_v49 }
 0x158   :  { %2251 = vmatmul.mubr.bf16.gmra.mrb[120].mxu0 %v14235_v48  ;;  %v14255_v32 = vpop.f32.mrb[31].mxu1 }
 0x159   :  { %2258 = vmatprep.mubr.bf16.mxu0 %v14237_v20 }
 0x15a   :  { %2877 = vmatmul.mubr.bf16.gmra.mrb[136].mxu1 %v13674_v12 }
 0x15b   :  { %v2044_v28 = vpop.f32.mrb[16].mxu0  ;;  %2884 = vmatprep.mubr.bf16.mxu1 %v13676_v44  ;;  %v11843_v44 = vld [vmem:[%s18155_s2 + $0x218] sm:$0xff]  }
 0x15c   :  { %v14265_v19 = vadd.f32 %v14022_v62, %v2044_v28  ;;  %v2046_v42 = vpop.f32.mrb[17].mxu0 }
 0x15d   :  { %v2047_v27 = vpop.f32.mrb[18].mxu0  ;;  %v14271_v23 = vpop.f32.mrb[32].mxu1  ;;  %v11839_v42 = vld [vmem:[%s18155_s2 + $0x208] sm:$0xff]  }
 0x15e   :  { %v14274_v56 = vadd.f32 %v14033_v4, %v2047_v27  ;;  %v2049_v13 = vpop.f32.mrb[19].mxu0  ;;  %v14276_v43 = vpop.f32.mrb[33].mxu1 }
 0x15f   :  { %v14278_v41 = vpop.f32.mrb[34].mxu1  ;;  %v18625_v13 = vld [vmem:[#allocation13_spill] sm:$0xff] }
 0x160   :  { %2259 = vmatmul.mubr.bf16.gmra.mrb[124].mxu0 %v14269_v34  ;;  %v14281_v62 = vpop.f32.mrb[35].mxu1 }
 0x161   :  { %11355 = vmatprep.mubr.bf16.mxu0 %v10168_v33 }
 0x162   :  { %2885 = vmatmul.mubr.bf16.gmra.mrb[140].mxu1 %v13708_v3 }
 0x163   :  { %v2052_v36 = vpop.f32.mrb[20].mxu0  ;;  %2892 = vmatprep.mubr.bf16.mxu1 %v13710_v24 }
 0x164   :  { %v14286_v31 = vadd.f32 %v14019_v0, %v2052_v36  ;;  %v2054_v4 = vpop.f32.mrb[21].mxu0  ;;  %v12033_v36 = vld [vmem:[%s18155_s2 + $0x200] sm:$0xff]  }
 0x165   :  { %v2055_v21 = vpop.f32.mrb[22].mxu0  ;;  %v14288_v9 = vpop.f32.mrb[36].mxu1  ;;  %v11841_v4 = vld [vmem:[%s18155_s2 + $0x210] sm:$0xff]  }
 0x166   :  { %v14291_v49 = vadd.f32 %v14028_v37, %v2055_v21  ;;  %v2057_v28 = vpop.f32.mrb[23].mxu0  ;;  %v14296_v27 = vpop.f32.mrb[37].mxu1  ;;  %v18626_v37 = vld [vmem:[#allocation14_spill] sm:$0xff] }
 0x167   :  { %v14298_v33 = vpop.f32.mrb[38].mxu1  ;;  %v18627_v28 = vld [vmem:[#allocation82_spill] sm:$0xff] }
 0x168   :  { %11356 = vmatmul.mubr.bf16.vlgmr.msra.gmra.mrb[128].mxu0 %v18625_v13  ;;  %v14301_v0 = vpop.f32.mrb[39].mxu1 }
 0x169   :  { %11420 = vmatpush3.bf16.msra.mxu0 %v12033_v36  ;;  %11359 = vmatprep.mubr.bf16.mxu0 %v18626_v37 }
 0x16a   :  { %2893 = vmatmul.mubr.bf16.gmra.mrb[144].mxu1 %v13734_v45  ;;  %11421 = vmatprep.subr.bf16.mxu0 %v11839_v42 }
 0x16b   :  { %v2060_v21 = vpop.f32.mrb[24].mxu0  ;;  %2900 = vmatprep.mubr.bf16.mxu1 %v18627_v28 }
 0x16c   :  { %v14313_v13 = vadd.f32 %v14069_v53, %v2060_v21  ;;  %v2062_v34 = vpop.f32.mrb[25].mxu0  ;;  %v18629_v53 = vld [vmem:[#allocation15_spill] sm:$0xff] }
 0x16d   :  { %v2063_v20 = vpop.f32.mrb[26].mxu0  ;;  %11422 = vmatpush3.bf16.msra.mxu0 %v11839_v42  ;;  %v14315_v24 = vpop.f32.mrb[40].mxu1  ;;  %v18630_v42 = vld [vmem:[#allocation18_spill] sm:$0xff]  ;;  %v18631_v21 = vld [vmem:[#allocation83_spill] sm:$0xff] }
 0x16e   :  { %v14318_v36 = vadd.f32 %v14079_v15, %v2063_v20  ;;  %v2065_v45 = vpop.f32.mrb[27].mxu0  ;;  %v14320_v3 = vpop.f32.mrb[41].mxu1  ;;  %11423 = vmatprep.subr.bf16.mxu0 %v11841_v4  ;;  %v18632_v20 = vld [vmem:[#allocation84_spill] sm:$0xff] }
 0x16f   :  { %v14325_v28 = vpop.f32.mrb[42].mxu1  ;;  %v11845_v45 = vld [vmem:[%s18155_s2 + $0x220] sm:$0xff]  }
 0x170   :  { %18628 = vst [vmem:[#allocation13_spill] sm:$0xff] %v14325_v28  ;;  %11360 = vmatmul.mubr.bf16.gmra.mrb[132].mxu0 %v18629_v53  ;;  %v14328_v34 = vpop.f32.mrb[43].mxu1  ;;  %v11847_v53 = vld [vmem:[%s18155_s2 + $0x228] sm:$0xff]  }
 0x171   :  { %11363 = vmatprep.mubr.bf16.mxu0 %v18630_v42  ;;  %11424 = vmatpush3.bf16.msra.mxu0 %v11841_v4 }
 0x172   :  { %2901 = vmatmul.mubr.bf16.gmra.mrb[148].mxu1 %v18631_v21  ;;  %11425 = vmatprep.subr.bf16.mxu0 %v11843_v44 }
 0x173   :  { %v2068_v15 = vpop.f32.mrb[28].mxu0  ;;  %2908 = vmatprep.mubr.bf16.mxu1 %v18632_v20 }
 0x174   :  { %v14337_v12 = vadd.f32 %v14065_v47, %v2068_v15  ;;  %v2070_v7 = vpop.f32.mrb[29].mxu0  ;;  %v18636_v47 = vld [vmem:[#allocation19_spill] sm:$0xff]  ;;  %v18638_v15 = vld [vmem:[#allocation22_spill] sm:$0xff] }
 0x175   :  { %v2071_v8 = vpop.f32.mrb[30].mxu0  ;;  %v14339_v11 = vpop.f32.mrb[44].mxu1  ;;  %11426 = vmatpush3.bf16.msra.mxu0 %v11843_v44  ;;  %v18639_v44 = vld [vmem:[#allocation85_spill] sm:$0xff] }
 0x176   :  { %18633 = vst [vmem:[#allocation14_spill] sm:$0xff] %v14339_v11  ;;  %v14342_v4 = vadd.f32 %v14071_v14, %v2071_v8  ;;  %v2073_v21 = vpop.f32.mrb[31].mxu0  ;;  %v14344_v42 = vpop.f32.mrb[45].mxu1  ;;  %11427 = vmatprep.subr.bf16.mxu0 %v11845_v45  ;;  %v11851_v8 = vld [vmem:[%s18155_s2 + $0x230] sm:$0xff]  }
 0x177   :  { %18634 = vst [vmem:[#allocation108_spill] sm:$0xff] %v14344_v42  ;;  %v14349_v20 = vpop.f32.mrb[46].mxu1  ;;  %v18640_v21 = vld [vmem:[#allocation86_spill] sm:$0xff] }
 0x178   :  { %18635 = vst [vmem:[#allocation109_spill] sm:$0xff] %v14349_v20  ;;  %11364 = vmatmul.mubr.bf16.gmra.mrb[136].mxu0 %v18636_v47  ;;  %v14352_v7 = vpop.f32.mrb[47].mxu1 }
 0x179   :  { %18637 = vst [vmem:[#allocation110_spill] sm:$0xff] %v14352_v7  ;;  %11367 = vmatprep.mubr.bf16.mxu0 %v18638_v15  ;;  %11428 = vmatpush3.bf16.msra.mxu0 %v11845_v45  ;;  %v11852_v7 = vld [vmem:[%s18155_s2 + $0x238] sm:$0xff]  }
 0x17a   :  { %2909 = vmatmul.mubr.bf16.gmra.mrb[152].mxu1 %v18639_v44  ;;  %11429 = vmatprep.subr.bf16.mxu0 %v11847_v53 }
 0x17b   :  { %v2076_v14 = vpop.f32.mrb[32].mxu0  ;;  %2916 = vmatprep.mubr.bf16.mxu1 %v18640_v21 }
 0x17c   :  { %v14361_v11 = vadd.f32 %v14127_v26, %v2076_v14  ;;  %v2078_v20 = vpop.f32.mrb[33].mxu0  ;;  %v18644_v26 = vld [vmem:[#allocation27_spill] sm:$0xff]  ;;  %v18646_v14 = vld [vmem:[#allocation32_spill] sm:$0xff] }
 0x17d   :  { %v2079_v47 = vpop.f32.mrb[34].mxu0  ;;  %v14363_v42 = vpop.f32.mrb[48].mxu1  ;;  %11430 = vmatpush3.bf16.msra.mxu0 %v11847_v53  ;;  %v18647_v53 = vld [vmem:[#allocation87_spill] sm:$0xff] }
 0x17e   :  { %18641 = vst [vmem:[#allocation111_spill] sm:$0xff] %v14363_v42  ;;  %v14366_v45 = vadd.f32 %v14135_v50, %v2079_v47  ;;  %v2081_v44 = vpop.f32.mrb[35].mxu0  ;;  %v14368_v15 = vpop.f32.mrb[49].mxu1  ;;  %11431 = vmatprep.subr.bf16.mxu0 %v11851_v8  ;;  %v18648_v47 = vld [vmem:[#allocation88_spill] sm:$0xff] }
 0x17f   :  { %18642 = vst [vmem:[#allocation112_spill] sm:$0xff] %v14368_v15  ;;  %v14373_v21 = vpop.f32.mrb[50].mxu1 }
 0x180   :  { %18643 = vst [vmem:[#allocation113_spill] sm:$0xff] %v14373_v21  ;;  %11368 = vmatmul.mubr.bf16.gmra.mrb[140].mxu0 %v18644_v26  ;;  %v14376_v20 = vpop.f32.mrb[51].mxu1  ;;  %v18674_v26 = vld [vmem:[#allocation43_spill] sm:$0xff] }
 0x181   :  { %18645 = vst [vmem:[#allocation114_spill] sm:$0xff] %v14376_v20  ;;  %11371 = vmatprep.mubr.bf16.mxu0 %v18646_v14  ;;  %11432 = vmatpush3.bf16.msra.mxu0 %v11851_v8 }
 0x182   :  { %2917 = vmatmul.mubr.bf16.gmra.mrb[156].mxu1 %v18647_v53  ;;  %11433 = vmatprep.subr.bf16.mxu0 %v11852_v7  ;;  %v18652_v53 = vld [vmem:[#allocation33_spill] sm:$0xff] }
 0x183   :  { %v2084_v50 = vpop.f32.mrb[36].mxu0  ;;  %2924 = vmatprep.mubr.bf16.mxu1 %v18648_v47 }
 0x184   :  { %v14382_v44 = vadd.f32 %v14119_v61, %v2084_v50  ;;  %v2086_v42 = vpop.f32.mrb[37].mxu0  ;;  %v18654_v61 = vld [vmem:[#allocation35_spill] sm:$0xff] }
 0x185   :  { %v2087_v15 = vpop.f32.mrb[38].mxu0  ;;  %v14384_v28 = vpop.f32.mrb[52].mxu1  ;;  %11434 = vmatpush3.bf16.msra.mxu0 %v11852_v7  ;;  %v18655_v42 = vld [vmem:[#allocation89_spill] sm:$0xff]  ;;  %v18656_v7 = vld [vmem:[#allocation90_spill] sm:$0xff] }
 0x186   :  { %18649 = vst [vmem:[#allocation115_spill] sm:$0xff] %v14384_v28  ;;  %v14387_v21 = vadd.f32 %v14129_v30, %v2087_v15  ;;  %v2089_v20 = vpop.f32.mrb[39].mxu0  ;;  %v14389_v14 = vpop.f32.mrb[53].mxu1  ;;  %7173 = vmatprep.subr.bf16.mxu0 %v18519_v57 }
 0x187   :  { %18650 = vst [vmem:[#allocation116_spill] sm:$0xff] %v14389_v14  ;;  %v14392_v8 = vpop.f32.mrb[54].mxu1 }
 0x188   :  { %18651 = vst [vmem:[#allocation117_spill] sm:$0xff] %v14392_v8  ;;  %11372 = vmatmul.mubr.bf16.gmra.mrb[144].mxu0 %v18652_v53  ;;  %v14395_v47 = vpop.f32.mrb[55].mxu1 }
 0x189   :  { %18653 = vst [vmem:[#allocation118_spill] sm:$0xff] %v14395_v47  ;;  %11375 = vmatprep.mubr.bf16.mxu0 %v18654_v61  ;;  %v18660_v61 = vld [vmem:[#allocation37_spill] sm:$0xff] }
 0x18a   :  { %2925 = vmatmul.mubr.bf16.gmra.mrb[160].mxu1 %v18655_v42 }
 0x18b   :  { %v2092_v50 = vpop.f32.mrb[40].mxu0  ;;  %2932 = vmatprep.mubr.bf16.mxu1 %v18656_v7  ;;  %v18662_v7 = vld [vmem:[#allocation38_spill] sm:$0xff] }
 0x18c   :  { %v14401_v30 = vadd.f32 %v14182_v10, %v2092_v50  ;;  %v2094_v15 = vpop.f32.mrb[41].mxu0  ;;  %v18663_v10 = vld [vmem:[#allocation91_spill] sm:$0xff] }
 0x18d   :  { %v2095_v20 = vpop.f32.mrb[42].mxu0  ;;  %v14403_v28 = vpop.f32.mrb[56].mxu1  ;;  %v18664_v15 = vld [vmem:[#allocation92_spill] sm:$0xff] }
 0x18e   :  { %18657 = vst [vmem:[#allocation119_spill] sm:$0xff] %v14403_v28  ;;  %v14406_v8 = vadd.f32 %v14187_v60, %v2095_v20  ;;  %v2097_v14 = vpop.f32.mrb[43].mxu0  ;;  %v14408_v53 = vpop.f32.mrb[57].mxu1 }
 0x18f   :  { %18658 = vst [vmem:[#allocation120_spill] sm:$0xff] %v14408_v53  ;;  %v14410_v47 = vpop.f32.mrb[58].mxu1 }
 0x190   :  { %18659 = vst [vmem:[#allocation121_spill] sm:$0xff] %v14410_v47  ;;  %11376 = vmatmul.mubr.bf16.gmra.mrb[148].mxu0 %v18660_v61  ;;  %v14413_v42 = vpop.f32.mrb[59].mxu1 }
 0x191   :  { %18661 = vst [vmem:[#allocation122_spill] sm:$0xff] %v14413_v42  ;;  %11379 = vmatprep.mubr.bf16.mxu0 %v18662_v7  ;;  %v18668_v7 = vld [vmem:[#allocation39_spill] sm:$0xff] }
 0x192   :  { %2933 = vmatmul.mubr.bf16.gmra.mrb[164].mxu1 %v18663_v10 }
 0x193   :  { %v2100_v50 = vpop.f32.mrb[44].mxu0  ;;  %2940 = vmatprep.mubr.bf16.mxu1 %v18664_v15  ;;  %v18670_v15 = vld [vmem:[#allocation41_spill] sm:$0xff] }
 0x194   :  { %v14419_v28 = vadd.f32 %v14174_v51, %v2100_v50  ;;  %v2102_v60 = vpop.f32.mrb[45].mxu0  ;;  %v18671_v51 = vld [vmem:[#allocation95_spill] sm:$0xff] }
 0x195   :  { %v2103_v14 = vpop.f32.mrb[46].mxu0  ;;  %v14421_v20 = vpop.f32.mrb[60].mxu1  ;;  %v18672_v60 = vld [vmem:[#allocation96_spill] sm:$0xff] }
 0x196   :  { %18665 = vst [vmem:[#allocation123_spill] sm:$0xff] %v14421_v20  ;;  %v14424_v47 = vadd.f32 %v14184_v52, %v2103_v14  ;;  %v2105_v53 = vpop.f32.mrb[47].mxu0  ;;  %v14426_v61 = vpop.f32.mrb[61].mxu1 }
 0x197   :  { %18666 = vst [vmem:[#allocation124_spill] sm:$0xff] %v14426_v61  ;;  %v14428_v42 = vpop.f32.mrb[62].mxu1 }
 0x198   :  { %18667 = vst [vmem:[#allocation125_spill] sm:$0xff] %v14428_v42  ;;  %11380 = vmatmul.mubr.bf16.gmra.mrb[152].mxu0 %v18668_v7  ;;  %v14431_v10 = vpop.f32.mrb[63].mxu1 }
 0x199   :  { %18669 = vst [vmem:[#allocation126_spill] sm:$0xff] %v14431_v10  ;;  %11383 = vmatprep.mubr.bf16.mxu0 %v18670_v15 }
 0x19a   :  { %2941 = vmatmul.mubr.bf16.gmra.mrb[168].mxu1 %v18671_v51 }
 0x19b   :  { %v2108_v50 = vpop.f32.mrb[48].mxu0  ;;  %2948 = vmatprep.mubr.bf16.mxu1 %v18672_v60 }
 0x19c   :  { %v14437_v20 = vadd.f32 %v14213_v40, %v2108_v50  ;;  %v2110_v52 = vpop.f32.mrb[49].mxu0  ;;  %v18675_v40 = vld [vmem:[#allocation93_spill] sm:$0xff]  ;;  %v18676_v50 = vld [vmem:[#allocation94_spill] sm:$0xff] }
 0x19d   :  { %v2734_v53 = vpop.f32.mrb[64].mxu1  ;;  %v2111_v14 = vpop.f32.mrb[50].mxu0  ;;  %v18677_v52 = vcombine.low %v18675_v40, %v18676_v50 }
 0x19e   :  { %18673 = vst [vmem:[#allocation127_spill] sm:$0xff] %v14437_v20  ;;  %v14440_v61 = vadd.f32 %v2734_v53, %v14110_v54  ;;  %v14443_v42 = vadd.f32 %v14218_v46, %v2111_v14  ;;  %v2736_v10 = vpop.f32.mrb[65].mxu1  ;;  %v2113_v7 = vpop.f32.mrb[51].mxu0  ;;  %v18678_v20 = vld [vmem:[#allocation97_spill] sm:$0xff]  ;;  %v18679_v53 = vld [vmem:[#allocation98_spill] sm:$0xff] }
 0x19f   :  { %v2737_v15 = vpop.f32.mrb[66].mxu1 }
 0x1a0   :  { %v14446_v51 = vadd.f32 %v2737_v15, %v14123_v2  ;;  %11384 = vmatmul.mubr.bf16.gmra.mrb[156].mxu0 %v18674_v26  ;;  %v2739_v60 = vpop.f32.mrb[67].mxu1 }
 0x1a1   :  { %11387 = vmatprep.mubr.bf16.mxu0 %v18677_v52 }
 0x1a2   :  { %2949 = vmatmul.mubr.bf16.gmra.mrb[172].mxu1 %v18678_v20  ;;  %v18680_v20 = vld [vmem:[#allocation48_spill] sm:$0xff] }
 0x1a3   :  { %v2116_v54 = vpop.f32.mrb[52].mxu0  ;;  %2956 = vmatprep.mubr.bf16.mxu1 %v18679_v53 }
 0x1a4   :  { %v14455_v46 = vadd.f32 %v14208_v6, %v2116_v54  ;;  %v2118_v7 = vpop.f32.mrb[53].mxu0  ;;  %v18681_v6 = vld [vmem:[#allocation49_spill] sm:$0xff] }
 0x1a5   :  { %v2742_v10 = vpop.f32.mrb[68].mxu1  ;;  %v2119_v14 = vpop.f32.mrb[54].mxu0  ;;  %v18682_v7 = vld [vmem:[#allocation100_spill] sm:$0xff] }
 0x1a6   :  { %v14458_v2 = vadd.f32 %v2742_v10, %v14163_v17  ;;  %v14461_v15 = vadd.f32 %v14215_v29, %v2119_v14  ;;  %v2744_v60 = vpop.f32.mrb[69].mxu1  ;;  %v2121_v40 = vpop.f32.mrb[55].mxu0 }
 0x1a7   :  { %v2745_v50 = vpop.f32.mrb[70].mxu1 }
 0x1a8   :  { %v14464_v52 = vadd.f32 %v2745_v50, %v14180_v59  ;;  %11388 = vmatmul.mubr.bf16.gmra.mrb[160].mxu0 %v18680_v20  ;;  %v2747_v53 = vpop.f32.mrb[71].mxu1 }
 0x1a9   :  { %11391 = vmatprep.mubr.bf16.mxu0 %v18681_v6 }
 0x1aa   :  { %2957 = vmatmul.mubr.bf16.gmra.mrb[176].mxu1 %v14106_v63  ;;  %v18683_v63 = vld [vmem:[#allocation50_spill] sm:$0xff] }
 0x1ab   :  { %v2124_v54 = vpop.f32.mrb[56].mxu0  ;;  %2964 = vmatprep.mubr.bf16.mxu1 %v18682_v7 }
 0x1ac   :  { %v14471_v17 = vadd.f32 %v14250_v18, %v2124_v54  ;;  %v2126_v29 = vpop.f32.mrb[57].mxu0  ;;  %v18684_v18 = vld [vmem:[#allocation53_spill] sm:$0xff] }
 0x1ad   :  { %v2750_v10 = vpop.f32.mrb[72].mxu1  ;;  %v2127_v14 = vpop.f32.mrb[58].mxu0 }
 0x1ae   :  { %v14474_v60 = vadd.f32 %v2750_v10, %v14200_v1  ;;  %v14477_v59 = vadd.f32 %v14255_v32, %v2127_v14  ;;  %v2752_v20 = vpop.f32.mrb[73].mxu1  ;;  %v2129_v53 = vpop.f32.mrb[59].mxu0 }
 0x1af   :  { %v2753_v40 = vpop.f32.mrb[74].mxu1 }
 0x1b0   :  { %v14480_v50 = vadd.f32 %v2753_v40, %v14211_v39  ;;  %11392 = vmatmul.mubr.bf16.gmra.mrb[164].mxu0 %v18683_v63  ;;  %v2755_v7 = vpop.f32.mrb[75].mxu1 }
 0x1b1   :  { %11395 = vmatprep.mubr.bf16.mxu0 %v18684_v18 }
 0x1b2   :  { %2965 = vmatmul.mubr.bf16.gmra.mrb[180].mxu1 %v14167_v16  ;;  %v18685_v16 = vld [vmem:[#allocation55_spill] sm:$0xff] }
 0x1b3   :  { %v2132_v54 = vpop.f32.mrb[60].mxu0  ;;  %2972 = vmatprep.mubr.bf16.mxu1 %v14172_v22 }
 0x1b4   :  { %v14487_v1 = vadd.f32 %v14239_v38, %v2132_v54  ;;  %v2134_v32 = vpop.f32.mrb[61].mxu0  ;;  %v18686_v38 = vld [vmem:[#allocation56_spill] sm:$0xff] }
 0x1b5   :  { %v2758_v29 = vpop.f32.mrb[76].mxu1  ;;  %v2135_v10 = vpop.f32.mrb[62].mxu0 }
 0x1b6   :  { %v14490_v14 = vadd.f32 %v2758_v29, %v14231_v55  ;;  %v14493_v39 = vadd.f32 %v14252_v58, %v2135_v10  ;;  %v2760_v7 = vpop.f32.mrb[77].mxu1  ;;  %v2137_v20 = vpop.f32.mrb[63].mxu0 }
 0x1b7   :  { %v2761_v53 = vpop.f32.mrb[78].mxu1 }
 0x1b8   :  { %v14496_v40 = vadd.f32 %v2761_v53, %v14242_v35  ;;  %11396 = vmatmul.mubr.bf16.gmra.mrb[168].mxu0 %v18685_v16  ;;  %v2763_v22 = vpop.f32.mrb[79].mxu1 }
 0x1b9   :  { %11399 = vmatprep.mubr.bf16.mxu0 %v18686_v38 }
 0x1ba   :  { %2973 = vmatmul.mubr.bf16.gmra.mrb[184].mxu1 %v14204_v25  ;;  %v18689_v25 = vld [vmem:[#allocation57_spill] sm:$0xff] }
 0x1bb   :  { %v2140_v54 = vpop.f32.mrb[64].mxu0  ;;  %2980 = vmatprep.mubr.bf16.mxu1 %v14206_v5 }
 0x1bc   :  { %v14503_v55 = vadd.f32 %v14276_v43, %v2140_v54  ;;  %v2142_v58 = vpop.f32.mrb[65].mxu0  ;;  %v18690_v43 = vld [vmem:[#allocation59_spill] sm:$0xff] }
 0x1bd   :  { %v2766_v32 = vpop.f32.mrb[80].mxu1  ;;  %v2143_v29 = vpop.f32.mrb[66].mxu0  ;;  %v18691_v58 = vld [vmem:[#allocation36_spill] sm:$0xff] }
 0x1be   :  { %v14506_v10 = vadd.f32 %v2766_v32, %v14265_v19  ;;  %v14509_v35 = vadd.f32 %v14281_v62, %v2143_v29  ;;  %v2768_v22 = vpop.f32.mrb[81].mxu1  ;;  %v2145_v7 = vpop.f32.mrb[67].mxu0 }
 0x1bf   :  { %v2769_v20 = vpop.f32.mrb[82].mxu1 }
 0x1c0   :  { %18687 = vst [vmem:[#allocation43_spill] sm:$0xff] %v14506_v10  ;;  %v14512_v53 = vadd.f32 %v2769_v20, %v14274_v56  ;;  %11400 = vmatmul.mubr.bf16.gmra.mrb[172].mxu0 %v18689_v25  ;;  %v2771_v5 = vpop.f32.mrb[83].mxu1  ;;  %v18697_v10 = vld [vmem:[#allocation40_spill] sm:$0xff] }
 0x1c1   :  { %11403 = vmatprep.mubr.bf16.mxu0 %v18690_v43 }
 0x1c2   :  { %18688 = vst [vmem:[#allocation93_spill] sm:$0xff] %v14512_v53  ;;  %2981 = vmatmul.mubr.bf16.gmra.mrb[188].mxu1 %v14235_v48  ;;  %v18694_v53 = vld [vmem:[#allocation21_spill] sm:$0xff] }
 0x1c3   :  { %v2148_v54 = vpop.f32.mrb[68].mxu0  ;;  %3595 = vmatprep.mubr.bf16.mxu1 %v18691_v58 }
 0x1c4   :  { %v14519_v19 = vadd.f32 %v14271_v23, %v2148_v54  ;;  %v2150_v62 = vpop.f32.mrb[69].mxu0  ;;  %v18695_v23 = vld [vmem:[#allocation28_spill] sm:$0xff] }
 0x1c5   :  { %v2774_v32 = vpop.f32.mrb[84].mxu1  ;;  %v2151_v29 = vpop.f32.mrb[70].mxu0  ;;  %v18696_v54 = vld [vmem:[#allocation24_spill] sm:$0xff] }
 0x1c6   :  { %v14522_v22 = vadd.f32 %v2774_v32, %v14286_v31  ;;  %v14525_v56 = vadd.f32 %v14278_v41, %v2151_v29  ;;  %v2776_v5 = vpop.f32.mrb[85].mxu1  ;;  %v2153_v7 = vpop.f32.mrb[71].mxu0 }
 0x1c7   :  { %v2777_v20 = vpop.f32.mrb[86].mxu1 }
 0x1c8   :  { %18692 = vst [vmem:[#allocation94_spill] sm:$0xff] %v14522_v22  ;;  %v14528_v48 = vadd.f32 %v2777_v20, %v14291_v49  ;;  %11404 = vmatmul.mubr.bf16.gmra.mrb[176].mxu0 %v18694_v53  ;;  %v2779_v58 = vpop.f32.mrb[87].mxu1  ;;  %v18703_v22 = vld [vmem:[#allocation42_spill] sm:$0xff] }
 0x1c9   :  { %11407 = vmatprep.mubr.bf16.mxu0 %v18695_v23 }
 0x1ca   :  { %18693 = vst [vmem:[#allocation48_spill] sm:$0xff] %v14528_v48  ;;  %3596 = vmatmul.mubr.bf16.vlgmr.msra.gmra.mrb[192].mxu1 %v18696_v54  ;;  %v18700_v48 = vld [vmem:[#allocation29_spill] sm:$0xff] }
 0x1cb   :  { %v2156_v62 = vpop.f32.mrb[72].mxu0  ;;  %3603 = vmatprep.mubr.bf16.mxu1 %v18697_v10 }
 0x1cc   :  { %v14535_v31 = vadd.f32 %v14296_v27, %v2156_v62  ;;  %v2158_v41 = vpop.f32.mrb[73].mxu0  ;;  %v18701_v27 = vld [vmem:[#allocation61_spill] sm:$0xff]  ;;  %v18702_v62 = vld [vmem:[#allocation30_spill] sm:$0xff] }
 0x1cd   :  { %v2782_v32 = vpop.f32.mrb[88].mxu1  ;;  %v2159_v29 = vpop.f32.mrb[74].mxu0 }
 0x1ce   :  { %v14538_v5 = vadd.f32 %v2782_v32, %v14313_v13  ;;  %v14541_v49 = vadd.f32 %v14301_v0, %v2159_v29  ;;  %v2784_v7 = vpop.f32.mrb[89].mxu1  ;;  %v2161_v20 = vpop.f32.mrb[75].mxu0 }
 0x1cf   :  { %v2785_v58 = vpop.f32.mrb[90].mxu1 }
 0x1d0   :  { %18698 = vst [vmem:[#allocation49_spill] sm:$0xff] %v14538_v5  ;;  %v14544_v54 = vadd.f32 %v2785_v58, %v14318_v36  ;;  %11408 = vmatmul.mubr.bf16.gmra.mrb[180].mxu0 %v18700_v48  ;;  %v2787_v10 = vpop.f32.mrb[91].mxu1  ;;  %v18708_v5 = vld [vmem:[#allocation47_spill] sm:$0xff] }
 0x1d1   :  { %11411 = vmatprep.mubr.bf16.mxu0 %v18701_v27 }
 0x1d2   :  { %18699 = vst [vmem:[#allocation50_spill] sm:$0xff] %v14544_v54  ;;  %3604 = vmatmul.mubr.bf16.gmra.mrb[196].mxu1 %v18702_v62  ;;  %v18705_v54 = vld [vmem:[#allocation34_spill] sm:$0xff] }
 0x1d3   :  { %v2164_v41 = vpop.f32.mrb[76].mxu0  ;;  %3611 = vmatprep.mubr.bf16.mxu1 %v18703_v22 }
 0x1d4   :  { %v14551_v13 = vadd.f32 %v14288_v9, %v2164_v41  ;;  %v2166_v0 = vpop.f32.mrb[77].mxu0  ;;  %v18706_v9 = vld [vmem:[#allocation65_spill] sm:$0xff]  ;;  %v18707_v41 = vld [vmem:[#allocation31_spill] sm:$0xff] }
 0x1d5   :  { %v2790_v32 = vpop.f32.mrb[92].mxu1  ;;  %v2167_v29 = vpop.f32.mrb[78].mxu0 }
 0x1d6   :  { %v14554_v7 = vadd.f32 %v2790_v32, %v14337_v12  ;;  %v14557_v36 = vadd.f32 %v14298_v33, %v2167_v29  ;;  %v2792_v20 = vpop.f32.mrb[93].mxu1  ;;  %v2169_v58 = vpop.f32.mrb[79].mxu0 }
 0x1d7   :  { %v2793_v10 = vpop.f32.mrb[94].mxu1 }
 0x1d8   :  { %v14560_v62 = vadd.f32 %v2793_v10, %v14342_v4  ;;  %11412 = vmatmul.mubr.bf16.gmra.mrb[184].mxu0 %v18705_v54  ;;  %v2795_v22 = vpop.f32.mrb[95].mxu1 }
 0x1d9   :  { %11415 = vmatprep.mubr.bf16.mxu0 %v18706_v9 }
 0x1da   :  { %18704 = vst [vmem:[#allocation53_spill] sm:$0xff] %v14560_v62  ;;  %3612 = vmatmul.mubr.bf16.gmra.mrb[200].mxu1 %v18707_v41  ;;  %v18711_v62 = vld [vmem:[#allocation66_spill] sm:$0xff] }
 0x1db   :  { %v2172_v0 = vpop.f32.mrb[80].mxu0  ;;  %3619 = vmatprep.mubr.bf16.mxu1 %v18708_v5 }
 0x1dc   :  { %v14567_v12 = vadd.f32 %v14320_v3, %v2172_v0  ;;  %v2174_v33 = vpop.f32.mrb[81].mxu0  ;;  %v18712_v3 = vld [vmem:[#allocation44_spill] sm:$0xff] }
 0x1dd   :  { %v2798_v32 = vpop.f32.mrb[96].mxu1  ;;  %v2175_v29 = vpop.f32.mrb[82].mxu0  ;;  %v18713_v33 = vld [vmem:[#allocation51_spill] sm:$0xff] }
 0x1de   :  { %v14570_v20 = vadd.f32 %v2798_v32, %v14361_v11  ;;  %v14573_v4 = vadd.f32 %v14328_v34, %v2175_v29  ;;  %v2800_v58 = vpop.f32.mrb[97].mxu1  ;;  %v2177_v10 = vpop.f32.mrb[83].mxu0 }
 0x1df   :  { %v2801_v22 = vpop.f32.mrb[98].mxu1 }
 0x1e0   :  { %18709 = vst [vmem:[#allocation55_spill] sm:$0xff] %v14570_v20  ;;  %v14576_v41 = vadd.f32 %v2801_v22, %v14366_v45  ;;  %11416 = vmatmul.mubr.bf16.gmra.mrb[188].mxu0 %v18711_v62  ;;  %v2803_v5 = vpop.f32.mrb[99].mxu1  ;;  %v18715_v45 = vld [vmem:[#allocation13_spill] sm:$0xff]  ;;  %v18720_v20 = vld [vmem:[#allocation54_spill] sm:$0xff] }
 0x1e1   :  { %11435 = vmatprep.mubr.bf16.mxu0 %v18626_v37 }
 0x1e2   :  { %18710 = vst [vmem:[#allocation56_spill] sm:$0xff] %v14576_v41  ;;  %3620 = vmatmul.mubr.bf16.gmra.mrb[204].mxu1 %v18712_v3  ;;  %v18717_v41 = vld [vmem:[#allocation15_spill] sm:$0xff] }
 0x1e3   :  { %v2180_v0 = vpop.f32.mrb[84].mxu0  ;;  %3627 = vmatprep.mubr.bf16.mxu1 %v18713_v33 }
 0x1e4   :  { %v14583_v11 = vadd.f32 %v14315_v24, %v2180_v0  ;;  %v2182_v34 = vpop.f32.mrb[85].mxu0  ;;  %v11854_v24 = vld [vmem:[#allocation6 + $0x140] sm:$0xff]   ;;  %v18718_v0 = vld [vmem:[#allocation18_spill] sm:$0xff] }
 0x1e5   :  { %v2806_v32 = vpop.f32.mrb[100].mxu1  ;;  %v2183_v29 = vpop.f32.mrb[86].mxu0  ;;  %v18719_v34 = vld [vmem:[#allocation45_spill] sm:$0xff]  ;;  %11499 = vmatprep.subr.bf16.mxu1 %v11854_v24 }
 0x1e6   :  { %v14586_v58 = vadd.f32 %v2806_v32, %v14382_v44  ;;  %v14589_v10 = vadd.f32 %v18715_v45, %v2183_v29  ;;  %v2808_v22 = vpop.f32.mrb[101].mxu1  ;;  %v2185_v5 = vpop.f32.mrb[87].mxu0  ;;  %v11855_v44 = vld [vmem:[#allocation6 + $0xc0] sm:$0xff]   ;;  %11500 = vmatpush3.bf16.msra.mxu1 %v11854_v24  ;;  %v18725_v24 = vld [vmem:[#allocation19_spill] sm:$0xff] }
 0x1e7   :  { %v2809_v37 = vpop.f32.mrb[102].mxu1  ;;  %v18721_v29 = vld [vmem:[#allocation108_spill] sm:$0xff] }
 0x1e8   :  { %18714 = vst [vmem:[#allocation57_spill] sm:$0xff] %v14586_v58  ;;  %v14592_v3 = vadd.f32 %v2809_v37, %v14387_v21  ;;  %11436 = vmatmul.mubr.bf16.vlgmr.msra.gmra.mrb[192].mxu0 %v18717_v41  ;;  %v2811_v33 = vpop.f32.mrb[103].mxu1  ;;  %v18723_v37 = vld [vmem:[#allocation110_spill] sm:$0xff] }
 0x1e9   :  { %11439 = vmatprep.mubr.bf16.mxu0 %v18718_v0  ;;  %7174 = vmatpush1.bf16.msra.mxu0 %v11855_v44  ;;  %v18726_v44 = vld [vmem:[#allocation22_spill] sm:$0xff] }
 0x1ea   :  { %18716 = vst [vmem:[#allocation59_spill] sm:$0xff] %v14592_v3  ;;  %3628 = vmatmul.mubr.bf16.gmra.mrb[208].mxu1 %v18719_v34  ;;  %7175 = vmatprep.subr.bf16.mxu0 %v18519_v57 }
 0x1eb   :  { %v2188_v32 = vpop.f32.mrb[88].mxu0  ;;  %3635 = vmatprep.mubr.bf16.mxu1 %v18720_v20 }
 0x1ec   :  { %v14599_v45 = vadd.f32 %v18721_v29, %v2188_v32  ;;  %v2190_v22 = vpop.f32.mrb[89].mxu0  ;;  %v18727_v29 = vld [vmem:[#allocation16_spill] sm:$0xff] }
 0x1ed   :  { %v2814_v21 = vpop.f32.mrb[104].mxu1  ;;  %v2191_v5 = vpop.f32.mrb[90].mxu0  ;;  %v11856_v22 = vld [vmem:[#allocation6 + $0xc8] sm:$0xff]  }
 0x1ee   :  { %v14603_v41 = vadd.f32 %v2814_v21, %v14401_v30  ;;  %v14606_v33 = vadd.f32 %v18723_v37, %v2191_v5  ;;  %v2816_v0 = vpop.f32.mrb[105].mxu1  ;;  %v2193_v34 = vpop.f32.mrb[91].mxu0  ;;  %v18728_v30 = vld [vmem:[#allocation58_spill] sm:$0xff]  ;;  %7176 = vmatpush1.bf16.msra.mxu0 %v11856_v22  ;;  %v18734_v22 = vld [vmem:[#allocation32_spill] sm:$0xff] }
 0x1ef   :  { %v2817_v3 = vpop.f32.mrb[106].mxu1  ;;  %v18729_v21 = vld [vmem:[#allocation14_spill] sm:$0xff]  ;;  %7177 = vmatprep.subr.bf16.mxu0 %v18519_v57 }
 0x1f0   :  { %18722 = vst [vmem:[#allocation36_spill] sm:$0xff] %v14603_v41  ;;  %v14609_v20 = vadd.f32 %v2817_v3, %v14406_v8  ;;  %11440 = vmatmul.mubr.bf16.gmra.mrb[196].mxu0 %v18725_v24  ;;  %v2819_v32 = vpop.f32.mrb[107].mxu1  ;;  %v18731_v3 = vld [vmem:[#allocation109_spill] sm:$0xff] }
 0x1f1   :  { %11443 = vmatprep.mubr.bf16.mxu0 %v18726_v44 }
 0x1f2   :  { %18724 = vst [vmem:[#allocation21_spill] sm:$0xff] %v14609_v20  ;;  %3636 = vmatmul.mubr.bf16.gmra.mrb[212].mxu1 %v18727_v29  ;;  %v11857_v20 = vld [vmem:[#allocation6 + $0xd0] sm:$0xff]  }
 0x1f3   :  { %v2196_v58 = vpop.f32.mrb[92].mxu0  ;;  %3643 = vmatprep.mubr.bf16.mxu1 %v18728_v30  ;;  %7178 = vmatpush1.bf16.msra.mxu0 %v11857_v20  ;;  %v18744_v20 = vld [vmem:[#allocation35_spill] sm:$0xff] }
 0x1f4   :  { %v14616_v5 = vadd.f32 %v18729_v21, %v2196_v58  ;;  %v2198_v37 = vpop.f32.mrb[93].mxu0  ;;  %v18733_v58 = vld [vmem:[#allocation27_spill] sm:$0xff]  ;;  %7179 = vmatprep.subr.bf16.mxu0 %v18519_v57 }
 0x1f5   :  { %v2822_v0 = vpop.f32.mrb[108].mxu1  ;;  %v2199_v34 = vpop.f32.mrb[94].mxu0  ;;  %v18735_v37 = vld [vmem:[#allocation17_spill] sm:$0xff] }
 0x1f6   :  { %v14620_v8 = vadd.f32 %v2822_v0, %v14419_v28  ;;  %v14623_v24 = vadd.f32 %v18731_v3, %v2199_v34  ;;  %v2824_v32 = vpop.f32.mrb[109].mxu1  ;;  %v2201_v44 = vpop.f32.mrb[95].mxu0  ;;  %v18736_v28 = vld [vmem:[#allocation25_spill] sm:$0xff]  ;;  %v18737_v0 = vld [vmem:[#allocation112_spill] sm:$0xff] }
 0x1f7   :  { %v2825_v29 = vpop.f32.mrb[110].mxu1 }
 0x1f8   :  { %18730 = vst [vmem:[#allocation28_spill] sm:$0xff] %v14620_v8  ;;  %v14626_v30 = vadd.f32 %v2825_v29, %v14424_v47  ;;  %11444 = vmatmul.mubr.bf16.gmra.mrb[200].mxu0 %v18733_v58  ;;  %v2827_v21 = vpop.f32.mrb[111].mxu1  ;;  %v18739_v47 = vld [vmem:[#allocation127_spill] sm:$0xff]  ;;  %v18741_v58 = vld [vmem:[#allocation114_spill] sm:$0xff] }
 0x1f9   :  { %11447 = vmatprep.mubr.bf16.mxu0 %v18734_v22  ;;  %v11858_v8 = vld [vmem:[#allocation6 + $0xd8] sm:$0xff]  }
 0x1fa   :  { %18732 = vst [vmem:[#allocation24_spill] sm:$0xff] %v14626_v30  ;;  %3644 = vmatmul.mubr.bf16.gmra.mrb[216].mxu1 %v18735_v37  ;;  %7180 = vmatpush1.bf16.msra.mxu0 %v11858_v8  ;;  %v11859_v8 = vld [vmem:[#allocation6 + $0x148] sm:$0xff]  }
 0x1fb   :  { %v2204_v41 = vpop.f32.mrb[96].mxu0  ;;  %3651 = vmatprep.mubr.bf16.mxu1 %v18736_v28  ;;  %7181 = vmatprep.subr.bf16.mxu0 %v18519_v57 }
 0x1fc   :  { %v14633_v34 = vadd.f32 %v18737_v0, %v2204_v41  ;;  %v2206_v3 = vpop.f32.mrb[97].mxu0  ;;  %v18743_v41 = vld [vmem:[#allocation33_spill] sm:$0xff]  ;;  %11501 = vmatprep.subr.bf16.mxu1 %v11859_v8 }
 0x1fd   :  { %v2830_v32 = vpop.f32.mrb[112].mxu1  ;;  %v2207_v44 = vpop.f32.mrb[98].mxu0  ;;  %v18745_v3 = vld [vmem:[#allocation52_spill] sm:$0xff]  ;;  %11502 = vmatpush3.bf16.msra.mxu1 %v11859_v8 }
 0x1fe   :  { %18738 = vst [vmem:[#allocation40_spill] sm:$0xff] %v14633_v34  ;;  %v14637_v29 = vadd.f32 %v2830_v32, %v18739_v47  ;;  %v14640_v21 = vadd.f32 %v18741_v58, %v2207_v44  ;;  %v2832_v22 = vpop.f32.mrb[113].mxu1  ;;  %v2209_v37 = vpop.f32.mrb[99].mxu0  ;;  %v18746_v32 = vld [vmem:[#allocation60_spill] sm:$0xff]  ;;  %v18747_v47 = vld [vmem:[#allocation111_spill] sm:$0xff] }
 0x1ff   :  { %v2833_v30 = vpop.f32.mrb[114].mxu1 }
 0x200   :  { %18740 = vst [vmem:[#allocation29_spill] sm:$0xff] %v14637_v29  ;;  %v14643_v28 = vadd.f32 %v2833_v30, %v14443_v42  ;;  %11448 = vmatmul.mubr.bf16.gmra.mrb[204].mxu0 %v18743_v41  ;;  %v2835_v0 = vpop.f32.mrb[115].mxu1  ;;  %v18750_v30 = vld [vmem:[#allocation113_spill] sm:$0xff]  ;;  %v18756_v29 = vld [vmem:[#allocation63_spill] sm:$0xff] }
 0x201   :  { %11451 = vmatprep.mubr.bf16.mxu0 %v18744_v20 }
 0x202   :  { %18742 = vst [vmem:[#allocation61_spill] sm:$0xff] %v14643_v28  ;;  %3652 = vmatmul.mubr.bf16.gmra.mrb[220].mxu1 %v18745_v3  ;;  %v18755_v28 = vld [vmem:[#allocation26_spill] sm:$0xff] }
 0x203   :  { %v2212_v34 = vpop.f32.mrb[100].mxu0  ;;  %3659 = vmatprep.mubr.bf16.mxu1 %v18746_v32 }
 0x204   :  { %v14650_v44 = vadd.f32 %v18747_v47, %v2212_v34  ;;  %v2214_v58 = vpop.f32.mrb[101].mxu0  ;;  %v18753_v34 = vld [vmem:[#allocation37_spill] sm:$0xff] }
 0x205   :  { %v2838_v22 = vpop.f32.mrb[116].mxu1  ;;  %v2215_v37 = vpop.f32.mrb[102].mxu0  ;;  %v18754_v58 = vld [vmem:[#allocation38_spill] sm:$0xff] }
 0x206   :  { %18748 = vst [vmem:[#allocation30_spill] sm:$0xff] %v14650_v44  ;;  %v14654_v42 = vadd.f32 %v2838_v22, %v14455_v46  ;;  %v14657_v41 = vadd.f32 %v18750_v30, %v2215_v37  ;;  %v2840_v0 = vpop.f32.mrb[117].mxu1  ;;  %v2217_v20 = vpop.f32.mrb[103].mxu0  ;;  %v11860_v46 = vld [vmem:[#allocation6 + $0xe0] sm:$0xff]  }
 0x207   :  { %v2841_v3 = vpop.f32.mrb[118].mxu1  ;;  %v18757_v37 = vld [vmem:[#allocation116_spill] sm:$0xff]  ;;  %7182 = vmatpush1.bf16.msra.mxu0 %v11860_v46 }
 0x208   :  { %18749 = vst [vmem:[#allocation42_spill] sm:$0xff] %v14654_v42  ;;  %18751 = vst [vmem:[#allocation34_spill] sm:$0xff] %v14657_v41  ;;  %v14660_v32 = vadd.f32 %v2841_v3, %v14461_v15  ;;  %11452 = vmatmul.mubr.bf16.gmra.mrb[208].mxu0 %v18753_v34  ;;  %v2843_v47 = vpop.f32.mrb[119].mxu1  ;;  %7183 = vmatprep.subr.bf16.mxu0 %v18519_v57  ;;  %v18760_v34 = vld [vmem:[#allocation118_spill] sm:$0xff] }
 0x209   :  { %11455 = vmatprep.mubr.bf16.mxu0 %v18754_v58 }
 0x20a   :  { %18752 = vst [vmem:[#allocation65_spill] sm:$0xff] %v14660_v32  ;;  %3660 = vmatmul.mubr.bf16.gmra.mrb[224].mxu1 %v18755_v28 }
 0x20b   :  { %v2220_v22 = vpop.f32.mrb[104].mxu0  ;;  %3667 = vmatprep.mubr.bf16.mxu1 %v18756_v29  ;;  %v14679_v29 = vld [vmem:[%s18153_s0 + $0xd0] sm:$0xf] }
 0x20c   :  { %v14667_v30 = vadd.f32 %v18757_v37, %v2220_v22  ;;  %v2222_v0 = vpop.f32.mrb[105].mxu0  ;;  %v18763_v37 = vld [vmem:[#allocation39_spill] sm:$0xff] }
 0x20d   :  { %v2846_v15 = vpop.f32.mrb[120].mxu1  ;;  %v2223_v20 = vpop.f32.mrb[106].mxu0  ;;  %v18764_v0 = vld [vmem:[#allocation41_spill] sm:$0xff] }
 0x20e   :  { %18758 = vst [vmem:[#allocation31_spill] sm:$0xff] %v14667_v30  ;;  %v14671_v3 = vadd.f32 %v2846_v15, %v14471_v17  ;;  %v14674_v28 = vadd.f32 %v18760_v34, %v2223_v20  ;;  %v2848_v47 = vpop.f32.mrb[121].mxu1  ;;  %v2225_v58 = vpop.f32.mrb[107].mxu0  ;;  %v3334_v17 = vrot.slane %v14679_v29, 5  ;;  %v18765_v15 = vld [vmem:[#allocation62_spill] sm:$0xff]  ;;  %v18769_v30 = vld [vmem:[#allocation117_spill] sm:$0xff] }
 0x20f   :  { %v2849_v8 = vpop.f32.mrb[122].mxu1  ;;  %v14691_v20 = vld [vmem:[%s18153_s0 + $0xcc] sm:$0xf]  ;;  %v14696_v34 = vld [vmem:[%s18153_s0 + $0xd4] sm:$0x1] }
 0x210   :  { %18759 = vst [vmem:[#allocation47_spill] sm:$0xff] %v14671_v3  ;;  %18761 = vst [vmem:[#allocation66_spill] sm:$0xff] %v14674_v28  ;;  %v14682_v46 = vadd.f32 %v2849_v8, %v14477_v59  ;;  %v2851_v22 = vpop.f32.mrb[123].mxu1  ;;  %11456 = vmatmul.mubr.bf16.gmra.mrb[212].mxu0 %v18763_v37  ;;  %v11861_v59 = vld [vmem:[#allocation6 + $0xe8] sm:$0xff]   ;;  %v18766_v58 = vld [vmem:[#allocation64_spill] sm:$0xff]  ;;  %v3336_v3 = vrot.slane %v3334_v17, 4 }
 0x211   :  { %11459 = vmatprep.mubr.bf16.mxu0 %v18764_v0  ;;  %v18767_v8 = vld [vmem:[#allocation115_spill] sm:$0xff]  ;;  %7184 = vmatpush1.bf16.msra.mxu0 %v11861_v59  ;;  %v3337_v28 = vrot.slane %v14696_v34, 5 }
 0x212   :  { %18762 = vst [vmem:[#allocation44_spill] sm:$0xff] %v14682_v46  ;;  %3668 = vmatmul.mubr.bf16.gmra.mrb[228].mxu1 %v18765_v15  ;;  %v10304_v46 = vrot.slane %v14691_v20, 9  ;;  %7185 = vmatprep.subr.bf16.mxu0 %v18519_v57 }
 0x213   :  { %v2228_v47 = vpop.f32.mrb[108].mxu0  ;;  %3675 = vmatprep.mubr.bf16.mxu1 %v18766_v58 }
 0x214   :  { %v14700_v22 = vadd.f32 %v18767_v8, %v2228_v47  ;;  %v2230_v37 = vpop.f32.mrb[109].mxu0  ;;  %v3335_v44 = vsel %vm12242_vm2, %v10304_v46, %v3334_v17 }
 0x215   :  { %v2854_v0 = vpop.f32.mrb[124].mxu1  ;;  %v2231_v15 = vpop.f32.mrb[110].mxu0 }
 0x216   :  { %18768 = vst [vmem:[#allocation51_spill] sm:$0xff] %v14700_v22  ;;  %v14706_v32 = vadd.f32 %v2854_v0, %v14487_v1  ;;  %v14709_v42 = vadd.f32 %v18769_v30, %v2231_v15  ;;  %v2856_v58 = vpop.f32.mrb[125].mxu1  ;;  %v2233_v47 = vpop.f32.mrb[111].mxu0  ;;  %v18771_v22 = vld [vmem:[#allocation46_spill] sm:$0xff]  ;;  %v3338_v1 = vsel %vm12242_vm2, %v3336_v3, %v3337_v28  ;;  %v18773_v0 = vld [vmem:[#allocation67_spill] sm:$0xff] }
 0x217   :  { %v2857_v8 = vpop.f32.mrb[126].mxu1  ;;  %v11862_v30 = vld [vmem:[#allocation6 + $0xf0] sm:$0xff]   ;;  %v18774_v58 = vld [vmem:[#allocation68_spill] sm:$0xff] }
 0x218   :  { %18770 = vst [vmem:[#allocation13_spill] sm:$0xff] %v14709_v42  ;;  %v14712_v59 = vadd.f32 %v2857_v8, %v14493_v39  ;;  %v2859_v37 = vpop.f32.mrb[127].mxu1  ;;  %11460 = vmatmul.mubr.bf16.gmra.mrb[216].mxu0 %v18674_v26  ;;  %v18775_v47 = vld [vmem:[#allocation120_spill] sm:$0xff]  ;;  %v18777_v3 = vld [vmem:[#allocation122_spill] sm:$0xff] }
 0x219   :  { %11463 = vmatprep.mubr.bf16.mxu0 %v18771_v22  ;;  %v10310_v37 = vcombine.low %v3335_v44, %v3338_v1  ;;  %7186 = vmatpush1.bf16.msra.mxu0 %v11862_v30  ;;  %v18780_v44 = vld [vmem:[#allocation70_spill] sm:$0xff]  ;;  %v11863_v1 = vld [vmem:[#allocation6 + $0xf8] sm:$0xff]  }
 0x21a   :  { %3676 = vmatmul.mubr.bf16.gmra.mrb[232].mxu1 %v18773_v0  ;;  %7187 = vmatprep.subr.bf16.mxu0 %v18519_v57 }
 0x21b   :  { %v2236_v15 = vpop.f32.mrb[112].mxu0  ;;  %3683 = vmatprep.mubr.bf16.mxu1 %v18774_v58 }
 0x21c   :  { %v14723_v39 = vadd.f32 %v18775_v47, %v2236_v15  ;;  %v2238_v8 = vpop.f32.mrb[113].mxu0  ;;  %v18781_v47 = vld [vmem:[#allocation71_spill] sm:$0xff] }
 0x21d   :  { %v2862_v26 = vpop.f32.mrb[128].mxu1  ;;  %v2239_v22 = vpop.f32.mrb[114].mxu0  ;;  %v18782_v8 = vld [vmem:[#allocation119_spill] sm:$0xff]  ;;  %7188 = vmatpush1.bf16.msra.mxu0 %v11863_v1 }
 0x21e   :  { %18776 = vst [vmem:[#allocation15_spill] sm:$0xff] %v14723_v39  ;;  %v14727_v46 = vadd.f32 %v2862_v26, %v14503_v55  ;;  %v14730_v28 = vadd.f32 %v18777_v3, %v2239_v22  ;;  %v2864_v17 = vpop.f32.mrb[129].mxu1  ;;  %v2241_v0 = vpop.f32.mrb[115].mxu0  ;;  %v3279_v55 = vshrl.u32 %v14691_v20, 16  ;;  %v3282_v3 = vshll.u32 %v14691_v20, 16  ;;  %7189 = vmatprep.subr.bf16.mxu0 %v18519_v57 }
 0x21f   :  { %v2865_v42 = vpop.f32.mrb[130].mxu1  ;;  %v18784_v0 = vld [vmem:[#allocation121_spill] sm:$0xff] }
 0x220   :  { %18778 = vst [vmem:[#allocation18_spill] sm:$0xff] %v14730_v28  ;;  %v14733_v58 = vadd.f32 %v2865_v42, %v14509_v35  ;;  %v2867_v15 = vpop.f32.mrb[131].mxu1  ;;  %11464 = vmatmul.mubr.bf16.gmra.mrb[220].mxu0 %v10310_v37  ;;  %v3288_v35 = vshll.u32 %v14679_v29, 16  ;;  %v3292_v42 = vshrl.u32 %v14679_v29, 16  ;;  %v3284_v1 = vrot.slane %v3282_v3, 5 }
 0x221   :  { %11467 = vmatprep.mubr.bf16.mxu0 %v18681_v6 }
 0x222   :  { %18779 = vst [vmem:[#allocation45_spill] sm:$0xff] %v14733_v58  ;;  %3684 = vmatmul.mubr.bf16.gmra.mrb[236].mxu1 %v18780_v44  ;;  %v3290_v58 = vrot.slane %v3288_v35, 5  ;;  %v3294_v39 = vrot.slane %v3292_v42, 4  ;;  %v3298_v35 = vshll.u32 %v14696_v34, 16 }
 0x223   :  { %v2244_v30 = vpop.f32.mrb[116].mxu0  ;;  %3691 = vmatprep.mubr.bf16.mxu1 %v18781_v47 }
 0x224   :  { %v14740_v26 = vadd.f32 %v18782_v8, %v2244_v30  ;;  %v2246_v22 = vpop.f32.mrb[117].mxu0  ;;  %v3281_v8 = vrot.slane %v3279_v55, 4  ;;  %v18787_v55 = vld [vmem:[#allocation124_spill] sm:$0xff]  ;;  %v3295_v3 = vor.u32 %v3294_v39, %v3290_v58 }
 0x225   :  { %v2870_v6 = vpop.f32.mrb[132].mxu1  ;;  %v2247_v37 = vpop.f32.mrb[118].mxu0  ;;  %v11864_v22 = vld [vmem:[#allocation6 + $0x150] sm:$0xff]  }
 0x226   :  { %18783 = vst [vmem:[#allocation54_spill] sm:$0xff] %v14740_v26  ;;  %v14747_v17 = vadd.f32 %v2870_v6, %v14519_v19  ;;  %v14750_v15 = vadd.f32 %v18784_v0, %v2247_v37  ;;  %v2872_v44 = vpop.f32.mrb[133].mxu1  ;;  %v2249_v30 = vpop.f32.mrb[119].mxu0  ;;  %11503 = vmatprep.subr.bf16.mxu1 %v11864_v22  ;;  %v18785_v19 = vld [vmem:[#allocation23_spill] sm:$0xff]  ;;  %v11865_v6 = vld [vmem:[#allocation6 + $0x100] sm:$0xff]   ;;  %v3296_v34 = vrot.slane %v3295_v3, 4 }
 0x227   :  { %v2873_v47 = vpop.f32.mrb[134].mxu1  ;;  %v18786_v0 = vld [vmem:[#allocation72_spill] sm:$0xff]  ;;  %11504 = vmatpush3.bf16.msra.mxu1 %v11864_v22  ;;  %7190 = vmatpush1.bf16.msra.mxu0 %v11865_v6  ;;  %v18788_v30 = vld [vmem:[#allocation126_spill] sm:$0xff]  ;;  %v18789_v6 = vld [vmem:[#allocation73_spill] sm:$0xff] }
 0x228   :  { %v14753_v26 = vadd.f32 %v2873_v47, %v14525_v56  ;;  %v2875_v28 = vpop.f32.mrb[135].mxu1  ;;  %11468 = vmatmul.mubr.bf16.gmra.mrb[224].mxu0 %v18683_v63  ;;  %7191 = vmatprep.subr.bf16.mxu0 %v18519_v57 }
 0x229   :  { %11471 = vmatprep.mubr.bf16.mxu0 %v18684_v18  ;;  %v3285_v28 = vor.u32 %v3284_v1, %v3281_v8  ;;  %v3300_v1 = vrot.slane %v3298_v35, 5  ;;  %v18794_v35 = vld [vmem:[#allocation125_spill] sm:$0xff] }
 0x22a   :  { %3692 = vmatmul.mubr.bf16.gmra.mrb[240].mxu1 %v18785_v19 }
 0x22b   :  { %v2252_v37 = vpop.f32.mrb[120].mxu0  ;;  %3699 = vmatprep.mubr.bf16.mxu1 %v18786_v0  ;;  %v3286_v8 = vrot.slane %v3285_v28, 4  ;;  %v3301_v28 = vsel %vm12498_vm5, %v3296_v34, %v3300_v1 }
 0x22c   :  { %v14760_v44 = vadd.f32 %v18787_v55, %v2252_v37  ;;  %v2254_v56 = vpop.f32.mrb[121].mxu0 }
 0x22d   :  { %v2878_v63 = vpop.f32.mrb[136].mxu1  ;;  %v2255_v42 = vpop.f32.mrb[122].mxu0  ;;  %v18790_v56 = vld [vmem:[#allocation74_spill] sm:$0xff] }
 0x22e   :  { %v14765_v18 = vadd.f32 %v2878_v63, %v14535_v31  ;;  %v14768_v47 = vadd.f32 %v18788_v30, %v2255_v42  ;;  %v2880_v22 = vpop.f32.mrb[137].mxu1  ;;  %v2257_v19 = vpop.f32.mrb[123].mxu0  ;;  %v11866_v31 = vld [vmem:[#allocation6 + $0x108] sm:$0xff]   ;;  %v18791_v63 = vld [vmem:[#allocation123_spill] sm:$0xff] }
 0x22f   :  { %v2881_v37 = vpop.f32.mrb[138].mxu1  ;;  %v3291_v22 = vsel %vm12498_vm5, %v3286_v8, %v3290_v58  ;;  %7192 = vmatpush1.bf16.msra.mxu0 %v11866_v31  ;;  %v14794_v58 = vld [vmem:[%s18153_s0 + $0x1a4] sm:$0xf]  ;;  %v14799_v8 = vld [vmem:[%s18153_s0 + $0x1a8] sm:$0xf] }
 0x230   :  { %v14771_v0 = vadd.f32 %v2881_v37, %v14541_v49  ;;  %v2883_v39 = vpop.f32.mrb[139].mxu1  ;;  %11472 = vmatmul.mubr.bf16.gmra.mrb[228].mxu0 %v18685_v16  ;;  %7193 = vmatprep.subr.bf16.mxu0 %v18519_v57  ;;  %v10308_v1 = vcombine.low %v3291_v22, %v3301_v28  ;;  %v3306_v31 = vshll.u32 %v14794_v58, 16  ;;  %v14815_v22 = vld [vmem:[%s18153_s0 + $0x1ac] sm:$0x1] }
 0x231   :  { %11475 = vmatprep.mubr.bf16.mxu0 %v18686_v38 }
 0x232   :  { %3700 = vmatmul.mubr.bf16.gmra.mrb[244].mxu1 %v18789_v6  ;;  %v3303_v6 = vshrl.u32 %v14794_v58, 16 }
 0x233   :  { %v2260_v55 = vpop.f32.mrb[124].mxu0  ;;  %3707 = vmatprep.mubr.bf16.mxu1 %v18790_v56 }
 0x234   :  { %v14778_v42 = vadd.f32 %v18791_v63, %v2260_v55  ;;  %v2262_v30 = vpop.f32.mrb[125].mxu0  ;;  %v3312_v63 = vshll.u32 %v14799_v8, 16  ;;  %v3305_v28 = vrot.slane %v3303_v6, 4 }
 0x235   :  { %v2886_v16 = vpop.f32.mrb[140].mxu1  ;;  %v2263_v3 = vpop.f32.mrb[126].mxu0  ;;  %v3316_v30 = vshrl.u32 %v14799_v8, 16 }
 0x236   :  { %18792 = vst [vmem:[#allocation108_spill] sm:$0xff] %v14778_v42  ;;  %v14786_v38 = vadd.f32 %v2886_v16, %v14551_v13  ;;  %v14789_v19 = vadd.f32 %v18794_v35, %v2263_v3  ;;  %v2888_v37 = vpop.f32.mrb[141].mxu1  ;;  %v2265_v39 = vpop.f32.mrb[127].mxu0  ;;  %v3308_v16 = vrot.slane %v3306_v31, 5  ;;  %v18796_v3 = vld [vmem:[#allocation75_spill] sm:$0xff]  ;;  %v3314_v35 = vrot.slane %v3312_v63, 5 }
 0x237   :  { %v2889_v34 = vpop.f32.mrb[142].mxu1  ;;  %v3318_v37 = vrot.slane %v3316_v30, 4 }
 0x238   :  { %18795 = vst [vmem:[#allocation110_spill] sm:$0xff] %v14789_v19  ;;  %v14806_v55 = vadd.f32 %v2889_v34, %v14557_v36  ;;  %v2891_v56 = vpop.f32.mrb[143].mxu1  ;;  %11476 = vmatmul.mubr.bf16.gmra.mrb[232].mxu0 %v18689_v25  ;;  %v11868_v36 = vld [vmem:[#allocation6 + $0x110] sm:$0xff]   ;;  %v3322_v25 = vshll.u32 %v14815_v22, 16  ;;  %v3309_v34 = vor.u32 %v3308_v16, %v3305_v28  ;;  %v10306_v28 = vcombine.low %v14691_v20, %v14679_v29 }
 0x239   :  { %11479 = vmatprep.mubr.bf16.mxu0 %v18690_v43  ;;  %7194 = vmatpush1.bf16.msra.mxu0 %v11868_v36  ;;  %v3319_v13 = vor.u32 %v3318_v37, %v3314_v35 }
 0x23a   :  { %3708 = vmatmul.mubr.bf16.gmra.mrb[248].mxu1 %v18796_v3  ;;  %v3324_v19 = vrot.slane %v3322_v25, 5  ;;  %v3310_v3 = vrot.slane %v3309_v34, 4  ;;  %7195 = vmatprep.subr.bf16.mxu0 %v18519_v57 }
 0x23b   :  { %v11357_v39 = vpop.f32.mrb[128].mxu0  ;;  %3715 = vmatprep.mubr.bf16.mxu1 %v10308_v1  ;;  %v3320_v16 = vrot.slane %v3319_v13, 4 }
 0x23c   :  { %v14820_v56 = vadd.f32 %v11357_v39, %v14458_v2  ;;  %v3023_v43 = vpop.f32.mrb[129].mxu0  ;;  %v3315_v37 = vsel %vm12498_vm5, %v3310_v3, %v3314_v35 }
 0x23d   :  { %v2894_v42 = vpop.f32.mrb[144].mxu1  ;;  %v14823_v6 = vadd.f32 %v3023_v43, %v14440_v61  ;;  %v11358_v31 = vpop.f32.mrb[130].mxu0 }
 0x23e   :  { %v14827_v63 = vadd.f32 %v2894_v42, %v14567_v12  ;;  %v2896_v1 = vpop.f32.mrb[145].mxu1  ;;  %v14830_v30 = vadd.f32 %v11358_v31, %v14464_v52  ;;  %v3026_v2 = vpop.f32.mrb[131].mxu0  ;;  %v3325_v52 = vsel %vm12498_vm5, %v3320_v16, %v3324_v19 }
 0x23f   :  { %v2897_v36 = vpop.f32.mrb[146].mxu1  ;;  %v14835_v61 = vadd.f32 %v3026_v2, %v14446_v51  ;;  %v14846_v29 = vcombine.low %v3315_v37, %v3325_v52  ;;  %v18797_v51 = vld [vmem:[#allocation76_spill] sm:$0xff]  ;;  %v18799_v1 = vld [vmem:[#allocation78_spill] sm:$0xff] }
 0x240   :  { %v14840_v25 = vadd.f32 %v2897_v36, %v14573_v4  ;;  %v2899_v12 = vpop.f32.mrb[147].mxu1  ;;  %11480 = vmatmul.mubr.bf16.gmra.mrb[236].mxu0 %v18694_v53 }
 0x241   :  { %11483 = vmatprep.mubr.bf16.mxu0 %v18695_v23  ;;  %v18802_v12 = vld [vmem:[#allocation48_spill] sm:$0xff] }
 0x242   :  { %3716 = vmatmul.mubr.bf16.gmra.mrb[252].mxu1 %v10306_v28 }
 0x243   :  { %v11361_v20 = vpop.f32.mrb[132].mxu0  ;;  %3723 = vmatprep.mubr.bf16.mxu1 %v18797_v51  ;;  %v18803_v51 = vld [vmem:[#allocation93_spill] sm:$0xff] }
 0x244   :  { %v14850_v42 = vadd.f32 %v11361_v20, %v14490_v14  ;;  %v3039_v13 = vpop.f32.mrb[133].mxu0 }
 0x245   :  { %v2902_v4 = vpop.f32.mrb[148].mxu1  ;;  %v14853_v35 = vadd.f32 %v3039_v13, %v14474_v60  ;;  %v11362_v53 = vpop.f32.mrb[134].mxu0  ;;  %v18798_v60 = vld [vmem:[#allocation77_spill] sm:$0xff] }
 0x246   :  { %v14856_v39 = vadd.f32 %v2902_v4, %v14583_v11  ;;  %v2904_v19 = vpop.f32.mrb[149].mxu1  ;;  %v14859_v23 = vadd.f32 %v11362_v53, %v14496_v40  ;;  %v3042_v34 = vpop.f32.mrb[135].mxu0  ;;  %v18800_v40 = vld [vmem:[#allocation94_spill] sm:$0xff]  ;;  %v11870_v4 = vld [vmem:[#allocation6 + $0x158] sm:$0xff]  }
 0x247   :  { %v2905_v43 = vpop.f32.mrb[150].mxu1  ;;  %v14862_v31 = vadd.f32 %v3042_v34, %v14480_v50  ;;  %v18801_v50 = vld [vmem:[#allocation43_spill] sm:$0xff]  ;;  %11505 = vmatprep.subr.bf16.mxu1 %v11870_v4 }
 0x248   :  { %v14865_v14 = vadd.f32 %v2905_v43, %v14589_v10  ;;  %v2907_v3 = vpop.f32.mrb[151].mxu1  ;;  %11484 = vmatmul.mubr.bf16.gmra.mrb[240].mxu0 %v18700_v48  ;;  %v18804_v34 = vld [vmem:[#allocation79_spill] sm:$0xff]  ;;  %11506 = vmatpush3.bf16.msra.mxu1 %v11870_v4 }
 0x249   :  { %11487 = vmatprep.mubr.bf16.mxu0 %v18701_v27  ;;  %v18805_v3 = vld [vmem:[#allocation80_spill] sm:$0xff] }
 0x24a   :  { %3724 = vmatmul.mubr.bf16.gmra.mrb[0].mxu1 %v18798_v60 }
 0x24b   :  { %v11365_v11 = vpop.f32.mrb[136].mxu0  ;;  %3731 = vmatprep.mubr.bf16.mxu1 %v18799_v1 }
 0x24c   :  { %v14872_v2 = vadd.f32 %v11365_v11, %v18800_v40  ;;  %v3055_v28 = vpop.f32.mrb[137].mxu0  ;;  %v18806_v40 = vld [vmem:[#allocation49_spill] sm:$0xff] }
 0x24d   :  { %v2910_v16 = vpop.f32.mrb[152].mxu1  ;;  %v14875_v36 = vadd.f32 %v3055_v28, %v18801_v50  ;;  %v11366_v10 = vpop.f32.mrb[138].mxu0  ;;  %v3344_v50 = vrot.slane %v14815_v22, 5  ;;  %v11873_v22 = vld [vmem:[#allocation6 + $0x160] sm:$0xff]  }
 0x24e   :  { %v14878_v37 = vadd.f32 %v2910_v16, %v14599_v45  ;;  %v2912_v48 = vpop.f32.mrb[153].mxu1  ;;  %v14881_v27 = vadd.f32 %v11366_v10, %v18802_v12  ;;  %v3058_v52 = vpop.f32.mrb[139].mxu0  ;;  %v3341_v45 = vrot.slane %v14799_v8, 5  ;;  %v18807_v12 = vld [vmem:[#allocation53_spill] sm:$0xff]  ;;  %11507 = vmatprep.subr.bf16.mxu1 %v11873_v22 }
 0x24f   :  { %v2913_v20 = vpop.f32.mrb[154].mxu1  ;;  %v14884_v13 = vadd.f32 %v3058_v52, %v18803_v51  ;;  %v18808_v51 = vld [vmem:[#allocation50_spill] sm:$0xff]  ;;  %11508 = vmatpush3.bf16.msra.mxu1 %v11873_v22  ;;  %v11872_v22 = vld [vmem:[#allocation6 + $0x128] sm:$0xff]  }
 0x250   :  { %v14887_v53 = vadd.f32 %v2913_v20, %v14606_v33  ;;  %v2915_v19 = vpop.f32.mrb[155].mxu1  ;;  %11488 = vmatmul.mubr.bf16.gmra.mrb[244].mxu0 %v18705_v54  ;;  %v11869_v33 = vld [vmem:[#allocation6 + $0x118] sm:$0xff]   ;;  %v3343_v16 = vrot.slane %v3341_v45, 4 }
 0x251   :  { %11491 = vmatprep.mubr.bf16.mxu0 %v18706_v9  ;;  %v10305_v9 = vrot.slane %v14794_v58, 9  ;;  %7196 = vmatpush1.bf16.msra.mxu0 %v11869_v33  ;;  %v18810_v33 = vld [vmem:[#allocation81_spill] sm:$0xff] }
 0x252   :  { %3732 = vmatmul.mubr.bf16.gmra.mrb[4].mxu1 %v18804_v34  ;;  %7197 = vmatprep.subr.bf16.mxu0 %v18519_v57 }
 0x253   :  { %v11369_v43 = vpop.f32.mrb[140].mxu0  ;;  %3739 = vmatprep.mubr.bf16.mxu1 %v18805_v3  ;;  %v3342_v3 = vsel %vm12242_vm2, %v10305_v9, %v3341_v45  ;;  %v18814_v45 = vld [vmem:[#allocation55_spill] sm:$0xff] }
 0x254   :  { %v14895_v60 = vadd.f32 %v11369_v43, %v14554_v7  ;;  %v3071_v11 = vpop.f32.mrb[141].mxu0  ;;  %v18809_v43 = vld [vmem:[#allocation69_spill] sm:$0xff] }
 0x255   :  { %v2918_v1 = vpop.f32.mrb[156].mxu1  ;;  %v14898_v28 = vadd.f32 %v3071_v11, %v18806_v40  ;;  %v11370_v54 = vpop.f32.mrb[142].mxu0  ;;  %v3345_v11 = vsel %vm12242_vm2, %v3343_v16, %v3344_v50  ;;  %v18811_v40 = vld [vmem:[#allocation82_spill] sm:$0xff]  ;;  %v18815_v50 = vld [vmem:[#allocation40_spill] sm:$0xff] }
 0x256   :  { %v14903_v10 = vadd.f32 %v2918_v1, %v14616_v5  ;;  %v2920_v48 = vpop.f32.mrb[157].mxu1  ;;  %v14906_v52 = vadd.f32 %v11370_v54, %v18807_v12  ;;  %v3074_v7 = vpop.f32.mrb[143].mxu0  ;;  %v11871_v5 = vld [vmem:[#allocation6 + $0x120] sm:$0xff]   ;;  %v11874_v12 = vld [vmem:[#allocation6 + $0x168] sm:$0xff]  }
 0x257   :  { %v2921_v20 = vpop.f32.mrb[158].mxu1  ;;  %v14909_v4 = vadd.f32 %v3074_v7, %v18808_v51  ;;  %7198 = vmatpush1.bf16.msra.mxu0 %v11871_v5  ;;  %v10311_v48 = vcombine.low %v3342_v3, %v3345_v11  ;;  %11509 = vmatprep.subr.bf16.mxu1 %v11874_v12 }
 0x258   :  { %v14913_v19 = vadd.f32 %v2921_v20, %v14623_v24  ;;  %v2923_v34 = vpop.f32.mrb[159].mxu1  ;;  %11492 = vmatmul.mubr.bf16.gmra.mrb[248].mxu0 %v18711_v62  ;;  %7199 = vmatprep.subr.bf16.mxu0 %v18519_v57  ;;  %v18812_v24 = vld [vmem:[#allocation57_spill] sm:$0xff] }
 0x259   :  { %11495 = vmatprep.mubr.bf16.mxu0 %v18809_v43  ;;  %v18816_v34 = vld [vmem:[#allocation59_spill] sm:$0xff]  ;;  %11510 = vmatpush3.bf16.msra.mxu1 %v11874_v12 }
 0x25a   :  { %3740 = vmatmul.mubr.bf16.gmra.mrb[8].mxu1 %v18810_v33  ;;  %v11877_v12 = vld [vmem:[#allocation6 + $0x178] sm:$0xff]  }
 0x25b   :  { %v11373_v1 = vpop.f32.mrb[144].mxu0  ;;  %3747 = vmatprep.mubr.bf16.mxu1 %v18811_v40  ;;  %7200 = vmatpush1.bf16.msra.mxu0 %v11872_v22 }
 0x25c   :  { %v14925_v62 = vadd.f32 %v11373_v1, %v18812_v24  ;;  %v3087_v54 = vpop.f32.mrb[145].mxu0  ;;  %v18818_v1 = vld [vmem:[#allocation56_spill] sm:$0xff]  ;;  %v11876_v24 = vld [vmem:[#allocation6 + $0x170] sm:$0xff]   ;;  %7201 = vmatprep.subr.bf16.mxu0 %v18519_v57 }
 0x25d   :  { %v2926_v7 = vpop.f32.mrb[160].mxu1  ;;  %v14928_v9 = vadd.f32 %v3087_v54, %v18814_v45  ;;  %v11374_v16 = vpop.f32.mrb[146].mxu0  ;;  %v18819_v54 = vld [vmem:[#allocation83_spill] sm:$0xff]  ;;  %11511 = vmatprep.subr.bf16.mxu1 %v11876_v24  ;;  %v18820_v45 = vld [vmem:[#allocation84_spill] sm:$0xff] }
 0x25e   :  { %18813 = vst [vmem:[#allocation19_spill] sm:$0xff] %v14925_v62  ;;  %v14931_v20 = vadd.f32 %v2926_v7, %v18815_v50  ;;  %v2928_v51 = vpop.f32.mrb[161].mxu1  ;;  %v14934_v5 = vadd.f32 %v11374_v16, %v18816_v34  ;;  %v3090_v43 = vpop.f32.mrb[147].mxu0  ;;  %v18821_v16 = vld [vmem:[#allocation28_spill] sm:$0xff]  ;;  %11512 = vmatpush3.bf16.msra.mxu1 %v11876_v24  ;;  %v18831_v24 = vld [vmem:[#allocation85_spill] sm:$0xff] }
 0x25f   :  { %v2929_v33 = vpop.f32.mrb[162].mxu1  ;;  %v14937_v3 = vadd.f32 %v3090_v43, %v18818_v1  ;;  %v18823_v34 = vld [vmem:[#allocation36_spill] sm:$0xff]  ;;  %v18825_v1 = vld [vmem:[#allocation30_spill] sm:$0xff]  ;;  %11513 = vmatprep.subr.bf16.mxu1 %v11877_v12 }
 0x260   :  { %18817 = vst [vmem:[#allocation22_spill] sm:$0xff] %v14934_v5  ;;  %v14940_v11 = vadd.f32 %v2929_v33, %v14640_v21  ;;  %v2931_v40 = vpop.f32.mrb[163].mxu1  ;;  %11496 = vmatmul.mubr.bf16.gmra.mrb[252].mxu0 %v10311_v48  ;;  %v11875_v33 = vld [vmem:[#allocation6 + $0x130] sm:$0xff]  }
 0x261   :  { %7202 = vmatpush1.bf16.msra.mxu0 %v11875_v33 }
 0x262   :  { %3748 = vmatmul.mubr.bf16.gmra.mrb[12].mxu1 %v18819_v54  ;;  %7203 = vmatprep.subr.bf16.mxu0 %v18519_v57 }
 0x263   :  { %v11377_v7 = vpop.f32.mrb[148].mxu0  ;;  %3755 = vmatprep.mubr.bf16.mxu1 %v18820_v45  ;;  %v18826_v45 = vld [vmem:[#allocation24_spill] sm:$0xff]  ;;  %11514 = vmatpush3.bf16.msra.mxu1 %v11877_v12 }
 0x264   :  { %v14945_v50 = vadd.f32 %v11377_v7, %v18821_v16  ;;  %v3103_v51 = vpop.f32.mrb[149].mxu0  ;;  %7895 = vmatprep.subr.bf16.mxu1 %v18519_v57 }
 0x265   :  { %v2934_v21 = vpop.f32.mrb[164].mxu1  ;;  %v14949_v43 = vadd.f32 %v3103_v51, %v18823_v34  ;;  %v11378_v48 = vpop.f32.mrb[150].mxu0  ;;  %v18830_v51 = vld [vmem:[#allocation34_spill] sm:$0xff] }
 0x266   :  { %18822 = vst [vmem:[#allocation16_spill] sm:$0xff] %v14945_v50  ;;  %v14952_v40 = vadd.f32 %v2934_v21, %v18825_v1  ;;  %v2936_v54 = vpop.f32.mrb[165].mxu1  ;;  %v14955_v22 = vadd.f32 %v11378_v48, %v18826_v45  ;;  %v3106_v7 = vpop.f32.mrb[151].mxu0  ;;  %v18828_v50 = vld [vmem:[#allocation21_spill] sm:$0xff]  ;;  %v11878_v21 = vld [vmem:[#allocation6 + $0x138] sm:$0xff]   ;;  %v18832_v1 = vld [vmem:[#allocation86_spill] sm:$0xff] }
 0x267   :  { %18824 = vst [vmem:[#allocation58_spill] sm:$0xff] %v14949_v43  ;;  %v2937_v16 = vpop.f32.mrb[166].mxu1  ;;  %v14958_v49 = vadd.f32 %v3106_v7, %v18828_v50  ;;  %v18833_v54 = vld [vmem:[#allocation42_spill] sm:$0xff]  ;;  %7204 = vmatpush1.bf16.msra.mxu0 %v11878_v21  ;;  %v18835_v7 = vld [vmem:[#allocation29_spill] sm:$0xff] }
 0x268   :  { %18827 = vst [vmem:[#allocation14_spill] sm:$0xff] %v14955_v22  ;;  %v14961_v34 = vadd.f32 %v2937_v16, %v18830_v51  ;;  %v2939_v43 = vpop.f32.mrb[167].mxu1  ;;  %v18837_v51 = vld [vmem:[#allocation31_spill] sm:$0xff]  ;;  %v18838_v22 = vld [vmem:[#allocation65_spill] sm:$0xff] }
 0x269   :  { %18829 = vst [vmem:[#allocation109_spill] sm:$0xff] %v14958_v49 }
 0x26a   :  { %3756 = vmatmul.mubr.bf16.gmra.mrb[16].mxu1 %v18831_v24 }
 0x26b   :  { %v11381_v48 = vpop.f32.mrb[152].mxu0  ;;  %3763 = vmatprep.mubr.bf16.mxu1 %v18832_v1  ;;  %v18840_v1 = vld [vmem:[#allocation61_spill] sm:$0xff] }
 0x26c   :  { %v14968_v50 = vadd.f32 %v11381_v48, %v18833_v54  ;;  %v3119_v33 = vpop.f32.mrb[153].mxu0  ;;  %v18842_v48 = vld [vmem:[#allocation66_spill] sm:$0xff] }
 0x26d   :  { %v2942_v45 = vpop.f32.mrb[168].mxu1  ;;  %v14971_v16 = vadd.f32 %v3119_v33, %v18835_v7  ;;  %v11382_v43 = vpop.f32.mrb[154].mxu0  ;;  %v18844_v7 = vld [vmem:[#allocation88_spill] sm:$0xff] }
 0x26e   :  { %18834 = vst [vmem:[#allocation27_spill] sm:$0xff] %v14968_v50  ;;  %v14974_v12 = vadd.f32 %v2942_v45, %v18837_v51  ;;  %v2944_v24 = vpop.f32.mrb[169].mxu1  ;;  %v14977_v49 = vadd.f32 %v11382_v43, %v18838_v22  ;;  %v3122_v57 = vpop.f32.mrb[155].mxu0  ;;  %v18843_v50 = vld [vmem:[#allocation87_spill] sm:$0xff] }
 0x26f   :  { %18836 = vst [vmem:[#allocation32_spill] sm:$0xff] %v14971_v16  ;;  %v2945_v5 = vpop.f32.mrb[170].mxu1  ;;  %v14980_v62 = vadd.f32 %v3122_v57, %v18840_v1  ;;  %v18846_v43 = vld [vmem:[#allocation47_spill] sm:$0xff]  ;;  %v18852_v16 = vld [vmem:[#allocation89_spill] sm:$0xff] }
 0x270   :  { %18839 = vst [vmem:[#allocation17_spill] sm:$0xff] %v14977_v49  ;;  %v14983_v54 = vadd.f32 %v2945_v5, %v18842_v48  ;;  %v2947_v21 = vpop.f32.mrb[171].mxu1  ;;  %v18847_v57 = vld [vmem:[#allocation51_spill] sm:$0xff] }
 0x271   :  { %18841 = vst [vmem:[#allocation25_spill] sm:$0xff] %v14980_v62  ;;  %v18849_v62 = vld [vmem:[#allocation44_spill] sm:$0xff] }
 0x272   :  { %3764 = vmatmul.mubr.bf16.gmra.mrb[20].mxu1 %v18843_v50 }
 0x273   :  { %v11385_v33 = vpop.f32.mrb[156].mxu0  ;;  %3771 = vmatprep.mubr.bf16.mxu1 %v18844_v7 }
 0x274   :  { %v14988_v45 = vadd.f32 %v11385_v33, %v14706_v32  ;;  %v3135_v51 = vpop.f32.mrb[157].mxu0  ;;  %v18851_v32 = vld [vmem:[#allocation13_spill] sm:$0xff] }
 0x275   :  { %v2950_v22 = vpop.f32.mrb[172].mxu1  ;;  %v14991_v24 = vadd.f32 %v3135_v51, %v18846_v43  ;;  %v11386_v49 = vpop.f32.mrb[158].mxu0  ;;  %v18853_v43 = vld [vmem:[#allocation90_spill] sm:$0xff] }
 0x276   :  { %18845 = vst [vmem:[#allocation112_spill] sm:$0xff] %v14988_v45  ;;  %v14994_v1 = vadd.f32 %v2950_v22, %v18847_v57  ;;  %v2952_v5 = vpop.f32.mrb[173].mxu1  ;;  %v14997_v48 = vadd.f32 %v11386_v49, %v14712_v59  ;;  %v3138_v50 = vpop.f32.mrb[159].mxu0 }
 0x277   :  { %v2953_v21 = vpop.f32.mrb[174].mxu1  ;;  %v15000_v7 = vadd.f32 %v3138_v50, %v18849_v62  ;;  %v18855_v62 = vld [vmem:[#allocation15_spill] sm:$0xff] }
 0x278   :  { %18848 = vst [vmem:[#allocation127_spill] sm:$0xff] %v14997_v48  ;;  %v15003_v33 = vadd.f32 %v2953_v21, %v18851_v32  ;;  %v2955_v45 = vpop.f32.mrb[175].mxu1  ;;  %v18856_v48 = vld [vmem:[#allocation45_spill] sm:$0xff] }
 0x279   :  { %18850 = vst [vmem:[#allocation114_spill] sm:$0xff] %v15000_v7  ;;  %v18858_v7 = vld [vmem:[#allocation91_spill] sm:$0xff] }
 0x27a   :  { %3772 = vmatmul.mubr.bf16.gmra.mrb[24].mxu1 %v18852_v16 }
 0x27b   :  { %v11389_v51 = vpop.f32.mrb[160].mxu0  ;;  %3779 = vmatprep.mubr.bf16.mxu1 %v18853_v43 }
 0x27c   :  { %v15008_v22 = vadd.f32 %v11389_v51, %v14747_v17  ;;  %v3151_v57 = vpop.f32.mrb[161].mxu0  ;;  %v18857_v17 = vld [vmem:[#allocation18_spill] sm:$0xff] }
 0x27d   :  { %v2958_v59 = vpop.f32.mrb[176].mxu1  ;;  %v15011_v49 = vadd.f32 %v3151_v57, %v14727_v46  ;;  %v11390_v5 = vpop.f32.mrb[162].mxu0  ;;  %v18859_v57 = vld [vmem:[#allocation92_spill] sm:$0xff] }
 0x27e   :  { %18854 = vst [vmem:[#allocation33_spill] sm:$0xff] %v15008_v22  ;;  %v15014_v50 = vadd.f32 %v2958_v59, %v18855_v62  ;;  %v2960_v21 = vpop.f32.mrb[177].mxu1  ;;  %v15017_v45 = vadd.f32 %v11390_v5, %v14753_v26  ;;  %v3154_v16 = vpop.f32.mrb[163].mxu0 }
 0x27f   :  { %v2961_v32 = vpop.f32.mrb[178].mxu1  ;;  %v15020_v43 = vadd.f32 %v3154_v16, %v18856_v48  ;;  %v18862_v48 = vld [vmem:[#allocation54_spill] sm:$0xff] }
 0x280   :  { %v15023_v51 = vadd.f32 %v2961_v32, %v18857_v17  ;;  %v2963_v22 = vpop.f32.mrb[179].mxu1  ;;  %v15039_v17 = vld [vmem:[#allocation6 + $0x80] sm:$0xff]  }
 0x281   :  { %11579 = vmatprep.subr.bf16.mxu0 %v15039_v17 }
 0x282   :  { %3780 = vmatmul.mubr.bf16.gmra.mrb[28].mxu1 %v18858_v7 }
 0x283   :  { %v11393_v46 = vpop.f32.mrb[164].mxu0  ;;  %3787 = vmatprep.mubr.bf16.mxu1 %v18859_v57 }
 0x284   :  { %v15028_v59 = vadd.f32 %v11393_v46, %v14786_v38  ;;  %v3167_v62 = vpop.f32.mrb[165].mxu0 }
 0x285   :  { %v2966_v26 = vpop.f32.mrb[180].mxu1  ;;  %v15031_v5 = vadd.f32 %v3167_v62, %v14765_v18  ;;  %v11394_v21 = vpop.f32.mrb[166].mxu0  ;;  %v18865_v62 = vld [vmem:[#allocation95_spill] sm:$0xff] }
 0x286   :  { %18860 = vst [vmem:[#allocation35_spill] sm:$0xff] %v15028_v59  ;;  %v15034_v16 = vadd.f32 %v2966_v26, %v18862_v48  ;;  %v2968_v32 = vpop.f32.mrb[181].mxu1  ;;  %v15037_v22 = vadd.f32 %v11394_v21, %v14806_v55  ;;  %v3170_v7 = vpop.f32.mrb[167].mxu0  ;;  %v18866_v48 = vld [vmem:[#allocation96_spill] sm:$0xff] }
 0x287   :  { %18861 = vst [vmem:[#allocation52_spill] sm:$0xff] %v15031_v5  ;;  %v2969_v57 = vpop.f32.mrb[182].mxu1  ;;  %v15042_v38 = vadd.f32 %v3170_v7, %v14771_v0 }
 0x288   :  { %18863 = vst [vmem:[#allocation60_spill] sm:$0xff] %v15037_v22  ;;  %v15045_v46 = vadd.f32 %v2969_v57, %v14750_v15  ;;  %v2971_v18 = vpop.f32.mrb[183].mxu1 }
 0x289   :  { %18864 = vst [vmem:[#allocation111_spill] sm:$0xff] %v15042_v38 }
 0x28a   :  { %3788 = vmatmul.mubr.bf16.gmra.mrb[32].mxu1 %v18865_v62 }
 0x28b   :  { %v11397_v26 = vpop.f32.mrb[168].mxu0  ;;  %3795 = vmatprep.mubr.bf16.mxu1 %v18866_v48 }
 0x28c   :  { %v15051_v55 = vadd.f32 %v11397_v26, %v14856_v39  ;;  %v3183_v21 = vpop.f32.mrb[169].mxu0 }
 0x28d   :  { %v2974_v32 = vpop.f32.mrb[184].mxu1  ;;  %v15054_v22 = vadd.f32 %v3183_v21, %v14827_v63  ;;  %v11398_v0 = vpop.f32.mrb[170].mxu0  ;;  %v18872_v21 = vld [vmem:[#allocation98_spill] sm:$0xff] }
 0x28e   :  { %18867 = vst [vmem:[#allocation113_spill] sm:$0xff] %v15051_v55  ;;  %v15057_v15 = vadd.f32 %v2974_v32, %v14760_v44  ;;  %v2976_v7 = vpop.f32.mrb[185].mxu1  ;;  %v15060_v57 = vadd.f32 %v11398_v0, %v14865_v14  ;;  %v3186_v18 = vpop.f32.mrb[171].mxu0  ;;  %v18871_v55 = vld [vmem:[#allocation97_spill] sm:$0xff] }
 0x28f   :  { %18868 = vst [vmem:[#allocation37_spill] sm:$0xff] %v15054_v22  ;;  %v2977_v62 = vpop.f32.mrb[186].mxu1  ;;  %v15063_v48 = vadd.f32 %v3186_v18, %v14840_v25  ;;  %v18875_v25 = vld [vmem:[#allocation108_spill] sm:$0xff] }
 0x290   :  { %18869 = vst [vmem:[#allocation38_spill] sm:$0xff] %v15060_v57  ;;  %v15066_v39 = vadd.f32 %v2977_v62, %v14768_v47  ;;  %v2979_v26 = vpop.f32.mrb[187].mxu1 }
 0x291   :  { %18870 = vst [vmem:[#allocation26_spill] sm:$0xff] %v15063_v48 }
 0x292   :  { %3796 = vmatmul.mubr.bf16.gmra.mrb[36].mxu1 %v18871_v55 }
 0x293   :  { %v11401_v63 = vpop.f32.mrb[172].mxu0  ;;  %3803 = vmatprep.mubr.bf16.mxu1 %v18872_v21  ;;  %v18878_v21 = vld [vmem:[#allocation110_spill] sm:$0xff] }
 0x294   :  { %v15071_v44 = vadd.f32 %v11401_v63, %v14903_v10  ;;  %v3199_v32 = vpop.f32.mrb[173].mxu0 }
 0x295   :  { %v2982_v14 = vpop.f32.mrb[188].mxu1  ;;  %v15074_v0 = vadd.f32 %v3199_v32, %v14878_v37  ;;  %v11402_v7 = vpop.f32.mrb[174].mxu0  ;;  %v18880_v37 = vld [vmem:[#allocation100_spill] sm:$0xff] }
 0x296   :  { %18873 = vst [vmem:[#allocation63_spill] sm:$0xff] %v15071_v44  ;;  %v2983_v18 = vadd.f32 %v2982_v14, %v18875_v25  ;;  %v2984_v57 = vpop.f32.mrb[189].mxu1  ;;  %v15078_v47 = vadd.f32 %v11402_v7, %v14913_v19  ;;  %v3202_v62 = vpop.f32.mrb[175].mxu0  ;;  %v18879_v44 = vld [vmem:[#allocation99_spill] sm:$0xff] }
 0x297   :  { %18874 = vst [vmem:[#allocation116_spill] sm:$0xff] %v15074_v0  ;;  %v2985_v55 = vpop.f32.mrb[190].mxu1  ;;  %v15081_v26 = vadd.f32 %v3202_v62, %v14887_v53 }
 0x298   :  { %18876 = vst [vmem:[#allocation118_spill] sm:$0xff] %v15078_v47  ;;  %v2986_v10 = vadd.f32 %v2985_v55, %v18878_v21  ;;  %v2987_v63 = vpop.f32.mrb[191].mxu1 }
 0x299   :  { %18877 = vst [vmem:[#allocation39_spill] sm:$0xff] %v15081_v26  ;;  %v18885_v63 = vld [vmem:[#allocation101_spill] sm:$0xff] }
 0x29a   :  { %3804 = vmatmul.mubr.bf16.gmra.mrb[40].mxu1 %v18879_v44  ;;  %v11887_v26 = vld [vmem:[#allocation6 + $0x88] sm:$0xff]  }
 0x29b   :  { %v11405_v48 = vpop.f32.mrb[176].mxu0  ;;  %3811 = vmatprep.mubr.bf16.mxu1 %v18880_v37 }
 0x29c   :  { %v15087_v32 = vadd.f32 %v11405_v48, %v14952_v40  ;;  %v3215_v57 = vpop.f32.mrb[177].mxu0  ;;  %v18886_v48 = vld [vmem:[#allocation102_spill] sm:$0xff] }
 0x29d   :  { %v15090_v19 = vadd.f32 %v3215_v57, %v14931_v20  ;;  %v11406_v14 = vpop.f32.mrb[178].mxu0  ;;  %v3597_v7 = vpop.f32.mrb[192].mxu1 }
 0x29e   :  { %18881 = vst [vmem:[#allocation41_spill] sm:$0xff] %v15087_v32  ;;  %v15093_v53 = vadd.f32 %v11406_v14, %v14961_v34  ;;  %v3218_v25 = vpop.f32.mrb[179].mxu0  ;;  %v3599_v62 = vpop.f32.mrb[193].mxu1 }
 0x29f   :  { %18882 = vst [vmem:[#allocation62_spill] sm:$0xff] %v15090_v19  ;;  %v15096_v55 = vadd.f32 %v3218_v25, %v14940_v11  ;;  %v3600_v44 = vpop.f32.mrb[194].mxu1 }
 0x2a0   :  { %18883 = vst [vmem:[#allocation64_spill] sm:$0xff] %v15093_v53  ;;  %v3602_v21 = vpop.f32.mrb[195].mxu1 }
 0x2a1   :  { %18884 = vst [vmem:[#allocation115_spill] sm:$0xff] %v15096_v55 }
 0x2a2   :  { %3812 = vmatmul.mubr.bf16.gmra.mrb[44].mxu1 %v18885_v63 }
 0x2a3   :  { %v11409_v40 = vpop.f32.mrb[180].mxu0  ;;  %3819 = vmatprep.mubr.bf16.mxu1 %v18886_v48  ;;  %v18891_v48 = vld [vmem:[#allocation103_spill] sm:$0xff] }
 0x2a4   :  { %v15101_v20 = vadd.f32 %v11409_v40, %v14994_v1  ;;  %v3231_v37 = vpop.f32.mrb[181].mxu0  ;;  %v18892_v40 = vld [vmem:[#allocation104_spill] sm:$0xff] }
 0x2a5   :  { %v15104_v57 = vadd.f32 %v3231_v37, %v14974_v12  ;;  %v11410_v34 = vpop.f32.mrb[182].mxu0  ;;  %v3605_v14 = vpop.f32.mrb[196].mxu1 }
 0x2a6   :  { %18887 = vst [vmem:[#allocation117_spill] sm:$0xff] %v15101_v20  ;;  %v15107_v62 = vadd.f32 %v11410_v34, %v15003_v33  ;;  %v3234_v11 = vpop.f32.mrb[183].mxu0  ;;  %v3607_v25 = vpop.f32.mrb[197].mxu1 }
 0x2a7   :  { %18888 = vst [vmem:[#allocation46_spill] sm:$0xff] %v15104_v57  ;;  %v15110_v21 = vadd.f32 %v3234_v11, %v14983_v54  ;;  %v3608_v63 = vpop.f32.mrb[198].mxu1 }
 0x2a8   :  { %18889 = vst [vmem:[#allocation67_spill] sm:$0xff] %v15107_v62  ;;  %v3610_v53 = vpop.f32.mrb[199].mxu1 }
 0x2a9   :  { %18890 = vst [vmem:[#allocation68_spill] sm:$0xff] %v15110_v21 }
 0x2aa   :  { %3820 = vmatmul.mubr.bf16.gmra.mrb[48].mxu1 %v18891_v48 }
 0x2ab   :  { %v11413_v1 = vpop.f32.mrb[184].mxu0  ;;  %3827 = vmatprep.mubr.bf16.mxu1 %v18892_v40  ;;  %v18897_v40 = vld [vmem:[#allocation105_spill] sm:$0xff] }
 0x2ac   :  { %v15115_v12 = vadd.f32 %v11413_v1, %v15034_v16  ;;  %v3247_v37 = vpop.f32.mrb[185].mxu0  ;;  %v18898_v1 = vld [vmem:[#allocation106_spill] sm:$0xff] }
 0x2ad   :  { %v15118_v20 = vadd.f32 %v3247_v37, %v15014_v50  ;;  %v11414_v33 = vpop.f32.mrb[186].mxu0  ;;  %v3613_v34 = vpop.f32.mrb[200].mxu1 }
 0x2ae   :  { %18893 = vst [vmem:[#allocation120_spill] sm:$0xff] %v15115_v12  ;;  %v15121_v25 = vadd.f32 %v11414_v33, %v15045_v46  ;;  %v3250_v54 = vpop.f32.mrb[187].mxu0  ;;  %v3615_v11 = vpop.f32.mrb[201].mxu1 }
 0x2af   :  { %18894 = vst [vmem:[#allocation122_spill] sm:$0xff] %v15118_v20  ;;  %v15124_v53 = vadd.f32 %v3250_v54, %v15023_v51  ;;  %v3616_v48 = vpop.f32.mrb[202].mxu1 }
 0x2b0   :  { %18895 = vst [vmem:[#allocation70_spill] sm:$0xff] %v15121_v25  ;;  %v3618_v62 = vpop.f32.mrb[203].mxu1 }
 0x2b1   :  { %18896 = vst [vmem:[#allocation71_spill] sm:$0xff] %v15124_v53  ;;  %v18903_v53 = vld [vmem:[#allocation107_spill] sm:$0xff] }
 0x2b2   :  { %3828 = vmatmul.mubr.bf16.gmra.mrb[52].mxu1 %v18897_v40 }
 0x2b3   :  { %v11417_v16 = vpop.f32.mrb[188].mxu0  ;;  %3835 = vmatprep.mubr.bf16.mxu1 %v18898_v1 }
 0x2b4   :  { %v15128_v12 = vadd.f32 %v11417_v16, %v2983_v18  ;;  %v3263_v50 = vpop.f32.mrb[189].mxu0 }
 0x2b5   :  { %v15131_v37 = vadd.f32 %v3263_v50, %v15057_v15  ;;  %v11418_v46 = vpop.f32.mrb[190].mxu0  ;;  %v3621_v33 = vpop.f32.mrb[204].mxu1  ;;  %v15143_v15 = vld [vmem:[%s18156_s3] ss:$0 sm:$0xff] }
 0x2b6   :  { %18899 = vst [vmem:[#allocation119_spill] sm:$0xff] %v15128_v12  ;;  %v15133_v25 = vadd.f32 %v11418_v46, %v2986_v10  ;;  %v3266_v11 = vpop.f32.mrb[191].mxu0  ;;  %v3623_v51 = vpop.f32.mrb[205].mxu1 }
 0x2b7   :  { %18900 = vst [vmem:[#allocation121_spill] sm:$0xff] %v15131_v37  ;;  %v15136_v54 = vadd.f32 %v3266_v11, %v15066_v39  ;;  %v3624_v62 = vpop.f32.mrb[206].mxu1 }
 0x2b8   :  { %18901 = vst [vmem:[#allocation23_spill] sm:$0xff] %v15133_v25  ;;  %v3626_v40 = vpop.f32.mrb[207].mxu1 }
 0x2b9   :  { %18902 = vst [vmem:[#allocation72_spill] sm:$0xff] %v15136_v54 }
 0x2ba   :  { %3836 = vmatmul.mubr.bf16.gmra.mrb[56].mxu1 %v18903_v53 }
 0x2bb   :  { %v11437_v1 = vpop.f32.mrb[192].mxu0  ;;  %3843 = vmatprep.mubr.bf16.mxu1 %v14846_v29  ;;  %v15151_v29 = vld [vmem:[%s18157_s4] ss:$0 sm:$0xff] }
 0x2bc   :  { %v3895_v18 = vadd.f32 %v11437_v1, %v3605_v14  ;;  %v3886_v16 = vpop.f32.mrb[193].mxu0 }
 0x2bd   :  { %v3887_v10 = vadd.f32 %v3886_v16, %v3597_v7  ;;  %v11438_v50 = vpop.f32.mrb[194].mxu0  ;;  %v15145_v46 = vpop.f32.mrb[208].mxu1 }
 0x2be   :  { %v4143_v39 = vadd.f32 %v3895_v18, %v14820_v56  ;;  %v3898_v11 = vadd.f32 %v11438_v50, %v3608_v63  ;;  %v3889_v51 = vpop.f32.mrb[195].mxu0  ;;  %v3631_v40 = vpop.f32.mrb[209].mxu1 }
 0x2bf   :  { %v4141_v14 = vadd.f32 %v3887_v10, %v14823_v6  ;;  %v3890_v53 = vadd.f32 %v3889_v51, %v3600_v44  ;;  %v15154_v1 = vpop.f32.mrb[210].mxu1  ;;  %v18904_v40 = vcombine.low %v14794_v58, %v14799_v8 }
 0x2c0   :  { %v4214_v7 = vmul.f32 %v15143_v15, %v4143_v39  ;;  %v4144_v16 = vadd.f32 %v3898_v11, %v14830_v30  ;;  %v3634_v25 = vpop.f32.mrb[211].mxu1 }
 0x2c1   :  { %v4212_v56 = vmul.f32 %v15143_v15, %v4141_v14  ;;  %v4142_v63 = vadd.f32 %v3890_v53, %v14835_v61 }
 0x2c2   :  { %v4285_v18 = vadd.f32 %v15151_v29, %v4214_v7  ;;  %v4215_v50 = vmul.f32 %v15143_v15, %v4144_v16  ;;  %3844 = vmatmul.mubr.bf16.gmra.mrb[60].mxu1 %v18904_v40 }
 0x2c3   :  { %v4283_v6 = vadd.f32 %v15151_v29, %v4212_v56  ;;  %v4213_v44 = vmul.f32 %v15143_v15, %v4142_v63  ;;  %v11441_v10 = vpop.f32.mrb[196].mxu0 }
 0x2c4   :  { %v4286_v30 = vadd.f32 %v15151_v29, %v4215_v50  ;;  %v3911_v25 = vadd.f32 %v11441_v10, %v3621_v33  ;;  %v3902_v39 = vpop.f32.mrb[197].mxu0  ;;  %v4349_v53 = vmax.f32 %v4285_v18, 0.0 }
 0x2c5   :  { %v4284_v61 = vadd.f32 %v15151_v29, %v4213_v44  ;;  %v3903_v11 = vadd.f32 %v3902_v39, %v3613_v34  ;;  %v11442_v51 = vpop.f32.mrb[198].mxu0  ;;  %v3637_v14 = vpop.f32.mrb[212].mxu1  ;;  %v4347_v40 = vmax.f32 %v4283_v6, 0.0 }
 0x2c6   :  { %v4350_v7 = vmax.f32 %v4286_v30, 0.0  ;;  %v4147_v58 = vadd.f32 %v3911_v25, %v14850_v42  ;;  %v3914_v8 = vadd.f32 %v11442_v51, %v3624_v62  ;;  %v3905_v16 = vpop.f32.mrb[199].mxu0  ;;  %v3639_v56 = vpop.f32.mrb[213].mxu1 }
 0x2c7   :  { %v4348_v63 = vmax.f32 %v4284_v61, 0.0  ;;  %v4145_v12 = vadd.f32 %v3903_v11, %v14853_v35  ;;  %v3906_v50 = vadd.f32 %v3905_v16, %v3616_v48  ;;  %v15171_v33 = vpop.f32.mrb[214].mxu1 }
 0x2c8   :  { %v4412_v10 = vpack.c.bf16 %v4350_v7, %v4349_v53  ;;  %v4218_v34 = vmul.f32 %v15143_v15, %v4147_v58  ;;  %v4148_v44 = vadd.f32 %v3914_v8, %v14859_v23  ;;  %v3642_v18 = vpop.f32.mrb[215].mxu1 }
 0x2c9   :  { %v4411_v30 = vpack.c.bf16 %v4348_v63, %v4347_v40  ;;  %v4216_v42 = vmul.f32 %v15143_v15, %v4145_v12  ;;  %v4146_v62 = vadd.f32 %v3906_v50, %v14862_v31 }
 0x2ca   :  { %v4451_v25 = vshrl.u32 %v4412_v10, 16  ;;  %v4454_v6 = vshll.u32 %v4412_v10, 16  ;;  %v4289_v39 = vadd.f32 %v15151_v29, %v4218_v34  ;;  %v4219_v35 = vmul.f32 %v15143_v15, %v4148_v44 }
 0x2cb   :  { %v4444_v61 = vshrl.u32 %v4411_v30, 16  ;;  %v4447_v11 = vshll.u32 %v4411_v30, 16  ;;  %v4287_v23 = vadd.f32 %v15151_v29, %v4216_v42  ;;  %v4217_v51 = vmul.f32 %v15143_v15, %v4146_v62  ;;  %v11445_v12 = vpop.f32.mrb[200].mxu0 }
 0x2cc   :  { %v4453_v53 = vrot.slane %v4451_v25, 7  ;;  %v4353_v31 = vmax.f32 %v4289_v39, 0.0  ;;  %v4290_v7 = vadd.f32 %v15151_v29, %v4219_v35  ;;  %v3927_v58 = vadd.f32 %v11445_v12, %v3637_v14  ;;  %v3918_v8 = vpop.f32.mrb[201].mxu0 }
 0x2cd   :  { %v4446_v16 = vrot.slane %v4444_v61, 7  ;;  %v4351_v56 = vmax.f32 %v4287_v23, 0.0  ;;  %v4288_v40 = vadd.f32 %v15151_v29, %v4217_v51  ;;  %v3919_v63 = vadd.f32 %v3918_v8, %v15145_v46  ;;  %v11446_v50 = vpop.f32.mrb[202].mxu0  ;;  %v3645_v10 = vpop.f32.mrb[216].mxu1 }
 0x2ce   :  { %v4456_v34 = vor.u32 %v4454_v6, %v4453_v53  ;;  %v4767_v44 = vsel %vm15180_vm8, %v4453_v53, 0  ;;  %v4354_v18 = vmax.f32 %v4290_v7, 0.0  ;;  %v4151_v30 = vadd.f32 %v3927_v58, %v14872_v2  ;;  %v3921_v42 = vpop.f32.mrb[203].mxu0  ;;  %v3647_v62 = vpop.f32.mrb[217].mxu1 }
 0x2cf   :  { %v10391_v25 = vcombine.low %v4767_v44, %v4767_v44  ;;  %v4449_v14 = vor.u32 %v4447_v11, %v4446_v16  ;;  %v4766_v39 = vsel %vm15180_vm8, %v4446_v16, 0  ;;  %v4352_v35 = vmax.f32 %v4288_v40, 0.0  ;;  %v15194_v61 = vpop.f32.mrb[218].mxu1 }
 0x2d0   :  { %v4735_v46 = vsel %vm15180_vm8, 0, %v4456_v34  ;;  %v10388_v6 = vcombine.low %v4766_v39, %v4766_v39  ;;  %v4414_v23 = vpack.c.bf16 %v4354_v18, %v4353_v31  ;;  %v4222_v51 = vmul.f32 %v15143_v15, %v4151_v30  ;;  %v3650_v12 = vpop.f32.mrb[219].mxu1 }
 0x2d1   :  { %v10389_v53 = vcombine.low %v4735_v46, %v4735_v46  ;;  %v10390_v2 = vcombine.high %v4735_v46, %v4735_v46  ;;  %5169 = vst [vmem:[#allocation2 + $0x20] sm:$0x1] %v10391_v25  ;;  %v4734_v11 = vsel %vm15180_vm8, 0, %v4449_v14  ;;  %v4413_v7 = vpack.c.bf16 %v4352_v35, %v4351_v56 }
 0x2d2   :  { %v10386_v58 = vcombine.low %v4734_v11, %v4734_v11  ;;  %v10387_v8 = vcombine.high %v4734_v11, %v4734_v11  ;;  %5166 = vst [vmem:[#allocation2 + $0x14] sm:$0x1] %v10388_v6  ;;  %v4465_v16 = vshrl.u32 %v4414_v23, 16  ;;  %v4468_v40 = vshll.u32 %v4414_v23, 16 }
 0x2d3   :  { %5167 = vst [vmem:[#allocation2 + $0x18] sm:$0xf] %v10389_v53  ;;  %5168 = vst [vmem:[#allocation2 + $0x1c] sm:$0xf] %v10390_v2  ;;  %v4458_v34 = vshrl.u32 %v4413_v7, 16  ;;  %v4149_v31 = vadd.f32 %v3919_v63, %v14875_v36  ;;  %v11449_v44 = vpop.f32.mrb[204].mxu0  ;;  %v3930_v62 = vadd.f32 %v11446_v50, %v15171_v33  ;;  %v3922_v25 = vadd.f32 %v3921_v42, %v15154_v1 }
 0x2d4   :  { %5164 = vst [vmem:[#allocation2 + $0xc] sm:$0xf] %v10386_v58  ;;  %5165 = vst [vmem:[#allocation2 + $0x10] sm:$0xf] %v10387_v8  ;;  %v4467_v18 = vrot.slane %v4465_v16, 7  ;;  %v4461_v30 = vshll.u32 %v4413_v7, 16  ;;  %v4293_v39 = vadd.f32 %v15151_v29, %v4222_v51 }
 0x2d5   :  { %v3934_v56 = vpop.f32.mrb[205].mxu0  ;;  %v4460_v14 = vrot.slane %v4458_v34, 7  ;;  %v4220_v35 = vmul.f32 %v15143_v15, %v4149_v31  ;;  %v3653_v46 = vpop.f32.mrb[220].mxu1  ;;  %v4152_v63 = vadd.f32 %v3930_v62, %v14881_v27  ;;  %v4150_v53 = vadd.f32 %v3922_v25, %v14884_v13 }
 0x2d6   :  { %v3935_v6 = vadd.f32 %v3934_v56, %v3645_v10  ;;  %v11450_v23 = vpop.f32.mrb[206].mxu0  ;;  %v4470_v12 = vor.u32 %v4468_v40, %v4467_v18  ;;  %v4769_v36 = vsel %vm15180_vm8, %v4467_v18, 0  ;;  %v3655_v33 = vpop.f32.mrb[221].mxu1  ;;  %v4357_v34 = vmax.f32 %v4293_v39, 0.0 }
 0x2d7   :  { %v3937_v50 = vpop.f32.mrb[207].mxu0  ;;  %v10397_v1 = vcombine.low %v4769_v36, %v4769_v36  ;;  %v4463_v42 = vor.u32 %v4461_v30, %v4460_v14  ;;  %v4768_v51 = vsel %vm15180_vm8, %v4460_v14, 0  ;;  %v4291_v2 = vadd.f32 %v15151_v29, %v4220_v35  ;;  %v3656_v11 = vpop.f32.mrb[222].mxu1 }
 0x2d8   :  { %v4737_v10 = vsel %vm15180_vm8, 0, %v4470_v12  ;;  %v10394_v7 = vcombine.low %v4768_v51, %v4768_v51  ;;  %v4223_v58 = vmul.f32 %v15143_v15, %v4152_v63  ;;  %v4221_v27 = vmul.f32 %v15143_v15, %v4150_v53  ;;  %v3658_v8 = vpop.f32.mrb[223].mxu1 }
 0x2d9   :  { %v10395_v13 = vcombine.low %v4737_v10, %v4737_v10  ;;  %v10396_v16 = vcombine.high %v4737_v10, %v4737_v10  ;;  %5175 = vst [vmem:[#allocation2 + $0x38] sm:$0x1] %v10397_v1  ;;  %v4736_v40 = vsel %vm15180_vm8, 0, %v4463_v42  ;;  %v3943_v25 = vadd.f32 %v11449_v44, %v3653_v46 }
 0x2da   :  { %v10392_v31 = vcombine.low %v4736_v40, %v4736_v40  ;;  %v10393_v18 = vcombine.high %v4736_v40, %v4736_v40  ;;  %5172 = vst [vmem:[#allocation2 + $0x2c] sm:$0x1] %v10394_v7  ;;  %v4294_v30 = vadd.f32 %v15151_v29, %v4223_v58  ;;  %v4292_v62 = vadd.f32 %v15151_v29, %v4221_v27 }
 0x2db   :  { %5173 = vst [vmem:[#allocation2 + $0x30] sm:$0xf] %v10395_v13  ;;  %5174 = vst [vmem:[#allocation2 + $0x34] sm:$0xf] %v10396_v16  ;;  %v4153_v56 = vadd.f32 %v3935_v6, %v14898_v28  ;;  %v3946_v14 = vadd.f32 %v11450_v23, %v3656_v11  ;;  %v3938_v35 = vadd.f32 %v3937_v50, %v15194_v61  ;;  %v15223_v12 = vpop.f32.mrb[208].mxu0  ;;  %v4355_v63 = vmax.f32 %v4291_v2, 0.0 }
 0x2dc   :  { %v15225_v36 = vld [vmem:[#allocation2 + $0xc] sm:$0xf]  ;;  %v15227_v39 = vld [vmem:[#allocation2 + $0x10] sm:$0xf]  ;;  %5170 = vst [vmem:[#allocation2 + $0x24] sm:$0xf] %v10392_v31  ;;  %v4155_v44 = vadd.f32 %v3943_v25, %v14895_v60 }
 0x2dd   :  { %5171 = vst [vmem:[#allocation2 + $0x28] sm:$0xf] %v10393_v18  ;;  %v4358_v53 = vmax.f32 %v4294_v30, 0.0  ;;  %v4356_v33 = vmax.f32 %v4292_v62, 0.0  ;;  %v3950_v1 = vpop.f32.mrb[209].mxu0  ;;  %v10483_v42 = vrot.slane %v15225_v36, 9  ;;  %v4224_v28 = vmul.f32 %v15143_v15, %v4153_v56 }
 0x2de   :  { %v4156_v61 = vadd.f32 %v3946_v14, %v14906_v52  ;;  %v4154_v46 = vadd.f32 %v3938_v35, %v14909_v4  ;;  %v3661_v6 = vpop.f32.mrb[224].mxu1  ;;  %v15234_v23 = vpop.f32.mrb[210].mxu0  ;;  %v6241_v7 = vrot.slane %v15227_v39, 5  ;;  %v4226_v58 = vmul.f32 %v15143_v15, %v4155_v44 }
 0x2df   :  { %v4416_v50 = vpack.c.bf16 %v4358_v53, %v4357_v34  ;;  %v4415_v51 = vpack.c.bf16 %v4356_v33, %v4355_v63  ;;  %v3951_v11 = vadd.f32 %v3950_v1, %v3661_v6  ;;  %v3663_v2 = vpop.f32.mrb[225].mxu1  ;;  %v3953_v10 = vpop.f32.mrb[211].mxu0  ;;  %v4295_v60 = vadd.f32 %v15151_v29, %v4224_v28 }
 0x2e0   :  { %v4227_v27 = vmul.f32 %v15143_v15, %v4156_v61  ;;  %v4225_v52 = vmul.f32 %v15143_v15, %v4154_v46  ;;  %v3664_v8 = vpop.f32.mrb[226].mxu1  ;;  %v4297_v31 = vadd.f32 %v15151_v29, %v4226_v58  ;;  %v6243_v1 = vrot.slane %v6241_v7, 4 }
 0x2e1   :  { %v4479_v4 = vshrl.u32 %v4416_v50, 16  ;;  %v4482_v13 = vshll.u32 %v4416_v50, 16  ;;  %v4472_v16 = vshrl.u32 %v4415_v51, 16  ;;  %v4475_v40 = vshll.u32 %v4415_v51, 16  ;;  %v3666_v34 = vpop.f32.mrb[227].mxu1 }
 0x2e2   :  { %v4359_v18 = vmax.f32 %v4295_v60, 0.0  ;;  %v4298_v30 = vadd.f32 %v15151_v29, %v4227_v27  ;;  %v4296_v62 = vadd.f32 %v15151_v29, %v4225_v52  ;;  %v4157_v14 = vadd.f32 %v3951_v11, %v14928_v9 }
 0x2e3   :  { %v4481_v25 = vrot.slane %v4479_v4, 7  ;;  %v4474_v56 = vrot.slane %v4472_v16, 7  ;;  %v3954_v35 = vadd.f32 %v3953_v10, %v3664_v8  ;;  %v4361_v63 = vmax.f32 %v4297_v31, 0.0  ;;  %v15245_v44 = vpop.f32.mrb[212].mxu0  ;;  %v15259_v8 = vld [vmem:[#allocation2 + $0x14] sm:$0x1] }
 0x2e4   :  { %v4362_v53 = vmax.f32 %v4298_v30, 0.0  ;;  %v4360_v33 = vmax.f32 %v4296_v62, 0.0  ;;  %v15251_v11 = vpop.f32.mrb[213].mxu0  ;;  %v4228_v27 = vmul.f32 %v15143_v15, %v4157_v14  ;;  %v15347_v37 = vld [vmem:[#allocation2 + $0x28] sm:$0xf] }
 0x2e5   :  { %v4484_v28 = vor.u32 %v4482_v13, %v4481_v25  ;;  %v4771_v61 = vsel %vm15180_vm8, %v4481_v25, 0  ;;  %v4477_v46 = vor.u32 %v4475_v40, %v4474_v56  ;;  %v4770_v6 = vsel %vm15180_vm8, %v4474_v56, 0  ;;  %v3669_v9 = vpop.f32.mrb[228].mxu1  ;;  %v15261_v13 = vpop.f32.mrb[214].mxu0 }
 0x2e6   :  { %v10403_v50 = vcombine.low %v4771_v61, %v4771_v61  ;;  %v10400_v51 = vcombine.low %v4770_v6, %v4770_v6  ;;  %v4418_v2 = vpack.c.bf16 %v4362_v53, %v4361_v63  ;;  %v4417_v58 = vpack.c.bf16 %v4360_v33, %v4359_v18  ;;  %v3671_v4 = vpop.f32.mrb[229].mxu1  ;;  %v15263_v18 = vld [vmem:[#allocation2 + $0x18] sm:$0xf]  ;;  %v15265_v62 = vpop.f32.mrb[215].mxu0 }
 0x2e7   :  { %v4739_v10 = vsel %vm15180_vm8, 0, %v4484_v28  ;;  %v4738_v60 = vsel %vm15180_vm8, 0, %v4477_v46  ;;  %v4158_v52 = vadd.f32 %v3954_v35, %v14937_v3  ;;  %v3672_v30 = vpop.f32.mrb[230].mxu1  ;;  %v6242_v3 = vsel %vm12242_vm2, %v10483_v42, %v6241_v7  ;;  %v15271_v35 = vld [vmem:[#allocation2 + $0x1c] sm:$0xf] }
 0x2e8   :  { %v10401_v16 = vcombine.low %v4739_v10, %v4739_v10  ;;  %v10402_v40 = vcombine.high %v4739_v10, %v4739_v10  ;;  %5181 = vst [vmem:[#allocation2 + $0x50] sm:$0x1] %v10403_v50  ;;  %v10398_v34 = vcombine.low %v4738_v60, %v4738_v60  ;;  %v10399_v31 = vcombine.high %v4738_v60, %v4738_v60  ;;  %v3674_v63 = vpop.f32.mrb[231].mxu1 }
 0x2e9   :  { %5178 = vst [vmem:[#allocation2 + $0x44] sm:$0x1] %v10400_v51  ;;  %v4493_v25 = vshrl.u32 %v4418_v2, 16  ;;  %v4496_v56 = vshll.u32 %v4418_v2, 16  ;;  %v4486_v14 = vshrl.u32 %v4417_v58, 16  ;;  %v4489_v53 = vshll.u32 %v4417_v58, 16 }
 0x2ea   :  { %5179 = vst [vmem:[#allocation2 + $0x48] sm:$0xf] %v10401_v16  ;;  %5180 = vst [vmem:[#allocation2 + $0x4c] sm:$0xf] %v10402_v40  ;;  %v4299_v33 = vadd.f32 %v15151_v29, %v4228_v27  ;;  %v4229_v28 = vmul.f32 %v15143_v15, %v4158_v52  ;;  %v6244_v61 = vrot.slane %v15259_v8, 5  ;;  %v3959_v50 = vadd.f32 %v15223_v12, %v3669_v9  ;;  %v18908_v63 = vld [vmem:[#allocation19_spill] sm:$0xff] }
 0x2eb   :  { %5176 = vst [vmem:[#allocation2 + $0x3c] sm:$0xf] %v10398_v34  ;;  %5177 = vst [vmem:[#allocation2 + $0x40] sm:$0xf] %v10399_v31  ;;  %v4495_v46 = vrot.slane %v4493_v25, 7  ;;  %v4488_v6 = vrot.slane %v4486_v14, 7 }
 0x2ec   :  { %v10484_v42 = vrot.slane %v15263_v18, 9  ;;  %v4363_v7 = vmax.f32 %v4299_v33, 0.0  ;;  %v4300_v51 = vadd.f32 %v15151_v29, %v4229_v28  ;;  %v6245_v2 = vsel %vm12242_vm2, %v6243_v1, %v6244_v61  ;;  %v15282_v10 = vpop.f32.mrb[216].mxu0  ;;  %v15292_v1 = vld [vmem:[#allocation2 + $0x20] sm:$0x1] }
 0x2ed   :  { %v6248_v58 = vrot.slane %v15271_v35, 5  ;;  %v4498_v60 = vor.u32 %v4496_v56, %v4495_v46  ;;  %v4773_v27 = vsel %vm15180_vm8, %v4495_v46, 0  ;;  %v4491_v52 = vor.u32 %v4489_v53, %v4488_v6  ;;  %v15288_v9 = vpop.f32.mrb[217].mxu0  ;;  %v15294_v31 = vpop.f32.mrb[232].mxu1 }
 0x2ee   :  { %v4772_v12 = vsel %vm15180_vm8, %v4488_v6, 0  ;;  %v10409_v4 = vcombine.low %v4773_v27, %v4773_v27  ;;  %v4364_v40 = vmax.f32 %v4300_v51, 0.0  ;;  %v15290_v34 = vcombine.low %v6242_v3, %v6245_v2  ;;  %v15296_v25 = vpop.f32.mrb[218].mxu0  ;;  %v3679_v28 = vpop.f32.mrb[233].mxu1 }
 0x2ef   :  { %v10406_v16 = vcombine.low %v4772_v12, %v4772_v12  ;;  %v4741_v56 = vsel %vm15180_vm8, 0, %v4498_v60  ;;  %v4740_v14 = vsel %vm15180_vm8, 0, %v4491_v52  ;;  %v4159_v53 = vadd.f32 %v3959_v50, %v18908_v63  ;;  %v15305_v3 = vpop.f32.mrb[219].mxu0  ;;  %v15308_v2 = vpop.f32.mrb[234].mxu1 }
 0x2f0   :  { %18907 = vst [vmem:[#allocation124_spill] sm:$0xff] %v15290_v34  ;;  %v6249_v33 = vsel %vm12242_vm2, %v10484_v42, %v6248_v58  ;;  %v10407_v61 = vcombine.low %v4741_v56, %v4741_v56  ;;  %v10408_v46 = vcombine.high %v4741_v56, %v4741_v56  ;;  %5187 = vst [vmem:[#allocation2 + $0x68] sm:$0x1] %v10409_v4  ;;  %11515 = vmatprep.mubr.bf16.mxu1 %v15290_v34  ;;  %v3682_v42 = vpop.f32.mrb[235].mxu1 }
 0x2f1   :  { %v10404_v6 = vcombine.low %v4740_v14, %v4740_v14  ;;  %v10405_v51 = vcombine.high %v4740_v14, %v4740_v14  ;;  %5184 = vst [vmem:[#allocation2 + $0x5c] sm:$0x1] %v10406_v16  ;;  %v4419_v60 = vpack.c.bf16 %v4364_v40, %v4363_v7  ;;  %v4230_v27 = vmul.f32 %v15143_v15, %v4159_v53  ;;  %v18910_v53 = vld [vmem:[#allocation22_spill] sm:$0xff]  ;;  %v15461_v22 = vld [vmem:[#allocation2 + $0x4c] sm:$0xf] }
 0x2f2   :  { %v6250_v50 = vrot.slane %v6248_v58, 4  ;;  %v6251_v52 = vrot.slane %v15292_v1, 5  ;;  %5185 = vst [vmem:[#allocation2 + $0x60] sm:$0xf] %v10407_v61  ;;  %5186 = vst [vmem:[#allocation2 + $0x64] sm:$0xf] %v10408_v46  ;;  %v3962_v12 = vadd.f32 %v15234_v23, %v3672_v30 }
 0x2f3   :  { %5182 = vst [vmem:[#allocation2 + $0x54] sm:$0xf] %v10404_v6  ;;  %5183 = vst [vmem:[#allocation2 + $0x58] sm:$0xf] %v10405_v51  ;;  %v5393_v4 = vshrl.u32 %v15225_v36, 16  ;;  %v5396_v16 = vshll.u32 %v15225_v36, 16  ;;  %v4301_v40 = vadd.f32 %v15151_v29, %v4230_v27 }
 0x2f4   :  { %v5402_v56 = vshll.u32 %v15227_v39, 16  ;;  %v4500_v14 = vshrl.u32 %v4419_v60, 16  ;;  %v4503_v7 = vshll.u32 %v4419_v60, 16  ;;  %v6252_v58 = vsel %vm12242_vm2, %v6250_v50, %v6251_v52  ;;  %v15322_v23 = vpop.f32.mrb[220].mxu0 }
 0x2f5   :  { %v15319_v63 = vcombine.low %v6249_v33, %v6252_v58  ;;  %v4160_v28 = vadd.f32 %v3962_v12, %v18910_v53  ;;  %v5395_v61 = vrot.slane %v5393_v4, 4  ;;  %v5398_v46 = vrot.slane %v5396_v16, 5  ;;  %v15325_v34 = vpop.f32.mrb[221].mxu0  ;;  %v15331_v52 = vpop.f32.mrb[236].mxu1 }
 0x2f6   :  { %v4502_v30 = vrot.slane %v4500_v14, 7  ;;  %v4365_v6 = vmax.f32 %v4301_v40, 0.0  ;;  %v5404_v51 = vrot.slane %v5402_v56, 5  ;;  %v5406_v42 = vshrl.u32 %v15227_v39, 16  ;;  %v15333_v12 = vpop.f32.mrb[222].mxu0  ;;  %v3687_v40 = vpop.f32.mrb[237].mxu1 }
 0x2f7   :  { %18909 = vst [vmem:[#allocation126_spill] sm:$0xff] %v15319_v63  ;;  %11516 = vmatmul.mubr.bf16.vlgmr.msra.gmra.mrb[64].mxu1 %v15319_v63  ;;  %v4231_v60 = vmul.f32 %v15143_v15, %v4160_v28  ;;  %v5399_v27 = vor.u32 %v5398_v46, %v5395_v61  ;;  %v5412_v33 = vshll.u32 %v15259_v8, 16  ;;  %v5417_v50 = vshrl.u32 %v15263_v18, 16  ;;  %v15339_v8 = vld [vmem:[#allocation2 + $0x24] sm:$0xf]  ;;  %v15341_v46 = vpop.f32.mrb[238].mxu1 }
 0x2f8   :  { %v4505_v4 = vor.u32 %v4503_v7, %v4502_v30  ;;  %v4774_v16 = vsel %vm15180_vm8, %v4502_v30, 0  ;;  %v5408_v56 = vrot.slane %v5406_v42, 4  ;;  %v5420_v14 = vshll.u32 %v15263_v18, 16  ;;  %v15343_v63 = vpop.f32.mrb[223].mxu0  ;;  %v3690_v40 = vpop.f32.mrb[239].mxu1 }
 0x2f9   :  { %v10412_v58 = vcombine.low %v4774_v16, %v4774_v16  ;;  %v4302_v53 = vadd.f32 %v15151_v29, %v4231_v60  ;;  %v5400_v28 = vrot.slane %v5399_v27, 4  ;;  %v5414_v61 = vrot.slane %v5412_v33, 5 }
 0x2fa   :  { %v4742_v7 = vsel %vm15180_vm8, 0, %v4505_v4  ;;  %v5409_v54 = vor.u32 %v5408_v56, %v5404_v51  ;;  %v5419_v30 = vrot.slane %v5417_v50, 4  ;;  %v5422_v42 = vrot.slane %v5420_v14, 5  ;;  %v15353_v4 = vld [vmem:[#allocation2 + $0x2c] sm:$0x1] }
 0x2fb   :  { %v10410_v16 = vcombine.low %v4742_v7, %v4742_v7  ;;  %v10411_v20 = vcombine.high %v4742_v7, %v4742_v7  ;;  %5190 = vst [vmem:[#allocation2 + $0x74] sm:$0x1] %v10412_v58  ;;  %v4366_v60 = vmax.f32 %v4302_v53, 0.0  ;;  %v5405_v33 = vsel %vm12498_vm5, %v5400_v28, %v5404_v51  ;;  %v15358_v53 = vld [vmem:[#allocation2 + $0x38] sm:$0x1]  ;;  %v15360_v51 = vpop.f32.mrb[224].mxu0 }
 0x2fc   :  { %v5410_v21 = vrot.slane %v5409_v54, 4  ;;  %v5423_v57 = vor.u32 %v5422_v42, %v5419_v30  ;;  %v5426_v32 = vshll.u32 %v15271_v35, 16  ;;  %v5430_v55 = vshrl.u32 %v15271_v35, 16  ;;  %v15364_v42 = vld [vmem:[#allocation2 + $0x30] sm:$0xf] }
 0x2fd   :  { %5188 = vst [vmem:[#allocation2 + $0x6c] sm:$0xf] %v10410_v16  ;;  %5189 = vst [vmem:[#allocation2 + $0x70] sm:$0xf] %v10411_v20  ;;  %v4420_v50 = vpack.c.bf16 %v4366_v60, %v4365_v6  ;;  %v5436_v56 = vshll.u32 %v15292_v1, 16  ;;  %v10485_v14 = vrot.slane %v15339_v8, 9  ;;  %v15370_v1 = vcombine.low %v15225_v36, %v15227_v39 }
 0x2fe   :  { %v6255_v58 = vrot.slane %v15347_v37, 5  ;;  %v5415_v54 = vsel %vm12498_vm5, %v5410_v21, %v5414_v61  ;;  %v5424_v28 = vrot.slane %v5423_v57, 4  ;;  %v5428_v7 = vrot.slane %v5426_v32, 5  ;;  %v15366_v20 = vpop.f32.mrb[225].mxu0  ;;  %v15374_v60 = vld [vmem:[#allocation2 + $0x34] sm:$0xf] }
 0x2ff   :  { %v5432_v30 = vrot.slane %v5430_v55, 4  ;;  %18912 = vst [vmem:[#allocation73_spill] sm:$0xff] %v15370_v1  ;;  %v4507_v6 = vshrl.u32 %v4420_v50, 16  ;;  %v4510_v40 = vshll.u32 %v4420_v50, 16  ;;  %v15372_v16 = vcombine.low %v5405_v33, %v5415_v54  ;;  %v15376_v19 = vpop.f32.mrb[240].mxu1  ;;  %v15378_v21 = vpop.f32.mrb[226].mxu0 }
 0x300   :  { %v5429_v32 = vsel %vm12498_vm5, %v5424_v28, %v5428_v7  ;;  %v5438_v57 = vrot.slane %v5436_v56, 5  ;;  %v6257_v61 = vrot.slane %v6255_v58, 4  ;;  %v3695_v47 = vpop.f32.mrb[241].mxu1  ;;  %v15382_v36 = vpop.f32.mrb[227].mxu0  ;;  %v6256_v33 = vsel %vm12242_vm2, %v10485_v14, %v6255_v58 }
 0x301   :  { %18913 = vst [vmem:[#allocation74_spill] sm:$0xff] %v15372_v16  ;;  %v5433_v55 = vor.u32 %v5432_v30, %v5428_v7  ;;  %v4509_v39 = vrot.slane %v4507_v6, 7  ;;  %7205 = vmatprep.mubr.bf16.mxu0 %v15372_v16  ;;  %v6258_v50 = vrot.slane %v15353_v4, 5  ;;  %v3967_v54 = vadd.f32 %v15251_v11, %v15294_v31  ;;  %v15390_v0 = vpop.f32.mrb[242].mxu1  ;;  %v18914_v31 = vld [vmem:[#allocation58_spill] sm:$0xff] }
 0x302   :  { %7206 = vmatmul.mubr.bf16.vlgmr.msra.gmra.mrb[0].mxu0 %v15370_v1  ;;  %v10486_v47 = vrot.slane %v15364_v42, 9  ;;  %v6262_v28 = vrot.slane %v15374_v60, 5  ;;  %v6265_v7 = vrot.slane %v15358_v53, 5  ;;  %v3698_v30 = vpop.f32.mrb[243].mxu1  ;;  %v6276_v59 = vrot.slane %v15461_v22, 5 }
 0x303   :  { %v5434_v56 = vrot.slane %v5433_v55, 4  ;;  %v4512_v6 = vor.u32 %v4510_v40, %v4509_v39  ;;  %v4775_v14 = vsel %vm15180_vm8, %v4509_v39, 0  ;;  %11580 = vmatpush3.bf16.msra.mxu0 %v15039_v17  ;;  %v6259_v11 = vsel %vm12242_vm2, %v6257_v61, %v6258_v50  ;;  %v11892_v40 = vld [vmem:[#allocation6 + $0x90] sm:$0xff]  }
 0x304   :  { %v4161_v58 = vadd.f32 %v3967_v54, %v18914_v31  ;;  %v10415_v1 = vcombine.low %v4775_v14, %v4775_v14  ;;  %v15404_v16 = vcombine.low %v6256_v33, %v6259_v11  ;;  %v6263_v30 = vsel %vm12242_vm2, %v10486_v47, %v6262_v28  ;;  %11581 = vmatprep.subr.bf16.mxu0 %v11887_v26  ;;  %v15413_v54 = vpop.f32.mrb[228].mxu0 }
 0x305   :  { %v5439_v55 = vsel %vm12498_vm5, %v5434_v56, %v5438_v57  ;;  %v4743_v39 = vsel %vm15180_vm8, 0, %v4512_v6  ;;  %v6264_v50 = vrot.slane %v6262_v28, 4  ;;  %18917 = vst [vmem:[#allocation75_spill] sm:$0xff] %v15413_v54  ;;  %v3970_v57 = vadd.f32 %v15265_v62, %v15308_v2  ;;  %v15422_v56 = vpop.f32.mrb[229].mxu0  ;;  %v15430_v6 = vld [vmem:[#allocation2 + $0x3c] sm:$0xf] }
 0x306   :  { %18915 = vst [vmem:[#allocation123_spill] sm:$0xff] %v15404_v16  ;;  %v15410_v17 = vcombine.low %v5429_v32, %v5439_v55  ;;  %v4232_v61 = vmul.f32 %v15143_v15, %v4161_v58  ;;  %v10413_v14 = vcombine.low %v4743_v39, %v4743_v39  ;;  %v10414_v31 = vcombine.high %v4743_v39, %v4743_v39  ;;  %v15432_v62 = vpop.f32.mrb[244].mxu1  ;;  %v18921_v2 = vld [vmem:[#allocation109_spill] sm:$0xff]  ;;  %v15441_v55 = vld [vmem:[#allocation2 + $0x40] sm:$0xf] }
 0x307   :  { %5193 = vst [vmem:[#allocation2 + $0x80] sm:$0x1] %v10415_v1  ;;  %11519 = vmatprep.mubr.bf16.mxu1 %v15404_v16  ;;  %v15420_v33 = vcombine.low %v15263_v18, %v15271_v35  ;;  %v6266_v47 = vsel %vm12242_vm2, %v6264_v50, %v6265_v7  ;;  %v5441_v1 = vshrl.u32 %v15339_v8, 16  ;;  %v5444_v28 = vshll.u32 %v15339_v8, 16  ;;  %11582 = vmatpush3.bf16.msra.mxu0 %v11887_v26  ;;  %v15434_v18 = vpop.f32.mrb[230].mxu0  ;;  %v3703_v39 = vpop.f32.mrb[245].mxu1 }
 0x308   :  { %18916 = vst [vmem:[#allocation125_spill] sm:$0xff] %v15410_v17  ;;  %7213 = vmatprep.mubr.bf16.mxu0 %v15410_v17  ;;  %v4303_v32 = vadd.f32 %v15151_v29, %v4232_v61  ;;  %18919 = vst [vmem:[#allocation77_spill] sm:$0xff] %v15434_v18  ;;  %v15436_v35 = vcombine.low %v6263_v30, %v6266_v47  ;;  %v4162_v11 = vadd.f32 %v3970_v57, %v18921_v2  ;;  %v15443_v61 = vpop.f32.mrb[231].mxu0  ;;  %v15452_v57 = vpop.f32.mrb[246].mxu1 }
 0x309   :  { %18918 = vst [vmem:[#allocation76_spill] sm:$0xff] %v15420_v33  ;;  %5191 = vst [vmem:[#allocation2 + $0x78] sm:$0xf] %v10413_v14  ;;  %v5450_v58 = vshll.u32 %v15347_v37, 16  ;;  %v5454_v7 = vshrl.u32 %v15347_v37, 16  ;;  %11583 = vmatprep.subr.bf16.mxu0 %v11892_v40  ;;  %v15447_v26 = vcombine.low %v15339_v8, %v15347_v37  ;;  %v5443_v50 = vrot.slane %v5441_v1, 4 }
 0x30a   :  { %5192 = vst [vmem:[#allocation2 + $0x7c] sm:$0xf] %v10414_v31  ;;  %18920 = vst [vmem:[#allocation78_spill] sm:$0xff] %v15436_v35  ;;  %v5446_v14 = vrot.slane %v5444_v28, 5  ;;  %v5460_v30 = vshll.u32 %v15353_v4, 16  ;;  %11520 = vmatmul.mubr.bf16.gmra.mrb[68].mxu1 %v15436_v35  ;;  %v4233_v47 = vmul.f32 %v15143_v15, %v4162_v11  ;;  %7214 = vmatmul.mubr.bf16.gmra.mrb[4].mxu0 %v15420_v33  ;;  %v10487_v16 = vrot.slane %v15430_v6, 9 }
 0x30b   :  { %18922 = vst [vmem:[#allocation94_spill] sm:$0xff] %v15447_v26  ;;  %v15450_v31 = vld [vmem:[#allocation2 + $0x44] sm:$0x1]  ;;  %v5452_v2 = vrot.slane %v5450_v58, 5  ;;  %v5456_v39 = vrot.slane %v5454_v7, 4  ;;  %v3706_v8 = vpop.f32.mrb[247].mxu1  ;;  %11584 = vmatpush3.bf16.msra.mxu0 %v11892_v40  ;;  %v3975_v58 = vadd.f32 %v15245_v44, %v15331_v52 }
 0x30c   :  { %v15458_v37 = vld [vmem:[#allocation2 + $0x48] sm:$0xf]  ;;  %v4367_v1 = vmax.f32 %v4303_v32, 0.0  ;;  %v5447_v28 = vor.u32 %v5446_v14, %v5443_v50  ;;  %v5462_v4 = vrot.slane %v5460_v30, 5  ;;  %v6269_v17 = vrot.slane %v15441_v55, 5  ;;  %v15472_v30 = vpop.f32.mrb[232].mxu0 }
 0x30d   :  { %v4304_v35 = vadd.f32 %v15151_v29, %v4233_v47  ;;  %v5457_v11 = vor.u32 %v5456_v39, %v5452_v2  ;;  %v6272_v33 = vrot.slane %v15450_v31, 5  ;;  %v15467_v7 = vld [vmem:[#allocation2 + $0x50] sm:$0x1]  ;;  %v10488_v14 = vrot.slane %v15458_v37, 9  ;;  %18923 = vst [vmem:[#allocation43_spill] sm:$0xff] %v15472_v30  ;;  %v15476_v54 = vpop.f32.mrb[233].mxu0 }
 0x30e   :  { %v5448_v18 = vrot.slane %v5447_v28, 4  ;;  %v6270_v32 = vsel %vm12242_vm2, %v10487_v16, %v6269_v17  ;;  %v6271_v50 = vrot.slane %v6269_v17, 4  ;;  %v18924_v47 = vld [vmem:[#allocation16_spill] sm:$0xff]  ;;  %18925 = vst [vmem:[#allocation48_spill] sm:$0xff] %v15476_v54  ;;  %v6279_v16 = vrot.slane %v15467_v7, 5  ;;  %v15485_v28 = vpop.f32.mrb[248].mxu1 }
 0x30f   :  { %v4368_v40 = vmax.f32 %v4304_v35, 0.0  ;;  %v5458_v8 = vrot.slane %v5457_v11, 4  ;;  %v4163_v39 = vadd.f32 %v3975_v58, %v18924_v47  ;;  %v3978_v17 = vadd.f32 %v15261_v13, %v15341_v46  ;;  %v3711_v30 = vpop.f32.mrb[249].mxu1  ;;  %v18929_v13 = vld [vmem:[#allocation14_spill] sm:$0xff] }
 0x310   :  { %v5453_v44 = vsel %vm12498_vm5, %v5448_v18, %v5452_v2  ;;  %v6273_v52 = vsel %vm12242_vm2, %v6271_v50, %v6272_v33  ;;  %v15492_v18 = vpop.f32.mrb[234].mxu0  ;;  %v6277_v33 = vsel %vm12242_vm2, %v10488_v14, %v6276_v59  ;;  %v6278_v50 = vrot.slane %v6276_v59, 4  ;;  %v15499_v54 = vpop.f32.mrb[250].mxu1 }
 0x311   :  { %v4421_v35 = vpack.c.bf16 %v4368_v40, %v4367_v1  ;;  %v5463_v11 = vsel %vm12498_vm5, %v5458_v8, %v5462_v4  ;;  %v15489_v58 = vcombine.low %v6270_v32, %v6273_v52  ;;  %v4234_v47 = vmul.f32 %v15143_v15, %v4163_v39  ;;  %18927 = vst [vmem:[#allocation79_spill] sm:$0xff] %v15492_v18  ;;  %v15501_v1 = vpop.f32.mrb[235].mxu0  ;;  %v3714_v8 = vpop.f32.mrb[251].mxu1  ;;  %v15512_v52 = vld [vmem:[#allocation2 + $0x54] sm:$0xf] }
 0x312   :  { %v15494_v2 = vcombine.low %v5453_v44, %v5463_v11  ;;  %v4164_v46 = vadd.f32 %v3978_v17, %v18929_v13  ;;  %18930 = vst [vmem:[#allocation49_spill] sm:$0xff] %v15501_v1  ;;  %v5465_v40 = vshrl.u32 %v15364_v42, 16  ;;  %v6280_v59 = vsel %vm12242_vm2, %v6278_v50, %v6279_v16 }
 0x313   :  { %18926 = vst [vmem:[#allocation93_spill] sm:$0xff] %v15489_v58  ;;  %v4514_v4 = vshrl.u32 %v4421_v35, 16  ;;  %v4517_v32 = vshll.u32 %v4421_v35, 16  ;;  %11523 = vmatprep.mubr.bf16.mxu1 %v15489_v58  ;;  %v4305_v30 = vadd.f32 %v15151_v29, %v4234_v47  ;;  %v5468_v39 = vshll.u32 %v15364_v42, 16 }
 0x314   :  { %18928 = vst [vmem:[#allocation80_spill] sm:$0xff] %v15494_v2  ;;  %7221 = vmatprep.mubr.bf16.mxu0 %v15494_v2  ;;  %v4235_v14 = vmul.f32 %v15143_v15, %v4164_v46  ;;  %v5474_v44 = vshll.u32 %v15374_v60, 16  ;;  %v15514_v11 = vcombine.low %v6277_v33, %v6280_v59  ;;  %v5467_v47 = vrot.slane %v5465_v40, 4  ;;  %v15519_v15 = vld [vmem:[#allocation2 + $0x58] sm:$0xf] }
 0x315   :  { %v4516_v17 = vrot.slane %v4514_v4, 7  ;;  %v4369_v35 = vmax.f32 %v4305_v30, 0.0  ;;  %7222 = vmatmul.mubr.bf16.gmra.mrb[8].mxu0 %v15447_v26  ;;  %v5470_v8 = vrot.slane %v5468_v39, 5  ;;  %v5478_v16 = vshrl.u32 %v15374_v60, 16  ;;  %v15525_v4 = vld [vmem:[#allocation2 + $0x5c] sm:$0x1] }
 0x316   :  { %18931 = vst [vmem:[#allocation53_spill] sm:$0xff] %v15514_v11  ;;  %v4306_v13 = vadd.f32 %v15151_v29, %v4235_v14  ;;  %v5476_v58 = vrot.slane %v5474_v44, 5  ;;  %11524 = vmatmul.mubr.bf16.gmra.mrb[72].mxu1 %v15514_v11  ;;  %v5484_v33 = vshll.u32 %v15358_v53, 16  ;;  %v10489_v30 = vrot.slane %v15512_v52, 9  ;;  %v15528_v39 = vld [vmem:[#allocation2 + $0x60] sm:$0xf] }
 0x317   :  { %v4519_v50 = vor.u32 %v4517_v32, %v4516_v17  ;;  %v4776_v46 = vsel %vm15180_vm8, %v4516_v17, 0  ;;  %v5471_v59 = vor.u32 %v5470_v8, %v5467_v47  ;;  %v5480_v14 = vrot.slane %v5478_v16, 4  ;;  %v15530_v44 = vpop.f32.mrb[252].mxu1  ;;  %v11897_v53 = vld [vmem:[#allocation6 + $0x98] sm:$0xff]   ;;  %v15539_v8 = vpop.f32.mrb[236].mxu0 }
 0x318   :  { %v10418_v40 = vcombine.low %v4776_v46, %v4776_v46  ;;  %v4370_v29 = vmax.f32 %v4306_v13, 0.0  ;;  %v5486_v17 = vrot.slane %v5484_v33, 5  ;;  %v6283_v11 = vrot.slane %v15519_v15, 5  ;;  %v3719_v26 = vpop.f32.mrb[253].mxu1  ;;  %v15535_v13 = vld [vmem:[#allocation2 + $0x64] sm:$0xf]  ;;  %11585 = vmatprep.subr.bf16.mxu0 %v11897_v53 }
 0x319   :  { %v4744_v32 = vsel %vm15180_vm8, 0, %v4519_v50  ;;  %v5472_v46 = vrot.slane %v5471_v59, 4  ;;  %v15537_v47 = vpop.f32.mrb[254].mxu1  ;;  %18932 = vst [vmem:[#allocation50_spill] sm:$0xff] %v15539_v8  ;;  %v5481_v16 = vor.u32 %v5480_v14, %v5476_v58  ;;  %v6286_v38 = vrot.slane %v15525_v4, 5  ;;  %11586 = vmatpush3.bf16.msra.mxu0 %v11897_v53 }
 0x31a   :  { %v10416_v2 = vcombine.low %v4744_v32, %v4744_v32  ;;  %v10417_v18 = vcombine.high %v4744_v32, %v4744_v32  ;;  %5196 = vst [vmem:[#allocation2 + $0x8c] sm:$0x1] %v10418_v40  ;;  %v4422_v1 = vpack.c.bf16 %v4370_v29, %v4369_v35  ;;  %v6284_v50 = vsel %vm12242_vm2, %v10489_v30, %v6283_v11  ;;  %v15544_v26 = vld [vmem:[#allocation2 + $0x68] sm:$0x1]  ;;  %v3722_v5 = vpop.f32.mrb[255].mxu1  ;;  %v15546_v40 = vpop.f32.mrb[237].mxu0 }
 0x31b   :  { %v6285_v33 = vrot.slane %v6283_v11, 4  ;;  %18933 = vst [vmem:[#allocation69_spill] sm:$0xff] %v15546_v40  ;;  %v5477_v59 = vsel %vm12498_vm5, %v5472_v46, %v5476_v58  ;;  %v3983_v14 = vadd.f32 %v15288_v9, %v15376_v19  ;;  %v15552_v11 = vpop.f32.mrb[238].mxu0  ;;  %v5482_v30 = vrot.slane %v5481_v16, 4  ;;  %v18937_v58 = vld [vmem:[#allocation32_spill] sm:$0xff] }
 0x31c   :  { %5194 = vst [vmem:[#allocation2 + $0x84] sm:$0xf] %v10416_v2  ;;  %5195 = vst [vmem:[#allocation2 + $0x88] sm:$0xf] %v10417_v18  ;;  %v4521_v35 = vshrl.u32 %v4422_v1, 16  ;;  %v4524_v29 = vshll.u32 %v4422_v1, 16  ;;  %v3986_v16 = vadd.f32 %v15305_v3, %v15390_v0 }
 0x31d   :  { %18934 = vst [vmem:[#allocation81_spill] sm:$0xff] %v15552_v11  ;;  %v6287_v5 = vsel %vm12242_vm2, %v6285_v33, %v6286_v38  ;;  %v10490_v32 = vrot.slane %v15528_v39, 9  ;;  %v6290_v2 = vrot.slane %v15535_v13, 5  ;;  %v15558_v18 = vpop.f32.mrb[239].mxu0  ;;  %v4165_v46 = vadd.f32 %v3983_v14, %v18937_v58  ;;  %v15578_v14 = vld [vmem:[%s18156_s3] ss:$0 sm:$0xff] }
 0x31e   :  { %18935 = vst [vmem:[#allocation82_spill] sm:$0xff] %v15558_v18  ;;  %v4523_v1 = vrot.slane %v4521_v35, 7  ;;  %v15560_v8 = vcombine.low %v6284_v50, %v6287_v5  ;;  %v6293_v19 = vrot.slane %v15544_v26, 5  ;;  %v5487_v9 = vsel %vm12498_vm5, %v5482_v30, %v5486_v17  ;;  %v15581_v30 = vpop.f32.mrb[0].mxu1  ;;  %v18939_v3 = vld [vmem:[#allocation25_spill] sm:$0xff] }
 0x31f   :  { %v6291_v53 = vsel %vm12242_vm2, %v10490_v32, %v6290_v2  ;;  %v6292_v38 = vrot.slane %v6290_v2, 4  ;;  %v15572_v50 = vcombine.low %v5477_v59, %v5487_v9  ;;  %v4236_v17 = vmul.f32 %v15578_v14, %v4165_v46  ;;  %v3727_v32 = vpop.f32.mrb[1].mxu1  ;;  %v15602_v9 = vld [vmem:[#allocation2 + $0x6c] sm:$0xf] }
 0x320   :  { %18936 = vst [vmem:[#allocation57_spill] sm:$0xff] %v15560_v8  ;;  %v4526_v33 = vor.u32 %v4524_v29, %v4523_v1  ;;  %v4777_v35 = vsel %vm15180_vm8, %v4523_v1, 0  ;;  %11527 = vmatprep.mubr.bf16.mxu1 %v15560_v8  ;;  %v4166_v29 = vadd.f32 %v3986_v16, %v18939_v3  ;;  %v15588_v59 = vcombine.low %v15364_v42, %v15374_v60  ;;  %v15596_v1 = vld [vmem:[%s18157_s4] ss:$0 sm:$0xff]  ;;  %v15604_v42 = vpop.f32.mrb[2].mxu1 }
 0x321   :  { %18938 = vst [vmem:[#allocation55_spill] sm:$0xff] %v15572_v50  ;;  %v10421_v5 = vcombine.low %v4777_v35, %v4777_v35  ;;  %v6294_v0 = vsel %vm12242_vm2, %v6292_v38, %v6293_v19  ;;  %7229 = vmatprep.mubr.bf16.mxu0 %v15572_v50  ;;  %v4307_v58 = vadd.f32 %v15596_v1, %v4236_v17  ;;  %v5489_v19 = vshrl.u32 %v15430_v6, 16  ;;  %v15609_v35 = vld [vmem:[#allocation2 + $0x70] sm:$0xf]  ;;  %v3730_v17 = vpop.f32.mrb[3].mxu1 }
 0x322   :  { %18940 = vst [vmem:[#allocation40_spill] sm:$0xff] %v15588_v59  ;;  %v4745_v2 = vsel %vm15180_vm8, 0, %v4526_v33  ;;  %v15599_v46 = vcombine.low %v6291_v53, %v6294_v0  ;;  %v4237_v16 = vmul.f32 %v15578_v14, %v4166_v29  ;;  %7230 = vmatmul.mubr.bf16.gmra.mrb[12].mxu0 %v15588_v59  ;;  %v5492_v33 = vshll.u32 %v15430_v6, 16  ;;  %v15618_v32 = vld [vmem:[#allocation2 + $0x74] sm:$0x1] }
 0x323   :  { %v10419_v60 = vcombine.low %v4745_v2, %v4745_v2  ;;  %v10420_v38 = vcombine.high %v4745_v2, %v4745_v2  ;;  %5199 = vst [vmem:[#allocation2 + $0x98] sm:$0x1] %v10421_v5  ;;  %v15613_v53 = vcombine.low %v15430_v6, %v15441_v55  ;;  %v5491_v0 = vrot.slane %v5489_v19, 4 }
 0x324   :  { %18941 = vst [vmem:[#allocation59_spill] sm:$0xff] %v15599_v46  ;;  %11528 = vmatmul.mubr.bf16.gmra.mrb[76].mxu1 %v15599_v46  ;;  %v5498_v3 = vshll.u32 %v15441_v55, 16  ;;  %v5502_v5 = vshrl.u32 %v15441_v55, 16  ;;  %v4308_v29 = vadd.f32 %v15596_v1, %v4237_v16  ;;  %v5494_v2 = vrot.slane %v5492_v33, 5 }
 0x325   :  { %18942 = vst [vmem:[#allocation56_spill] sm:$0xff] %v15613_v53  ;;  %5197 = vst [vmem:[#allocation2 + $0x90] sm:$0xf] %v10419_v60  ;;  %v5508_v17 = vshll.u32 %v15450_v31, 16  ;;  %v10491_v8 = vrot.slane %v15602_v9, 9  ;;  %v4371_v6 = vmax.f32 %v4307_v58, 0.0  ;;  %v3991_v31 = vadd.f32 %v15282_v10, %v15432_v62 }
 0x326   :  { %5198 = vst [vmem:[#allocation2 + $0x94] sm:$0xf] %v10420_v38  ;;  %v5500_v59 = vrot.slane %v5498_v3, 5  ;;  %v5504_v50 = vrot.slane %v5502_v5, 4  ;;  %v6297_v19 = vrot.slane %v15609_v35, 5  ;;  %v4372_v46 = vmax.f32 %v4308_v29, 0.0 }
 0x327   :  { %v5495_v11 = vor.u32 %v5494_v2, %v5491_v0  ;;  %v5510_v18 = vrot.slane %v5508_v17, 5  ;;  %v6300_v55 = vrot.slane %v15618_v32, 5  ;;  %v15629_v16 = vpop.f32.mrb[4].mxu1  ;;  %v3994_v3 = vadd.f32 %v15296_v25, %v15452_v57  ;;  %v18943_v2 = vld [vmem:[#allocation27_spill] sm:$0xff] }
 0x328   :  { %v5505_v40 = vor.u32 %v5504_v50, %v5500_v59  ;;  %v6298_v60 = vsel %vm12242_vm2, %v10491_v8, %v6297_v19  ;;  %v6299_v38 = vrot.slane %v6297_v19, 4  ;;  %v4423_v58 = vpack.c.bf16 %v4372_v46, %v4371_v6  ;;  %v3735_v5 = vpop.f32.mrb[5].mxu1  ;;  %v18945_v6 = vld [vmem:[#allocation17_spill] sm:$0xff] }
 0x329   :  { %v5496_v33 = vrot.slane %v5495_v11, 4  ;;  %v5513_v0 = vshrl.u32 %v15458_v37, 16  ;;  %v4167_v8 = vadd.f32 %v3991_v31, %v18943_v2  ;;  %v5516_v17 = vshll.u32 %v15458_v37, 16  ;;  %v15638_v19 = vpop.f32.mrb[6].mxu1 }
 0x32a   :  { %v5506_v29 = vrot.slane %v5505_v40, 4  ;;  %v6301_v50 = vsel %vm12242_vm2, %v6299_v38, %v6300_v55  ;;  %v4528_v10 = vshrl.u32 %v4423_v58, 16  ;;  %v4531_v62 = vshll.u32 %v4423_v58, 16  ;;  %v3738_v25 = vpop.f32.mrb[7].mxu1 }
 0x32b   :  { %v5501_v11 = vsel %vm12498_vm5, %v5496_v33, %v5500_v59  ;;  %v15642_v46 = vcombine.low %v6298_v60, %v6301_v50  ;;  %v4238_v40 = vmul.f32 %v15578_v14, %v4167_v8  ;;  %v4168_v55 = vadd.f32 %v3994_v3, %v18945_v6  ;;  %v15658_v3 = vpop.f32.mrb[240].mxu0  ;;  %v15669_v6 = vld [vmem:[#allocation2 + $0x7c] sm:$0xf] }
 0x32c   :  { %v5511_v57 = vsel %vm12498_vm5, %v5506_v29, %v5510_v18  ;;  %v5515_v38 = vrot.slane %v5513_v0, 4  ;;  %v4530_v31 = vrot.slane %v4528_v10, 7  ;;  %v5518_v58 = vrot.slane %v5516_v17, 5  ;;  %v15656_v29 = vld [vmem:[#allocation2 + $0x78] sm:$0xf]  ;;  %18947 = vst [vmem:[#allocation28_spill] sm:$0xff] %v15658_v3 }
 0x32d   :  { %18944 = vst [vmem:[#allocation83_spill] sm:$0xff] %v15642_v46  ;;  %v15648_v5 = vcombine.low %v5501_v11, %v5511_v57  ;;  %11531 = vmatprep.mubr.bf16.mxu1 %v15642_v46  ;;  %v5522_v2 = vshll.u32 %v15461_v22, 16  ;;  %v4309_v59 = vadd.f32 %v15596_v1, %v4238_v40  ;;  %v4239_v60 = vmul.f32 %v15578_v14, %v4168_v55  ;;  %v15663_v10 = vld [vmem:[#allocation2 + $0x80] sm:$0x1]  ;;  %v15665_v11 = vpop.f32.mrb[241].mxu0 }
 0x32e   :  { %v5526_v33 = vshrl.u32 %v15461_v22, 16  ;;  %v5532_v18 = vshll.u32 %v15467_v7, 16  ;;  %v4533_v0 = vor.u32 %v4531_v62, %v4530_v31  ;;  %v4778_v50 = vsel %vm15180_vm8, %v4530_v31, 0  ;;  %v15671_v62 = vpop.f32.mrb[8].mxu1  ;;  %v15673_v55 = vpop.f32.mrb[242].mxu0 }
 0x32f   :  { %18946 = vst [vmem:[#allocation84_spill] sm:$0xff] %v15648_v5  ;;  %7237 = vmatprep.mubr.bf16.mxu0 %v15648_v5  ;;  %v5519_v8 = vor.u32 %v5518_v58, %v5515_v38  ;;  %v5524_v17 = vrot.slane %v5522_v2, 5  ;;  %v10424_v25 = vcombine.low %v4778_v50, %v4778_v50  ;;  %v4373_v57 = vmax.f32 %v4309_v59, 0.0  ;;  %18948 = vst [vmem:[#allocation36_spill] sm:$0xff] %v15673_v55  ;;  %v3743_v50 = vpop.f32.mrb[9].mxu1  ;;  %v15678_v59 = vpop.f32.mrb[243].mxu0 }
 0x330   :  { %v4310_v7 = vadd.f32 %v15596_v1, %v4239_v60  ;;  %7238 = vmatmul.mubr.bf16.gmra.mrb[16].mxu0 %v15613_v53  ;;  %v5528_v40 = vrot.slane %v5526_v33, 4  ;;  %v4746_v38 = vsel %vm15180_vm8, 0, %v4533_v0  ;;  %v5534_v58 = vrot.slane %v5532_v18, 5  ;;  %v15680_v5 = vpop.f32.mrb[10].mxu1 }
 0x331   :  { %v5520_v31 = vrot.slane %v5519_v8, 4  ;;  %v10492_v2 = vrot.slane %v15656_v29, 9  ;;  %v10422_v60 = vcombine.low %v4746_v38, %v4746_v38  ;;  %v10423_v46 = vcombine.high %v4746_v38, %v4746_v38  ;;  %5202 = vst [vmem:[#allocation2 + $0xa4] sm:$0x1] %v10424_v25  ;;  %v3746_v8 = vpop.f32.mrb[11].mxu1 }
 0x332   :  { %v4374_v33 = vmax.f32 %v4310_v7, 0.0  ;;  %v5529_v53 = vor.u32 %v5528_v40, %v5524_v17  ;;  %v6304_v3 = vrot.slane %v15669_v6, 5  ;;  %v6307_v0 = vrot.slane %v15663_v10, 5 }
 0x333   :  { %v5525_v55 = vsel %vm12498_vm5, %v5520_v31, %v5524_v17  ;;  %v3999_v18 = vadd.f32 %v15325_v34, %v15485_v28  ;;  %5200 = vst [vmem:[#allocation2 + $0x9c] sm:$0xf] %v10422_v60  ;;  %5201 = vst [vmem:[#allocation2 + $0xa0] sm:$0xf] %v10423_v46  ;;  %v4002_v25 = vadd.f32 %v15343_v63, %v15499_v54  ;;  %v5537_v34 = vshrl.u32 %v15512_v52, 16  ;;  %v18950_v46 = vld [vmem:[#allocation114_spill] sm:$0xff] }
 0x334   :  { %v4424_v50 = vpack.c.bf16 %v4374_v33, %v4373_v57  ;;  %v5530_v38 = vrot.slane %v5529_v53, 4  ;;  %v15692_v7 = vcombine.low %v15458_v37, %v15461_v22  ;;  %v6305_v17 = vsel %vm12242_vm2, %v10492_v2, %v6304_v3 }
 0x335   :  { %v6306_v40 = vrot.slane %v6304_v3, 4  ;;  %v4169_v31 = vadd.f32 %v3999_v18, %v14991_v24  ;;  %v4170_v57 = vadd.f32 %v4002_v25, %v18950_v46  ;;  %v5539_v37 = vrot.slane %v5537_v34, 4  ;;  %v15710_v18 = vpop.f32.mrb[12].mxu1  ;;  %v15730_v46 = vld [vmem:[#allocation2 + $0x88] sm:$0xf] }
 0x336   :  { %18949 = vst [vmem:[#allocation30_spill] sm:$0xff] %v15692_v7  ;;  %v4535_v28 = vshrl.u32 %v4424_v50, 16  ;;  %v4538_v60 = vshll.u32 %v4424_v50, 16  ;;  %v5535_v53 = vsel %vm12498_vm5, %v5530_v38, %v5534_v58  ;;  %v5540_v33 = vshll.u32 %v15512_v52, 16  ;;  %v3751_v50 = vpop.f32.mrb[13].mxu1 }
 0x337   :  { %v15701_v63 = vcombine.low %v5525_v55, %v5535_v53  ;;  %v6308_v22 = vsel %vm12242_vm2, %v6306_v40, %v6307_v0  ;;  %v4240_v54 = vmul.f32 %v15578_v14, %v4169_v31  ;;  %v4241_v24 = vmul.f32 %v15578_v14, %v4170_v57  ;;  %v15722_v31 = vld [vmem:[#allocation2 + $0x84] sm:$0xf]  ;;  %v15724_v34 = vpop.f32.mrb[14].mxu1 }
 0x338   :  { %v4537_v3 = vrot.slane %v4535_v28, 7  ;;  %v15706_v2 = vcombine.low %v6305_v17, %v6308_v22  ;;  %v5546_v58 = vshll.u32 %v15519_v15, 16  ;;  %v5550_v0 = vshrl.u32 %v15519_v15, 16  ;;  %v3754_v57 = vpop.f32.mrb[15].mxu1 }
 0x339   :  { %18951 = vst [vmem:[#allocation24_spill] sm:$0xff] %v15701_v63  ;;  %7245 = vmatprep.mubr.bf16.mxu0 %v15701_v63  ;;  %v4311_v55 = vadd.f32 %v15596_v1, %v4240_v54  ;;  %v5556_v8 = vshll.u32 %v15525_v4, 16  ;;  %v4312_v17 = vadd.f32 %v15596_v1, %v4241_v24  ;;  %v5542_v40 = vrot.slane %v5540_v33, 5  ;;  %v15734_v33 = vld [vmem:[#allocation2 + $0x8c] sm:$0x1] }
 0x33a   :  { %18952 = vst [vmem:[#allocation21_spill] sm:$0xff] %v15706_v2  ;;  %v4540_v38 = vor.u32 %v4538_v60, %v4537_v3  ;;  %v4779_v25 = vsel %vm15180_vm8, %v4537_v3, 0  ;;  %11532 = vmatmul.mubr.bf16.gmra.mrb[80].mxu1 %v15706_v2  ;;  %7246 = vmatmul.mubr.bf16.gmra.mrb[20].mxu0 %v15692_v7  ;;  %v15728_v28 = vcombine.low %v15512_v52, %v15519_v15  ;;  %v5548_v60 = vrot.slane %v5546_v58, 5 }
 0x33b   :  { %v10427_v4 = vcombine.low %v4779_v25, %v4779_v25  ;;  %v5552_v53 = vrot.slane %v5550_v0, 4  ;;  %v4375_v54 = vmax.f32 %v4311_v55, 0.0  ;;  %v4376_v3 = vmax.f32 %v4312_v17, 0.0 }
 0x33c   :  { %18953 = vst [vmem:[#allocation34_spill] sm:$0xff] %v15728_v28  ;;  %v4747_v22 = vsel %vm15180_vm8, 0, %v4540_v38  ;;  %v5543_v24 = vor.u32 %v5542_v40, %v5539_v37  ;;  %v10493_v52 = vrot.slane %v15722_v31, 9  ;;  %v5558_v0 = vrot.slane %v5556_v8, 5 }
 0x33d   :  { %v10425_v50 = vcombine.low %v4747_v22, %v4747_v22  ;;  %v10426_v2 = vcombine.high %v4747_v22, %v4747_v22  ;;  %5205 = vst [vmem:[#allocation2 + $0xb0] sm:$0x1] %v10427_v4  ;;  %v5553_v7 = vor.u32 %v5552_v53, %v5548_v60  ;;  %v4425_v15 = vpack.c.bf16 %v4376_v3, %v4375_v54  ;;  %v15747_v53 = vpop.f32.mrb[16].mxu1  ;;  %v18954_v22 = vld [vmem:[#allocation112_spill] sm:$0xff] }
 0x33e   :  { %v5544_v58 = vrot.slane %v5543_v24, 4  ;;  %v6311_v25 = vrot.slane %v15730_v46, 5  ;;  %v6314_v55 = vrot.slane %v15734_v33, 5  ;;  %v4007_v37 = vadd.f32 %v15322_v23, %v15530_v44  ;;  %v18955_v23 = vld [vmem:[#allocation127_spill] sm:$0xff]  ;;  %v3759_v3 = vpop.f32.mrb[17].mxu1 }
 0x33f   :  { %5203 = vst [vmem:[#allocation2 + $0xa8] sm:$0xf] %v10425_v50  ;;  %5204 = vst [vmem:[#allocation2 + $0xac] sm:$0xf] %v10426_v2  ;;  %v5554_v57 = vrot.slane %v5553_v7, 4  ;;  %v4010_v38 = vadd.f32 %v15333_v12, %v15537_v47  ;;  %v4542_v17 = vshrl.u32 %v4425_v15, 16 }
 0x340   :  { %v4545_v40 = vshll.u32 %v4425_v15, 16  ;;  %v5549_v4 = vsel %vm12498_vm5, %v5544_v58, %v5548_v60  ;;  %v6312_v8 = vsel %vm12242_vm2, %v10493_v52, %v6311_v25  ;;  %v6313_v2 = vrot.slane %v6311_v25, 4  ;;  %v15757_v50 = vpop.f32.mrb[18].mxu1  ;;  %v15781_v3 = vld [vmem:[#allocation2 + $0x94] sm:$0xf] }
 0x341   :  { %v5559_v7 = vsel %vm12498_vm5, %v5554_v57, %v5558_v0  ;;  %v4171_v54 = vadd.f32 %v4007_v37, %v18954_v22  ;;  %v4172_v44 = vadd.f32 %v4010_v38, %v18955_v23  ;;  %v4544_v12 = vrot.slane %v4542_v17, 7  ;;  %v3762_v25 = vpop.f32.mrb[19].mxu1  ;;  %v15772_v22 = vld [vmem:[#allocation2 + $0x90] sm:$0xf] }
 0x342   :  { %v15753_v47 = vcombine.low %v5549_v4, %v5559_v7  ;;  %v5561_v24 = vshrl.u32 %v15528_v39, 16  ;;  %v5564_v60 = vshll.u32 %v15528_v39, 16  ;;  %v6315_v52 = vsel %vm12242_vm2, %v6313_v2, %v6314_v55 }
 0x343   :  { %v4242_v15 = vmul.f32 %v15578_v14, %v4171_v54  ;;  %v4243_v58 = vmul.f32 %v15578_v14, %v4172_v44  ;;  %v5570_v0 = vshll.u32 %v15535_v13, 16  ;;  %v4547_v57 = vor.u32 %v4545_v40, %v4544_v12  ;;  %v15774_v54 = vld [vmem:[#allocation2 + $0x98] sm:$0x1] }
 0x344   :  { %18956 = vst [vmem:[#allocation85_spill] sm:$0xff] %v15753_v47  ;;  %v4780_v37 = vsel %vm15180_vm8, %v4544_v12, 0  ;;  %7253 = vmatprep.mubr.bf16.mxu0 %v15753_v47  ;;  %v15767_v38 = vcombine.low %v6312_v8, %v6315_v52  ;;  %v5563_v17 = vrot.slane %v5561_v24, 4  ;;  %v5566_v2 = vrot.slane %v5564_v60, 5 }
 0x345   :  { %v10430_v4 = vcombine.low %v4780_v37, %v4780_v37  ;;  %v4313_v7 = vadd.f32 %v15596_v1, %v4242_v15  ;;  %v4314_v55 = vadd.f32 %v15596_v1, %v4243_v58  ;;  %7254 = vmatmul.mubr.bf16.gmra.mrb[24].mxu0 %v15728_v28  ;;  %v4748_v40 = vsel %vm15180_vm8, 0, %v4547_v57  ;;  %v11902_v15 = vld [vmem:[#allocation6] sm:$0xff]  }
 0x346   :  { %18957 = vst [vmem:[#allocation86_spill] sm:$0xff] %v15767_v38  ;;  %11535 = vmatprep.mubr.bf16.mxu1 %v15767_v38  ;;  %v5572_v8 = vrot.slane %v5570_v0, 5  ;;  %v5574_v23 = vshrl.u32 %v15535_v13, 16  ;;  %v5580_v44 = vshll.u32 %v15544_v26, 16  ;;  %v10428_v12 = vcombine.low %v4748_v40, %v4748_v40  ;;  %v11903_v58 = vld [vmem:[#allocation6 + $0xa0] sm:$0xff]   ;;  %v15784_v38 = vpop.f32.mrb[20].mxu1  ;;  %7896 = vmatpush1.bf16.msra.mxu1 %v11902_v15 }
 0x347   :  { %v10429_v24 = vcombine.high %v4748_v40, %v4748_v40  ;;  %5208 = vst [vmem:[#allocation2 + $0xbc] sm:$0x1] %v10430_v4  ;;  %v4377_v60 = vmax.f32 %v4313_v7, 0.0  ;;  %v4378_v52 = vmax.f32 %v4314_v55, 0.0  ;;  %v5567_v25 = vor.u32 %v5566_v2, %v5563_v17  ;;  %v15786_v0 = vpop.f32.mrb[244].mxu0  ;;  %v3767_v55 = vpop.f32.mrb[21].mxu1  ;;  %11587 = vmatprep.subr.bf16.mxu0 %v11903_v58 }
 0x348   :  { %v5576_v37 = vrot.slane %v5574_v23, 4  ;;  %v5582_v28 = vrot.slane %v5580_v44, 5  ;;  %v10494_v57 = vrot.slane %v15772_v22, 9  ;;  %5206 = vst [vmem:[#allocation2 + $0xb4] sm:$0xf] %v10428_v12  ;;  %v6318_v47 = vrot.slane %v15781_v3, 5  ;;  %11588 = vmatpush3.bf16.msra.mxu0 %v11903_v58 }
 0x349   :  { %5207 = vst [vmem:[#allocation2 + $0xb8] sm:$0xf] %v10429_v24  ;;  %v4426_v26 = vpack.c.bf16 %v4378_v52, %v4377_v60  ;;  %v6321_v4 = vrot.slane %v15774_v54, 5  ;;  %v4015_v7 = vadd.f32 %v15366_v20, %v15581_v30  ;;  %v15792_v17 = vpop.f32.mrb[245].mxu0  ;;  %v5568_v2 = vrot.slane %v5567_v25, 4  ;;  %v15800_v12 = vpop.f32.mrb[22].mxu1 }
 0x34a   :  { %v5577_v40 = vor.u32 %v5576_v37, %v5572_v8  ;;  %v4018_v23 = vadd.f32 %v15382_v36, %v15604_v42  ;;  %v15798_v44 = vcombine.low %v15528_v39, %v15535_v13  ;;  %v15802_v24 = vpop.f32.mrb[246].mxu0  ;;  %v18959_v20 = vmov 0   ;;  %v3770_v25 = vpop.f32.mrb[23].mxu1 }
 0x34b   :  { %7897 = vmatprep.subr.bf16.mxu1 %v18959_v20  ;;  %v4549_v30 = vshrl.u32 %v4426_v26, 16  ;;  %v4552_v60 = vshll.u32 %v4426_v26, 16  ;;  %v6319_v52 = vsel %vm12242_vm2, %v10494_v57, %v6318_v47  ;;  %v6320_v15 = vrot.slane %v6318_v47, 4  ;;  %v15807_v37 = vpop.f32.mrb[247].mxu0 }
 0x34c   :  { %18958 = vst [vmem:[#allocation42_spill] sm:$0xff] %v15798_v44  ;;  %v5573_v36 = vsel %vm12498_vm5, %v5568_v2, %v5572_v8  ;;  %v5578_v39 = vrot.slane %v5577_v40, 4  ;;  %v4173_v13 = vadd.f32 %v4015_v7, %v15011_v49  ;;  %v4174_v42 = vadd.f32 %v4018_v23, %v15020_v43  ;;  %v11905_v40 = vld [vmem:[#allocation6 + $0x8] sm:$0xff]  }
 0x34d   :  { %v4551_v58 = vrot.slane %v4549_v30, 7  ;;  %v6322_v55 = vsel %vm12242_vm2, %v6320_v15, %v6321_v4  ;;  %v5585_v26 = vshrl.u32 %v15602_v9, 16  ;;  %v5588_v57 = vshll.u32 %v15602_v9, 16  ;;  %v15830_v15 = vld [vmem:[#allocation2 + $0x9c] sm:$0xf]  ;;  %7898 = vmatpush1.bf16.msra.mxu1 %v11905_v40 }
 0x34e   :  { %v5583_v47 = vsel %vm12498_vm5, %v5578_v39, %v5582_v28  ;;  %v15819_v25 = vcombine.low %v6319_v52, %v6322_v55  ;;  %v4244_v8 = vmul.f32 %v15578_v14, %v4173_v13  ;;  %v4245_v2 = vmul.f32 %v15578_v14, %v4174_v42  ;;  %v15832_v39 = vld [vmem:[#allocation2 + $0xa0] sm:$0xf]  ;;  %7899 = vmatprep.subr.bf16.mxu1 %v18959_v20 }
 0x34f   :  { %v4554_v49 = vor.u32 %v4552_v60, %v4551_v58  ;;  %v4781_v43 = vsel %vm15180_vm8, %v4551_v58, 0  ;;  %v15825_v7 = vcombine.low %v5573_v36, %v5583_v47  ;;  %v5587_v4 = vrot.slane %v5585_v26, 4  ;;  %v15834_v60 = vpop.f32.mrb[24].mxu1 }
 0x350   :  { %18960 = vst [vmem:[#allocation29_spill] sm:$0xff] %v15819_v25  ;;  %v10433_v23 = vcombine.low %v4781_v43, %v4781_v43  ;;  %11536 = vmatmul.mubr.bf16.gmra.mrb[84].mxu1 %v15819_v25  ;;  %v4315_v30 = vadd.f32 %v15596_v1, %v4244_v8  ;;  %v4316_v28 = vadd.f32 %v15596_v1, %v4245_v2  ;;  %v5590_v52 = vrot.slane %v5588_v57, 5  ;;  %v3775_v55 = vpop.f32.mrb[25].mxu1  ;;  %v15843_v2 = vld [vmem:[#allocation2 + $0xa4] sm:$0x1] }
 0x351   :  { %18961 = vst [vmem:[#allocation31_spill] sm:$0xff] %v15825_v7  ;;  %v4749_v36 = vsel %vm15180_vm8, 0, %v4554_v49  ;;  %7261 = vmatprep.mubr.bf16.mxu0 %v15825_v7  ;;  %v5594_v13 = vshll.u32 %v15609_v35, 16  ;;  %v5598_v42 = vshrl.u32 %v15609_v35, 16  ;;  %v5604_v58 = vshll.u32 %v15618_v32, 16  ;;  %v15845_v49 = vpop.f32.mrb[26].mxu1 }
 0x352   :  { %v10431_v26 = vcombine.low %v4749_v36, %v4749_v36  ;;  %v10432_v57 = vcombine.high %v4749_v36, %v4749_v36  ;;  %5211 = vst [vmem:[#allocation2 + $0xc8] sm:$0x1] %v10433_v23  ;;  %v4379_v47 = vmax.f32 %v4315_v30, 0.0  ;;  %v4380_v8 = vmax.f32 %v4316_v28, 0.0  ;;  %7262 = vmatmul.mubr.bf16.gmra.mrb[28].mxu0 %v15798_v44  ;;  %v3778_v25 = vpop.f32.mrb[27].mxu1 }
 0x353   :  { %v15850_v43 = vcombine.low %v15602_v9, %v15609_v35  ;;  %v5591_v32 = vor.u32 %v5590_v52, %v5587_v4  ;;  %v5596_v55 = vrot.slane %v5594_v13, 5  ;;  %v5600_v40 = vrot.slane %v5598_v42, 4 }
 0x354   :  { %5209 = vst [vmem:[#allocation2 + $0xc0] sm:$0xf] %v10431_v26  ;;  %5210 = vst [vmem:[#allocation2 + $0xc4] sm:$0xf] %v10432_v57  ;;  %v4427_v23 = vpack.c.bf16 %v4380_v8, %v4379_v47  ;;  %v5606_v30 = vrot.slane %v5604_v58, 5  ;;  %v10495_v28 = vrot.slane %v15830_v15, 9  ;;  %v4023_v9 = vadd.f32 %v15360_v51, %v15629_v16 }
 0x355   :  { %18962 = vst [vmem:[#allocation65_spill] sm:$0xff] %v15850_v43  ;;  %v6325_v36 = vrot.slane %v15832_v39, 5  ;;  %v5592_v44 = vrot.slane %v5591_v32, 4  ;;  %v5601_v7 = vor.u32 %v5600_v40, %v5596_v55  ;;  %v6328_v63 = vrot.slane %v15843_v2, 5  ;;  %v18963_v58 = vld [vmem:[#allocation33_spill] sm:$0xff]  ;;  %v15868_v32 = vpop.f32.mrb[28].mxu1 }
 0x356   :  { %v4556_v35 = vshrl.u32 %v4427_v23, 16  ;;  %v4559_v4 = vshll.u32 %v4427_v23, 16  ;;  %v4175_v26 = vadd.f32 %v4023_v9, %v18963_v58  ;;  %v4026_v57 = vadd.f32 %v15378_v21, %v15638_v19  ;;  %v3783_v21 = vpop.f32.mrb[29].mxu1 }
 0x357   :  { %v6326_v25 = vsel %vm12242_vm2, %v10495_v28, %v6325_v36  ;;  %v6327_v52 = vrot.slane %v6325_v36, 4  ;;  %v5597_v13 = vsel %vm12498_vm5, %v5592_v44, %v5596_v55  ;;  %v5602_v42 = vrot.slane %v5601_v7, 4  ;;  %v15880_v36 = vpop.f32.mrb[30].mxu1 }
 0x358   :  { %v4558_v47 = vrot.slane %v4556_v35, 7  ;;  %v5609_v51 = vshrl.u32 %v15656_v29, 16  ;;  %v5612_v16 = vshll.u32 %v15656_v29, 16  ;;  %v4246_v7 = vmul.f32 %v15578_v14, %v4175_v26 }
 0x359   :  { %v6329_v8 = vsel %vm12242_vm2, %v6327_v52, %v6328_v63  ;;  %v5607_v40 = vsel %vm12498_vm5, %v5602_v42, %v5606_v30  ;;  %v4176_v55 = vadd.f32 %v4026_v57, %v15017_v45  ;;  %v15885_v52 = vld [vmem:[#allocation2 + $0xa8] sm:$0xf]  ;;  %v15887_v45 = vld [vmem:[#allocation2 + $0xb0] sm:$0x1]  ;;  %v5618_v42 = vshll.u32 %v15669_v6, 16 }
 0x35a   :  { %v15872_v44 = vcombine.low %v6326_v25, %v6329_v8  ;;  %v4561_v19 = vor.u32 %v4559_v4, %v4558_v47  ;;  %v4782_v63 = vsel %vm15180_vm8, %v4558_v47, 0  ;;  %v15878_v23 = vcombine.low %v5597_v13, %v5607_v40  ;;  %v3786_v4 = vpop.f32.mrb[31].mxu1  ;;  %v15895_v57 = vld [vmem:[#allocation2 + $0xac] sm:$0xf] }
 0x35b   :  { %v5611_v28 = vrot.slane %v5609_v51, 4  ;;  %v10436_v9 = vcombine.low %v4782_v63, %v4782_v63  ;;  %v4317_v30 = vadd.f32 %v15596_v1, %v4246_v7  ;;  %v4247_v35 = vmul.f32 %v15578_v14, %v4176_v55  ;;  %v15899_v63 = vpop.f32.mrb[248].mxu0 }
 0x35c   :  { %18964 = vst [vmem:[#allocation61_spill] sm:$0xff] %v15872_v44  ;;  %18965 = vst [vmem:[#allocation66_spill] sm:$0xff] %v15878_v23  ;;  %11539 = vmatprep.mubr.bf16.mxu1 %v15872_v44  ;;  %v5614_v25 = vrot.slane %v5612_v16, 5  ;;  %v4750_v13 = vsel %vm15180_vm8, 0, %v4561_v19  ;;  %7269 = vmatprep.mubr.bf16.mxu0 %v15878_v23  ;;  %v5622_v58 = vshrl.u32 %v15669_v6, 16  ;;  %v5628_v26 = vshll.u32 %v15663_v10, 16 }
 0x35d   :  { %v10434_v47 = vcombine.low %v4750_v13, %v4750_v13  ;;  %v10435_v8 = vcombine.high %v4750_v13, %v4750_v13  ;;  %5214 = vst [vmem:[#allocation2 + $0xec] sm:$0x1] %v10436_v9  ;;  %v4381_v51 = vmax.f32 %v4317_v30, 0.0  ;;  %v4318_v16 = vadd.f32 %v15596_v1, %v4247_v35  ;;  %7270 = vmatmul.mubr.bf16.gmra.mrb[32].mxu0 %v15850_v43  ;;  %v11907_v19 = vld [vmem:[#allocation6 + $0x10] sm:$0xff]   ;;  %v15904_v30 = vpop.f32.mrb[249].mxu0 }
 0x35e   :  { %v5615_v40 = vor.u32 %v5614_v25, %v5611_v28  ;;  %v5620_v7 = vrot.slane %v5618_v42, 5  ;;  %v5624_v55 = vrot.slane %v5622_v58, 4  ;;  %v5630_v21 = vrot.slane %v5628_v26, 5  ;;  %18966 = vst [vmem:[#allocation87_spill] sm:$0xff] %v15899_v63  ;;  %v15910_v42 = vpop.f32.mrb[32].mxu1  ;;  %7900 = vmatpush1.bf16.msra.mxu1 %v11907_v19  ;;  %v15912_v58 = vpop.f32.mrb[250].mxu0 }
 0x35f   :  { %5212 = vst [vmem:[#allocation2 + $0xe4] sm:$0xf] %v10434_v47  ;;  %5213 = vst [vmem:[#allocation2 + $0xe8] sm:$0xf] %v10435_v8  ;;  %v4382_v10 = vmax.f32 %v4318_v16, 0.0  ;;  %v10496_v4 = vrot.slane %v15885_v52, 9  ;;  %v4031_v28 = vadd.f32 %v15422_v56, %v15671_v62  ;;  %v4034_v25 = vadd.f32 %v15443_v61, %v15680_v5  ;;  %7901 = vmatprep.subr.bf16.mxu1 %v18959_v20 }
 0x360   :  { %v6332_v13 = vrot.slane %v15895_v57, 5  ;;  %v6335_v9 = vrot.slane %v15887_v45, 5  ;;  %v5616_v35 = vrot.slane %v5615_v40, 4  ;;  %v5625_v44 = vor.u32 %v5624_v55, %v5620_v7  ;;  %18967 = vst [vmem:[#allocation88_spill] sm:$0xff] %v15912_v58  ;;  %v3791_v40 = vpop.f32.mrb[33].mxu1  ;;  %v15920_v55 = vpop.f32.mrb[251].mxu0 }
 0x361   :  { %v4428_v26 = vpack.c.bf16 %v4382_v10, %v4381_v51  ;;  %v15918_v16 = vcombine.low %v15656_v29, %v15669_v6  ;;  %18969 = vst [vmem:[#allocation51_spill] sm:$0xff] %v15920_v55  ;;  %v18970_v5 = vld [vmem:[#allocation52_spill] sm:$0xff]  ;;  %v18971_v51 = vld [vmem:[#allocation111_spill] sm:$0xff]  ;;  %v15927_v10 = vpop.f32.mrb[34].mxu1  ;;  %v5633_v6 = vshrl.u32 %v15722_v31, 16  ;;  %v16015_v63 = vpop.f32.mrb[252].mxu0 }
 0x362   :  { %v6333_v47 = vsel %vm12242_vm2, %v10496_v4, %v6332_v13  ;;  %v6334_v8 = vrot.slane %v6332_v13, 4  ;;  %v5621_v56 = vsel %vm12498_vm5, %v5616_v35, %v5620_v7  ;;  %v5626_v61 = vrot.slane %v5625_v44, 4  ;;  %v3794_v40 = vpop.f32.mrb[35].mxu1  ;;  %18981 = vst [vmem:[#allocation45_spill] sm:$0xff] %v16015_v63 }
 0x363   :  { %18968 = vst [vmem:[#allocation47_spill] sm:$0xff] %v15918_v16  ;;  %v4177_v62 = vadd.f32 %v4031_v28, %v18970_v5  ;;  %v4178_v19 = vadd.f32 %v4034_v25, %v18971_v51  ;;  %v4563_v4 = vshrl.u32 %v4428_v26, 16  ;;  %v4566_v13 = vshll.u32 %v4428_v26, 16  ;;  %v11909_v51 = vld [vmem:[#allocation6 + $0x18] sm:$0xff]   ;;  %v15953_v40 = vld [vmem:[#allocation2 + $0xb8] sm:$0xf] }
 0x364   :  { %v6336_v29 = vsel %vm12242_vm2, %v6334_v8, %v6335_v9  ;;  %v5631_v43 = vsel %vm12498_vm5, %v5626_v61, %v5630_v21  ;;  %v5635_v25 = vrot.slane %v5633_v6, 4  ;;  %v5636_v26 = vshll.u32 %v15722_v31, 16  ;;  %7902 = vmatpush1.bf16.msra.mxu1 %v11909_v51  ;;  %v16082_v63 = vld [vmem:[#allocation2 + $0xec] sm:$0x1] }
 0x365   :  { %v15934_v23 = vcombine.low %v6333_v47, %v6336_v29  ;;  %v4248_v44 = vmul.f32 %v15578_v14, %v4177_v62  ;;  %v4249_v7 = vmul.f32 %v15578_v14, %v4178_v19  ;;  %v4565_v35 = vrot.slane %v4563_v4, 7  ;;  %v15950_v62 = vld [vmem:[#allocation2 + $0xb4] sm:$0xf]  ;;  %7903 = vmatprep.subr.bf16.mxu1 %v18959_v20 }
 0x366   :  { %v15938_v28 = vcombine.low %v5621_v56, %v5631_v43  ;;  %v5642_v21 = vshll.u32 %v15730_v46, 16  ;;  %v5646_v47 = vshrl.u32 %v15730_v46, 16  ;;  %v5638_v43 = vrot.slane %v5636_v26, 5  ;;  %v15963_v26 = vld [vmem:[#allocation2 + $0xbc] sm:$0x1] }
 0x367   :  { %18972 = vst [vmem:[#allocation44_spill] sm:$0xff] %v15934_v23  ;;  %11540 = vmatmul.mubr.bf16.gmra.mrb[88].mxu1 %v15934_v23  ;;  %v4319_v9 = vadd.f32 %v15596_v1, %v4248_v44  ;;  %v4320_v8 = vadd.f32 %v15596_v1, %v4249_v7  ;;  %v4568_v61 = vor.u32 %v4566_v13, %v4565_v35  ;;  %v4783_v5 = vsel %vm15180_vm8, %v4565_v35, 0  ;;  %v15955_v13 = vpop.f32.mrb[36].mxu1 }
 0x368   :  { %18973 = vst [vmem:[#allocation13_spill] sm:$0xff] %v15938_v28  ;;  %7277 = vmatprep.mubr.bf16.mxu0 %v15938_v28  ;;  %v5652_v56 = vshll.u32 %v15734_v33, 16  ;;  %v10439_v19 = vcombine.low %v4783_v5, %v4783_v5  ;;  %v5644_v6 = vrot.slane %v5642_v21, 5  ;;  %v15959_v44 = vcombine.low %v15722_v31, %v15730_v46 }
 0x369   :  { %v4383_v4 = vmax.f32 %v4319_v9, 0.0  ;;  %v4384_v29 = vmax.f32 %v4320_v8, 0.0  ;;  %7278 = vmatmul.mubr.bf16.gmra.mrb[36].mxu0 %v15918_v16  ;;  %v4751_v33 = vsel %vm15180_vm8, 0, %v4568_v61  ;;  %v5639_v7 = vor.u32 %v5638_v43, %v5635_v25  ;;  %v3799_v9 = vpop.f32.mrb[37].mxu1 }
 0x36a   :  { %18974 = vst [vmem:[#allocation89_spill] sm:$0xff] %v15959_v44  ;;  %v5648_v35 = vrot.slane %v5646_v47, 4  ;;  %v10437_v8 = vcombine.low %v4751_v33, %v4751_v33  ;;  %v10438_v5 = vcombine.high %v4751_v33, %v4751_v33  ;;  %5217 = vst [vmem:[#allocation2 + $0xf8] sm:$0x1] %v10439_v19  ;;  %v10497_v23 = vrot.slane %v15950_v62, 9  ;;  %v15966_v16 = vpop.f32.mrb[38].mxu1 }
 0x36b   :  { %v4429_v21 = vpack.c.bf16 %v4384_v29, %v4383_v4  ;;  %v5640_v31 = vrot.slane %v5639_v7, 4  ;;  %v5654_v28 = vrot.slane %v5652_v56, 5  ;;  %v6339_v25 = vrot.slane %v15953_v40, 5  ;;  %v3802_v47 = vpop.f32.mrb[39].mxu1  ;;  %v18975_v19 = vld [vmem:[#allocation75_spill] sm:$0xff] }
 0x36c   :  { %v5649_v46 = vor.u32 %v5648_v35, %v5644_v6  ;;  %5215 = vst [vmem:[#allocation2 + $0xf0] sm:$0xf] %v10437_v8  ;;  %5216 = vst [vmem:[#allocation2 + $0xf4] sm:$0xf] %v10438_v5  ;;  %v6342_v51 = vrot.slane %v15963_v26, 5  ;;  %v4039_v4 = vadd.f32 %v18975_v19, %v15710_v18  ;;  %v18976_v9 = vld [vmem:[#allocation35_spill] sm:$0xff] }
 0x36d   :  { %v4570_v61 = vshrl.u32 %v4429_v21, 16  ;;  %v4573_v43 = vshll.u32 %v4429_v21, 16  ;;  %v5645_v29 = vsel %vm12498_vm5, %v5640_v31, %v5644_v6  ;;  %v6340_v7 = vsel %vm12242_vm2, %v10497_v23, %v6339_v25  ;;  %v18977_v8 = vld [vmem:[#allocation77_spill] sm:$0xff]  ;;  %v15995_v19 = vpop.f32.mrb[40].mxu1 }
 0x36e   :  { %v5650_v33 = vrot.slane %v5649_v46, 4  ;;  %v6341_v56 = vrot.slane %v6339_v25, 4  ;;  %v4179_v47 = vadd.f32 %v4039_v4, %v18976_v9  ;;  %v4042_v5 = vadd.f32 %v18977_v8, %v15724_v34  ;;  %v15993_v34 = vld [vmem:[#allocation2 + $0xc8] sm:$0x1]  ;;  %v15999_v9 = vld [vmem:[#allocation2 + $0xc0] sm:$0xf] }
 0x36f   :  { %v4572_v35 = vrot.slane %v4570_v61, 7  ;;  %v5657_v21 = vshrl.u32 %v15772_v22, 16  ;;  %v5660_v6 = vshll.u32 %v15772_v22, 16  ;;  %v5666_v31 = vshll.u32 %v15781_v3, 16  ;;  %v3807_v8 = vpop.f32.mrb[41].mxu1 }
 0x370   :  { %v5655_v58 = vsel %vm12498_vm5, %v5650_v33, %v5654_v28  ;;  %v6343_v18 = vsel %vm12242_vm2, %v6341_v56, %v6342_v51  ;;  %v4250_v4 = vmul.f32 %v15578_v14, %v4179_v47  ;;  %v18980_v51 = vld [vmem:[#allocation60_spill] sm:$0xff]  ;;  %v16008_v47 = vpop.f32.mrb[42].mxu1 }
 0x371   :  { %v4575_v23 = vor.u32 %v4573_v43, %v4572_v35  ;;  %v4784_v46 = vsel %vm15180_vm8, %v4572_v35, 0  ;;  %v15989_v25 = vcombine.low %v5645_v29, %v5655_v58  ;;  %v15991_v61 = vcombine.low %v6340_v7, %v6343_v18  ;;  %v16001_v43 = vld [vmem:[#allocation2 + $0xc4] sm:$0xf] }
 0x372   :  { %v10442_v28 = vcombine.low %v4784_v46, %v4784_v46  ;;  %v4180_v33 = vadd.f32 %v4042_v5, %v18980_v51  ;;  %v5659_v56 = vrot.slane %v5657_v21, 4  ;;  %v5662_v29 = vrot.slane %v5660_v6, 5  ;;  %v11911_v51 = vld [vmem:[#allocation6 + $0x20] sm:$0xff]  }
 0x373   :  { %18978 = vst [vmem:[#allocation90_spill] sm:$0xff] %v15989_v25  ;;  %18979 = vst [vmem:[#allocation15_spill] sm:$0xff] %v15991_v61  ;;  %v4752_v58 = vsel %vm15180_vm8, 0, %v4575_v23  ;;  %7285 = vmatprep.mubr.bf16.mxu0 %v15989_v25  ;;  %11543 = vmatprep.mubr.bf16.mxu1 %v15991_v61  ;;  %v5668_v7 = vrot.slane %v5666_v31, 5  ;;  %v5670_v35 = vshrl.u32 %v15781_v3, 16  ;;  %v4321_v18 = vadd.f32 %v15596_v1, %v4250_v4  ;;  %v3810_v23 = vpop.f32.mrb[43].mxu1 }
 0x374   :  { %v10440_v5 = vcombine.low %v4752_v58, %v4752_v58  ;;  %v10441_v21 = vcombine.high %v4752_v58, %v4752_v58  ;;  %5220 = vst [vmem:[#allocation2 + $0x104] sm:$0x1] %v10442_v28  ;;  %v4251_v46 = vmul.f32 %v15578_v14, %v4180_v33  ;;  %7286 = vmatmul.mubr.bf16.gmra.mrb[40].mxu0 %v15959_v44  ;;  %v5676_v6 = vshll.u32 %v15774_v54, 16  ;;  %v11912_v61 = vld [vmem:[#allocation6 + $0xa8] sm:$0xff]   ;;  %v16020_v58 = vpop.f32.mrb[253].mxu0 }
 0x375   :  { %v5663_v8 = vor.u32 %v5662_v29, %v5659_v56  ;;  %v5672_v25 = vrot.slane %v5670_v35, 4  ;;  %v10610_v31 = vrot.slane %v15999_v9, 9  ;;  %v4385_v28 = vmax.f32 %v4321_v18, 0.0  ;;  %7904 = vmatpush1.bf16.msra.mxu1 %v11911_v51  ;;  %18982 = vst [vmem:[#allocation18_spill] sm:$0xff] %v16020_v58  ;;  %v18983_v35 = vld [vmem:[#allocation48_spill] sm:$0xff]  ;;  %11589 = vmatprep.subr.bf16.mxu0 %v11912_v61  ;;  %v16024_v44 = vpop.f32.mrb[254].mxu0 }
 0x376   :  { %5218 = vst [vmem:[#allocation2 + $0xfc] sm:$0xf] %v10440_v5  ;;  %5219 = vst [vmem:[#allocation2 + $0x100] sm:$0xf] %v10441_v21  ;;  %v4322_v4 = vadd.f32 %v15596_v1, %v4251_v46  ;;  %v6944_v14 = vrot.slane %v16001_v43, 5  ;;  %v6947_v33 = vrot.slane %v15993_v34, 5  ;;  %v4047_v23 = vadd.f32 %v18983_v35, %v15747_v53  ;;  %7905 = vmatprep.subr.bf16.mxu1 %v18959_v20 }
 0x377   :  { %v5664_v56 = vrot.slane %v5663_v8, 4  ;;  %v5673_v29 = vor.u32 %v5672_v25, %v5668_v7  ;;  %v5678_v54 = vrot.slane %v5676_v6, 5  ;;  %18984 = vst [vmem:[#allocation91_spill] sm:$0xff] %v16024_v44  ;;  %v18985_v18 = vld [vmem:[#allocation49_spill] sm:$0xff]  ;;  %11590 = vmatpush3.bf16.msra.mxu0 %v11912_v61  ;;  %v16031_v51 = vpop.f32.mrb[255].mxu0  ;;  %v16038_v35 = vcombine.low %v15772_v22, %v15781_v3 }
 0x378   :  { %v4386_v5 = vmax.f32 %v4322_v4, 0.0  ;;  %v6945_v1 = vsel %vm12242_vm2, %v10610_v31, %v6944_v14  ;;  %v6946_v21 = vrot.slane %v6944_v14, 4  ;;  %v4050_v46 = vadd.f32 %v18985_v18, %v15757_v50  ;;  %18986 = vst [vmem:[#allocation92_spill] sm:$0xff] %v16031_v51  ;;  %v18987_v8 = vld [vmem:[#allocation37_spill] sm:$0xff]  ;;  %v16040_v4 = vpop.f32.mrb[44].mxu1  ;;  %v18989_v50 = vld [vmem:[#allocation26_spill] sm:$0xff] }
 0x379   :  { %v5669_v25 = vsel %vm12498_vm5, %v5664_v56, %v5668_v7  ;;  %v5674_v53 = vrot.slane %v5673_v29, 4  ;;  %v4181_v6 = vadd.f32 %v4047_v23, %v18987_v8  ;;  %18988 = vst [vmem:[#allocation54_spill] sm:$0xff] %v16038_v35  ;;  %v5681_v18 = vshrl.u32 %v15830_v15, 16  ;;  %v3815_v44 = vpop.f32.mrb[45].mxu1  ;;  %v16053_v22 = vld [vmem:[%s18156_s3] ss:$0 sm:$0xff] }
 0x37a   :  { %v4430_v31 = vpack.c.bf16 %v4386_v5, %v4385_v28  ;;  %v6948_v14 = vsel %vm12242_vm2, %v6946_v21, %v6947_v33  ;;  %v4182_v61 = vadd.f32 %v4050_v46, %v18989_v50  ;;  %v5684_v28 = vshll.u32 %v15830_v15, 16  ;;  %v16057_v33 = vpop.f32.mrb[46].mxu1  ;;  %v16068_v21 = vld [vmem:[%s18157_s4] ss:$0 sm:$0xff] }
 0x37b   :  { %v5679_v7 = vsel %vm12498_vm5, %v5674_v53, %v5678_v54  ;;  %v16048_v56 = vcombine.low %v6945_v1, %v6948_v14  ;;  %v4252_v3 = vmul.f32 %v16053_v22, %v4181_v6  ;;  %v16062_v54 = vld [vmem:[#allocation2 + $0xe4] sm:$0xf]  ;;  %v3818_v1 = vpop.f32.mrb[47].mxu1  ;;  %v5683_v53 = vrot.slane %v5681_v18, 4 }
 0x37c   :  { %v4577_v29 = vshrl.u32 %v4430_v31, 16  ;;  %v4580_v23 = vshll.u32 %v4430_v31, 16  ;;  %v16059_v5 = vcombine.low %v5669_v25, %v5679_v7  ;;  %v4253_v44 = vmul.f32 %v16053_v22, %v4182_v61  ;;  %v16076_v61 = vld [vmem:[#allocation2 + $0xe8] sm:$0xf]  ;;  %v11914_v7 = vld [vmem:[#allocation6 + $0x28] sm:$0xff]  }
 0x37d   :  { %18990 = vst [vmem:[#allocation95_spill] sm:$0xff] %v16048_v56  ;;  %11544 = vmatmul.mubr.bf16.gmra.mrb[92].mxu1 %v16048_v56  ;;  %v4323_v46 = vadd.f32 %v16068_v21, %v4252_v3  ;;  %v5686_v8 = vrot.slane %v5684_v28, 5  ;;  %v5690_v6 = vshll.u32 %v15832_v39, 16  ;;  %v5694_v14 = vshrl.u32 %v15832_v39, 16 }
 0x37e   :  { %18991 = vst [vmem:[#allocation96_spill] sm:$0xff] %v16059_v5  ;;  %v4579_v25 = vrot.slane %v4577_v29, 7  ;;  %7293 = vmatprep.mubr.bf16.mxu0 %v16059_v5  ;;  %v4324_v31 = vadd.f32 %v16068_v21, %v4253_v44  ;;  %v5700_v50 = vshll.u32 %v15843_v2, 16  ;;  %v10499_v28 = vrot.slane %v16062_v54, 9  ;;  %7906 = vmatpush1.bf16.msra.mxu1 %v11914_v7 }
 0x37f   :  { %v4387_v1 = vmax.f32 %v4323_v46, 0.0  ;;  %7294 = vmatmul.mubr.bf16.gmra.mrb[44].mxu0 %v16038_v35  ;;  %v5687_v3 = vor.u32 %v5686_v8, %v5683_v53  ;;  %v5692_v18 = vrot.slane %v5690_v6, 5  ;;  %v5696_v44 = vrot.slane %v5694_v14, 4  ;;  %v16089_v8 = vpop.f32.mrb[48].mxu1  ;;  %7907 = vmatprep.subr.bf16.mxu1 %v18959_v20 }
 0x380   :  { %v4582_v56 = vor.u32 %v4580_v23, %v4579_v25  ;;  %v4785_v29 = vsel %vm15180_vm8, %v4579_v25, 0  ;;  %v4388_v5 = vmax.f32 %v4324_v31, 0.0  ;;  %v16086_v2 = vcombine.low %v15830_v15, %v15832_v39  ;;  %v3823_v14 = vpop.f32.mrb[49].mxu1 }
 0x381   :  { %v10445_v46 = vcombine.low %v4785_v29, %v4785_v29  ;;  %v5688_v51 = vrot.slane %v5687_v3, 4  ;;  %v6353_v53 = vrot.slane %v16076_v61, 5  ;;  %v5697_v25 = vor.u32 %v5696_v44, %v5692_v18  ;;  %v16097_v3 = vpop.f32.mrb[50].mxu1 }
 0x382   :  { %18992 = vst [vmem:[#allocation97_spill] sm:$0xff] %v16086_v2  ;;  %v4753_v23 = vsel %vm15180_vm8, 0, %v4582_v56  ;;  %v4431_v6 = vpack.c.bf16 %v4388_v5, %v4387_v1  ;;  %v5702_v31 = vrot.slane %v5700_v50, 5  ;;  %v6356_v39 = vrot.slane %v16082_v63, 5  ;;  %v3826_v5 = vpop.f32.mrb[51].mxu1  ;;  %v18993_v1 = vld [vmem:[#allocation43_spill] sm:$0xff] }
 0x383   :  { %v10443_v7 = vcombine.low %v4753_v23, %v4753_v23  ;;  %v10444_v35 = vcombine.high %v4753_v23, %v4753_v23  ;;  %5223 = vst [vmem:[#allocation2 + $0x110] sm:$0x1] %v10445_v46  ;;  %v5693_v15 = vsel %vm12498_vm5, %v5688_v51, %v5692_v18  ;;  %v5698_v58 = vrot.slane %v5697_v25, 4  ;;  %v18994_v46 = vld [vmem:[#allocation79_spill] sm:$0xff] }
 0x384   :  { %v4584_v29 = vshrl.u32 %v4431_v6, 16  ;;  %v6354_v55 = vsel %vm12242_vm2, %v10499_v28, %v6353_v53  ;;  %v6355_v56 = vrot.slane %v6353_v53, 4  ;;  %v4587_v50 = vshll.u32 %v4431_v6, 16  ;;  %v18997_v6 = vld [vmem:[#allocation113_spill] sm:$0xff] }
 0x385   :  { %5221 = vst [vmem:[#allocation2 + $0x108] sm:$0xf] %v10443_v7  ;;  %5222 = vst [vmem:[#allocation2 + $0x10c] sm:$0xf] %v10444_v35  ;;  %v4055_v44 = vadd.f32 %v18993_v1, %v15784_v38  ;;  %v4058_v51 = vadd.f32 %v18994_v46, %v15800_v12  ;;  %v5705_v18 = vshrl.u32 %v15885_v52, 16  ;;  %v5703_v25 = vsel %vm12498_vm5, %v5698_v58, %v5702_v31  ;;  %v18998_v7 = vld [vmem:[#allocation38_spill] sm:$0xff] }
 0x386   :  { %v4586_v23 = vrot.slane %v4584_v29, 7  ;;  %v6357_v28 = vsel %vm12242_vm2, %v6355_v56, %v6356_v39  ;;  %v5708_v53 = vshll.u32 %v15885_v52, 16  ;;  %v16111_v14 = vcombine.low %v5693_v15, %v5703_v25  ;;  %v16124_v39 = vld [vmem:[#allocation2 + $0xf0] sm:$0xf]  ;;  %v16126_v56 = vpop.f32.mrb[52].mxu1 }
 0x387   :  { %v16113_v35 = vcombine.low %v6354_v55, %v6357_v28  ;;  %v4183_v38 = vadd.f32 %v4055_v44, %v18997_v6  ;;  %v4184_v5 = vadd.f32 %v4058_v51, %v18998_v7  ;;  %v5707_v1 = vrot.slane %v5705_v18, 4  ;;  %18999 = vst [vmem:[#allocation110_spill] sm:$0xff] %v16126_v56  ;;  %v16133_v25 = vld [vmem:[#allocation2 + $0xf4] sm:$0xf]  ;;  %v3831_v28 = vpop.f32.mrb[53].mxu1 }
 0x388   :  { %18995 = vst [vmem:[#allocation98_spill] sm:$0xff] %v16111_v14  ;;  %v4589_v12 = vor.u32 %v4587_v50, %v4586_v23  ;;  %v4786_v29 = vsel %vm15180_vm8, %v4586_v23, 0  ;;  %v5710_v46 = vrot.slane %v5708_v53, 5  ;;  %7301 = vmatprep.mubr.bf16.mxu0 %v16111_v14  ;;  %v5714_v15 = vshll.u32 %v15895_v57, 16  ;;  %v11916_v50 = vld [vmem:[#allocation6 + $0x30] sm:$0xff]   ;;  %v11920_v14 = vld [vmem:[#allocation6 + $0x40] sm:$0xff]  }
 0x389   :  { %18996 = vst [vmem:[#allocation108_spill] sm:$0xff] %v16113_v35  ;;  %v10448_v58 = vcombine.low %v4786_v29, %v4786_v29  ;;  %11547 = vmatprep.mubr.bf16.mxu1 %v16113_v35  ;;  %v4254_v31 = vmul.f32 %v16053_v22, %v4183_v38  ;;  %v4255_v55 = vmul.f32 %v16053_v22, %v4184_v5  ;;  %v5718_v18 = vshrl.u32 %v15895_v57, 16  ;;  %v16137_v5 = vld [vmem:[#allocation2 + $0xf8] sm:$0x1]  ;;  %v11918_v29 = vld [vmem:[#allocation6 + $0x38] sm:$0xff]  }
 0x38a   :  { %v4754_v44 = vsel %vm15180_vm8, 0, %v4589_v12  ;;  %7302 = vmatmul.mubr.bf16.gmra.mrb[48].mxu0 %v16086_v2  ;;  %v5711_v51 = vor.u32 %v5710_v46, %v5707_v1  ;;  %v5724_v23 = vshll.u32 %v15887_v45, 16  ;;  %v16139_v12 = vpop.f32.mrb[54].mxu1  ;;  %7908 = vmatpush1.bf16.msra.mxu1 %v11916_v50  ;;  %v5716_v46 = vrot.slane %v5714_v15, 5  ;;  %v19001_v15 = vld [vmem:[#allocation69_spill] sm:$0xff] }
 0x38b   :  { %v10446_v53 = vcombine.low %v4754_v44, %v4754_v44  ;;  %v10447_v6 = vcombine.high %v4754_v44, %v4754_v44  ;;  %5226 = vst [vmem:[#allocation2 + $0x11c] sm:$0x1] %v10448_v58  ;;  %v4325_v38 = vadd.f32 %v16068_v21, %v4254_v31  ;;  %v4326_v7 = vadd.f32 %v16068_v21, %v4255_v55 }
 0x38c   :  { %19000 = vst [vmem:[#allocation99_spill] sm:$0xff] %v16139_v12  ;;  %v5712_v1 = vrot.slane %v5711_v51, 4  ;;  %v5720_v2 = vrot.slane %v5718_v18, 4  ;;  %v5726_v45 = vrot.slane %v5724_v23, 5  ;;  %7909 = vmatprep.subr.bf16.mxu1 %v18959_v20  ;;  %v10500_v31 = vrot.slane %v16124_v39, 9  ;;  %v3834_v18 = vpop.f32.mrb[55].mxu1 }
 0x38d   :  { %5224 = vst [vmem:[#allocation2 + $0x114] sm:$0xf] %v10446_v53  ;;  %5225 = vst [vmem:[#allocation2 + $0x118] sm:$0xf] %v10447_v6  ;;  %v4389_v44 = vmax.f32 %v4325_v38, 0.0  ;;  %v4390_v58 = vmax.f32 %v4326_v7, 0.0  ;;  %v4063_v51 = vadd.f32 %v19001_v15, %v15834_v60 }
 0x38e   :  { %v6360_v55 = vrot.slane %v16133_v25, 5  ;;  %v5717_v28 = vsel %vm12498_vm5, %v5712_v1, %v5716_v46  ;;  %v5721_v35 = vor.u32 %v5720_v2, %v5716_v46  ;;  %v6363_v50 = vrot.slane %v16137_v5, 5  ;;  %v19002_v38 = vld [vmem:[#allocation82_spill] sm:$0xff]  ;;  %7910 = vmatpush1.bf16.msra.mxu1 %v11918_v29  ;;  %v19003_v1 = vld [vmem:[#allocation116_spill] sm:$0xff] }
 0x38f   :  { %v4432_v23 = vpack.c.bf16 %v4390_v58, %v4389_v44  ;;  %v4066_v7 = vadd.f32 %v19002_v38, %v15845_v49  ;;  %v11922_v12 = vld [vmem:[#allocation6 + $0xb0] sm:$0xff]   ;;  %v4185_v2 = vadd.f32 %v4063_v51, %v19003_v1  ;;  %v16156_v46 = vcombine.low %v15885_v52, %v15895_v57  ;;  %7911 = vmatprep.subr.bf16.mxu1 %v18959_v20  ;;  %v19005_v49 = vld [vmem:[#allocation39_spill] sm:$0xff] }
 0x390   :  { %v6361_v53 = vsel %vm12242_vm2, %v10500_v31, %v6360_v55  ;;  %v6362_v6 = vrot.slane %v6360_v55, 4  ;;  %v5722_v56 = vrot.slane %v5721_v35, 4  ;;  %v5729_v60 = vshrl.u32 %v15950_v62, 16  ;;  %v16163_v55 = vpop.f32.mrb[56].mxu1  ;;  %11591 = vmatprep.subr.bf16.mxu0 %v11922_v12 }
 0x391   :  { %19004 = vst [vmem:[#allocation100_spill] sm:$0xff] %v16156_v46  ;;  %v4591_v44 = vshrl.u32 %v4432_v23, 16  ;;  %v4594_v58 = vshll.u32 %v4432_v23, 16  ;;  %v4186_v29 = vadd.f32 %v4066_v7, %v19005_v49  ;;  %v4256_v52 = vmul.f32 %v16053_v22, %v4185_v2  ;;  %v3839_v51 = vpop.f32.mrb[57].mxu1  ;;  %11592 = vmatpush3.bf16.msra.mxu0 %v11922_v12  ;;  %v11921_v7 = vld [vmem:[#allocation6 + $0x48] sm:$0xff]  }
 0x392   :  { %v6364_v31 = vsel %vm12242_vm2, %v6362_v6, %v6363_v50  ;;  %v5727_v35 = vsel %vm12498_vm5, %v5722_v56, %v5726_v45  ;;  %v5731_v57 = vrot.slane %v5729_v60, 4  ;;  %v5732_v6 = vshll.u32 %v15950_v62, 16  ;;  %v16174_v38 = vpop.f32.mrb[58].mxu1  ;;  %7912 = vmatpush1.bf16.msra.mxu1 %v11920_v14 }
 0x393   :  { %v16167_v15 = vcombine.low %v6361_v53, %v6364_v31  ;;  %v4593_v18 = vrot.slane %v4591_v44, 7  ;;  %v16170_v23 = vcombine.low %v5717_v28, %v5727_v35  ;;  %v4257_v50 = vmul.f32 %v16053_v22, %v4186_v29  ;;  %v3842_v28 = vpop.f32.mrb[59].mxu1  ;;  %7913 = vmatprep.subr.bf16.mxu1 %v18959_v20  ;;  %v16186_v44 = vld [vmem:[#allocation2 + $0xfc] sm:$0xf] }
 0x394   :  { %v4327_v56 = vadd.f32 %v16068_v21, %v4256_v52  ;;  %v5738_v45 = vshll.u32 %v15953_v40, 16  ;;  %v5742_v53 = vshrl.u32 %v15953_v40, 16  ;;  %v5748_v12 = vshll.u32 %v15963_v26, 16 }
 0x395   :  { %19006 = vst [vmem:[#allocation101_spill] sm:$0xff] %v16167_v15  ;;  %19007 = vst [vmem:[#allocation102_spill] sm:$0xff] %v16170_v23  ;;  %11548 = vmatmul.mubr.bf16.gmra.mrb[96].mxu1 %v16167_v15  ;;  %v4596_v1 = vor.u32 %v4594_v58, %v4593_v18  ;;  %v4787_v2 = vsel %vm15180_vm8, %v4593_v18, 0  ;;  %7309 = vmatprep.mubr.bf16.mxu0 %v16170_v23  ;;  %v4328_v14 = vadd.f32 %v16068_v21, %v4257_v50  ;;  %v16193_v58 = vld [vmem:[#allocation2 + $0x100] sm:$0xf] }
 0x396   :  { %v5734_v60 = vrot.slane %v5732_v6, 5  ;;  %v16190_v31 = vcombine.low %v15950_v62, %v15953_v40  ;;  %v10451_v49 = vcombine.low %v4787_v2, %v4787_v2  ;;  %7310 = vmatmul.mubr.bf16.gmra.mrb[52].mxu0 %v16156_v46  ;;  %v5740_v26 = vrot.slane %v5738_v45, 5  ;;  %v16197_v50 = vld [vmem:[#allocation2 + $0x104] sm:$0x1]  ;;  %7914 = vmatpush1.bf16.msra.mxu1 %v11921_v7 }
 0x397   :  { %v5744_v29 = vrot.slane %v5742_v53, 4  ;;  %v4755_v35 = vsel %vm15180_vm8, 0, %v4596_v1  ;;  %v4391_v52 = vmax.f32 %v4327_v56, 0.0  ;;  %v4392_v51 = vmax.f32 %v4328_v14, 0.0  ;;  %v11923_v6 = vld [vmem:[#allocation6 + $0x50] sm:$0xff]   ;;  %7915 = vmatprep.subr.bf16.mxu1 %v18959_v20  ;;  %v16202_v56 = vpop.f32.mrb[60].mxu1 }
 0x398   :  { %19008 = vst [vmem:[#allocation103_spill] sm:$0xff] %v16190_v31  ;;  %v5735_v18 = vor.u32 %v5734_v60, %v5731_v57  ;;  %v10449_v28 = vcombine.low %v4755_v35, %v4755_v35  ;;  %v10450_v62 = vcombine.high %v4755_v35, %v4755_v35  ;;  %5229 = vst [vmem:[#allocation2 + $0x128] sm:$0x1] %v10451_v49  ;;  %v10501_v2 = vrot.slane %v16186_v44, 9  ;;  %v19009_v14 = vld [vmem:[#allocation50_spill] sm:$0xff]  ;;  %v19010_v49 = vld [vmem:[#allocation81_spill] sm:$0xff] }
 0x399   :  { %v5745_v40 = vor.u32 %v5744_v29, %v5740_v26  ;;  %v4433_v45 = vpack.c.bf16 %v4392_v51, %v4391_v52  ;;  %v5750_v46 = vrot.slane %v5748_v12, 5  ;;  %v6367_v1 = vrot.slane %v16193_v58, 5  ;;  %v3847_v35 = vpop.f32.mrb[61].mxu1 }
 0x39a   :  { %v5736_v53 = vrot.slane %v5735_v18, 4  ;;  %5227 = vst [vmem:[#allocation2 + $0x120] sm:$0xf] %v10449_v28  ;;  %5228 = vst [vmem:[#allocation2 + $0x124] sm:$0xf] %v10450_v62  ;;  %v6370_v7 = vrot.slane %v16197_v50, 5  ;;  %v4071_v60 = vadd.f32 %v19009_v14, %v15868_v32  ;;  %v4074_v29 = vadd.f32 %v19010_v49, %v15880_v36  ;;  %7916 = vmatpush1.bf16.msra.mxu1 %v11923_v6 }
 0x39b   :  { %v5746_v57 = vrot.slane %v5745_v40, 4  ;;  %v4598_v23 = vshrl.u32 %v4433_v45, 16  ;;  %v4601_v52 = vshll.u32 %v4433_v45, 16  ;;  %v6368_v51 = vsel %vm12242_vm2, %v10501_v2, %v6367_v1  ;;  %v16213_v18 = vpop.f32.mrb[62].mxu1  ;;  %v11925_v28 = vld [vmem:[#allocation6 + $0x58] sm:$0xff]   ;;  %v19012_v36 = vld [vmem:[#allocation118_spill] sm:$0xff]  ;;  %7917 = vmatprep.subr.bf16.mxu1 %v18959_v20 }
 0x39c   :  { %v5741_v12 = vsel %vm12498_vm5, %v5736_v53, %v5740_v26  ;;  %v6369_v32 = vrot.slane %v6367_v1, 4  ;;  %v19011_v40 = vld [vmem:[#allocation63_spill] sm:$0xff]  ;;  %v4188_v49 = vadd.f32 %v4074_v29, %v19012_v36  ;;  %v3850_v45 = vpop.f32.mrb[63].mxu1  ;;  %v6889_v2 = vshrl.u32 %v15999_v9, 16 }
 0x39d   :  { %v5751_v62 = vsel %vm12498_vm5, %v5746_v57, %v5750_v46  ;;  %v4187_v14 = vadd.f32 %v4071_v60, %v19011_v40  ;;  %v4600_v35 = vrot.slane %v4598_v23, 7  ;;  %v6892_v53 = vshll.u32 %v15999_v9, 16  ;;  %v16237_v36 = vld [vmem:[#allocation2 + $0x108] sm:$0xf] }
 0x39e   :  { %v16220_v26 = vcombine.low %v5741_v12, %v5751_v62  ;;  %v6371_v6 = vsel %vm12242_vm2, %v6369_v32, %v6370_v7  ;;  %v4259_v1 = vmul.f32 %v16053_v22, %v4188_v49  ;;  %v6898_v57 = vshll.u32 %v16001_v43, 16  ;;  %7918 = vmatpush1.bf16.msra.mxu1 %v11925_v28  ;;  %v11927_v62 = vld [vmem:[#allocation6 + $0x60] sm:$0xff]  }
 0x39f   :  { %v4258_v46 = vmul.f32 %v16053_v22, %v4187_v14  ;;  %v4603_v60 = vor.u32 %v4601_v52, %v4600_v35  ;;  %v4788_v29 = vsel %vm15180_vm8, %v4600_v35, 0  ;;  %v16232_v23 = vcombine.low %v6368_v51, %v6371_v6  ;;  %v16239_v52 = vld [vmem:[#allocation2 + $0x110] sm:$0x1]  ;;  %7919 = vmatprep.subr.bf16.mxu1 %v18959_v20  ;;  %v16247_v35 = vld [vmem:[#allocation2 + $0x10c] sm:$0xf] }
 0x3a0   :  { %19013 = vst [vmem:[#allocation104_spill] sm:$0xff] %v16220_v26  ;;  %7317 = vmatprep.mubr.bf16.mxu0 %v16220_v26  ;;  %v6891_v12 = vrot.slane %v6889_v2, 4  ;;  %v10454_v40 = vcombine.low %v4788_v29, %v4788_v29  ;;  %v4330_v32 = vadd.f32 %v16068_v21, %v4259_v1  ;;  %v6894_v14 = vrot.slane %v6892_v53, 5 }
 0x3a1   :  { %19014 = vst [vmem:[#allocation105_spill] sm:$0xff] %v16232_v23  ;;  %v4329_v7 = vadd.f32 %v16068_v21, %v4258_v46  ;;  %7318 = vmatmul.mubr.bf16.gmra.mrb[56].mxu0 %v16190_v31  ;;  %v4756_v51 = vsel %vm15180_vm8, 0, %v4603_v60  ;;  %11551 = vmatprep.mubr.bf16.mxu1 %v16232_v23  ;;  %v6900_v28 = vrot.slane %v6898_v57, 5  ;;  %v6902_v49 = vshrl.u32 %v16001_v43, 16  ;;  %v11928_v60 = vld [vmem:[#allocation6 + $0x68] sm:$0xff]  }
 0x3a2   :  { %v6908_v45 = vshll.u32 %v15993_v34, 16  ;;  %v10452_v2 = vcombine.low %v4756_v51, %v4756_v51  ;;  %v10453_v53 = vcombine.high %v4756_v51, %v4756_v51  ;;  %5232 = vst [vmem:[#allocation2 + $0x134] sm:$0x1] %v10454_v40  ;;  %v4394_v46 = vmax.f32 %v4330_v32, 0.0  ;;  %7920 = vmatpush1.bf16.msra.mxu1 %v11927_v62 }
 0x3a3   :  { %v4393_v6 = vmax.f32 %v4329_v7, 0.0  ;;  %v6895_v1 = vor.u32 %v6894_v14, %v6891_v12  ;;  %v6904_v29 = vrot.slane %v6902_v49, 4  ;;  %v10502_v26 = vrot.slane %v16237_v36, 9  ;;  %7921 = vmatprep.subr.bf16.mxu1 %v18959_v20 }
 0x3a4   :  { %v6910_v31 = vrot.slane %v6908_v45, 5  ;;  %5230 = vst [vmem:[#allocation2 + $0x12c] sm:$0xf] %v10452_v2  ;;  %5231 = vst [vmem:[#allocation2 + $0x130] sm:$0xf] %v10453_v53  ;;  %v6374_v23 = vrot.slane %v16247_v35, 5  ;;  %v4079_v51 = vadd.f32 %v15665_v11, %v15910_v42  ;;  %v4082_v7 = vadd.f32 %v15678_v59, %v15927_v10 }
 0x3a5   :  { %v4434_v57 = vpack.c.bf16 %v4394_v46, %v4393_v6  ;;  %v6377_v34 = vrot.slane %v16239_v52, 5  ;;  %v6896_v40 = vrot.slane %v6895_v1, 4  ;;  %v6905_v12 = vor.u32 %v6904_v29, %v6900_v28  ;;  %v19016_v2 = vld [vmem:[#allocation62_spill] sm:$0xff]  ;;  %v19017_v6 = vld [vmem:[#allocation115_spill] sm:$0xff] }
 0x3a6   :  { %v16259_v62 = vcombine.low %v15999_v9, %v16001_v43  ;;  %v6375_v49 = vsel %vm12242_vm2, %v10502_v26, %v6374_v23  ;;  %v6376_v45 = vrot.slane %v6374_v23, 4  ;;  %v4189_v53 = vadd.f32 %v4079_v51, %v19016_v2  ;;  %7922 = vmatpush1.bf16.msra.mxu1 %v11928_v60  ;;  %v11929_v26 = vld [vmem:[#allocation6 + $0x70] sm:$0xff]   ;;  %v11931_v2 = vld [vmem:[#allocation6 + $0x78] sm:$0xff]  }
 0x3a7   :  { %v4605_v32 = vshrl.u32 %v4434_v57, 16  ;;  %v4608_v14 = vshll.u32 %v4434_v57, 16  ;;  %v6901_v11 = vsel %vm12498_vm5, %v6896_v40, %v6900_v28  ;;  %v6906_v42 = vrot.slane %v6905_v12, 4  ;;  %7923 = vmatprep.subr.bf16.mxu1 %v18959_v20 }
 0x3a8   :  { %19015 = vst [vmem:[#allocation106_spill] sm:$0xff] %v16259_v62  ;;  %v4190_v46 = vadd.f32 %v4082_v7, %v19017_v6  ;;  %v6378_v10 = vsel %vm12242_vm2, %v6376_v45, %v6377_v34  ;;  %v5777_v9 = vshrl.u32 %v16062_v54, 16  ;;  %v5780_v43 = vshll.u32 %v16062_v54, 16 }
 0x3a9   :  { %v4607_v59 = vrot.slane %v4605_v32, 7  ;;  %v6911_v23 = vsel %vm12498_vm5, %v6906_v42, %v6910_v31  ;;  %v16274_v28 = vcombine.low %v6375_v49, %v6378_v10  ;;  %v4260_v1 = vmul.f32 %v16053_v22, %v4189_v53  ;;  %v16285_v32 = vld [vmem:[#allocation2 + $0x114] sm:$0xf]  ;;  %v16287_v49 = vld [vmem:[#allocation2 + $0x118] sm:$0xf] }
 0x3aa   :  { %v4261_v29 = vmul.f32 %v16053_v22, %v4190_v46  ;;  %v16280_v34 = vcombine.low %v6901_v11, %v6911_v23  ;;  %v5779_v51 = vrot.slane %v5777_v9, 4  ;;  %v5782_v7 = vrot.slane %v5780_v43, 5  ;;  %7924 = vmatpush1.bf16.msra.mxu1 %v11929_v26  ;;  %v16296_v10 = vld [vmem:[#allocation2 + $0x11c] sm:$0x1] }
 0x3ab   :  { %19018 = vst [vmem:[#allocation107_spill] sm:$0xff] %v16274_v28  ;;  %v4610_v60 = vor.u32 %v4608_v14, %v4607_v59  ;;  %v4789_v57 = vsel %vm15180_vm8, %v4607_v59, 0  ;;  %11552 = vmatmul.mubr.bf16.gmra.mrb[100].mxu1 %v16274_v28  ;;  %v4331_v12 = vadd.f32 %v16068_v21, %v4260_v1  ;;  %v5786_v45 = vshll.u32 %v16076_v61, 16  ;;  %7925 = vmatprep.subr.bf16.mxu1 %v18959_v20 }
 0x3ac   :  { %19019 = vst [vmem:[#allocation19_spill] sm:$0xff] %v16280_v34  ;;  %v10457_v40 = vcombine.low %v4789_v57, %v4789_v57  ;;  %v4332_v31 = vadd.f32 %v16068_v21, %v4261_v29  ;;  %7325 = vmatprep.mubr.bf16.mxu0 %v16280_v34  ;;  %v5790_v11 = vshrl.u32 %v16076_v61, 16  ;;  %v5796_v42 = vshll.u32 %v16082_v63, 16  ;;  %v11933_v57 = vld [vmem:[#allocation6 + $0xb8] sm:$0xff]  }
 0x3ad   :  { %v4757_v14 = vsel %vm15180_vm8, 0, %v4610_v60  ;;  %v4395_v46 = vmax.f32 %v4331_v12, 0.0  ;;  %7326 = vmatmul.mubr.bf16.gmra.mrb[60].mxu0 %v16259_v62  ;;  %v16301_v9 = vcombine.low %v16062_v54, %v16076_v61  ;;  %v5783_v43 = vor.u32 %v5782_v7, %v5779_v51  ;;  %11593 = vmatprep.subr.bf16.mxu0 %v11933_v57  ;;  %v19038_v62 = vld [vmem:[#allocation122_spill] sm:$0xff] }
 0x3ae   :  { %v10455_v53 = vcombine.low %v4757_v14, %v4757_v14  ;;  %v10456_v6 = vcombine.high %v4757_v14, %v4757_v14  ;;  %5235 = vst [vmem:[#allocation2 + $0x140] sm:$0x1] %v10457_v40  ;;  %v4396_v59 = vmax.f32 %v4332_v31, 0.0  ;;  %v5788_v23 = vrot.slane %v5786_v45, 5  ;;  %v19021_v14 = vld [vmem:[#allocation28_spill] sm:$0xff]  ;;  %7926 = vmatpush1.bf16.msra.mxu1 %v11931_v2  ;;  %11594 = vmatpush3.bf16.msra.mxu0 %v11933_v57 }
 0x3af   :  { %19020 = vst [vmem:[#allocation22_spill] sm:$0xff] %v16301_v9  ;;  %v5792_v63 = vrot.slane %v5790_v11, 4  ;;  %v5798_v1 = vrot.slane %v5796_v42, 5  ;;  %v10503_v29 = vrot.slane %v16285_v32, 9  ;;  %v6381_v60 = vrot.slane %v16287_v49, 5  ;;  %8758 = vmatprep.subr.bf16.mxu0 %v18959_v20 }
 0x3b0   :  { %5233 = vst [vmem:[#allocation2 + $0x138] sm:$0xf] %v10455_v53  ;;  %5234 = vst [vmem:[#allocation2 + $0x13c] sm:$0xf] %v10456_v6  ;;  %v4435_v26 = vpack.c.bf16 %v4396_v59, %v4395_v46  ;;  %v5784_v40 = vrot.slane %v5783_v43, 4  ;;  %v6384_v31 = vrot.slane %v16296_v10, 5  ;;  %v4087_v54 = vadd.f32 %v19021_v14, %v15955_v13 }
 0x3b1   :  { %v5793_v12 = vor.u32 %v5792_v63, %v5788_v23  ;;  %v6382_v7 = vsel %vm12242_vm2, %v10503_v29, %v6381_v60  ;;  %v6383_v45 = vrot.slane %v6381_v60, 4  ;;  %v19022_v53 = vld [vmem:[#allocation41_spill] sm:$0xff]  ;;  %v19023_v46 = vld [vmem:[#allocation36_spill] sm:$0xff]  ;;  %v5801_v2 = vshrl.u32 %v16124_v39, 16 }
 0x3b2   :  { %v4612_v61 = vshrl.u32 %v4435_v26, 16  ;;  %v4615_v51 = vshll.u32 %v4435_v26, 16  ;;  %v5789_v11 = vsel %vm12498_vm5, %v5784_v40, %v5788_v23  ;;  %v4191_v6 = vadd.f32 %v4087_v54, %v19022_v53  ;;  %v19025_v60 = vld [vmem:[#allocation64_spill] sm:$0xff] }
 0x3b3   :  { %v5794_v42 = vrot.slane %v5793_v12, 4  ;;  %v4090_v59 = vadd.f32 %v19023_v46, %v15966_v16  ;;  %v6385_v13 = vsel %vm12242_vm2, %v6383_v45, %v6384_v31  ;;  %v5804_v63 = vshll.u32 %v16124_v39, 16  ;;  %v16335_v45 = vld [vmem:[#allocation2 + $0x128] sm:$0x1] }
 0x3b4   :  { %v4614_v43 = vrot.slane %v4612_v61, 7  ;;  %v16322_v26 = vcombine.low %v6382_v7, %v6385_v13  ;;  %v4262_v29 = vmul.f32 %v16053_v22, %v4191_v6  ;;  %v5803_v31 = vrot.slane %v5801_v2, 4  ;;  %v16333_v7 = vld [vmem:[#allocation2 + $0x120] sm:$0xf]  ;;  %v16343_v6 = vld [vmem:[#allocation2 + $0x124] sm:$0xf] }
 0x3b5   :  { %v5799_v23 = vsel %vm12498_vm5, %v5794_v42, %v5798_v1  ;;  %v4192_v16 = vadd.f32 %v4090_v59, %v19025_v60  ;;  %v5806_v61 = vrot.slane %v5804_v63, 5  ;;  %v5814_v42 = vshrl.u32 %v16133_v25, 16 }
 0x3b6   :  { %19024 = vst [vmem:[#allocation20_spill] sm:$0xff] %v16322_v26  ;;  %v4617_v57 = vor.u32 %v4615_v51, %v4614_v43  ;;  %v4790_v40 = vsel %vm15180_vm8, %v4614_v43, 0  ;;  %v16328_v12 = vcombine.low %v5789_v11, %v5799_v23  ;;  %11555 = vmatprep.mubr.bf16.mxu1 %v16322_v26  ;;  %v4333_v54 = vadd.f32 %v16068_v21, %v4262_v29 }
 0x3b7   :  { %v10460_v14 = vcombine.low %v4790_v40, %v4790_v40  ;;  %v4263_v1 = vmul.f32 %v16053_v22, %v4192_v16  ;;  %v5810_v11 = vshll.u32 %v16133_v25, 16  ;;  %v5820_v53 = vshll.u32 %v16137_v5, 16 }
 0x3b8   :  { %19026 = vst [vmem:[#allocation58_spill] sm:$0xff] %v16328_v12  ;;  %v4758_v51 = vsel %vm15180_vm8, 0, %v4617_v57  ;;  %7333 = vmatprep.mubr.bf16.mxu0 %v16328_v12  ;;  %v4397_v43 = vmax.f32 %v4333_v54, 0.0  ;;  %v5807_v2 = vor.u32 %v5806_v61, %v5803_v31  ;;  %v5816_v23 = vrot.slane %v5814_v42, 4 }
 0x3b9   :  { %v10458_v46 = vcombine.low %v4758_v51, %v4758_v51  ;;  %v10459_v59 = vcombine.high %v4758_v51, %v4758_v51  ;;  %5238 = vst [vmem:[#allocation2 + $0x14c] sm:$0x1] %v10460_v14  ;;  %v4334_v13 = vadd.f32 %v16068_v21, %v4263_v1  ;;  %7334 = vmatmul.mubr.bf16.gmra.mrb[64].mxu0 %v16301_v9  ;;  %v5812_v63 = vrot.slane %v5810_v11, 5  ;;  %v19052_v9 = vld [vmem:[#allocation18_spill] sm:$0xff] }
 0x3ba   :  { %v5822_v29 = vrot.slane %v5820_v53, 5  ;;  %v10504_v16 = vrot.slane %v16333_v7, 9  ;;  %v6388_v5 = vrot.slane %v16343_v6, 5  ;;  %v6391_v57 = vrot.slane %v16335_v45, 5 }
 0x3bb   :  { %5236 = vst [vmem:[#allocation2 + $0x144] sm:$0xf] %v10458_v46  ;;  %5237 = vst [vmem:[#allocation2 + $0x148] sm:$0xf] %v10459_v59  ;;  %v4398_v60 = vmax.f32 %v4334_v13, 0.0  ;;  %v5808_v40 = vrot.slane %v5807_v2, 4  ;;  %v5817_v14 = vor.u32 %v5816_v23, %v5812_v63  ;;  %v4095_v54 = vadd.f32 %v15792_v17, %v15995_v19 }
 0x3bc   :  { %v4098_v31 = vadd.f32 %v15807_v37, %v16008_v47  ;;  %v6389_v61 = vsel %vm12242_vm2, %v10504_v16, %v6388_v5  ;;  %v6390_v51 = vrot.slane %v6388_v5, 4  ;;  %v16358_v11 = vcombine.low %v16124_v39, %v16133_v25  ;;  %v19028_v46 = vld [vmem:[#allocation46_spill] sm:$0xff]  ;;  %v19029_v13 = vld [vmem:[#allocation68_spill] sm:$0xff] }
 0x3bd   :  { %v4436_v1 = vpack.c.bf16 %v4398_v60, %v4397_v43  ;;  %v5813_v42 = vsel %vm12498_vm5, %v5808_v40, %v5812_v63  ;;  %v5818_v53 = vrot.slane %v5817_v14, 4  ;;  %v4193_v59 = vadd.f32 %v4095_v54, %v19028_v46 }
 0x3be   :  { %19027 = vst [vmem:[#allocation109_spill] sm:$0xff] %v16358_v11  ;;  %v4194_v17 = vadd.f32 %v4098_v31, %v19029_v13  ;;  %v6392_v37 = vsel %vm12242_vm2, %v6390_v51, %v6391_v57  ;;  %v5825_v47 = vshrl.u32 %v16186_v44, 16  ;;  %v5828_v5 = vshll.u32 %v16186_v44, 16  ;;  %v16385_v51 = vld [vmem:[#allocation2 + $0x12c] sm:$0xf] }
 0x3bf   :  { %v4619_v19 = vshrl.u32 %v4436_v1, 16  ;;  %v4622_v2 = vshll.u32 %v4436_v1, 16  ;;  %v5823_v43 = vsel %vm12498_vm5, %v5818_v53, %v5822_v29  ;;  %v16369_v39 = vcombine.low %v6389_v61, %v6392_v37  ;;  %v16388_v13 = vld [vmem:[#allocation2 + $0x130] sm:$0xf] }
 0x3c0   :  { %v4264_v25 = vmul.f32 %v16053_v22, %v4193_v59  ;;  %v4265_v63 = vmul.f32 %v16053_v22, %v4194_v17  ;;  %v16373_v60 = vcombine.low %v5813_v42, %v5823_v43  ;;  %v5827_v16 = vrot.slane %v5825_v47, 4 }
 0x3c1   :  { %19030 = vst [vmem:[#allocation16_spill] sm:$0xff] %v16369_v39  ;;  %v4621_v23 = vrot.slane %v4619_v19, 7  ;;  %11556 = vmatmul.mubr.bf16.gmra.mrb[104].mxu1 %v16369_v39  ;;  %v5834_v29 = vshll.u32 %v16193_v58, 16  ;;  %v5838_v14 = vshrl.u32 %v16193_v58, 16  ;;  %v5830_v1 = vrot.slane %v5828_v5, 5 }
 0x3c2   :  { %19031 = vst [vmem:[#allocation14_spill] sm:$0xff] %v16373_v60  ;;  %v4335_v57 = vadd.f32 %v16068_v21, %v4264_v25  ;;  %v4336_v40 = vadd.f32 %v16068_v21, %v4265_v63  ;;  %7341 = vmatprep.mubr.bf16.mxu0 %v16373_v60  ;;  %v5844_v61 = vshll.u32 %v16197_v50, 16  ;;  %v16392_v17 = vcombine.low %v16186_v44, %v16193_v58  ;;  %v16396_v50 = vld [vmem:[#allocation2 + $0x134] sm:$0x1] }
 0x3c3   :  { %v4624_v54 = vor.u32 %v4622_v2, %v4621_v23  ;;  %v4791_v31 = vsel %vm15180_vm8, %v4621_v23, 0  ;;  %7342 = vmatmul.mubr.bf16.gmra.mrb[68].mxu0 %v16358_v11  ;;  %v5836_v59 = vrot.slane %v5834_v29, 5  ;;  %v5831_v2 = vor.u32 %v5830_v1, %v5827_v16 }
 0x3c4   :  { %v10463_v42 = vcombine.low %v4791_v31, %v4791_v31  ;;  %v4399_v53 = vmax.f32 %v4335_v57, 0.0  ;;  %v4400_v46 = vmax.f32 %v4336_v40, 0.0  ;;  %19032 = vst [vmem:[#allocation32_spill] sm:$0xff] %v16392_v17  ;;  %v5840_v37 = vrot.slane %v5838_v14, 4 }
 0x3c5   :  { %v4759_v19 = vsel %vm15180_vm8, 0, %v4624_v54  ;;  %v10505_v63 = vrot.slane %v16385_v51, 9  ;;  %v5832_v23 = vrot.slane %v5831_v2, 4  ;;  %v5846_v57 = vrot.slane %v5844_v61, 5 }
 0x3c6   :  { %v10461_v47 = vcombine.low %v4759_v19, %v4759_v19  ;;  %v10462_v43 = vcombine.high %v4759_v19, %v4759_v19  ;;  %5241 = vst [vmem:[#allocation2 + $0x158] sm:$0x1] %v10463_v42  ;;  %v4437_v25 = vpack.c.bf16 %v4400_v46, %v4399_v53  ;;  %v5841_v5 = vor.u32 %v5840_v37, %v5836_v59  ;;  %v19033_v42 = vld [vmem:[#allocation117_spill] sm:$0xff] }
 0x3c7   :  { %v6395_v40 = vrot.slane %v16388_v13, 5  ;;  %v6398_v16 = vrot.slane %v16396_v50, 5  ;;  %v4103_v29 = vadd.f32 %v15786_v0, %v16040_v4  ;;  %v5837_v14 = vsel %vm12498_vm5, %v5832_v23, %v5836_v59  ;;  %v19036_v23 = vld [vmem:[#allocation67_spill] sm:$0xff] }
 0x3c8   :  { %5239 = vst [vmem:[#allocation2 + $0x150] sm:$0xf] %v10461_v47  ;;  %5240 = vst [vmem:[#allocation2 + $0x154] sm:$0xf] %v10462_v43  ;;  %v4626_v44 = vshrl.u32 %v4437_v25, 16  ;;  %v4629_v58 = vshll.u32 %v4437_v25, 16  ;;  %v4106_v46 = vadd.f32 %v15802_v24, %v16057_v33 }
 0x3c9   :  { %v5842_v54 = vrot.slane %v5841_v5, 4  ;;  %v6396_v31 = vsel %vm12242_vm2, %v10505_v63, %v6395_v40  ;;  %v6397_v1 = vrot.slane %v6395_v40, 4  ;;  %v4195_v53 = vadd.f32 %v4103_v29, %v19033_v42  ;;  %v16423_v24 = vld [vmem:[#allocation2 + $0x140] sm:$0x1]  ;;  %v16427_v40 = vld [vmem:[#allocation2 + $0x138] sm:$0xf] }
 0x3ca   :  { %v4628_v61 = vrot.slane %v4626_v44, 7  ;;  %v5849_v19 = vshrl.u32 %v16237_v36, 16  ;;  %v5852_v4 = vshll.u32 %v16237_v36, 16  ;;  %v5858_v59 = vshll.u32 %v16247_v35, 16  ;;  %v16429_v44 = vld [vmem:[#allocation2 + $0x13c] sm:$0xf] }
 0x3cb   :  { %v5847_v2 = vsel %vm12498_vm5, %v5842_v54, %v5846_v57  ;;  %v6399_v0 = vsel %vm12242_vm2, %v6397_v1, %v6398_v16  ;;  %v4266_v63 = vmul.f32 %v16053_v22, %v4195_v53  ;;  %v4196_v5 = vadd.f32 %v4106_v46, %v19036_v23  ;;  %v11936_v1 = vld [vmem:[#allocation6 + $0x200] sm:$0xff]  }
 0x3cc   :  { %v4631_v37 = vor.u32 %v4629_v58, %v4628_v61  ;;  %v4792_v47 = vsel %vm15180_vm8, %v4628_v61, 0  ;;  %v16419_v43 = vcombine.low %v5837_v14, %v5847_v2  ;;  %v16421_v25 = vcombine.low %v6396_v31, %v6399_v0  ;;  %v16431_v58 = vpop.f32.mrb[64].mxu1  ;;  %11659 = vmatprep.subr.bf16.mxu1 %v11936_v1 }
 0x3cd   :  { %v10466_v33 = vcombine.low %v4792_v47, %v4792_v47  ;;  %v5851_v57 = vrot.slane %v5849_v19, 4  ;;  %v5854_v29 = vrot.slane %v5852_v4, 5  ;;  %v5860_v14 = vrot.slane %v5858_v59, 5  ;;  %v16438_v31 = vpop.f32.mrb[65].mxu1 }
 0x3ce   :  { %19034 = vst [vmem:[#allocation25_spill] sm:$0xff] %v16419_v43  ;;  %19035 = vst [vmem:[#allocation27_spill] sm:$0xff] %v16421_v25  ;;  %v4760_v16 = vsel %vm15180_vm8, 0, %v4631_v37  ;;  %7349 = vmatprep.mubr.bf16.mxu0 %v16419_v43  ;;  %11559 = vmatprep.mubr.bf16.mxu1 %v16421_v25  ;;  %v5862_v54 = vshrl.u32 %v16247_v35, 16  ;;  %v4337_v53 = vadd.f32 %v16068_v21, %v4266_v63  ;;  %v16443_v19 = vpop.f32.mrb[66].mxu1  ;;  %v5868_v4 = vshll.u32 %v16239_v52, 16 }
 0x3cf   :  { %v10464_v61 = vcombine.low %v4760_v16, %v4760_v16  ;;  %v10465_v42 = vcombine.high %v4760_v16, %v4760_v16  ;;  %5244 = vst [vmem:[#allocation2 + $0x164] sm:$0x1] %v10466_v33  ;;  %v4267_v46 = vmul.f32 %v16053_v22, %v4196_v5  ;;  %7350 = vmatmul.mubr.bf16.gmra.mrb[72].mxu0 %v16392_v17  ;;  %v10506_v59 = vrot.slane %v16427_v40, 9  ;;  %v16447_v37 = vpop.f32.mrb[67].mxu1 }
 0x3d0   :  { %v5855_v2 = vor.u32 %v5854_v29, %v5851_v57  ;;  %v5864_v0 = vrot.slane %v5862_v54, 4  ;;  %v4401_v47 = vmax.f32 %v4337_v53, 0.0  ;;  %v6402_v63 = vrot.slane %v16429_v44, 5 }
 0x3d1   :  { %5242 = vst [vmem:[#allocation2 + $0x15c] sm:$0xf] %v10464_v61  ;;  %5243 = vst [vmem:[#allocation2 + $0x160] sm:$0xf] %v10465_v42  ;;  %v4338_v33 = vadd.f32 %v16068_v21, %v4267_v46  ;;  %v6405_v23 = vrot.slane %v16423_v24, 5  ;;  %v5870_v57 = vrot.slane %v5868_v4, 5  ;;  %v4111_v52 = vadd.f32 %v15904_v30, %v16089_v8 }
 0x3d2   :  { %v5856_v5 = vrot.slane %v5855_v2, 4  ;;  %v5865_v16 = vor.u32 %v5864_v0, %v5860_v14  ;;  %v6403_v54 = vsel %vm12242_vm2, %v10506_v59, %v6402_v63  ;;  %v6404_v1 = vrot.slane %v6402_v63, 4  ;;  %v19037_v61 = vld [vmem:[#allocation51_spill] sm:$0xff] }
 0x3d3   :  { %v4402_v29 = vmax.f32 %v4338_v33, 0.0  ;;  %v4114_v42 = vadd.f32 %v19037_v61, %v16097_v3  ;;  %v4197_v34 = vadd.f32 %v4111_v52, %v19038_v62  ;;  %v16463_v2 = vcombine.low %v16237_v36, %v16247_v35  ;;  %v19040_v8 = vld [vmem:[#allocation71_spill] sm:$0xff] }
 0x3d4   :  { %v5861_v53 = vsel %vm12498_vm5, %v5856_v5, %v5860_v14  ;;  %v5866_v46 = vrot.slane %v5865_v16, 4  ;;  %v6406_v30 = vsel %vm12242_vm2, %v6404_v1, %v6405_v23  ;;  %v5873_v59 = vshrl.u32 %v16285_v32, 16  ;;  %v16478_v23 = vld [vmem:[#allocation2 + $0x144] sm:$0xf]  ;;  %v16489_v61 = vld [vmem:[#allocation2 + $0x148] sm:$0xf] }
 0x3d5   :  { %19039 = vst [vmem:[#allocation17_spill] sm:$0xff] %v16463_v2  ;;  %v4438_v0 = vpack.c.bf16 %v4402_v29, %v4401_v47  ;;  %v4198_v4 = vadd.f32 %v4114_v42, %v19040_v8  ;;  %v16471_v33 = vcombine.low %v6403_v54, %v6406_v30  ;;  %v4268_v14 = vmul.f32 %v16053_v22, %v4197_v34  ;;  %v16483_v29 = vpop.f32.mrb[0].mxu0 }
 0x3d6   :  { %v5871_v3 = vsel %vm12498_vm5, %v5866_v46, %v5870_v57  ;;  %v5876_v62 = vshll.u32 %v16285_v32, 16  ;;  %v5875_v16 = vrot.slane %v5873_v59, 4  ;;  %v5882_v52 = vshll.u32 %v16287_v49, 16  ;;  %v7209_v42 = vpop.f32.mrb[1].mxu0 }
 0x3d7   :  { %19041 = vst [vmem:[#allocation114_spill] sm:$0xff] %v16471_v33  ;;  %v4633_v63 = vshrl.u32 %v4438_v0, 16  ;;  %v4636_v36 = vshll.u32 %v4438_v0, 16  ;;  %v16475_v35 = vcombine.low %v5861_v53, %v5871_v3  ;;  %v4269_v47 = vmul.f32 %v16053_v22, %v4198_v4  ;;  %11560 = vmatmul.mubr.bf16.gmra.mrb[108].mxu1 %v16471_v33  ;;  %v16493_v8 = vpop.f32.mrb[2].mxu0 }
 0x3d8   :  { %v4339_v5 = vadd.f32 %v16068_v21, %v4268_v14  ;;  %v5878_v57 = vrot.slane %v5876_v62, 5  ;;  %v5886_v1 = vshrl.u32 %v16287_v49, 16  ;;  %v5892_v22 = vshll.u32 %v16296_v10, 16  ;;  %v16497_v14 = vld [vmem:[#allocation2 + $0x14c] sm:$0x1]  ;;  %v7212_v10 = vpop.f32.mrb[3].mxu0 }
 0x3d9   :  { %19042 = vst [vmem:[#allocation112_spill] sm:$0xff] %v16475_v35  ;;  %v4635_v34 = vrot.slane %v4633_v63, 7  ;;  %7357 = vmatprep.mubr.bf16.mxu0 %v16475_v35  ;;  %v4340_v54 = vadd.f32 %v16068_v21, %v4269_v47  ;;  %v5884_v0 = vrot.slane %v5882_v52, 5  ;;  %v10507_v30 = vrot.slane %v16478_v23, 9  ;;  %v19047_v10 = vld [vmem:[#allocation88_spill] sm:$0xff] }
 0x3da   :  { %v4403_v53 = vmax.f32 %v4339_v5, 0.0  ;;  %7358 = vmatmul.mubr.bf16.gmra.mrb[76].mxu0 %v16463_v2  ;;  %v5879_v46 = vor.u32 %v5878_v57, %v5875_v16  ;;  %v5888_v3 = vrot.slane %v5886_v1, 4  ;;  %v16501_v62 = vcombine.low %v16285_v32, %v16287_v49  ;;  %v19051_v2 = vld [vmem:[#allocation70_spill] sm:$0xff] }
 0x3db   :  { %v4638_v4 = vor.u32 %v4636_v36, %v4635_v34  ;;  %v4793_v21 = vsel %vm15180_vm8, %v4635_v34, 0  ;;  %v4404_v59 = vmax.f32 %v4340_v54, 0.0  ;;  %v6409_v5 = vrot.slane %v16489_v61, 5 }
 0x3dc   :  { %19043 = vst [vmem:[#allocation127_spill] sm:$0xff] %v16501_v62  ;;  %v10469_v63 = vcombine.low %v4793_v21, %v4793_v21  ;;  %v5880_v47 = vrot.slane %v5879_v46, 4  ;;  %v5889_v57 = vor.u32 %v5888_v3, %v5884_v0  ;;  %v5894_v52 = vrot.slane %v5892_v22, 5  ;;  %v19046_v3 = vld [vmem:[#allocation99_spill] sm:$0xff] }
 0x3dd   :  { %v4761_v16 = vsel %vm15180_vm8, 0, %v4638_v4  ;;  %v4439_v36 = vpack.c.bf16 %v4404_v59, %v4403_v53  ;;  %v6412_v42 = vrot.slane %v16497_v14, 5  ;;  %v6410_v46 = vsel %vm12242_vm2, %v10507_v30, %v6409_v5  ;;  %v19044_v53 = vld [vmem:[#allocation110_spill] sm:$0xff]  ;;  %v19045_v59 = vld [vmem:[#allocation87_spill] sm:$0xff] }
 0x3de   :  { %v10467_v34 = vcombine.low %v4761_v16, %v4761_v16  ;;  %v10468_v54 = vcombine.high %v4761_v16, %v4761_v16  ;;  %5247 = vst [vmem:[#allocation2 + $0x170] sm:$0x1] %v10469_v63  ;;  %v5885_v1 = vsel %vm12498_vm5, %v5880_v47, %v5884_v0  ;;  %v5890_v49 = vrot.slane %v5889_v57, 4  ;;  %v16516_v0 = vpop.f32.mrb[68].mxu1  ;;  %v16518_v47 = vpop.f32.mrb[4].mxu0 }
 0x3df   :  { %v4640_v32 = vshrl.u32 %v4439_v36, 16  ;;  %v6411_v21 = vrot.slane %v6409_v5, 4  ;;  %v4643_v4 = vshll.u32 %v4439_v36, 16  ;;  %v4119_v22 = vadd.f32 %v19045_v59, %v19044_v53 }
 0x3e0   :  { %5245 = vst [vmem:[#allocation2 + $0x168] sm:$0xf] %v10467_v34  ;;  %5246 = vst [vmem:[#allocation2 + $0x16c] sm:$0xf] %v10468_v54  ;;  %v4122_v63 = vadd.f32 %v19047_v10, %v19046_v3  ;;  %v5897_v16 = vshrl.u32 %v16333_v7, 16  ;;  %v5895_v30 = vsel %vm12498_vm5, %v5890_v49, %v5894_v52  ;;  %v5900_v36 = vshll.u32 %v16333_v7, 16 }
 0x3e1   :  { %v4642_v57 = vrot.slane %v4640_v32, 7  ;;  %v6413_v5 = vsel %vm12242_vm2, %v6411_v21, %v6412_v42  ;;  %v16525_v34 = vpop.f32.mrb[69].mxu1  ;;  %v7217_v54 = vpop.f32.mrb[5].mxu0  ;;  %v16527_v53 = vcombine.low %v5885_v1, %v5895_v30  ;;  %v19050_v3 = vld [vmem:[#allocation120_spill] sm:$0xff] }
 0x3e2   :  { %v16529_v59 = vcombine.low %v6410_v46, %v6413_v5  ;;  %v4199_v10 = vadd.f32 %v4119_v22, %v19050_v3  ;;  %v4200_v35 = vadd.f32 %v4122_v63, %v19051_v2  ;;  %v16533_v32 = vpop.f32.mrb[70].mxu1  ;;  %v16535_v17 = vpop.f32.mrb[6].mxu0  ;;  %v5899_v49 = vrot.slane %v5897_v16, 4  ;;  %v16546_v2 = vld [vmem:[%s18156_s3] ss:$0 sm:$0xff] }
 0x3e3   :  { %19048 = vst [vmem:[#allocation33_spill] sm:$0xff] %v16527_v53  ;;  %v4645_v52 = vor.u32 %v4643_v4, %v4642_v57  ;;  %v4794_v42 = vsel %vm15180_vm8, %v4642_v57, 0  ;;  %v5902_v21 = vrot.slane %v5900_v36, 5  ;;  %v16539_v43 = vpop.f32.mrb[71].mxu1  ;;  %v7220_v1 = vpop.f32.mrb[7].mxu0  ;;  %7365 = vmatprep.mubr.bf16.mxu0 %v16527_v53  ;;  %v5906_v22 = vshll.u32 %v16343_v6, 16 }
 0x3e4   :  { %19049 = vst [vmem:[#allocation52_spill] sm:$0xff] %v16529_v59  ;;  %v10472_v30 = vcombine.low %v4794_v42, %v4794_v42  ;;  %11563 = vmatprep.mubr.bf16.mxu1 %v16529_v59  ;;  %v4270_v46 = vmul.f32 %v16546_v2, %v4199_v10  ;;  %v4271_v4 = vmul.f32 %v16546_v2, %v4200_v35  ;;  %v16551_v63 = vld [vmem:[#allocation2 + $0x150] sm:$0xf]  ;;  %v5910_v5 = vshrl.u32 %v16343_v6, 16  ;;  %v16558_v54 = vld [vmem:[#allocation2 + $0x154] sm:$0xf] }
 0x3e5   :  { %v4762_v16 = vsel %vm15180_vm8, 0, %v4645_v52  ;;  %7366 = vmatmul.mubr.bf16.gmra.mrb[80].mxu0 %v16501_v62  ;;  %v5903_v57 = vor.u32 %v5902_v21, %v5899_v49  ;;  %v5916_v36 = vshll.u32 %v16335_v45, 16  ;;  %v16563_v35 = vld [vmem:[%s18157_s4] ss:$0 sm:$0xff]  ;;  %v16567_v1 = vld [vmem:[#allocation2 + $0x158] sm:$0x1] }
 0x3e6   :  { %v10470_v3 = vcombine.low %v4762_v16, %v4762_v16  ;;  %v10471_v10 = vcombine.high %v4762_v16, %v4762_v16  ;;  %5250 = vst [vmem:[#allocation2 + $0x17c] sm:$0x1] %v10472_v30  ;;  %v4341_v42 = vadd.f32 %v16563_v35, %v4270_v46  ;;  %v4342_v52 = vadd.f32 %v16563_v35, %v4271_v4  ;;  %v19054_v59 = vld [vmem:[#allocation121_spill] sm:$0xff] }
 0x3e7   :  { %v5904_v49 = vrot.slane %v5903_v57, 4  ;;  %v5908_v21 = vrot.slane %v5906_v22, 5  ;;  %v5912_v62 = vrot.slane %v5910_v5, 4  ;;  %v5918_v45 = vrot.slane %v5916_v36, 5 }
 0x3e8   :  { %5248 = vst [vmem:[#allocation2 + $0x174] sm:$0xf] %v10470_v3  ;;  %5249 = vst [vmem:[#allocation2 + $0x178] sm:$0xf] %v10471_v10  ;;  %v4405_v53 = vmax.f32 %v4341_v42, 0.0  ;;  %v4406_v16 = vmax.f32 %v4342_v52, 0.0  ;;  %v4127_v57 = vadd.f32 %v19052_v9, %v16163_v55 }
 0x3e9   :  { %v10508_v30 = vrot.slane %v16551_v63, 9  ;;  %v6416_v11 = vrot.slane %v16558_v54, 5  ;;  %v5909_v60 = vsel %vm12498_vm5, %v5904_v49, %v5908_v21  ;;  %v5913_v46 = vor.u32 %v5912_v62, %v5908_v21  ;;  %v19053_v3 = vld [vmem:[#allocation92_spill] sm:$0xff]  ;;  %v16580_v42 = vpop.f32.mrb[8].mxu0 }
 0x3ea   :  { %v6419_v4 = vrot.slane %v16567_v1, 5  ;;  %v4440_v22 = vpack.c.bf16 %v4406_v16, %v4405_v53  ;;  %v4130_v10 = vadd.f32 %v19053_v3, %v16174_v38  ;;  %v4201_v12 = vadd.f32 %v4127_v57, %v19054_v59  ;;  %v7225_v55 = vpop.f32.mrb[9].mxu0  ;;  %v19056_v21 = vld [vmem:[#allocation72_spill] sm:$0xff]  ;;  %v16591_v38 = vpop.f32.mrb[72].mxu1 }
 0x3eb   :  { %v6417_v5 = vsel %vm12242_vm2, %v10508_v30, %v6416_v11  ;;  %v6418_v36 = vrot.slane %v6416_v11, 4  ;;  %v5914_v52 = vrot.slane %v5913_v46, 4  ;;  %v16585_v62 = vcombine.low %v16333_v7, %v16343_v6  ;;  %v16593_v30 = vpop.f32.mrb[10].mxu0  ;;  %v16600_v57 = vpop.f32.mrb[73].mxu1 }
 0x3ec   :  { %v5921_v49 = vshrl.u32 %v16385_v51, 16  ;;  %v4647_v9 = vshrl.u32 %v4440_v22, 16  ;;  %v4650_v53 = vshll.u32 %v4440_v22, 16  ;;  %v4202_v16 = vadd.f32 %v4130_v10, %v19056_v21  ;;  %v7228_v22 = vpop.f32.mrb[11].mxu0  ;;  %v16606_v10 = vpop.f32.mrb[74].mxu1 }
 0x3ed   :  { %19055 = vst [vmem:[#allocation111_spill] sm:$0xff] %v16585_v62  ;;  %v6420_v11 = vsel %vm12242_vm2, %v6418_v36, %v6419_v4  ;;  %v5919_v59 = vsel %vm12498_vm5, %v5914_v52, %v5918_v45  ;;  %v4272_v7 = vmul.f32 %v16546_v2, %v4201_v12  ;;  %v5924_v36 = vshll.u32 %v16385_v51, 16 }
 0x3ee   :  { %v16597_v46 = vcombine.low %v6417_v5, %v6420_v11  ;;  %v5923_v6 = vrot.slane %v5921_v49, 4  ;;  %v4649_v3 = vrot.slane %v4647_v9, 7  ;;  %v16602_v55 = vcombine.low %v5909_v60, %v5919_v59  ;;  %v16613_v49 = vpop.f32.mrb[75].mxu1 }
 0x3ef   :  { %v4273_v4 = vmul.f32 %v16546_v2, %v4202_v16  ;;  %v4343_v45 = vadd.f32 %v16563_v35, %v4272_v7  ;;  %v5930_v5 = vshll.u32 %v16388_v13, 16  ;;  %v5934_v12 = vshrl.u32 %v16388_v13, 16  ;;  %v16619_v16 = vld [vmem:[#allocation2 + $0x15c] sm:$0xf] }
 0x3f0   :  { %19057 = vst [vmem:[#allocation75_spill] sm:$0xff] %v16597_v46  ;;  %19058 = vst [vmem:[#allocation35_spill] sm:$0xff] %v16602_v55  ;;  %11564 = vmatmul.mubr.bf16.gmra.mrb[112].mxu1 %v16597_v46  ;;  %v5940_v52 = vshll.u32 %v16396_v50, 16  ;;  %v4652_v60 = vor.u32 %v4650_v53, %v4649_v3  ;;  %v4795_v9 = vsel %vm15180_vm8, %v4649_v3, 0  ;;  %7373 = vmatprep.mubr.bf16.mxu0 %v16602_v55  ;;  %v5926_v21 = vrot.slane %v5924_v36, 5 }
 0x3f1   :  { %v4344_v11 = vadd.f32 %v16563_v35, %v4273_v4  ;;  %v16623_v59 = vcombine.low %v16385_v51, %v16388_v13  ;;  %v10475_v7 = vcombine.low %v4795_v9, %v4795_v9  ;;  %7374 = vmatmul.mubr.bf16.gmra.mrb[84].mxu0 %v16585_v62  ;;  %v5932_v50 = vrot.slane %v5930_v5, 5  ;;  %v16626_v53 = vld [vmem:[#allocation2 + $0x160] sm:$0xf]  ;;  %v16630_v36 = vld [vmem:[#allocation2 + $0x164] sm:$0x1] }
 0x3f2   :  { %v5936_v22 = vrot.slane %v5934_v12, 4  ;;  %v4763_v3 = vsel %vm15180_vm8, 0, %v4652_v60  ;;  %v4407_v55 = vmax.f32 %v4343_v45, 0.0  ;;  %v5927_v4 = vor.u32 %v5926_v21, %v5923_v6  ;;  %v19060_v6 = vld [vmem:[#allocation45_spill] sm:$0xff] }
 0x3f3   :  { %19059 = vst [vmem:[#allocation77_spill] sm:$0xff] %v16623_v59  ;;  %v4408_v46 = vmax.f32 %v4344_v11, 0.0  ;;  %v10473_v33 = vcombine.low %v4763_v3, %v4763_v3  ;;  %v10474_v25 = vcombine.high %v4763_v3, %v4763_v3  ;;  %5253 = vst [vmem:[#allocation2 + $0x188] sm:$0x1] %v10475_v7  ;;  %v10509_v13 = vrot.slane %v16619_v16, 9  ;;  %v19061_v11 = vld [vmem:[#allocation91_spill] sm:$0xff] }
 0x3f4   :  { %v5937_v51 = vor.u32 %v5936_v22, %v5932_v50  ;;  %v5928_v62 = vrot.slane %v5927_v4, 4  ;;  %v5942_v5 = vrot.slane %v5940_v52, 5  ;;  %v6423_v12 = vrot.slane %v16626_v53, 5  ;;  %v19062_v52 = vld [vmem:[#allocation119_spill] sm:$0xff] }
 0x3f5   :  { %v4441_v9 = vpack.c.bf16 %v4408_v46, %v4407_v55  ;;  %5251 = vst [vmem:[#allocation2 + $0x180] sm:$0xf] %v10473_v33  ;;  %5252 = vst [vmem:[#allocation2 + $0x184] sm:$0xf] %v10474_v25  ;;  %v6426_v45 = vrot.slane %v16630_v36, 5  ;;  %v4135_v60 = vadd.f32 %v19060_v6, %v16202_v56  ;;  %v4138_v21 = vadd.f32 %v19061_v11, %v16213_v18  ;;  %v19063_v4 = vld [vmem:[#allocation23_spill] sm:$0xff] }
 0x3f6   :  { %v5938_v39 = vrot.slane %v5937_v51, 4  ;;  %v5933_v46 = vsel %vm12498_vm5, %v5928_v62, %v5932_v50  ;;  %v6424_v55 = vsel %vm12242_vm2, %v10509_v13, %v6423_v12  ;;  %v6425_v33 = vrot.slane %v6423_v12, 4  ;;  %v16651_v11 = vpop.f32.mrb[12].mxu0 }
 0x3f7   :  { %v4654_v7 = vshrl.u32 %v4441_v9, 16  ;;  %v4657_v22 = vshll.u32 %v4441_v9, 16  ;;  %v4203_v3 = vadd.f32 %v4135_v60, %v19062_v52  ;;  %v4204_v51 = vadd.f32 %v4138_v21, %v19063_v4  ;;  %v7233_v12 = vpop.f32.mrb[13].mxu0  ;;  %v16674_v4 = vld [vmem:[#allocation2 + $0x168] sm:$0xf] }
 0x3f8   :  { %v5943_v25 = vsel %vm12498_vm5, %v5938_v39, %v5942_v5  ;;  %v5945_v18 = vshrl.u32 %v16427_v40, 16  ;;  %v5948_v9 = vshll.u32 %v16427_v40, 16  ;;  %v6427_v62 = vsel %vm12242_vm2, %v6425_v33, %v6426_v45  ;;  %v16658_v5 = vpop.f32.mrb[76].mxu1  ;;  %v16669_v33 = vpop.f32.mrb[14].mxu0  ;;  %v16683_v12 = vld [vmem:[#allocation2 + $0x16c] sm:$0xf] }
 0x3f9   :  { %v4656_v56 = vrot.slane %v4654_v7, 7  ;;  %v16647_v6 = vcombine.low %v5933_v46, %v5943_v25  ;;  %v4274_v50 = vmul.f32 %v16546_v2, %v4203_v3  ;;  %v4275_v39 = vmul.f32 %v16546_v2, %v4204_v51  ;;  %19065 = vst [vmem:[#allocation48_spill] sm:$0xff] %v16658_v5  ;;  %v16665_v25 = vld [vmem:[#allocation2 + $0x170] sm:$0x1]  ;;  %v16667_v45 = vpop.f32.mrb[77].mxu1 }
 0x3fa   :  { %v5954_v13 = vshll.u32 %v16429_v44, 16  ;;  %v16663_v7 = vcombine.low %v6424_v55, %v6427_v62  ;;  %v5947_v46 = vrot.slane %v5945_v18, 4  ;;  %19067 = vst [vmem:[#allocation37_spill] sm:$0xff] %v16667_v45  ;;  %v16676_v51 = vpop.f32.mrb[78].mxu1  ;;  %v7236_v55 = vpop.f32.mrb[15].mxu0  ;;  %v5958_v62 = vshrl.u32 %v16429_v44, 16 }
 0x3fb   :  { %19064 = vst [vmem:[#allocation60_spill] sm:$0xff] %v16647_v6  ;;  %v4659_v60 = vor.u32 %v4657_v22, %v4656_v56  ;;  %v4796_v21 = vsel %vm15180_vm8, %v4656_v56, 0  ;;  %7381 = vmatprep.mubr.bf16.mxu0 %v16647_v6  ;;  %v4345_v52 = vadd.f32 %v16563_v35, %v4274_v50  ;;  %v4346_v3 = vadd.f32 %v16563_v35, %v4275_v39  ;;  %v16858_v45 = vld [vmem:[#allocation2 + $0x4] sm:$0xf] }
 0x3fc   :  { %19066 = vst [vmem:[#allocation49_spill] sm:$0xff] %v16663_v7  ;;  %v10478_v2 = vcombine.low %v4796_v21, %v4796_v21  ;;  %7382 = vmatmul.mubr.bf16.gmra.mrb[88].mxu0 %v16623_v59  ;;  %v5950_v22 = vrot.slane %v5948_v9, 5  ;;  %19068 = vst [vmem:[#allocation26_spill] sm:$0xff] %v16676_v51  ;;  %11567 = vmatprep.mubr.bf16.mxu1 %v16663_v7  ;;  %v5956_v18 = vrot.slane %v5954_v13, 5  ;;  %v5964_v50 = vshll.u32 %v16423_v24, 16  ;;  %v16685_v59 = vpop.f32.mrb[79].mxu1 }
 0x3fd   :  { %v4764_v56 = vsel %vm15180_vm8, 0, %v4659_v60  ;;  %v4409_v9 = vmax.f32 %v4345_v52, 0.0  ;;  %v4410_v21 = vmax.f32 %v4346_v3, 0.0  ;;  %19069 = vst [vmem:[#allocation43_spill] sm:$0xff] %v16685_v59  ;;  %v5960_v6 = vrot.slane %v5958_v62, 4 }
 0x3fe   :  { %v10476_v35 = vcombine.low %v4764_v56, %v4764_v56  ;;  %v10477_v39 = vcombine.high %v4764_v56, %v4764_v56  ;;  %5256 = vst [vmem:[#allocation2 + $0x194] sm:$0x1] %v10478_v2  ;;  %v5951_v55 = vor.u32 %v5950_v22, %v5947_v46  ;;  %v10510_v60 = vrot.slane %v16674_v4, 9 }
 0x3ff   :  { %v4442_v13 = vpack.c.bf16 %v4410_v21, %v4409_v9  ;;  %v5966_v7 = vrot.slane %v5964_v50, 5  ;;  %v6430_v26 = vrot.slane %v16683_v12, 5  ;;  %v6433_v24 = vrot.slane %v16665_v25, 5 }
 0x400   :  { %5254 = vst [vmem:[#allocation2 + $0x18c] sm:$0xf] %v10476_v35  ;;  %5255 = vst [vmem:[#allocation2 + $0x190] sm:$0xf] %v10477_v39  ;;  %v5952_v28 = vrot.slane %v5951_v55, 4  ;;  %v5961_v15 = vor.u32 %v5960_v6, %v5956_v18  ;;  %v5969_v2 = vshrl.u32 %v16478_v23, 16 }
 0x401   :  { %v5972_v52 = vshll.u32 %v16478_v23, 16  ;;  %v4661_v3 = vshrl.u32 %v4442_v13, 16  ;;  %v4664_v56 = vshll.u32 %v4442_v13, 16  ;;  %v6431_v46 = vsel %vm12242_vm2, %v10510_v60, %v6430_v26 }
 0x402   :  { %v6432_v22 = vrot.slane %v6430_v26, 4  ;;  %v5957_v62 = vsel %vm12498_vm5, %v5952_v28, %v5956_v18  ;;  %v5962_v50 = vrot.slane %v5961_v15, 4  ;;  %v5971_v35 = vrot.slane %v5969_v2, 4  ;;  %v16705_v28 = vld [vmem:[#allocation2 + $0x174] sm:$0xf] }
 0x403   :  { %v5974_v39 = vrot.slane %v5972_v52, 5  ;;  %v4663_v9 = vrot.slane %v4661_v3, 7  ;;  %v5978_v21 = vshll.u32 %v16489_v61, 16  ;;  %v5982_v55 = vshrl.u32 %v16489_v61, 16  ;;  %v16707_v15 = vld [vmem:[#allocation2 + $0x178] sm:$0xf] }
 0x404   :  { %v6434_v6 = vsel %vm12242_vm2, %v6432_v22, %v6433_v24  ;;  %v5967_v13 = vsel %vm12498_vm5, %v5962_v50, %v5966_v7  ;;  %v5988_v60 = vshll.u32 %v16497_v14, 16  ;;  %v16713_v3 = vld [vmem:[#allocation2 + $0x17c] sm:$0x1]  ;;  %v16715_v22 = vpop.f32.mrb[16].mxu0  ;;  %v16720_v14 = vcombine.low %v16427_v40, %v16429_v44 }
 0x405   :  { %v16702_v20 = vcombine.low %v6431_v46, %v6434_v6  ;;  %v5975_v26 = vor.u32 %v5974_v39, %v5971_v35  ;;  %v4666_v18 = vor.u32 %v4664_v56, %v4663_v9  ;;  %v4797_v24 = vsel %vm15180_vm8, %v4663_v9, 0  ;;  %v7241_v56 = vpop.f32.mrb[17].mxu0 }
 0x406   :  { %v16711_v2 = vcombine.low %v5957_v62, %v5967_v13  ;;  %v5980_v52 = vrot.slane %v5978_v21, 5  ;;  %v10481_v7 = vcombine.low %v4797_v24, %v4797_v24  ;;  %19072 = vst [vmem:[#allocation38_spill] sm:$0xff] %v16720_v14  ;;  %v5984_v50 = vrot.slane %v5982_v55, 4  ;;  %v16729_v55 = vld [vmem:[#allocation2 + $0x180] sm:$0xf]  ;;  %v16731_v13 = vpop.f32.mrb[18].mxu0 }
 0x407   :  { %19070 = vst [vmem:[#allocation79_spill] sm:$0xff] %v16702_v20  ;;  %11568 = vmatmul.mubr.bf16.gmra.mrb[116].mxu1 %v16702_v20  ;;  %v5976_v46 = vrot.slane %v5975_v26, 4  ;;  %v4765_v35 = vsel %vm15180_vm8, 0, %v4666_v18  ;;  %v5990_v62 = vrot.slane %v5988_v60, 5  ;;  %v10511_v39 = vrot.slane %v16705_v28, 9  ;;  %v7244_v24 = vpop.f32.mrb[19].mxu0 }
 0x408   :  { %19071 = vst [vmem:[#allocation113_spill] sm:$0xff] %v16711_v2  ;;  %7389 = vmatprep.mubr.bf16.mxu0 %v16711_v2  ;;  %v6437_v9 = vrot.slane %v16707_v15, 5  ;;  %v10479_v6 = vcombine.low %v4765_v35, %v4765_v35  ;;  %v10480_v21 = vcombine.high %v4765_v35, %v4765_v35  ;;  %5259 = vst [vmem:[#allocation2 + $0x1a0] sm:$0x1] %v10481_v7  ;;  %v6440_v44 = vrot.slane %v16713_v3, 5 }
 0x409   :  { %7390 = vmatmul.mubr.bf16.gmra.mrb[92].mxu0 %v16720_v14  ;;  %v5985_v40 = vor.u32 %v5984_v50, %v5980_v52  ;;  %v5981_v48 = vsel %vm12498_vm5, %v5976_v46, %v5980_v52  ;;  %v5993_v18 = vshrl.u32 %v16551_v63, 16  ;;  %v5996_v50 = vshll.u32 %v16551_v63, 16  ;;  %v16741_v14 = vld [vmem:[#allocation2 + $0x184] sm:$0xf] }
 0x40a   :  { %v6438_v26 = vsel %vm12242_vm2, %v10511_v39, %v6437_v9  ;;  %v6439_v60 = vrot.slane %v6437_v9, 4  ;;  %5257 = vst [vmem:[#allocation2 + $0x198] sm:$0xf] %v10479_v6  ;;  %5258 = vst [vmem:[#allocation2 + $0x19c] sm:$0xf] %v10480_v21  ;;  %v6002_v56 = vshll.u32 %v16558_v54, 16  ;;  %v16755_v20 = vcombine.low %v16478_v23, %v16489_v61 }
 0x40b   :  { %v5986_v7 = vrot.slane %v5985_v40, 4  ;;  %v6006_v35 = vshrl.u32 %v16558_v54, 16  ;;  %v5995_v46 = vrot.slane %v5993_v18, 4  ;;  %v6012_v39 = vshll.u32 %v16567_v1, 16  ;;  %v16746_v9 = vld [vmem:[#allocation2 + $0x188] sm:$0x1] }
 0x40c   :  { %v6441_v52 = vsel %vm12242_vm2, %v6439_v60, %v6440_v44  ;;  %v10512_v6 = vrot.slane %v16729_v55, 9  ;;  %v5998_v24 = vrot.slane %v5996_v50, 5  ;;  %v6004_v2 = vrot.slane %v6002_v56, 5  ;;  %19074 = vst [vmem:[#allocation82_spill] sm:$0xff] %v16755_v20 }
 0x40d   :  { %v5991_v21 = vsel %vm12498_vm5, %v5986_v7, %v5990_v62  ;;  %v16751_v40 = vcombine.low %v6438_v26, %v6441_v52  ;;  %v6008_v44 = vrot.slane %v6006_v35, 4  ;;  %v6444_v1 = vrot.slane %v16741_v14, 5  ;;  %v16767_v7 = vld [vmem:[#allocation2 + $0x18c] sm:$0xf]  ;;  %v16769_v50 = vpop.f32.mrb[80].mxu1  ;;  %v16771_v56 = vpop.f32.mrb[20].mxu0 }
 0x40e   :  { %v16757_v51 = vcombine.low %v5981_v48, %v5991_v21  ;;  %v5999_v60 = vor.u32 %v5998_v24, %v5995_v46  ;;  %v6014_v18 = vrot.slane %v6012_v39, 5  ;;  %v6447_v5 = vrot.slane %v16746_v9, 5  ;;  %19076 = vst [vmem:[#allocation39_spill] sm:$0xff] %v16769_v50  ;;  %v16776_v21 = vpop.f32.mrb[81].mxu1 }
 0x40f   :  { %19073 = vst [vmem:[#allocation69_spill] sm:$0xff] %v16751_v40  ;;  %11571 = vmatprep.mubr.bf16.mxu1 %v16751_v40  ;;  %v6017_v62 = vshrl.u32 %v16619_v16, 16  ;;  %v6009_v26 = vor.u32 %v6008_v44, %v6004_v2  ;;  %v6445_v23 = vsel %vm12242_vm2, %v10512_v6, %v6444_v1  ;;  %v6446_v61 = vrot.slane %v6444_v1, 4  ;;  %19077 = vst [vmem:[#allocation50_spill] sm:$0xff] %v16776_v21  ;;  %v7249_v6 = vpop.f32.mrb[21].mxu0  ;;  %v16783_v50 = vpop.f32.mrb[82].mxu1 }
 0x410   :  { %19075 = vst [vmem:[#allocation116_spill] sm:$0xff] %v16757_v51  ;;  %7397 = vmatprep.mubr.bf16.mxu0 %v16757_v51  ;;  %v6020_v48 = vshll.u32 %v16619_v16, 16  ;;  %v6000_v35 = vrot.slane %v5999_v60, 4  ;;  %v6026_v46 = vshll.u32 %v16626_v53, 16  ;;  %v6030_v39 = vshrl.u32 %v16626_v53, 16  ;;  %19078 = vst [vmem:[#allocation81_spill] sm:$0xff] %v16783_v50 }
 0x411   :  { %7398 = vmatmul.mubr.bf16.gmra.mrb[96].mxu0 %v16755_v20  ;;  %v6019_v52 = vrot.slane %v6017_v62, 4  ;;  %v6010_v24 = vrot.slane %v6009_v26, 4  ;;  %v6448_v44 = vsel %vm12242_vm2, %v6446_v61, %v6447_v5  ;;  %v6036_v51 = vshll.u32 %v16630_v36, 16  ;;  %v16781_v40 = vld [vmem:[#allocation2 + $0x190] sm:$0xf]  ;;  %v16791_v26 = vpop.f32.mrb[83].mxu1 }
 0x412   :  { %v6022_v1 = vrot.slane %v6020_v48, 5  ;;  %v6005_v60 = vsel %vm12498_vm5, %v6000_v35, %v6004_v2  ;;  %v16787_v62 = vcombine.low %v6445_v23, %v6448_v44  ;;  %v6028_v20 = vrot.slane %v6026_v46, 5  ;;  %v16789_v21 = vld [vmem:[#allocation2 + $0x194] sm:$0x1]  ;;  %19080 = vst [vmem:[#allocation118_spill] sm:$0xff] %v16791_v26  ;;  %v16793_v6 = vpop.f32.mrb[22].mxu0 }
 0x413   :  { %v6032_v59 = vrot.slane %v6030_v39, 4  ;;  %v6015_v36 = vsel %vm12498_vm5, %v6010_v24, %v6014_v18  ;;  %v16799_v5 = vcombine.low %v16551_v63, %v16558_v54  ;;  %v10513_v2 = vrot.slane %v16767_v7, 9  ;;  %v7252_v23 = vpop.f32.mrb[23].mxu0 }
 0x414   :  { %19079 = vst [vmem:[#allocation63_spill] sm:$0xff] %v16787_v62  ;;  %v6023_v61 = vor.u32 %v6022_v1, %v6019_v52  ;;  %v16802_v48 = vcombine.low %v6005_v60, %v6015_v36  ;;  %11572 = vmatmul.mubr.bf16.gmra.mrb[120].mxu1 %v16787_v62  ;;  %v6038_v46 = vrot.slane %v6036_v51, 5  ;;  %v6451_v39 = vrot.slane %v16781_v40, 5  ;;  %v16818_v23 = vld [vmem:[#allocation2 + $0x19c] sm:$0xf] }
 0x415   :  { %19081 = vst [vmem:[#allocation62_spill] sm:$0xff] %v16799_v5  ;;  %v6033_v35 = vor.u32 %v6032_v59, %v6028_v20  ;;  %v6454_v50 = vrot.slane %v16789_v21, 5  ;;  %v6041_v18 = vshrl.u32 %v16674_v4, 16  ;;  %v6044_v63 = vshll.u32 %v16674_v4, 16  ;;  %v16813_v59 = vld [vmem:[#allocation2 + $0x198] sm:$0xf] }
 0x416   :  { %19082 = vst [vmem:[#allocation115_spill] sm:$0xff] %v16802_v48  ;;  %v6024_v44 = vrot.slane %v6023_v61, 4  ;;  %7405 = vmatprep.mubr.bf16.mxu0 %v16802_v48  ;;  %v6452_v52 = vsel %vm12242_vm2, %v10513_v2, %v6451_v39  ;;  %v6453_v24 = vrot.slane %v6451_v39, 4  ;;  %v6050_v1 = vshll.u32 %v16683_v12, 16  ;;  %v16826_v62 = vld [vmem:[#allocation2 + $0x1a0] sm:$0x1] }
 0x417   :  { %v6034_v54 = vrot.slane %v6033_v35, 4  ;;  %v6043_v60 = vrot.slane %v6041_v18, 4  ;;  %v6046_v36 = vrot.slane %v6044_v63, 5  ;;  %v6054_v61 = vshrl.u32 %v16683_v12, 16 }
 0x418   :  { %v6029_v51 = vsel %vm12498_vm5, %v6024_v44, %v6028_v20  ;;  %v6455_v2 = vsel %vm12242_vm2, %v6453_v24, %v6454_v50  ;;  %v6052_v39 = vrot.slane %v6050_v1, 5  ;;  %v6060_v48 = vshll.u32 %v16665_v25, 16 }
 0x419   :  { %7406 = vmatmul.mubr.bf16.gmra.mrb[100].mxu0 %v16799_v5  ;;  %v6039_v35 = vsel %vm12498_vm5, %v6034_v54, %v6038_v46  ;;  %v16830_v44 = vcombine.low %v6452_v52, %v6455_v2  ;;  %v6047_v18 = vor.u32 %v6046_v36, %v6043_v60  ;;  %v6056_v63 = vrot.slane %v6054_v61, 4  ;;  %v16838_v54 = vpop.f32.mrb[24].mxu0  ;;  %v16848_v36 = vld [vmem:[#allocation2] sm:$0xf] }
 0x41a   :  { %v16828_v20 = vcombine.low %v6029_v51, %v6039_v35  ;;  %v16834_v5 = vcombine.low %v16619_v16, %v16626_v53  ;;  %v6062_v26 = vrot.slane %v6060_v48, 5  ;;  %v10611_v46 = vrot.slane %v16813_v59, 9  ;;  %19086 = vst [vmem:[#allocation64_spill] sm:$0xff] %v16838_v54  ;;  %v7257_v51 = vpop.f32.mrb[25].mxu0 }
 0x41b   :  { %19084 = vst [vmem:[#allocation41_spill] sm:$0xff] %v16830_v44  ;;  %v6951_v50 = vrot.slane %v16818_v23, 5  ;;  %11575 = vmatprep.mubr.bf16.mxu1 %v16830_v44  ;;  %v6048_v25 = vrot.slane %v6047_v18, 4  ;;  %v6057_v52 = vor.u32 %v6056_v63, %v6052_v39  ;;  %v6954_v24 = vrot.slane %v16826_v62, 5  ;;  %v16850_v61 = vpop.f32.mrb[26].mxu0 }
 0x41c   :  { %19083 = vst [vmem:[#allocation28_spill] sm:$0xff] %v16828_v20  ;;  %19085 = vst [vmem:[#allocation36_spill] sm:$0xff] %v16834_v5  ;;  %7413 = vmatprep.mubr.bf16.mxu0 %v16828_v20  ;;  %v6065_v1 = vshrl.u32 %v16705_v28, 16  ;;  %v6068_v48 = vshll.u32 %v16705_v28, 16  ;;  %v6074_v60 = vshll.u32 %v16707_v15, 16  ;;  %v6078_v63 = vshrl.u32 %v16707_v15, 16 }
 0x41d   :  { %v6952_v16 = vsel %vm12242_vm2, %v10611_v46, %v6951_v50  ;;  %v6953_v53 = vrot.slane %v6951_v50, 4  ;;  %19087 = vst [vmem:[#allocation46_spill] sm:$0xff] %v16850_v61  ;;  %v6053_v35 = vsel %vm12498_vm5, %v6048_v25, %v6052_v39  ;;  %v6058_v2 = vrot.slane %v6057_v52, 4  ;;  %v7260_v51 = vpop.f32.mrb[27].mxu0  ;;  %v16864_v25 = vld [vmem:[#allocation2 + $0x8] sm:$0x1] }
 0x41e   :  { %v6067_v18 = vrot.slane %v6065_v1, 4  ;;  %v6070_v50 = vrot.slane %v6068_v48, 5  ;;  %v6076_v20 = vrot.slane %v6074_v60, 5  ;;  %v6084_v44 = vshll.u32 %v16713_v3, 16 }
 0x41f   :  { %v6955_v46 = vsel %vm12242_vm2, %v6953_v53, %v6954_v24  ;;  %v6063_v61 = vsel %vm12498_vm5, %v6058_v2, %v6062_v26  ;;  %v6080_v39 = vrot.slane %v6078_v63, 4  ;;  %v5369_v52 = vshrl.u32 %v16848_v36, 16 }
 0x420   :  { %v16862_v54 = vcombine.low %v6952_v16, %v6955_v46  ;;  %v16868_v1 = vcombine.low %v6053_v35, %v6063_v61  ;;  %v6071_v24 = vor.u32 %v6070_v50, %v6067_v18  ;;  %v5372_v53 = vshll.u32 %v16848_v36, 16 }
 0x421   :  { %7414 = vmatmul.mubr.bf16.gmra.mrb[104].mxu0 %v16834_v5  ;;  %v6081_v3 = vor.u32 %v6080_v39, %v6076_v20  ;;  %v5371_v48 = vrot.slane %v5369_v52, 4  ;;  %v5378_v26 = vshll.u32 %v16858_v45, 16  ;;  %v5382_v16 = vshrl.u32 %v16858_v45, 16 }
 0x422   :  { %19088 = vst [vmem:[#allocation68_spill] sm:$0xff] %v16862_v54  ;;  %19089 = vst [vmem:[#allocation117_spill] sm:$0xff] %v16868_v1  ;;  %11576 = vmatmul.mubr.bf16.gmra.mrb[124].mxu1 %v16862_v54  ;;  %7421 = vmatprep.mubr.bf16.mxu0 %v16868_v1  ;;  %v6072_v60 = vrot.slane %v6071_v24, 4  ;;  %v6086_v2 = vrot.slane %v6084_v44, 5  ;;  %v5374_v63 = vrot.slane %v5372_v53, 5  ;;  %v5388_v51 = vshll.u32 %v16864_v25, 16 }
 0x423   :  { %v6082_v61 = vrot.slane %v6081_v3, 4  ;;  %v5380_v35 = vrot.slane %v5378_v26, 5  ;;  %v5384_v18 = vrot.slane %v5382_v16, 4  ;;  %v6089_v46 = vshrl.u32 %v16729_v55, 16  ;;  %v16883_v5 = vpop.f32.mrb[84].mxu1 }
 0x424   :  { %v6077_v50 = vsel %vm12498_vm5, %v6072_v60, %v6076_v20  ;;  %v5375_v39 = vor.u32 %v5374_v63, %v5371_v48  ;;  %v5390_v52 = vrot.slane %v5388_v51, 5  ;;  %v6092_v54 = vshll.u32 %v16729_v55, 16  ;;  %19090 = vst [vmem:[#allocation67_spill] sm:$0xff] %v16883_v5  ;;  %v16890_v48 = vpop.f32.mrb[85].mxu1 }
 0x425   :  { %v6087_v1 = vsel %vm12498_vm5, %v6082_v61, %v6086_v2  ;;  %v5385_v24 = vor.u32 %v5384_v18, %v5380_v35  ;;  %v6091_v44 = vrot.slane %v6089_v46, 4  ;;  %v6098_v53 = vshll.u32 %v16741_v14, 16  ;;  %19092 = vst [vmem:[#allocation122_spill] sm:$0xff] %v16890_v48  ;;  %v16895_v61 = vpop.f32.mrb[86].mxu1  ;;  %v16897_v18 = vpop.f32.mrb[28].mxu0 }
 0x426   :  { %v16887_v3 = vcombine.low %v16674_v4, %v16683_v12  ;;  %v5376_v26 = vrot.slane %v5375_v39, 4  ;;  %v6094_v16 = vrot.slane %v6092_v54, 5  ;;  %v6102_v20 = vshrl.u32 %v16741_v14, 16  ;;  %19094 = vst [vmem:[#allocation110_spill] sm:$0xff] %v16895_v61  ;;  %v16903_v39 = vpop.f32.mrb[87].mxu1 }
 0x427   :  { %v16892_v60 = vcombine.low %v6077_v50, %v6087_v1  ;;  %v5386_v63 = vrot.slane %v5385_v24, 4  ;;  %v6100_v2 = vrot.slane %v6098_v53, 5  ;;  %v6108_v51 = vshll.u32 %v16746_v9, 16  ;;  %19095 = vst [vmem:[#allocation87_spill] sm:$0xff] %v16903_v39  ;;  %v7265_v1 = vpop.f32.mrb[29].mxu0 }
 0x428   :  { %19091 = vst [vmem:[#allocation51_spill] sm:$0xff] %v16887_v3  ;;  %v5381_v4 = vsel %vm12498_vm5, %v5376_v26, %v5380_v35  ;;  %v6095_v12 = vor.u32 %v6094_v16, %v6091_v44  ;;  %v6104_v54 = vrot.slane %v6102_v20, 4  ;;  %v6113_v46 = vshrl.u32 %v16767_v7, 16  ;;  %v16912_v35 = vpop.f32.mrb[30].mxu0 }
 0x429   :  { %19093 = vst [vmem:[#allocation71_spill] sm:$0xff] %v16892_v60  ;;  %7422 = vmatmul.mubr.bf16.gmra.mrb[108].mxu0 %v16887_v3  ;;  %v5391_v9 = vsel %vm12498_vm5, %v5386_v63, %v5390_v52  ;;  %v10514_v50 = vcombine.low %v16848_v36, %v16858_v45  ;;  %v6116_v24 = vshll.u32 %v16767_v7, 16  ;;  %v6122_v53 = vshll.u32 %v16781_v40, 16  ;;  %v7268_v3 = vpop.f32.mrb[31].mxu0  ;;  %v11941_v52 = vld [vmem:[#allocation6 + $0x208] sm:$0xff]  }
 0x42a   :  { %7429 = vmatprep.mubr.bf16.mxu0 %v16892_v60  ;;  %v10546_v44 = vcombine.low %v5381_v4, %v5391_v9  ;;  %v6096_v26 = vrot.slane %v6095_v12, 4  ;;  %v6105_v16 = vor.u32 %v6104_v54, %v6100_v2  ;;  %v6115_v20 = vrot.slane %v6113_v46, 4  ;;  %v19096_v54 = vld [vmem:[#allocation74_spill] sm:$0xff] }
 0x42b   :  { %v6110_v1 = vrot.slane %v6108_v51, 5  ;;  %v6118_v61 = vrot.slane %v6116_v24, 5  ;;  %v6124_v60 = vrot.slane %v6122_v53, 5  ;;  %v6126_v5 = vshrl.u32 %v16781_v40, 16  ;;  %v12040_v24 = vld [vmem:[#allocation6 + $0x200] sm:$0xff]  }
 0x42c   :  { %7927 = vmatprep.mubr.bf16.mxu1 %v10546_v44  ;;  %v6101_v63 = vsel %vm12498_vm5, %v6096_v26, %v6100_v2  ;;  %v6106_v39 = vrot.slane %v6105_v16, 4  ;;  %v6913_v48 = vshrl.u32 %v16813_v59, 16  ;;  %v6916_v41 = vshll.u32 %v16813_v59, 16  ;;  %v11947_v44 = vld [vmem:[#allocation6 + $0x210] sm:$0xff]  }
 0x42d   :  { %7928 = vmatmul.mubr.bf16.vlgmr.msra.gmra.mrb[128].mxu1 %v10514_v50  ;;  %v6119_v4 = vor.u32 %v6118_v61, %v6115_v20  ;;  %v6128_v12 = vrot.slane %v6126_v5, 4  ;;  %v6922_v3 = vshll.u32 %v16818_v23, 16  ;;  %v16922_v51 = vcombine.low %v16705_v28, %v16707_v15 }
 0x42e   :  { %7935 = vmatprep.mubr.bf16.mxu1 %v19096_v54  ;;  %v6111_v46 = vsel %vm12498_vm5, %v6106_v39, %v6110_v1  ;;  %v6132_v2 = vshll.u32 %v16789_v21, 16  ;;  %v6926_v9 = vshrl.u32 %v16818_v23, 16  ;;  %11660 = vmatpush3.bf16.msra.mxu1 %v12040_v24  ;;  %v6915_v61 = vrot.slane %v6913_v48, 4 }
 0x42f   :  { %v16929_v50 = vcombine.low %v6101_v63, %v6111_v46  ;;  %v6129_v5 = vor.u32 %v6128_v12, %v6124_v60  ;;  %v6918_v53 = vrot.slane %v6916_v41, 5  ;;  %11661 = vmatprep.subr.bf16.mxu1 %v11941_v52  ;;  %v6120_v28 = vrot.slane %v6119_v4, 4  ;;  %v11952_v63 = vld [vmem:[#allocation6 + $0x218] sm:$0xff]   ;;  %v19098_v46 = vld [vmem:[#allocation125_spill] sm:$0xff] }
 0x430   :  { %v6924_v15 = vrot.slane %v6922_v3, 5  ;;  %v6928_v26 = vrot.slane %v6926_v9, 4  ;;  %v6134_v21 = vrot.slane %v6132_v2, 5  ;;  %v7271_v16 = vpop.f32.mrb[32].mxu0  ;;  %v19097_v3 = vld [vmem:[#allocation73_spill] sm:$0xff]  ;;  %v6932_v2 = vshll.u32 %v16826_v62, 16 }
 0x431   :  { %7430 = vmatmul.mubr.bf16.gmra.mrb[112].mxu0 %v16922_v51  ;;  %v6130_v39 = vrot.slane %v6129_v5, 4  ;;  %v6919_v20 = vor.u32 %v6918_v53, %v6915_v61  ;;  %v7273_v1 = vpop.f32.mrb[33].mxu0  ;;  %v6125_v41 = vsel %vm12498_vm5, %v6120_v28, %v6124_v60  ;;  %v16949_v5 = vadd.f32 %v16438_v31, %v16483_v29  ;;  %v19110_v28 = vld [vmem:[#allocation43_spill] sm:$0xff] }
 0x432   :  { %7437 = vmatprep.mubr.bf16.mxu0 %v16929_v50  ;;  %11662 = vmatpush3.bf16.msra.mxu1 %v11941_v52  ;;  %v6929_v12 = vor.u32 %v6928_v26, %v6924_v15  ;;  %v7274_v4 = vpop.f32.mrb[34].mxu0  ;;  %v16941_v52 = vcombine.low %v16729_v55, %v16741_v14  ;;  %v16953_v61 = vcombine.low %v16767_v7, %v16781_v40  ;;  %v10482_v14 = vrot.slane %v16848_v36, 9  ;;  %v19119_v1 = vld [vmem:[#allocation118_spill] sm:$0xff] }
 0x433   :  { %11663 = vmatprep.subr.bf16.mxu1 %v11947_v44  ;;  %v6135_v48 = vsel %vm12498_vm5, %v6130_v39, %v6134_v21  ;;  %v7276_v54 = vpop.f32.mrb[35].mxu0  ;;  %v6920_v60 = vrot.slane %v6919_v20, 4  ;;  %v16959_v55 = vadd.f32 %v16447_v37, %v16493_v8  ;;  %v6934_v62 = vrot.slane %v6932_v2, 5  ;;  %v19117_v21 = vld [vmem:[#allocation50_spill] sm:$0xff] }
 0x434   :  { %v16944_v9 = vcombine.low %v6125_v41, %v6135_v48  ;;  %v6930_v24 = vrot.slane %v6929_v12, 4  ;;  %19099 = vst [vmem:[#allocation99_spill] sm:$0xff] %v16953_v61  ;;  %v6234_v53 = vrot.slane %v16858_v45, 5  ;;  %v16964_v31 = vadd.f32 %v16431_v58, %v16518_v47  ;;  %v19121_v41 = vld [vmem:[#allocation39_spill] sm:$0xff]  ;;  %v19123_v12 = vld [vmem:[#allocation81_spill] sm:$0xff]  ;;  %v19126_v2 = vld [vmem:[#allocation94_spill] sm:$0xff] }
 0x435   :  { %7936 = vmatmul.mubr.bf16.gmra.mrb[132].mxu1 %v19097_v3  ;;  %v16968_v29 = vadd.f32 %v16443_v19, %v16535_v17  ;;  %v6925_v40 = vsel %vm12498_vm5, %v6920_v60, %v6924_v15  ;;  %v16976_v37 = vadd.f32 %v16525_v34, %v16580_v42  ;;  %v16980_v8 = vadd.f32 %v16539_v43, %v16593_v30  ;;  %v19102_v42 = vld [vmem:[#allocation76_spill] sm:$0xff]  ;;  %v19127_v60 = vld [vmem:[#allocation55_spill] sm:$0xff] }
 0x436   :  { %7943 = vmatprep.mubr.bf16.mxu1 %v19098_v46  ;;  %11664 = vmatpush3.bf16.msra.mxu1 %v11947_v44  ;;  %v16984_v58 = vadd.f32 %v16516_v0, %v16651_v11  ;;  %v6935_v17 = vsel %vm12498_vm5, %v6930_v24, %v6934_v62  ;;  %v16992_v47 = vadd.f32 %v16533_v32, %v16669_v33  ;;  %v6237_v0 = vrot.slane %v16864_v25, 5  ;;  %v19106_v33 = vld [vmem:[#allocation37_spill] sm:$0xff]  ;;  %v19109_v44 = vld [vmem:[#allocation46_spill] sm:$0xff] }
 0x437   :  { %11665 = vmatprep.subr.bf16.mxu1 %v11952_v63  ;;  %v16996_v34 = vadd.f32 %v16600_v57, %v16715_v22  ;;  %v17000_v43 = vadd.f32 %v16613_v49, %v16731_v13  ;;  %v17008_v45 = vadd.f32 %v16591_v38, %v16771_v56  ;;  %v17012_v32 = vadd.f32 %v16606_v10, %v16793_v6  ;;  %v19105_v57 = vld [vmem:[#allocation64_spill] sm:$0xff]  ;;  %v19114_v10 = vld [vmem:[#allocation26_spill] sm:$0xff] }
 0x438   :  { %v17016_v22 = vadd.f32 %v19106_v33, %v19105_v57  ;;  %v19108_v49 = vld [vmem:[#allocation80_spill] sm:$0xff]  ;;  %v6236_v13 = vrot.slane %v6234_v53, 4  ;;  %v17023_v15 = vadd.f32 %v19110_v28, %v19109_v44  ;;  %v17031_v6 = vadd.f32 %v19114_v10, %v16912_v35  ;;  %v19136_v44 = vld [vmem:[#allocation126_spill] sm:$0xff]  ;;  %v11938_v28 = vld [vmem:[#allocation6 + $0x188] sm:$0xff]  }
 0x439   :  { %7438 = vmatmul.mubr.bf16.gmra.mrb[116].mxu0 %v16941_v52  ;;  %19100 = vst [vmem:[#allocation88_spill] sm:$0xff] %v16996_v34  ;;  %19101 = vst [vmem:[#allocation120_spill] sm:$0xff] %v17000_v43  ;;  %v19112_v38 = vld [vmem:[#allocation48_spill] sm:$0xff]  ;;  %v17033_v26 = vcombine.low %v6925_v40, %v6935_v17  ;;  %v17036_v20 = vadd.f32 %v19117_v21, %v7271_v16  ;;  %v6235_v54 = vsel %vm12242_vm2, %v10482_v14, %v6234_v53  ;;  %v19129_v17 = vld [vmem:[#allocation122_spill] sm:$0xff]  ;;  %v19137_v10 = vmov 0  }
 0x43a   :  { %7445 = vmatprep.mubr.bf16.mxu0 %v16944_v9  ;;  %11666 = vmatpush3.bf16.msra.mxu1 %v11952_v63  ;;  %v16972_v7 = vpop.f32.mrb[88].mxu1  ;;  %19103 = vst [vmem:[#allocation70_spill] sm:$0xff] %v17008_v45  ;;  %19104 = vst [vmem:[#allocation18_spill] sm:$0xff] %v17012_v32  ;;  %v17027_v56 = vadd.f32 %v19112_v38, %v16897_v18  ;;  %v17039_v63 = vadd.f32 %v19119_v1, %v7274_v4  ;;  %v19133_v33 = vld [vmem:[#allocation40_spill] sm:$0xff] }
 0x43b   :  { %v16988_v19 = vpop.f32.mrb[89].mxu1  ;;  %19107 = vst [vmem:[#allocation92_spill] sm:$0xff] %v17016_v22  ;;  %19111 = vst [vmem:[#allocation121_spill] sm:$0xff] %v17023_v15  ;;  %v6238_v16 = vsel %vm12242_vm2, %v6236_v13, %v6237_v0  ;;  %v17057_v24 = vcombine.low %v16813_v59, %v16818_v23  ;;  %v19131_v0 = vld [vmem:[#allocation87_spill] sm:$0xff]  ;;  %v11937_v13 = vld [vmem:[#allocation6 + $0x180] sm:$0xff]  }
 0x43c   :  { %v17004_v30 = vpop.f32.mrb[90].mxu1  ;;  %v7279_v11 = vpop.f32.mrb[36].mxu0  ;;  %19113 = vst [vmem:[#allocation72_spill] sm:$0xff] %v17027_v56  ;;  %19115 = vst [vmem:[#allocation45_spill] sm:$0xff] %v17031_v6  ;;  %v10578_v4 = vcombine.low %v6235_v54, %v6238_v16  ;;  %v11957_v59 = vld [vmem:[#allocation6 + $0x220] sm:$0xff]   ;;  %v19167_v6 = vld [vmem:[#allocation29_spill] sm:$0xff] }
 0x43d   :  { %7944 = vmatmul.mubr.bf16.gmra.mrb[136].mxu1 %v19102_v42  ;;  %v17019_v36 = vpop.f32.mrb[91].mxu1  ;;  %v7281_v25 = vpop.f32.mrb[37].mxu0  ;;  %19116 = vst [vmem:[#allocation91_spill] sm:$0xff] %v17033_v26  ;;  %19118 = vst [vmem:[#allocation119_spill] sm:$0xff] %v17036_v20  ;;  %v17042_v48 = vadd.f32 %v19121_v41, %v7279_v11  ;;  %v19135_v23 = vld [vmem:[#allocation124_spill] sm:$0xff]  ;;  %11667 = vmatprep.subr.bf16.mxu1 %v11957_v59  ;;  %v19159_v20 = vld [vmem:[#allocation66_spill] sm:$0xff] }
 0x43e   :  { %7951 = vmatprep.mubr.bf16.mxu1 %v19108_v49  ;;  %v7282_v39 = vpop.f32.mrb[38].mxu0  ;;  %19120 = vst [vmem:[#allocation23_spill] sm:$0xff] %v17039_v63  ;;  %19128 = vst [vmem:[#allocation125_spill] sm:$0xff] %v17057_v24  ;;  %v19134_v25 = vld [vmem:[#allocation84_spill] sm:$0xff]  ;;  %11668 = vmatpush3.bf16.msra.mxu1 %v11957_v59  ;;  %v11940_v59 = vld [vmem:[#allocation6 + $0x198] sm:$0xff]  }
 0x43f   :  { %19122 = vst [vmem:[#allocation74_spill] sm:$0xff] %v17042_v48  ;;  %v7284_v18 = vpop.f32.mrb[39].mxu0  ;;  %v17046_v3 = vadd.f32 %v19123_v12, %v7282_v39  ;;  %v19138_v12 = vld [vmem:[#allocation67_spill] sm:$0xff]  ;;  %v19140_v16 = vld [vmem:[#allocation56_spill] sm:$0xff]  ;;  %v11954_v15 = vld [vmem:[#allocation6 + $0x1e8] sm:$0xff]  }
 0x441   :  { %7446 = vmatmul.mubr.bf16.gmra.mrb[120].mxu0 %v16953_v61  ;;  %19124 = vst [vmem:[#allocation73_spill] sm:$0xff] %v17046_v3  ;;  %v19157_v3 = vld [vmem:[#allocation42_spill] sm:$0xff] }
 0x442   :  { %7453 = vmatprep.mubr.bf16.mxu0 %v17033_v26 }
 0x445   :  { %7952 = vmatmul.mubr.bf16.gmra.mrb[140].mxu1 %v19126_v2 }
 0x446   :  { %7959 = vmatprep.mubr.bf16.mxu1 %v19127_v60 }
 0x447   :  { %v7287_v62 = vpop.f32.mrb[40].mxu0 }
 0x448   :  { %v7289_v40 = vpop.f32.mrb[41].mxu0  ;;  %v17061_v11 = vadd.f32 %v19129_v17, %v7287_v62 }
 0x449   :  { %7454 = vmatmul.mubr.bf16.gmra.mrb[124].mxu0 %v17057_v24  ;;  %v7290_v14 = vpop.f32.mrb[42].mxu0  ;;  %v19141_v40 = vld [vmem:[#allocation24_spill] sm:$0xff]  ;;  %v11943_v24 = vld [vmem:[#allocation6 + $0x1a8] sm:$0xff]  }
 0x44a   :  { %11595 = vmatprep.mubr.bf16.mxu0 %v10578_v4  ;;  %19130 = vst [vmem:[#allocation76_spill] sm:$0xff] %v17061_v11  ;;  %v7292_v53 = vpop.f32.mrb[43].mxu0  ;;  %v17064_v57 = vadd.f32 %v19131_v0, %v7290_v14  ;;  %v11939_v4 = vld [vmem:[#allocation6 + $0x190] sm:$0xff]   ;;  %v19144_v0 = vld [vmem:[#allocation123_spill] sm:$0xff] }
 0x44b   :  { %v19142_v14 = vld [vmem:[#allocation110_spill] sm:$0xff] }
 0x44c   :  { %19132 = vst [vmem:[#allocation64_spill] sm:$0xff] %v17064_v57 }
 0x44d   :  { %7960 = vmatmul.mubr.bf16.gmra.mrb[144].mxu1 %v19133_v33 }
 0x44e   :  { %7967 = vmatprep.mubr.bf16.mxu1 %v19134_v25 }
 0x450   :  { %v17070_v38 = vpop.f32.mrb[92].mxu1 }
 0x451   :  { %11596 = vmatmul.mubr.bf16.vlgmr.msra.gmra.mrb[128].mxu0 %v19135_v23  ;;  %v17073_v39 = vpop.f32.mrb[93].mxu1  ;;  %v19146_v23 = vld [vmem:[#allocation30_spill] sm:$0xff] }
 0x452   :  { %11599 = vmatprep.mubr.bf16.mxu0 %v19136_v44  ;;  %8759 = vmatpush1.bf16.msra.mxu0 %v11937_v13  ;;  %v17075_v21 = vpop.f32.mrb[94].mxu1  ;;  %v7295_v1 = vpop.f32.mrb[44].mxu0  ;;  %v19145_v13 = vld [vmem:[#allocation78_spill] sm:$0xff] }
 0x453   :  { %8760 = vmatprep.subr.bf16.mxu0 %v19137_v10  ;;  %v17077_v41 = vpop.f32.mrb[95].mxu1  ;;  %v7297_v18 = vpop.f32.mrb[45].mxu0  ;;  %v17080_v54 = vadd.f32 %v19138_v12, %v7295_v1  ;;  %v19147_v1 = vld [vmem:[#allocation85_spill] sm:$0xff] }
 0x454   :  { %v7298_v62 = vpop.f32.mrb[46].mxu0 }
 0x455   :  { %19139 = vst [vmem:[#allocation37_spill] sm:$0xff] %v17080_v54  ;;  %7968 = vmatmul.mubr.bf16.gmra.mrb[148].mxu1 %v19140_v16  ;;  %v7300_v17 = vpop.f32.mrb[47].mxu0  ;;  %v17086_v53 = vadd.f32 %v19142_v14, %v7298_v62  ;;  %v19153_v54 = vld [vmem:[#allocation31_spill] sm:$0xff] }
 0x456   :  { %8761 = vmatpush1.bf16.msra.mxu0 %v11938_v28  ;;  %7975 = vmatprep.mubr.bf16.mxu1 %v19141_v40  ;;  %v11942_v28 = vld [vmem:[#allocation6 + $0x1a0] sm:$0xff]   ;;  %v19149_v17 = vld [vmem:[#allocation93_spill] sm:$0xff] }
 0x457   :  { %8762 = vmatprep.subr.bf16.mxu0 %v19137_v10  ;;  %19143 = vst [vmem:[#allocation80_spill] sm:$0xff] %v17086_v53  ;;  %v19152_v53 = vld [vmem:[#allocation34_spill] sm:$0xff] }
 0x459   :  { %11600 = vmatmul.mubr.bf16.gmra.mrb[132].mxu0 %v19144_v0 }
 0x45a   :  { %11603 = vmatprep.mubr.bf16.mxu0 %v19145_v13  ;;  %8763 = vmatpush1.bf16.msra.mxu0 %v11939_v4  ;;  %v19150_v4 = vld [vmem:[#allocation53_spill] sm:$0xff] }
 0x45b   :  { %8764 = vmatprep.subr.bf16.mxu0 %v19137_v10 }
 0x45d   :  { %7976 = vmatmul.mubr.bf16.gmra.mrb[152].mxu1 %v19146_v23  ;;  %v7303_v18 = vpop.f32.mrb[48].mxu0 }
 0x45e   :  { %8765 = vmatpush1.bf16.msra.mxu0 %v11940_v59  ;;  %7983 = vmatprep.mubr.bf16.mxu1 %v19147_v1  ;;  %v7305_v12 = vpop.f32.mrb[49].mxu0  ;;  %v17095_v62 = vadd.f32 %v16988_v19, %v7303_v18  ;;  %v19154_v19 = vld [vmem:[#allocation57_spill] sm:$0xff] }
 0x45f   :  { %8766 = vmatprep.subr.bf16.mxu0 %v19137_v10  ;;  %v7306_v14 = vpop.f32.mrb[50].mxu0  ;;  %v11944_v12 = vld [vmem:[#allocation6 + $0x1b0] sm:$0xff]  }
 0x460   :  { %19148 = vst [vmem:[#allocation46_spill] sm:$0xff] %v17095_v62  ;;  %v7308_v26 = vpop.f32.mrb[51].mxu0  ;;  %v17100_v59 = vadd.f32 %v17019_v36, %v7306_v14  ;;  %v11945_v36 = vld [vmem:[#allocation6 + $0x1b8] sm:$0xff]  }
 0x461   :  { %11604 = vmatmul.mubr.bf16.gmra.mrb[136].mxu0 %v19149_v17 }
 0x462   :  { %11607 = vmatprep.mubr.bf16.mxu0 %v19150_v4  ;;  %8767 = vmatpush1.bf16.msra.mxu0 %v11942_v28  ;;  %19151 = vst [vmem:[#allocation43_spill] sm:$0xff] %v17100_v59  ;;  %v19155_v28 = vld [vmem:[#allocation59_spill] sm:$0xff]  ;;  %v19171_v4 = vld [vmem:[#allocation44_spill] sm:$0xff] }
 0x463   :  { %8768 = vmatprep.subr.bf16.mxu0 %v19137_v10 }
 0x465   :  { %7984 = vmatmul.mubr.bf16.gmra.mrb[156].mxu1 %v19152_v53 }
 0x466   :  { %8769 = vmatpush1.bf16.msra.mxu0 %v11943_v24  ;;  %7991 = vmatprep.mubr.bf16.mxu1 %v19153_v54 }
 0x467   :  { %8770 = vmatprep.subr.bf16.mxu0 %v19137_v10 }
 0x468   :  { %v17107_v18 = vpop.f32.mrb[96].mxu1 }
 0x469   :  { %11608 = vmatmul.mubr.bf16.gmra.mrb[140].mxu0 %v19154_v19  ;;  %v17110_v26 = vpop.f32.mrb[97].mxu1  ;;  %v7311_v24 = vpop.f32.mrb[52].mxu0  ;;  %v19160_v19 = vld [vmem:[#allocation83_spill] sm:$0xff] }
 0x46a   :  { %11611 = vmatprep.mubr.bf16.mxu0 %v19155_v28  ;;  %8771 = vmatpush1.bf16.msra.mxu0 %v11944_v12  ;;  %v17112_v14 = vpop.f32.mrb[98].mxu1  ;;  %v7313_v62 = vpop.f32.mrb[53].mxu0  ;;  %v17118_v57 = vadd.f32 %v16972_v7, %v7311_v24  ;;  %v11948_v12 = vld [vmem:[#allocation6 + $0x1c0] sm:$0xff]   ;;  %v11958_v28 = vld [vmem:[#allocation6 + $0x228] sm:$0xff]  }
 0x46b   :  { %8772 = vmatprep.subr.bf16.mxu0 %v19137_v10  ;;  %v17115_v59 = vpop.f32.mrb[99].mxu1  ;;  %v7314_v11 = vpop.f32.mrb[54].mxu0  ;;  %11669 = vmatprep.subr.bf16.mxu1 %v11958_v28  ;;  %v19161_v62 = vld [vmem:[#allocation21_spill] sm:$0xff] }
 0x46c   :  { %19156 = vst [vmem:[#allocation48_spill] sm:$0xff] %v17118_v57  ;;  %v7316_v48 = vpop.f32.mrb[55].mxu0  ;;  %v17122_v63 = vadd.f32 %v17004_v30, %v7314_v11  ;;  %v11949_v7 = vld [vmem:[#allocation6 + $0x1c8] sm:$0xff]   ;;  %11670 = vmatpush3.bf16.msra.mxu1 %v11958_v28  ;;  %v11950_v11 = vld [vmem:[#allocation6 + $0x1d0] sm:$0xff]  }
 0x46d   :  { %7992 = vmatmul.mubr.bf16.gmra.mrb[160].mxu1 %v19157_v3  ;;  %v19166_v28 = vld [vmem:[#allocation86_spill] sm:$0xff] }
 0x46e   :  { %8773 = vmatpush1.bf16.msra.mxu0 %v11945_v36  ;;  %19158 = vst [vmem:[#allocation26_spill] sm:$0xff] %v17122_v63  ;;  %7999 = vmatprep.mubr.bf16.mxu1 %v19159_v20  ;;  %v19162_v36 = vld [vmem:[#allocation65_spill] sm:$0xff] }
 0x46f   :  { %8774 = vmatprep.subr.bf16.mxu0 %v19137_v10  ;;  %v19164_v63 = vld [vmem:[#allocation13_spill] sm:$0xff] }
 0x471   :  { %11612 = vmatmul.mubr.bf16.gmra.mrb[144].mxu0 %v19160_v19 }
 0x472   :  { %11615 = vmatprep.mubr.bf16.mxu0 %v19161_v62  ;;  %8775 = vmatpush1.bf16.msra.mxu0 %v11948_v12  ;;  %v17135_v62 = vld [vmem:[#allocation2 + $0xdc] sm:$0xf] }
 0x473   :  { %8776 = vmatprep.subr.bf16.mxu0 %v19137_v10 }
 0x474   :  { %v7319_v48 = vpop.f32.mrb[56].mxu0 }
 0x475   :  { %8000 = vmatmul.mubr.bf16.gmra.mrb[164].mxu1 %v19162_v36  ;;  %v7321_v30 = vpop.f32.mrb[57].mxu0  ;;  %v17131_v24 = vadd.f32 %v17073_v39, %v7319_v48  ;;  %v6346_v39 = vrot.slane %v17135_v62, 5  ;;  %v17144_v48 = vld [vmem:[#allocation2 + $0xd8] sm:$0xf] }
 0x476   :  { %8777 = vmatpush1.bf16.msra.mxu0 %v11949_v7  ;;  %8007 = vmatprep.mubr.bf16.mxu1 %v19164_v63  ;;  %v7322_v57 = vpop.f32.mrb[58].mxu0  ;;  %v11951_v7 = vld [vmem:[#allocation6 + $0x1d8] sm:$0xff]   ;;  %v17146_v30 = vld [vmem:[#allocation2 + $0xe0] sm:$0x1] }
 0x477   :  { %19163 = vst [vmem:[#allocation50_spill] sm:$0xff] %v17131_v24  ;;  %8778 = vmatprep.subr.bf16.mxu0 %v19137_v10  ;;  %v7324_v12 = vpop.f32.mrb[59].mxu0  ;;  %v17138_v19 = vadd.f32 %v17077_v41, %v7322_v57  ;;  %v19168_v24 = vld [vmem:[#allocation47_spill] sm:$0xff]  ;;  %v19169_v57 = vld [vmem:[#allocation90_spill] sm:$0xff]  ;;  %v10498_v41 = vrot.slane %v17144_v48, 9 }
 0x478   :  { %v11953_v12 = vld [vmem:[#allocation6 + $0x1e0] sm:$0xff]  }
 0x479   :  { %19165 = vst [vmem:[#allocation118_spill] sm:$0xff] %v17138_v19  ;;  %11616 = vmatmul.mubr.bf16.gmra.mrb[148].mxu0 %v19166_v28  ;;  %v6348_v19 = vrot.slane %v6346_v39, 4  ;;  %v19170_v28 = vld [vmem:[#allocation61_spill] sm:$0xff]  ;;  %v6347_v22 = vsel %vm12242_vm2, %v10498_v41, %v6346_v39  ;;  %v11955_v39 = vld [vmem:[#allocation6 + $0x1f0] sm:$0xff]   ;;  %v19175_v41 = vld [vmem:[#allocation96_spill] sm:$0xff] }
 0x47a   :  { %11619 = vmatprep.mubr.bf16.mxu0 %v19167_v6  ;;  %8779 = vmatpush1.bf16.msra.mxu0 %v11950_v11  ;;  %v6349_v11 = vrot.slane %v17146_v30, 5 }
 0x47b   :  { %8780 = vmatprep.subr.bf16.mxu0 %v19137_v10 }
 0x47c   :  { %v6350_v13 = vsel %vm12242_vm2, %v6348_v19, %v6349_v11  ;;  %v19177_v19 = vld [vmem:[#allocation54_spill] sm:$0xff] }
 0x47d   :  { %8008 = vmatmul.mubr.bf16.gmra.mrb[168].mxu1 %v19168_v24  ;;  %v10594_v61 = vcombine.low %v6347_v22, %v6350_v13 }
 0x47e   :  { %8781 = vmatpush1.bf16.msra.mxu0 %v11951_v7  ;;  %8015 = vmatprep.mubr.bf16.mxu1 %v19169_v57  ;;  %v17153_v6 = vpop.f32.mrb[100].mxu1 }
 0x47f   :  { %8782 = vmatprep.subr.bf16.mxu0 %v19137_v10  ;;  %v17156_v56 = vpop.f32.mrb[101].mxu1 }
 0x480   :  { %v17159_v17 = vpop.f32.mrb[102].mxu1  ;;  %v7327_v7 = vpop.f32.mrb[60].mxu0 }
 0x481   :  { %11620 = vmatmul.mubr.bf16.gmra.mrb[152].mxu0 %v19170_v28  ;;  %v17165_v0 = vpop.f32.mrb[103].mxu1  ;;  %v7329_v32 = vpop.f32.mrb[61].mxu0  ;;  %v17169_v28 = vadd.f32 %v17070_v38, %v7327_v7  ;;  %v11956_v38 = vld [vmem:[#allocation6 + $0x1f8] sm:$0xff]   ;;  %v5756_v7 = vshll.u32 %v17144_v48, 16 }
 0x482   :  { %11623 = vmatprep.mubr.bf16.mxu0 %v19171_v4  ;;  %8783 = vmatpush1.bf16.msra.mxu0 %v11953_v12  ;;  %v7330_v4 = vpop.f32.mrb[62].mxu0  ;;  %v19174_v12 = vld [vmem:[#allocation89_spill] sm:$0xff]  ;;  %v19176_v32 = vld [vmem:[#allocation15_spill] sm:$0xff] }
 0x483   :  { %8784 = vmatprep.subr.bf16.mxu0 %v19137_v10  ;;  %19172 = vst [vmem:[#allocation39_spill] sm:$0xff] %v17169_v28  ;;  %v7332_v45 = vpop.f32.mrb[63].mxu0  ;;  %v17172_v44 = vadd.f32 %v17075_v21, %v7330_v4  ;;  %v5753_v4 = vshrl.u32 %v17144_v48, 16 }
 0x485   :  { %19173 = vst [vmem:[#allocation81_spill] sm:$0xff] %v17172_v44  ;;  %8016 = vmatmul.mubr.bf16.gmra.mrb[172].mxu1 %v19174_v12  ;;  %v19181_v44 = vld [vmem:[#allocation108_spill] sm:$0xff] }
 0x486   :  { %8785 = vmatpush1.bf16.msra.mxu0 %v11954_v15  ;;  %8023 = vmatprep.mubr.bf16.mxu1 %v19175_v41  ;;  %v19179_v15 = vld [vmem:[#allocation98_spill] sm:$0xff] }
 0x487   :  { %8786 = vmatprep.subr.bf16.mxu0 %v19137_v10 }
 0x489   :  { %11624 = vmatmul.mubr.bf16.gmra.mrb[156].mxu0 %v19176_v32 }
 0x48a   :  { %11627 = vmatprep.mubr.bf16.mxu0 %v10594_v61  ;;  %8787 = vmatpush1.bf16.msra.mxu0 %v11955_v39  ;;  %v5766_v39 = vshrl.u32 %v17135_v62, 16 }
 0x48b   :  { %8788 = vmatprep.subr.bf16.mxu0 %v19137_v10  ;;  %v5762_v10 = vshll.u32 %v17135_v62, 16 }
 0x48c   :  { %v7335_v45 = vpop.f32.mrb[64].mxu0  ;;  %v5768_v28 = vrot.slane %v5766_v39, 4 }
 0x48d   :  { %8024 = vmatmul.mubr.bf16.gmra.mrb[176].mxu1 %v19177_v19  ;;  %v17181_v21 = vadd.f32 %v17110_v26, %v7335_v45  ;;  %v7337_v22 = vpop.f32.mrb[65].mxu0  ;;  %v19182_v26 = vld [vmem:[#allocation101_spill] sm:$0xff]  ;;  %v5755_v45 = vrot.slane %v5753_v4, 4 }
 0x48e   :  { %8789 = vmatpush1.bf16.msra.mxu0 %v11956_v38  ;;  %8031 = vmatprep.mubr.bf16.mxu1 %v19179_v15  ;;  %v7338_v13 = vpop.f32.mrb[66].mxu0  ;;  %v11959_v38 = vld [vmem:[#allocation6 + $0x230] sm:$0xff]   ;;  %v5758_v22 = vrot.slane %v5756_v7, 5  ;;  %v19185_v4 = vld [vmem:[#allocation105_spill] sm:$0xff] }
 0x48f   :  { %19178 = vst [vmem:[#allocation94_spill] sm:$0xff] %v17181_v21  ;;  %v17186_v11 = vadd.f32 %v17115_v59, %v7338_v13  ;;  %v7340_v61 = vpop.f32.mrb[67].mxu0  ;;  %v5764_v21 = vrot.slane %v5762_v10, 5  ;;  %11671 = vmatprep.subr.bf16.mxu1 %v11959_v38  ;;  %v19183_v59 = vld [vmem:[#allocation97_spill] sm:$0xff] }
 0x490   :  { %11672 = vmatpush3.bf16.msra.mxu1 %v11959_v38  ;;  %v19184_v61 = vld [vmem:[#allocation102_spill] sm:$0xff]  ;;  %v5759_v32 = vor.u32 %v5758_v22, %v5755_v45  ;;  %v19187_v38 = vld [vmem:[#allocation107_spill] sm:$0xff]  ;;  %v19189_v22 = vld [vmem:[#allocation100_spill] sm:$0xff] }
 0x491   :  { %19180 = vst [vmem:[#allocation55_spill] sm:$0xff] %v17186_v11  ;;  %11628 = vmatmul.mubr.bf16.gmra.mrb[160].mxu0 %v19181_v44  ;;  %v5769_v44 = vor.u32 %v5768_v28, %v5764_v21 }
 0x492   :  { %11631 = vmatprep.mubr.bf16.mxu0 %v19182_v26  ;;  %v5772_v26 = vshll.u32 %v17146_v30, 16  ;;  %v5760_v34 = vrot.slane %v5759_v32, 4  ;;  %v19190_v30 = vld [vmem:[#allocation104_spill] sm:$0xff] }
 0x493   :  { %v5770_v45 = vrot.slane %v5769_v44, 4  ;;  %v19194_v44 = vld [vmem:[#allocation103_spill] sm:$0xff] }
 0x494   :  { %v17194_v13 = vpop.f32.mrb[104].mxu1  ;;  %v5774_v28 = vrot.slane %v5772_v26, 5 }
 0x495   :  { %8032 = vmatmul.mubr.bf16.gmra.mrb[180].mxu1 %v19183_v59  ;;  %v7656_v11 = vpop.f32.mrb[105].mxu1 }
 0x496   :  { %8039 = vmatprep.mubr.bf16.mxu1 %v19184_v61  ;;  %v17197_v35 = vpop.f32.mrb[106].mxu1  ;;  %v7343_v43 = vpop.f32.mrb[68].mxu0 }
 0x497   :  { %v7659_v7 = vpop.f32.mrb[107].mxu1  ;;  %v17202_v10 = vadd.f32 %v17107_v18, %v7343_v43  ;;  %v7345_v39 = vpop.f32.mrb[69].mxu0  ;;  %v5775_v43 = vsel %vm12498_vm5, %v5770_v45, %v5774_v28  ;;  %v19191_v18 = vld [vmem:[#allocation20_spill] sm:$0xff]  ;;  %v10530_v45 = vcombine.low %v17144_v48, %v17135_v62  ;;  %v19197_v28 = vld [vmem:[#allocation114_spill] sm:$0xff] }
 0x498   :  { %v7346_v59 = vpop.f32.mrb[70].mxu0  ;;  %v19192_v39 = vld [vmem:[#allocation16_spill] sm:$0xff] }
 0x499   :  { %11632 = vmatmul.mubr.bf16.gmra.mrb[164].mxu0 %v19185_v4  ;;  %19186 = vst [vmem:[#allocation122_spill] sm:$0xff] %v17202_v10  ;;  %v17206_v61 = vadd.f32 %v17112_v14, %v7346_v59  ;;  %v7348_v15 = vpop.f32.mrb[71].mxu0  ;;  %v5765_v4 = vsel %vm12498_vm5, %v5760_v34, %v5764_v21  ;;  %v19196_v21 = vld [vmem:[#allocation27_spill] sm:$0xff]  ;;  %v19200_v48 = vld [vmem:[#allocation52_spill] sm:$0xff] }
 0x49a   :  { %11635 = vmatprep.mubr.bf16.mxu0 %v19187_v38  ;;  %v10562_v14 = vcombine.low %v5765_v4, %v5775_v43  ;;  %v11960_v4 = vld [vmem:[#allocation6 + $0x238] sm:$0xff]  }
 0x49b   :  { %19188 = vst [vmem:[#allocation87_spill] sm:$0xff] %v17206_v61  ;;  %11673 = vmatprep.subr.bf16.mxu1 %v11960_v4  ;;  %v19202_v10 = vld [vmem:[#allocation75_spill] sm:$0xff] }
 0x49c   :  { %11674 = vmatpush3.bf16.msra.mxu1 %v11960_v4  ;;  %v19204_v4 = vld [vmem:[#allocation14_spill] sm:$0xff] }
 0x49d   :  { %8040 = vmatmul.mubr.bf16.gmra.mrb[184].mxu1 %v19189_v22 }
 0x49e   :  { %8047 = vmatprep.mubr.bf16.mxu1 %v19190_v30 }
 0x4a1   :  { %11636 = vmatmul.mubr.bf16.gmra.mrb[168].mxu0 %v19191_v18 }
 0x4a2   :  { %11639 = vmatprep.mubr.bf16.mxu0 %v19192_v39  ;;  %v7351_v59 = vpop.f32.mrb[72].mxu0 }
 0x4a3   :  { %v17217_v32 = vadd.f32 %v17156_v56, %v7351_v59  ;;  %v7353_v15 = vpop.f32.mrb[73].mxu0 }
 0x4a4   :  { %v7354_v26 = vpop.f32.mrb[74].mxu0  ;;  %v19198_v15 = vld [vmem:[#allocation58_spill] sm:$0xff] }
 0x4a5   :  { %19193 = vst [vmem:[#allocation40_spill] sm:$0xff] %v17217_v32  ;;  %8048 = vmatmul.mubr.bf16.gmra.mrb[188].mxu1 %v19194_v44  ;;  %v17221_v61 = vadd.f32 %v17165_v0, %v7354_v26  ;;  %v7356_v34 = vpop.f32.mrb[75].mxu0 }
 0x4a6   :  { %8055 = vmatprep.mubr.bf16.mxu1 %v10562_v14 }
 0x4a7   :  { %19195 = vst [vmem:[#allocation84_spill] sm:$0xff] %v17221_v61 }
 0x4a9   :  { %11640 = vmatmul.mubr.bf16.gmra.mrb[172].mxu0 %v19196_v21  ;;  %v19206_v21 = vld [vmem:[#allocation79_spill] sm:$0xff] }
 0x4aa   :  { %11643 = vmatprep.mubr.bf16.mxu0 %v19197_v28  ;;  %v17227_v43 = vpop.f32.mrb[108].mxu1  ;;  %v19205_v28 = vld [vmem:[#allocation49_spill] sm:$0xff] }
 0x4ab   :  { %v7672_v56 = vpop.f32.mrb[109].mxu1 }
 0x4ac   :  { %v17229_v59 = vpop.f32.mrb[110].mxu1 }
 0x4ad   :  { %8056 = vmatmul.mubr.bf16.gmra.mrb[192].mxu1 %v10530_v45  ;;  %v7359_v0 = vpop.f32.mrb[76].mxu0  ;;  %v7675_v14 = vpop.f32.mrb[111].mxu1  ;;  %v19203_v45 = vld [vmem:[#allocation22_spill] sm:$0xff] }
 0x4ae   :  { %8063 = vmatprep.mubr.bf16.mxu1 %v19198_v15  ;;  %v17233_v26 = vadd.f32 %v17153_v6, %v7359_v0  ;;  %v7361_v34 = vpop.f32.mrb[77].mxu0 }
 0x4af   :  { %v7362_v62 = vpop.f32.mrb[78].mxu0 }
 0x4b0   :  { %19199 = vst [vmem:[#allocation124_spill] sm:$0xff] %v17233_v26  ;;  %v17237_v61 = vadd.f32 %v17159_v17, %v7362_v62  ;;  %v7364_v32 = vpop.f32.mrb[79].mxu0  ;;  %v19209_v62 = vld [vmem:[#allocation109_spill] sm:$0xff] }
 0x4b1   :  { %11644 = vmatmul.mubr.bf16.gmra.mrb[176].mxu0 %v19200_v48  ;;  %v19210_v32 = vld [vmem:[#allocation25_spill] sm:$0xff] }
 0x4b2   :  { %19201 = vst [vmem:[#allocation67_spill] sm:$0xff] %v17237_v61  ;;  %11647 = vmatprep.mubr.bf16.mxu0 %v19202_v10  ;;  %v19211_v61 = vld [vmem:[#allocation69_spill] sm:$0xff] }
 0x4b5   :  { %8064 = vmatmul.mubr.bf16.gmra.mrb[196].mxu1 %v19203_v45  ;;  %v19212_v45 = vld [vmem:[#allocation63_spill] sm:$0xff] }
 0x4b6   :  { %8071 = vmatprep.mubr.bf16.mxu1 %v19204_v4 }
 0x4b8   :  { %v7367_v15 = vpop.f32.mrb[80].mxu0 }
 0x4b9   :  { %11648 = vmatmul.mubr.bf16.gmra.mrb[180].mxu0 %v19205_v28  ;;  %v17244_v6 = vadd.f32 %v7656_v11, %v7367_v15  ;;  %v7369_v0 = vpop.f32.mrb[81].mxu0 }
 0x4ba   :  { %11651 = vmatprep.mubr.bf16.mxu0 %v19206_v21  ;;  %v7370_v34 = vpop.f32.mrb[82].mxu0  ;;  %v19213_v21 = vld [vmem:[#allocation32_spill] sm:$0xff] }
 0x4bb   :  { %19207 = vst [vmem:[#allocation56_spill] sm:$0xff] %v17244_v6  ;;  %v17246_v26 = vadd.f32 %v7659_v7, %v7370_v34  ;;  %v7372_v17 = vpop.f32.mrb[83].mxu0  ;;  %v19215_v0 = vld [vmem:[#allocation112_spill] sm:$0xff]  ;;  %v19217_v6 = vld [vmem:[#allocation41_spill] sm:$0xff] }
 0x4bd   :  { %19208 = vst [vmem:[#allocation24_spill] sm:$0xff] %v17246_v26  ;;  %8072 = vmatmul.mubr.bf16.gmra.mrb[200].mxu1 %v19209_v62 }
 0x4be   :  { %8079 = vmatprep.mubr.bf16.mxu1 %v19210_v32 }
 0x4c1   :  { %11652 = vmatmul.mubr.bf16.gmra.mrb[184].mxu0 %v19211_v61  ;;  %v19219_v61 = vld [vmem:[#allocation33_spill] sm:$0xff] }
 0x4c2   :  { %11655 = vmatprep.mubr.bf16.mxu0 %v19212_v45  ;;  %v19218_v45 = vld [vmem:[#allocation17_spill] sm:$0xff] }
 0x4c3   :  { %v11565_v10 = vpop.f32.mrb[112].mxu1 }
 0x4c4   :  { %v7688_v28 = vpop.f32.mrb[113].mxu1  ;;  %v7375_v39 = vpop.f32.mrb[84].mxu0 }
 0x4c5   :  { %v11566_v48 = vpop.f32.mrb[114].mxu1  ;;  %8080 = vmatmul.mubr.bf16.gmra.mrb[204].mxu1 %v19213_v21  ;;  %v17254_v15 = vadd.f32 %v17194_v13, %v7375_v39  ;;  %v7377_v7 = vpop.f32.mrb[85].mxu0 }
 0x4c6   :  { %v7691_v11 = vpop.f32.mrb[115].mxu1  ;;  %8087 = vmatprep.mubr.bf16.mxu1 %v19215_v0  ;;  %v7378_v34 = vpop.f32.mrb[86].mxu0  ;;  %v19222_v7 = vld [vmem:[#allocation127_spill] sm:$0xff] }
 0x4c7   :  { %19214 = vst [vmem:[#allocation110_spill] sm:$0xff] %v17254_v15  ;;  %v17258_v17 = vadd.f32 %v17197_v35, %v7378_v34  ;;  %v7380_v26 = vpop.f32.mrb[87].mxu0  ;;  %v19223_v34 = vld [vmem:[#allocation35_spill] sm:$0xff] }
 0x4c9   :  { %19216 = vst [vmem:[#allocation30_spill] sm:$0xff] %v17258_v17  ;;  %11656 = vmatmul.mubr.bf16.gmra.mrb[188].mxu0 %v19217_v6 }
 0x4ca   :  { %8790 = vmatprep.mubr.bf16.mxu0 %v19098_v46 }
 0x4cd   :  { %8088 = vmatmul.mubr.bf16.gmra.mrb[208].mxu1 %v19218_v45 }
 0x4ce   :  { %8095 = vmatprep.mubr.bf16.mxu1 %v19219_v61 }
 0x4cf   :  { %v7383_v18 = vpop.f32.mrb[88].mxu0 }
 0x4d0   :  { %v17264_v38 = vadd.f32 %v7672_v56, %v7383_v18  ;;  %v7385_v13 = vpop.f32.mrb[89].mxu0 }
 0x4d1   :  { %8791 = vmatmul.mubr.bf16.vlgmr.msra.gmra.mrb[192].mxu0 %v19102_v42  ;;  %v7386_v39 = vpop.f32.mrb[90].mxu0 }
 0x4d2   :  { %19220 = vst [vmem:[#allocation85_spill] sm:$0xff] %v17264_v38  ;;  %8798 = vmatprep.mubr.bf16.mxu0 %v19108_v49  ;;  %v17268_v35 = vadd.f32 %v7675_v14, %v7386_v39  ;;  %v7388_v26 = vpop.f32.mrb[91].mxu0  ;;  %v19225_v14 = vld [vmem:[#allocation111_spill] sm:$0xff] }
 0x4d3   :  { %v19226_v26 = vld [vmem:[#allocation60_spill] sm:$0xff] }
 0x4d4   :  { %19221 = vst [vmem:[#allocation34_spill] sm:$0xff] %v17268_v35 }
 0x4d5   :  { %8096 = vmatmul.mubr.bf16.gmra.mrb[212].mxu1 %v19222_v7 }
 0x4d6   :  { %8103 = vmatprep.mubr.bf16.mxu1 %v19223_v34 }
 0x4d9   :  { %8799 = vmatmul.mubr.bf16.gmra.mrb[196].mxu0 %v19126_v2 }
 0x4da   :  { %v11569_v46 = vpop.f32.mrb[116].mxu1  ;;  %8806 = vmatprep.mubr.bf16.mxu0 %v19127_v60 }
 0x4db   :  { %v7704_v18 = vpop.f32.mrb[117].mxu1 }
 0x4dc   :  { %v11570_v56 = vpop.f32.mrb[118].mxu1  ;;  %v7391_v13 = vpop.f32.mrb[92].mxu0 }
 0x4dd   :  { %v7707_v38 = vpop.f32.mrb[119].mxu1  ;;  %v17275_v42 = vadd.f32 %v17227_v43, %v7391_v13  ;;  %v7393_v49 = vpop.f32.mrb[93].mxu0  ;;  %8104 = vmatmul.mubr.bf16.gmra.mrb[216].mxu1 %v19225_v14  ;;  %v19229_v43 = vld [vmem:[#allocation77_spill] sm:$0xff] }
 0x4de   :  { %v7394_v39 = vpop.f32.mrb[94].mxu0  ;;  %8111 = vmatprep.mubr.bf16.mxu1 %v19226_v26  ;;  %v19230_v49 = vld [vmem:[#allocation113_spill] sm:$0xff] }
 0x4df   :  { %19224 = vst [vmem:[#allocation31_spill] sm:$0xff] %v17275_v42  ;;  %v17280_v35 = vadd.f32 %v17229_v59, %v7394_v39  ;;  %v7396_v2 = vpop.f32.mrb[95].mxu0 }
 0x4e0   :  { %v19233_v2 = vld [vmem:[#allocation38_spill] sm:$0xff] }
 0x4e1   :  { %19227 = vst [vmem:[#allocation42_spill] sm:$0xff] %v17280_v35  ;;  %8807 = vmatmul.mubr.bf16.gmra.mrb[200].mxu0 %v19133_v33 }
 0x4e2   :  { %8814 = vmatprep.mubr.bf16.mxu0 %v19134_v25 }
 0x4e4   :  { %v7399_v60 = vpop.f32.mrb[96].mxu0 }
 0x4e5   :  { %v17284_v17 = vadd.f32 %v7688_v28, %v7399_v60  ;;  %v7401_v15 = vpop.f32.mrb[97].mxu0  ;;  %8112 = vmatmul.mubr.bf16.gmra.mrb[220].mxu1 %v19229_v43 }
 0x4e6   :  { %v7402_v13 = vpop.f32.mrb[98].mxu0  ;;  %8119 = vmatprep.mubr.bf16.mxu1 %v19230_v49 }
 0x4e7   :  { %19228 = vst [vmem:[#allocation66_spill] sm:$0xff] %v17284_v17  ;;  %v17288_v42 = vadd.f32 %v7691_v11, %v7402_v13  ;;  %v7404_v6 = vpop.f32.mrb[99].mxu0  ;;  %v17290_v26 = vpop.f32.mrb[120].mxu1  ;;  %v19234_v11 = vld [vmem:[#allocation116_spill] sm:$0xff] }
 0x4e8   :  { %v7720_v59 = vpop.f32.mrb[121].mxu1 }
 0x4e9   :  { %19231 = vst [vmem:[#allocation65_spill] sm:$0xff] %v17288_v42  ;;  %8815 = vmatmul.mubr.bf16.gmra.mrb[204].mxu0 %v19140_v16  ;;  %v17293_v33 = vpop.f32.mrb[122].mxu1 }
 0x4ea   :  { %8822 = vmatprep.mubr.bf16.mxu0 %v19141_v40  ;;  %v7723_v25 = vpop.f32.mrb[123].mxu1 }
 0x4ec   :  { %v7407_v28 = vpop.f32.mrb[100].mxu0 }
 0x4ed   :  { %v17296_v15 = vadd.f32 %v11565_v10, %v7407_v28  ;;  %v7409_v39 = vpop.f32.mrb[101].mxu0  ;;  %8120 = vmatmul.mubr.bf16.gmra.mrb[224].mxu1 %v19233_v2  ;;  %v19237_v10 = vld [vmem:[#allocation82_spill] sm:$0xff] }
 0x4ee   :  { %v7410_v60 = vpop.f32.mrb[102].mxu0  ;;  %8127 = vmatprep.mubr.bf16.mxu1 %v19234_v11  ;;  %v19365_v27 = vld [vmem:[#allocation66_spill] sm:$0xff] }
 0x4ef   :  { %19232 = vst [vmem:[#allocation13_spill] sm:$0xff] %v17296_v15  ;;  %v17300_v6 = vadd.f32 %v11566_v48, %v7410_v60  ;;  %v7412_v13 = vpop.f32.mrb[103].mxu0  ;;  %v19238_v15 = vld [vmem:[#allocation115_spill] sm:$0xff] }
 0x4f1   :  { %19235 = vst [vmem:[#allocation47_spill] sm:$0xff] %v17300_v6  ;;  %8823 = vmatmul.mubr.bf16.gmra.mrb[208].mxu0 %v19146_v23 }
 0x4f2   :  { %8830 = vmatprep.mubr.bf16.mxu0 %v19147_v1 }
 0x4f4   :  { %v7415_v16 = vpop.f32.mrb[104].mxu0 }
 0x4f5   :  { %v17304_v42 = vadd.f32 %v7704_v18, %v7415_v16  ;;  %v7417_v40 = vpop.f32.mrb[105].mxu0  ;;  %v17306_v17 = vpop.f32.mrb[124].mxu1  ;;  %8128 = vmatmul.mubr.bf16.gmra.mrb[228].mxu1 %v19237_v10  ;;  %v19240_v16 = vld [vmem:[#allocation62_spill] sm:$0xff] }
 0x4f6   :  { %v7418_v28 = vpop.f32.mrb[106].mxu0  ;;  %v7736_v39 = vpop.f32.mrb[125].mxu1  ;;  %8135 = vmatprep.mubr.bf16.mxu1 %v19238_v15 }
 0x4f7   :  { %19236 = vst [vmem:[#allocation90_spill] sm:$0xff] %v17304_v42  ;;  %v17310_v35 = vadd.f32 %v7707_v38, %v7418_v28  ;;  %v7420_v48 = vpop.f32.mrb[107].mxu0  ;;  %v17312_v60 = vpop.f32.mrb[126].mxu1  ;;  %v19241_v42 = vld [vmem:[#allocation28_spill] sm:$0xff] }
 0x4f8   :  { %v7739_v23 = vpop.f32.mrb[127].mxu1 }
 0x4f9   :  { %8831 = vmatmul.mubr.bf16.gmra.mrb[212].mxu0 %v19152_v53 }
 0x4fa   :  { %8838 = vmatprep.mubr.bf16.mxu0 %v19153_v54 }
 0x4fc   :  { %v7423_v1 = vpop.f32.mrb[108].mxu0 }
 0x4fd   :  { %v17316_v18 = vadd.f32 %v11569_v46, %v7423_v1  ;;  %v7425_v13 = vpop.f32.mrb[109].mxu0  ;;  %8136 = vmatmul.mubr.bf16.gmra.mrb[232].mxu1 %v19240_v16 }
 0x4fe   :  { %v7426_v40 = vpop.f32.mrb[110].mxu0  ;;  %8143 = vmatprep.mubr.bf16.mxu1 %v19241_v42 }
 0x4ff   :  { %19239 = vst [vmem:[#allocation89_spill] sm:$0xff] %v17316_v18  ;;  %v17320_v6 = vadd.f32 %v11570_v56, %v7426_v40  ;;  %v7428_v38 = vpop.f32.mrb[111].mxu0  ;;  %v19243_v40 = vld [vmem:[#allocation36_spill] sm:$0xff] }
 0x500   :  { %v7929_v28 = vpop.f32.mrb[128].mxu1 }
 0x501   :  { %19242 = vst [vmem:[#allocation96_spill] sm:$0xff] %v17320_v6  ;;  %8839 = vmatmul.mubr.bf16.gmra.mrb[216].mxu0 %v19157_v3  ;;  %v17324_v48 = vadd.f32 %v7929_v28, %v16949_v5  ;;  %v7931_v53 = vpop.f32.mrb[129].mxu1  ;;  %v19244_v6 = vld [vmem:[#allocation117_spill] sm:$0xff] }
 0x502   :  { %8846 = vmatprep.mubr.bf16.mxu0 %v19159_v20  ;;  %v7932_v54 = vpop.f32.mrb[130].mxu1 }
 0x503   :  { %v17328_v46 = vadd.f32 %v7932_v54, %v16959_v55  ;;  %v7934_v13 = vpop.f32.mrb[131].mxu1 }
 0x504   :  { %v7431_v1 = vpop.f32.mrb[112].mxu0 }
 0x505   :  { %v17330_v18 = vadd.f32 %v7720_v59, %v7431_v1  ;;  %v7433_v56 = vpop.f32.mrb[113].mxu0  ;;  %8144 = vmatmul.mubr.bf16.gmra.mrb[236].mxu1 %v19243_v40 }
 0x506   :  { %v7434_v38 = vpop.f32.mrb[114].mxu0  ;;  %8151 = vmatprep.mubr.bf16.mxu1 %v19244_v6 }
 0x507   :  { %v17334_v3 = vadd.f32 %v7723_v25, %v7434_v38  ;;  %v7436_v5 = vpop.f32.mrb[115].mxu0  ;;  %v19245_v25 = vld [vmem:[#allocation51_spill] sm:$0xff] }
 0x508   :  { %v7937_v28 = vpop.f32.mrb[132].mxu1  ;;  %v19246_v5 = vld [vmem:[#allocation71_spill] sm:$0xff] }
 0x509   :  { %8847 = vmatmul.mubr.bf16.gmra.mrb[220].mxu0 %v19162_v36  ;;  %v7938_v20 = vadd.f32 %v7937_v28, %v16964_v31  ;;  %v7939_v55 = vpop.f32.mrb[133].mxu1 }
 0x50a   :  { %8854 = vmatprep.mubr.bf16.mxu0 %v19164_v63  ;;  %v7940_v53 = vpop.f32.mrb[134].mxu1 }
 0x50b   :  { %v7941_v59 = vadd.f32 %v7940_v53, %v16968_v29  ;;  %v7942_v54 = vpop.f32.mrb[135].mxu1 }
 0x50c   :  { %v7439_v1 = vpop.f32.mrb[116].mxu0 }
 0x50d   :  { %v17341_v13 = vadd.f32 %v17290_v26, %v7439_v1  ;;  %v7441_v56 = vpop.f32.mrb[117].mxu0  ;;  %8152 = vmatmul.mubr.bf16.gmra.mrb[240].mxu1 %v19245_v25 }
 0x50e   :  { %v7442_v38 = vpop.f32.mrb[118].mxu0  ;;  %8159 = vmatprep.mubr.bf16.mxu1 %v19246_v5 }
 0x50f   :  { %v17346_v36 = vadd.f32 %v17293_v33, %v7442_v38  ;;  %v7444_v31 = vpop.f32.mrb[119].mxu0 }
 0x510   :  { %v7945_v28 = vpop.f32.mrb[136].mxu1 }
 0x511   :  { %19247 = vst [vmem:[#allocation54_spill] sm:$0xff] %v17346_v36  ;;  %8855 = vmatmul.mubr.bf16.gmra.mrb[224].mxu0 %v19168_v24  ;;  %v17350_v29 = vadd.f32 %v7945_v28, %v16976_v37  ;;  %v7947_v63 = vpop.f32.mrb[137].mxu1 }
 0x512   :  { %8862 = vmatprep.mubr.bf16.mxu0 %v19169_v57  ;;  %v7948_v26 = vpop.f32.mrb[138].mxu1 }
 0x513   :  { %v17354_v55 = vadd.f32 %v7948_v26, %v16980_v8  ;;  %v7950_v53 = vpop.f32.mrb[139].mxu1 }
 0x514   :  { %v7447_v54 = vpop.f32.mrb[120].mxu0 }
 0x515   :  { %v17356_v1 = vadd.f32 %v7736_v39, %v7447_v54  ;;  %v7449_v33 = vpop.f32.mrb[121].mxu0  ;;  %8160 = vmatmul.mubr.bf16.gmra.mrb[244].mxu1 %v16922_v51 }
 0x516   :  { %v7450_v56 = vpop.f32.mrb[122].mxu0  ;;  %8167 = vmatprep.mubr.bf16.mxu1 %v16929_v50 }
 0x517   :  { %19248 = vst [vmem:[#allocation108_spill] sm:$0xff] %v17356_v1  ;;  %v17360_v24 = vadd.f32 %v7739_v23, %v7450_v56  ;;  %v7452_v37 = vpop.f32.mrb[123].mxu0  ;;  %v19253_v56 = vld [vmem:[#allocation98_spill] sm:$0xff] }
 0x518   :  { %v7953_v38 = vpop.f32.mrb[140].mxu1  ;;  %v19254_v37 = vld [vmem:[#allocation120_spill] sm:$0xff] }
 0x519   :  { %19249 = vst [vmem:[#allocation100_spill] sm:$0xff] %v17360_v24  ;;  %8863 = vmatmul.mubr.bf16.gmra.mrb[228].mxu0 %v19174_v12  ;;  %v7954_v57 = vadd.f32 %v7953_v38, %v16984_v58  ;;  %v7955_v8 = vpop.f32.mrb[141].mxu1 }
 0x51a   :  { %8870 = vmatprep.mubr.bf16.mxu0 %v19175_v41  ;;  %v7956_v31 = vpop.f32.mrb[142].mxu1  ;;  %v19252_v41 = vld [vmem:[#allocation88_spill] sm:$0xff] }
 0x51b   :  { %v7957_v39 = vadd.f32 %v7956_v31, %v16992_v47  ;;  %v7958_v28 = vpop.f32.mrb[143].mxu1 }
 0x51c   :  { %v7455_v63 = vpop.f32.mrb[124].mxu0 }
 0x51d   :  { %v17367_v26 = vadd.f32 %v17306_v17, %v7455_v63  ;;  %v7457_v53 = vpop.f32.mrb[125].mxu0  ;;  %8168 = vmatmul.mubr.bf16.gmra.mrb[248].mxu1 %v16941_v52 }
 0x51e   :  { %v7458_v23 = vpop.f32.mrb[126].mxu0  ;;  %8175 = vmatprep.mubr.bf16.mxu1 %v16944_v9 }
 0x51f   :  { %19250 = vst [vmem:[#allocation104_spill] sm:$0xff] %v17367_v26  ;;  %v17372_v12 = vadd.f32 %v17312_v60, %v7458_v23  ;;  %v7460_v58 = vpop.f32.mrb[127].mxu0  ;;  %v19256_v60 = vld [vmem:[#allocation99_spill] sm:$0xff]  ;;  %v19258_v23 = vld [vmem:[#allocation126_spill] sm:$0xff] }
 0x520   :  { %v7961_v54 = vpop.f32.mrb[144].mxu1 }
 0x521   :  { %19251 = vst [vmem:[#allocation103_spill] sm:$0xff] %v17372_v12  ;;  %8871 = vmatmul.mubr.bf16.gmra.mrb[232].mxu0 %v19177_v19  ;;  %v7962_v47 = vadd.f32 %v7961_v54, %v19252_v41  ;;  %v7963_v33 = vpop.f32.mrb[145].mxu1  ;;  %v17389_v41 = vld [vmem:[#allocation2 + $0xcc] sm:$0xf]  ;;  %v19266_v12 = vld [vmem:[#allocation78_spill] sm:$0xff] }
 0x522   :  { %8878 = vmatprep.mubr.bf16.mxu0 %v19253_v56  ;;  %v7964_v17 = vpop.f32.mrb[146].mxu1  ;;  %v17394_v56 = vld [vmem:[#allocation2 + $0xd0] sm:$0xf] }
 0x523   :  { %v17378_v38 = vadd.f32 %v7964_v17, %v19254_v37  ;;  %v7966_v8 = vpop.f32.mrb[147].mxu1  ;;  %v19261_v17 = vld [vmem:[#allocation97_spill] sm:$0xff]  ;;  %v19262_v37 = vld [vmem:[#allocation70_spill] sm:$0xff] }
 0x524   :  { %v11597_v31 = vpop.f32.mrb[128].mxu0 }
 0x525   :  { %v17380_v28 = vadd.f32 %v11597_v31, %v7938_v20  ;;  %v8218_v63 = vpop.f32.mrb[129].mxu0  ;;  %8176 = vmatmul.mubr.bf16.gmra.mrb[252].mxu1 %v19256_v60  ;;  %v19263_v31 = vld [vmem:[#allocation102_spill] sm:$0xff] }
 0x526   :  { %v17384_v53 = vadd.f32 %v8218_v63, %v17324_v48  ;;  %v11598_v19 = vpop.f32.mrb[130].mxu0  ;;  %11675 = vmatprep.mubr.bf16.mxu1 %v19258_v23  ;;  %v8474_v63 = vshrl.u32 %v17389_v41, 16  ;;  %v8483_v23 = vshll.u32 %v17394_v56, 16 }
 0x527   :  { %19255 = vst [vmem:[#allocation58_spill] sm:$0xff] %v17380_v28  ;;  %v17387_v58 = vadd.f32 %v11598_v19, %v7941_v59  ;;  %v8221_v54 = vpop.f32.mrb[131].mxu0  ;;  %v8477_v19 = vshll.u32 %v17389_v41, 16 }
 0x528   :  { %19257 = vst [vmem:[#allocation22_spill] sm:$0xff] %v17384_v53  ;;  %v17392_v33 = vadd.f32 %v8221_v54, %v17328_v46  ;;  %v7969_v20 = vpop.f32.mrb[148].mxu1  ;;  %v8487_v46 = vshrl.u32 %v17394_v56, 16  ;;  %v19264_v54 = vld [vmem:[#allocation18_spill] sm:$0xff]  ;;  %v8485_v36 = vrot.slane %v8483_v23, 5  ;;  %v19269_v23 = vld [vmem:[#allocation121_spill] sm:$0xff] }
 0x529   :  { %19259 = vst [vmem:[#allocation14_spill] sm:$0xff] %v17387_v58  ;;  %8879 = vmatmul.mubr.bf16.gmra.mrb[236].mxu0 %v19261_v17  ;;  %v7970_v8 = vadd.f32 %v7969_v20, %v19262_v37  ;;  %v7971_v48 = vpop.f32.mrb[149].mxu1  ;;  %v19265_v20 = vld [vmem:[#allocation123_spill] sm:$0xff]  ;;  %v8479_v1 = vrot.slane %v8477_v19, 5 }
 0x52a   :  { %19260 = vst [vmem:[#allocation109_spill] sm:$0xff] %v17392_v33  ;;  %8886 = vmatprep.mubr.bf16.mxu0 %v19263_v31  ;;  %v7972_v59 = vpop.f32.mrb[150].mxu1  ;;  %v8476_v31 = vrot.slane %v8474_v63, 4 }
 0x52b   :  { %v7973_v33 = vadd.f32 %v7972_v59, %v19264_v54  ;;  %v7974_v58 = vpop.f32.mrb[151].mxu1  ;;  %v8489_v59 = vrot.slane %v8487_v46, 4 }
 0x52c   :  { %v11601_v53 = vpop.f32.mrb[132].mxu0 }
 0x52d   :  { %v17404_v28 = vadd.f32 %v11601_v53, %v7954_v57  ;;  %v8234_v17 = vpop.f32.mrb[133].mxu0  ;;  %11676 = vmatmul.mubr.bf16.vlgmr.msra.gmra.mrb[0].mxu1 %v19265_v20  ;;  %v17416_v57 = vld [vmem:[#allocation2 + $0xd4] sm:$0x1]  ;;  %v8490_v63 = vor.u32 %v8489_v59, %v8485_v36 }
 0x52e   :  { %v17408_v37 = vadd.f32 %v8234_v17, %v17350_v29  ;;  %v11602_v48 = vpop.f32.mrb[134].mxu0  ;;  %11679 = vmatprep.mubr.bf16.mxu1 %v19266_v12  ;;  %v19268_v29 = vld [vmem:[#allocation92_spill] sm:$0xff]  ;;  %v8493_v19 = vshll.u32 %v17416_v57, 16 }
 0x52f   :  { %v17411_v26 = vadd.f32 %v11602_v48, %v7957_v39  ;;  %v8237_v24 = vpop.f32.mrb[135].mxu0  ;;  %v8480_v39 = vor.u32 %v8479_v1, %v8476_v31  ;;  %v8491_v59 = vrot.slane %v8490_v63, 4  ;;  %v19274_v63 = vld [vmem:[#allocation45_spill] sm:$0xff] }
 0x530   :  { %v17414_v58 = vadd.f32 %v8237_v24, %v17354_v55  ;;  %v7977_v53 = vpop.f32.mrb[152].mxu1 }
 0x531   :  { %8887 = vmatmul.mubr.bf16.gmra.mrb[240].mxu0 %v19189_v22  ;;  %v7978_v54 = vadd.f32 %v7977_v53, %v19268_v29  ;;  %v7979_v17 = vpop.f32.mrb[153].mxu1  ;;  %v19271_v29 = vld [vmem:[#allocation53_spill] sm:$0xff]  ;;  %v8481_v31 = vrot.slane %v8480_v39, 4 }
 0x532   :  { %19267 = vst [vmem:[#allocation25_spill] sm:$0xff] %v17414_v58  ;;  %8894 = vmatprep.mubr.bf16.mxu0 %v19190_v30  ;;  %v7980_v12 = vpop.f32.mrb[154].mxu1  ;;  %v19270_v58 = vld [vmem:[#allocation93_spill] sm:$0xff]  ;;  %v8495_v17 = vrot.slane %v8493_v19, 5 }
 0x533   :  { %v7981_v46 = vadd.f32 %v7980_v12, %v19269_v23  ;;  %v7982_v20 = vpop.f32.mrb[155].mxu1 }
 0x534   :  { %v11605_v55 = vpop.f32.mrb[136].mxu0  ;;  %v8496_v39 = vsel %vm12498_vm5, %v8491_v59, %v8495_v17  ;;  %v19280_v17 = vld [vmem:[#allocation106_spill] sm:$0xff] }
 0x535   :  { %v17423_v24 = vadd.f32 %v11605_v55, %v7970_v8  ;;  %v8250_v48 = vpop.f32.mrb[137].mxu0  ;;  %11680 = vmatmul.mubr.bf16.gmra.mrb[4].mxu1 %v19270_v58  ;;  %v19272_v8 = vld [vmem:[#allocation72_spill] sm:$0xff] }
 0x536   :  { %v17426_v22 = vadd.f32 %v8250_v48, %v7962_v47  ;;  %v11606_v53 = vpop.f32.mrb[138].mxu0  ;;  %11683 = vmatprep.mubr.bf16.mxu1 %v19271_v29  ;;  %v19273_v47 = vld [vmem:[#allocation19_spill] sm:$0xff] }
 0x537   :  { %v17429_v30 = vadd.f32 %v11606_v53, %v7973_v33  ;;  %v8253_v1 = vpop.f32.mrb[139].mxu0  ;;  %v8486_v33 = vsel %vm12498_vm5, %v8481_v31, %v8485_v36 }
 0x538   :  { %v17432_v12 = vadd.f32 %v8253_v1, %v17378_v38  ;;  %v7985_v23 = vpop.f32.mrb[156].mxu1 }
 0x539   :  { %8895 = vmatmul.mubr.bf16.gmra.mrb[244].mxu0 %v19194_v44  ;;  %v7986_v20 = vadd.f32 %v7985_v23, %v19272_v8  ;;  %v7987_v58 = vpop.f32.mrb[157].mxu1  ;;  %v19275_v44 = vld [vmem:[#allocation57_spill] sm:$0xff]  ;;  %v10670_v8 = vcombine.low %v8486_v33, %v8496_v39  ;;  %v10668_v39 = vcombine.low %v17389_v41, %v17394_v56 }
 0x53a   :  { %8902 = vmatprep.mubr.bf16.mxu0 %v19273_v47  ;;  %v7988_v55 = vpop.f32.mrb[158].mxu1  ;;  %v19277_v58 = vld [vmem:[#allocation59_spill] sm:$0xff] }
 0x53b   :  { %v7989_v19 = vadd.f32 %v7988_v55, %v19274_v63  ;;  %v7990_v48 = vpop.f32.mrb[159].mxu1  ;;  %v19281_v55 = vld [vmem:[#allocation119_spill] sm:$0xff] }
 0x53c   :  { %v11609_v38 = vpop.f32.mrb[140].mxu0 }
 0x53d   :  { %v17442_v53 = vadd.f32 %v11609_v38, %v7986_v20  ;;  %v8266_v29 = vpop.f32.mrb[141].mxu0  ;;  %11684 = vmatmul.mubr.bf16.gmra.mrb[8].mxu1 %v19275_v44  ;;  %v19282_v38 = vld [vmem:[#allocation23_spill] sm:$0xff] }
 0x53e   :  { %v17445_v1 = vadd.f32 %v8266_v29, %v7978_v54  ;;  %v11610_v23 = vpop.f32.mrb[142].mxu0  ;;  %11687 = vmatprep.mubr.bf16.mxu1 %v19277_v58  ;;  %v19285_v58 = vld [vmem:[#allocation21_spill] sm:$0xff] }
 0x53f   :  { %v17448_v47 = vadd.f32 %v11610_v23, %v7989_v19  ;;  %v8269_v36 = vpop.f32.mrb[143].mxu0  ;;  %v19283_v19 = vld [vmem:[#allocation83_spill] sm:$0xff] }
 0x540   :  { %19276 = vst [vmem:[#allocation32_spill] sm:$0xff] %v17445_v1  ;;  %v17450_v31 = vadd.f32 %v8269_v36, %v7981_v46  ;;  %v7993_v59 = vpop.f32.mrb[160].mxu1 }
 0x541   :  { %19278 = vst [vmem:[#allocation112_spill] sm:$0xff] %v17448_v47  ;;  %8903 = vmatmul.mubr.bf16.gmra.mrb[248].mxu0 %v19280_v17  ;;  %v7994_v20 = vadd.f32 %v7993_v59, %v19281_v55  ;;  %v7995_v63 = vpop.f32.mrb[161].mxu1  ;;  %v19287_v17 = vld [vmem:[#allocation74_spill] sm:$0xff] }
 0x542   :  { %19279 = vst [vmem:[#allocation17_spill] sm:$0xff] %v17450_v31  ;;  %8910 = vmatprep.mubr.bf16.mxu0 %v10670_v8  ;;  %v7996_v48 = vpop.f32.mrb[162].mxu1 }
 0x543   :  { %v7997_v54 = vadd.f32 %v7996_v48, %v19282_v38  ;;  %v7998_v29 = vpop.f32.mrb[163].mxu1 }
 0x544   :  { %v11613_v44 = vpop.f32.mrb[144].mxu0  ;;  %v19289_v29 = vld [vmem:[#allocation73_spill] sm:$0xff] }
 0x545   :  { %v8282_v33 = vpop.f32.mrb[145].mxu0  ;;  %11688 = vmatmul.mubr.bf16.gmra.mrb[12].mxu1 %v19283_v19 }
 0x546   :  { %v17458_v46 = vadd.f32 %v8282_v33, %v7994_v20  ;;  %v11614_v23 = vpop.f32.mrb[146].mxu0  ;;  %11691 = vmatprep.mubr.bf16.mxu1 %v19285_v58  ;;  %v19291_v58 = vld [vmem:[#allocation86_spill] sm:$0xff] }
 0x547   :  { %v8285_v36 = vpop.f32.mrb[147].mxu0 }
 0x548   :  { %19284 = vst [vmem:[#allocation33_spill] sm:$0xff] %v17458_v46  ;;  %v17461_v59 = vadd.f32 %v8285_v36, %v7997_v54  ;;  %v8001_v8 = vpop.f32.mrb[164].mxu1  ;;  %v19292_v36 = vld [vmem:[#allocation29_spill] sm:$0xff] }
 0x549   :  { %8911 = vmatmul.mubr.bf16.gmra.mrb[252].mxu0 %v10668_v39  ;;  %v8002_v55 = vadd.f32 %v8001_v8, %v19287_v17  ;;  %v8003_v63 = vpop.f32.mrb[165].mxu1 }
 0x54a   :  { %19286 = vst [vmem:[#allocation127_spill] sm:$0xff] %v17461_v59  ;;  %8918 = vmatprep.mubr.bf16.mxu0 %v19204_v4  ;;  %v8004_v48 = vpop.f32.mrb[166].mxu1  ;;  %v19293_v4 = vld [vmem:[#allocation76_spill] sm:$0xff] }
 0x54b   :  { %v17465_v38 = vadd.f32 %v11613_v44, %v8002_v55  ;;  %v8005_v19 = vadd.f32 %v8004_v48, %v19289_v29  ;;  %v8006_v20 = vpop.f32.mrb[167].mxu1  ;;  %v19295_v48 = vld [vmem:[#allocation64_spill] sm:$0xff] }
 0x54c   :  { %v11617_v33 = vpop.f32.mrb[148].mxu0 }
 0x54d   :  { %19288 = vst [vmem:[#allocation35_spill] sm:$0xff] %v17465_v38  ;;  %v8298_v46 = vpop.f32.mrb[149].mxu0  ;;  %v17468_v31 = vadd.f32 %v11614_v23, %v8005_v19  ;;  %11692 = vmatmul.mubr.bf16.gmra.mrb[16].mxu1 %v19291_v58 }
 0x54e   :  { %v11618_v54 = vpop.f32.mrb[150].mxu0  ;;  %11695 = vmatprep.mubr.bf16.mxu1 %v19292_v36  ;;  %v19297_v36 = vld [vmem:[#allocation61_spill] sm:$0xff] }
 0x54f   :  { %19290 = vst [vmem:[#allocation111_spill] sm:$0xff] %v17468_v31  ;;  %v8301_v39 = vpop.f32.mrb[151].mxu0  ;;  %v19298_v31 = vld [vmem:[#allocation44_spill] sm:$0xff] }
 0x550   :  { %v8009_v8 = vpop.f32.mrb[168].mxu1 }
 0x551   :  { %8919 = vmatmul.mubr.bf16.gmra.mrb[0].mxu0 %v19209_v62  ;;  %v8010_v17 = vadd.f32 %v8009_v8, %v19293_v4  ;;  %v8011_v44 = vpop.f32.mrb[169].mxu1  ;;  %v8529_v62 = vrot.slane %v17394_v56, 5  ;;  %v19301_v56 = vld [vmem:[#allocation80_spill] sm:$0xff] }
 0x552   :  { %8926 = vmatprep.mubr.bf16.mxu0 %v19210_v32  ;;  %v8012_v55 = vpop.f32.mrb[170].mxu1  ;;  %v19299_v32 = vld [vmem:[#allocation37_spill] sm:$0xff]  ;;  %v10666_v44 = vrot.slane %v17389_v41, 9 }
 0x553   :  { %v17475_v63 = vadd.f32 %v8298_v46, %v8010_v17  ;;  %v8013_v23 = vadd.f32 %v8012_v55, %v19295_v48  ;;  %v8014_v29 = vpop.f32.mrb[171].mxu1  ;;  %v8532_v55 = vrot.slane %v17416_v57, 5 }
 0x554   :  { %v11621_v19 = vpop.f32.mrb[152].mxu0  ;;  %v8530_v41 = vsel %vm12242_vm2, %v10666_v44, %v8529_v62 }
 0x555   :  { %19294 = vst [vmem:[#allocation77_spill] sm:$0xff] %v17475_v63  ;;  %v8314_v20 = vpop.f32.mrb[153].mxu0  ;;  %v17478_v58 = vadd.f32 %v8301_v39, %v8013_v23  ;;  %11696 = vmatmul.mubr.bf16.gmra.mrb[20].mxu1 %v19297_v36  ;;  %v8531_v39 = vrot.slane %v8529_v62, 4 }
 0x556   :  { %v11622_v59 = vpop.f32.mrb[154].mxu0  ;;  %11699 = vmatprep.mubr.bf16.mxu1 %v19298_v31 }
 0x557   :  { %19296 = vst [vmem:[#allocation113_spill] sm:$0xff] %v17478_v58  ;;  %v8317_v8 = vpop.f32.mrb[155].mxu0  ;;  %v8533_v57 = vsel %vm12242_vm2, %v8531_v39, %v8532_v55 }
 0x558   :  { %v8017_v4 = vpop.f32.mrb[172].mxu1 }
 0x559   :  { %8927 = vmatmul.mubr.bf16.gmra.mrb[4].mxu0 %v19213_v21  ;;  %v8018_v46 = vadd.f32 %v8017_v4, %v19299_v32  ;;  %v8019_v17 = vpop.f32.mrb[173].mxu1  ;;  %v19303_v4 = vld [vmem:[#allocation15_spill] sm:$0xff] }
 0x55a   :  { %8934 = vmatprep.mubr.bf16.mxu0 %v19215_v0  ;;  %v8020_v48 = vpop.f32.mrb[174].mxu1 }
 0x55b   :  { %v17488_v23 = vadd.f32 %v11617_v33, %v8018_v46  ;;  %v8021_v29 = vadd.f32 %v8020_v48, %v19301_v56  ;;  %v8022_v31 = vpop.f32.mrb[175].mxu1  ;;  %v19305_v33 = vld [vmem:[#allocation95_spill] sm:$0xff]  ;;  %v10672_v48 = vcombine.low %v8530_v41, %v8533_v57  ;;  %v19306_v56 = vld [vmem:[#allocation46_spill] sm:$0xff] }
 0x55c   :  { %v17491_v36 = vpop.f32.mrb[156].mxu0 }
 0x55d   :  { %19300 = vst [vmem:[#allocation38_spill] sm:$0xff] %v17488_v23  ;;  %v8330_v58 = vpop.f32.mrb[157].mxu0  ;;  %v17493_v21 = vadd.f32 %v11618_v54, %v8021_v29  ;;  %11700 = vmatmul.mubr.bf16.gmra.mrb[24].mxu1 %v19303_v4 }
 0x55e   :  { %v17496_v32 = vpop.f32.mrb[158].mxu0  ;;  %11703 = vmatprep.mubr.bf16.mxu1 %v19305_v33 }
 0x55f   :  { %19302 = vst [vmem:[#allocation116_spill] sm:$0xff] %v17493_v21  ;;  %v8333_v46 = vpop.f32.mrb[159].mxu0  ;;  %v19308_v21 = vld [vmem:[#allocation43_spill] sm:$0xff] }
 0x560   :  { %v8025_v17 = vpop.f32.mrb[176].mxu1 }
 0x561   :  { %8935 = vmatmul.mubr.bf16.gmra.mrb[8].mxu0 %v19218_v45  ;;  %v8026_v54 = vadd.f32 %v8025_v17, %v19306_v56  ;;  %v8027_v29 = vpop.f32.mrb[177].mxu1  ;;  %v19310_v45 = vld [vmem:[#allocation101_spill] sm:$0xff] }
 0x562   :  { %8942 = vmatprep.mubr.bf16.mxu0 %v19219_v61  ;;  %v8028_v31 = vpop.f32.mrb[178].mxu1  ;;  %v19311_v61 = vld [vmem:[#allocation48_spill] sm:$0xff] }
 0x563   :  { %v17506_v4 = vadd.f32 %v8314_v20, %v8026_v54  ;;  %v8029_v62 = vadd.f32 %v8028_v31, %v19308_v21  ;;  %v8030_v44 = vpop.f32.mrb[179].mxu1  ;;  %v19313_v54 = vld [vmem:[#allocation26_spill] sm:$0xff] }
 0x564   :  { %v17509_v63 = vpop.f32.mrb[160].mxu0  ;;  %v19315_v44 = vld [vmem:[#allocation105_spill] sm:$0xff] }
 0x565   :  { %19307 = vst [vmem:[#allocation82_spill] sm:$0xff] %v17506_v4  ;;  %v8346_v39 = vpop.f32.mrb[161].mxu0  ;;  %v17511_v55 = vadd.f32 %v8317_v8, %v8029_v62  ;;  %11704 = vmatmul.mubr.bf16.gmra.mrb[28].mxu1 %v10672_v48  ;;  %v19350_v4 = vld [vmem:[#allocation67_spill] sm:$0xff] }
 0x566   :  { %v17513_v33 = vpop.f32.mrb[162].mxu0  ;;  %11707 = vmatprep.mubr.bf16.mxu1 %v19310_v45  ;;  %v19316_v45 = vld [vmem:[#allocation107_spill] sm:$0xff] }
 0x567   :  { %19309 = vst [vmem:[#allocation115_spill] sm:$0xff] %v17511_v55  ;;  %v8349_v41 = vpop.f32.mrb[163].mxu0 }
 0x568   :  { %v8033_v57 = vpop.f32.mrb[180].mxu1 }
 0x569   :  { %8943 = vmatmul.mubr.bf16.gmra.mrb[12].mxu0 %v19222_v7  ;;  %v8034_v20 = vadd.f32 %v8033_v57, %v19311_v61  ;;  %v8035_v17 = vpop.f32.mrb[181].mxu1 }
 0x56a   :  { %8950 = vmatprep.mubr.bf16.mxu0 %v19223_v34  ;;  %v8036_v21 = vpop.f32.mrb[182].mxu1  ;;  %v19318_v17 = vld [vmem:[#allocation60_spill] sm:$0xff] }
 0x56b   :  { %v17519_v56 = vadd.f32 %v11621_v19, %v8034_v20  ;;  %v8037_v8 = vadd.f32 %v8036_v21, %v19313_v54  ;;  %v8038_v29 = vpop.f32.mrb[183].mxu1  ;;  %v19317_v19 = vld [vmem:[#allocation50_spill] sm:$0xff] }
 0x56c   :  { %v17522_v48 = vpop.f32.mrb[164].mxu0 }
 0x56d   :  { %19312 = vst [vmem:[#allocation62_spill] sm:$0xff] %v17519_v56  ;;  %v17524_v31 = vpop.f32.mrb[165].mxu0  ;;  %v17526_v62 = vadd.f32 %v11622_v59, %v8037_v8  ;;  %11708 = vmatmul.mubr.bf16.gmra.mrb[32].mxu1 %v19315_v44  ;;  %v19320_v59 = vld [vmem:[#allocation118_spill] sm:$0xff] }
 0x56e   :  { %v17529_v7 = vpop.f32.mrb[166].mxu0  ;;  %11711 = vmatprep.mubr.bf16.mxu1 %v19316_v45 }
 0x56f   :  { %19314 = vst [vmem:[#allocation28_spill] sm:$0xff] %v17526_v62  ;;  %v17532_v57 = vpop.f32.mrb[167].mxu0  ;;  %v19322_v62 = vld [vmem:[#allocation20_spill] sm:$0xff] }
 0x570   :  { %v8041_v34 = vpop.f32.mrb[184].mxu1 }
 0x571   :  { %8951 = vmatmul.mubr.bf16.gmra.mrb[16].mxu0 %v19225_v14  ;;  %v8042_v61 = vadd.f32 %v8041_v34, %v19317_v19  ;;  %v8043_v20 = vpop.f32.mrb[185].mxu1  ;;  %v19323_v34 = vld [vmem:[#allocation16_spill] sm:$0xff] }
 0x572   :  { %8958 = vmatprep.mubr.bf16.mxu0 %v19318_v17  ;;  %v8044_v21 = vpop.f32.mrb[186].mxu1 }
 0x573   :  { %v17537_v54 = vadd.f32 %v8330_v58, %v8042_v61  ;;  %v8045_v8 = vadd.f32 %v8044_v21, %v19320_v59  ;;  %v8046_v29 = vpop.f32.mrb[187].mxu1  ;;  %v19324_v58 = vld [vmem:[#allocation39_spill] sm:$0xff]  ;;  %v19326_v59 = vld [vmem:[#allocation81_spill] sm:$0xff] }
 0x574   :  { %v17540_v44 = vpop.f32.mrb[168].mxu0 }
 0x575   :  { %19319 = vst [vmem:[#allocation36_spill] sm:$0xff] %v17537_v54  ;;  %v17542_v55 = vpop.f32.mrb[169].mxu0  ;;  %v17544_v45 = vadd.f32 %v8333_v46, %v8045_v8  ;;  %11712 = vmatmul.mubr.bf16.gmra.mrb[36].mxu1 %v19322_v62 }
 0x576   :  { %v17547_v14 = vpop.f32.mrb[170].mxu0  ;;  %11715 = vmatprep.mubr.bf16.mxu1 %v19323_v34 }
 0x577   :  { %19321 = vst [vmem:[#allocation117_spill] sm:$0xff] %v17544_v45  ;;  %v17550_v19 = vpop.f32.mrb[171].mxu0 }
 0x578   :  { %v8049_v20 = vpop.f32.mrb[188].mxu1 }
 0x579   :  { %8959 = vmatmul.mubr.bf16.gmra.mrb[20].mxu0 %v19229_v43  ;;  %v8050_v61 = vadd.f32 %v8049_v20, %v19324_v58  ;;  %v8051_v17 = vpop.f32.mrb[189].mxu1  ;;  %v19328_v43 = vld [vmem:[#allocation27_spill] sm:$0xff]  ;;  %v19329_v58 = vld [vmem:[#allocation114_spill] sm:$0xff] }
 0x57a   :  { %8966 = vmatprep.mubr.bf16.mxu0 %v19230_v49  ;;  %v8052_v21 = vpop.f32.mrb[190].mxu1 }
 0x57b   :  { %v17556_v46 = vadd.f32 %v17491_v36, %v8050_v61  ;;  %v8053_v62 = vadd.f32 %v8052_v21, %v19326_v59  ;;  %v8054_v8 = vpop.f32.mrb[191].mxu1  ;;  %v19330_v61 = vld [vmem:[#allocation94_spill] sm:$0xff] }
 0x57c   :  { %v17559_v29 = vpop.f32.mrb[172].mxu0 }
 0x57d   :  { %19325 = vst [vmem:[#allocation51_spill] sm:$0xff] %v17556_v46  ;;  %v17561_v34 = vpop.f32.mrb[173].mxu0  ;;  %v17564_v45 = vadd.f32 %v17496_v32, %v8053_v62  ;;  %11716 = vmatmul.mubr.bf16.gmra.mrb[40].mxu1 %v19328_v43  ;;  %v19332_v32 = vld [vmem:[#allocation55_spill] sm:$0xff]  ;;  %v19334_v46 = vld [vmem:[#allocation52_spill] sm:$0xff] }
 0x57e   :  { %v17567_v20 = vpop.f32.mrb[174].mxu0  ;;  %11719 = vmatprep.mubr.bf16.mxu1 %v19329_v58 }
 0x57f   :  { %19327 = vst [vmem:[#allocation71_spill] sm:$0xff] %v17564_v45  ;;  %v17570_v49 = vpop.f32.mrb[175].mxu0 }
 0x580   :  { %v8057_v36 = vpop.f32.mrb[192].mxu1 }
 0x581   :  { %8967 = vmatmul.mubr.bf16.gmra.mrb[24].mxu0 %v19233_v2  ;;  %v8058_v17 = vadd.f32 %v8057_v36, %v19330_v61  ;;  %v8059_v21 = vpop.f32.mrb[193].mxu1  ;;  %v19335_v36 = vld [vmem:[#allocation75_spill] sm:$0xff] }
 0x582   :  { %8974 = vmatprep.mubr.bf16.mxu0 %v19234_v11  ;;  %v8060_v59 = vpop.f32.mrb[194].mxu1 }
 0x583   :  { %v17575_v8 = vadd.f32 %v8346_v39, %v8058_v17  ;;  %v8061_v62 = vadd.f32 %v8060_v59, %v19332_v32  ;;  %v8062_v45 = vpop.f32.mrb[195].mxu1  ;;  %v19336_v39 = vld [vmem:[#allocation122_spill] sm:$0xff]  ;;  %v19338_v59 = vld [vmem:[#allocation87_spill] sm:$0xff] }
 0x584   :  { %v17578_v43 = vpop.f32.mrb[176].mxu0 }
 0x585   :  { %19331 = vst [vmem:[#allocation88_spill] sm:$0xff] %v17575_v8  ;;  %v17580_v54 = vpop.f32.mrb[177].mxu0  ;;  %v17582_v58 = vadd.f32 %v8349_v41, %v8061_v62  ;;  %11720 = vmatmul.mubr.bf16.gmra.mrb[44].mxu1 %v19334_v46 }
 0x586   :  { %v17585_v2 = vpop.f32.mrb[178].mxu0  ;;  %11723 = vmatprep.mubr.bf16.mxu1 %v19335_v36 }
 0x587   :  { %19333 = vst [vmem:[#allocation98_spill] sm:$0xff] %v17582_v58  ;;  %v17588_v61 = vpop.f32.mrb[179].mxu0 }
 0x588   :  { %v8065_v11 = vpop.f32.mrb[196].mxu1 }
 0x589   :  { %8975 = vmatmul.mubr.bf16.gmra.mrb[28].mxu0 %v19237_v10  ;;  %v8066_v17 = vadd.f32 %v8065_v11, %v19336_v39  ;;  %v8067_v21 = vpop.f32.mrb[197].mxu1  ;;  %v19340_v10 = vld [vmem:[#allocation49_spill] sm:$0xff]  ;;  %v19341_v39 = vld [vmem:[#allocation79_spill] sm:$0xff] }
 0x58a   :  { %8982 = vmatprep.mubr.bf16.mxu0 %v19238_v15  ;;  %v8068_v45 = vpop.f32.mrb[198].mxu1 }
 0x58b   :  { %v17594_v41 = vadd.f32 %v17509_v63, %v8066_v17  ;;  %v8069_v46 = vadd.f32 %v8068_v45, %v19338_v59  ;;  %v8070_v32 = vpop.f32.mrb[199].mxu1  ;;  %v19342_v17 = vld [vmem:[#allocation40_spill] sm:$0xff] }
 0x58c   :  { %v17597_v62 = vpop.f32.mrb[180].mxu0 }
 0x58d   :  { %19337 = vst [vmem:[#allocation120_spill] sm:$0xff] %v17594_v41  ;;  %v17599_v36 = vpop.f32.mrb[181].mxu0  ;;  %v17602_v58 = vadd.f32 %v17513_v33, %v8069_v46  ;;  %11724 = vmatmul.mubr.bf16.gmra.mrb[48].mxu1 %v19340_v10  ;;  %v19344_v46 = vld [vmem:[#allocation84_spill] sm:$0xff] }
 0x58e   :  { %v17605_v11 = vpop.f32.mrb[182].mxu0  ;;  %11727 = vmatprep.mubr.bf16.mxu1 %v19341_v39  ;;  %v17619_v39 = vld [vmem:[#allocation2 + $0x1a8] sm:$0xf] }
 0x58f   :  { %19339 = vst [vmem:[#allocation99_spill] sm:$0xff] %v17602_v58  ;;  %v17608_v15 = vpop.f32.mrb[183].mxu0 }
 0x590   :  { %v8073_v63 = vpop.f32.mrb[200].mxu1 }
 0x591   :  { %8983 = vmatmul.mubr.bf16.gmra.mrb[32].mxu0 %v19240_v16  ;;  %v8074_v21 = vadd.f32 %v8073_v63, %v19342_v17  ;;  %v8075_v45 = vpop.f32.mrb[201].mxu1  ;;  %v19346_v63 = vld [vmem:[#allocation69_spill] sm:$0xff] }
 0x592   :  { %8990 = vmatprep.mubr.bf16.mxu0 %v19241_v42  ;;  %v8076_v59 = vpop.f32.mrb[202].mxu1  ;;  %v19347_v42 = vld [vmem:[#allocation63_spill] sm:$0xff]  ;;  %v17633_v45 = vld [vmem:[#allocation2 + $0x1a4] sm:$0xf] }
 0x593   :  { %v17614_v33 = vadd.f32 %v17524_v31, %v8074_v21  ;;  %v8077_v32 = vadd.f32 %v8076_v59, %v19344_v46  ;;  %v8078_v10 = vpop.f32.mrb[203].mxu1  ;;  %v8536_v21 = vrot.slane %v17619_v39, 5  ;;  %v17635_v59 = vld [vmem:[#allocation2 + $0x1ac] sm:$0x1] }
 0x594   :  { %v17617_v58 = vpop.f32.mrb[184].mxu0  ;;  %v19348_v10 = vld [vmem:[#allocation124_spill] sm:$0xff] }
 0x595   :  { %19343 = vst [vmem:[#allocation126_spill] sm:$0xff] %v17614_v33  ;;  %v17621_v8 = vpop.f32.mrb[185].mxu0  ;;  %v17624_v16 = vadd.f32 %v17532_v57, %v8077_v32  ;;  %11728 = vmatmul.mubr.bf16.gmra.mrb[52].mxu1 %v19346_v63  ;;  %v8539_v33 = vrot.slane %v17635_v59, 5 }
 0x596   :  { %v17627_v17 = vpop.f32.mrb[186].mxu0  ;;  %11731 = vmatprep.mubr.bf16.mxu1 %v19347_v42  ;;  %v8538_v42 = vrot.slane %v8536_v21, 4 }
 0x597   :  { %19345 = vst [vmem:[#allocation97_spill] sm:$0xff] %v17624_v16  ;;  %v17630_v31 = vpop.f32.mrb[187].mxu0  ;;  %v10667_v16 = vrot.slane %v17633_v45, 9 }
 0x598   :  { %v8081_v46 = vpop.f32.mrb[204].mxu1 }
 0x599   :  { %8991 = vmatmul.mubr.bf16.gmra.mrb[36].mxu0 %v19243_v40  ;;  %v8082_v57 = vadd.f32 %v8081_v46, %v19348_v10  ;;  %v8083_v32 = vpop.f32.mrb[205].mxu1 }
 0x59a   :  { %8998 = vmatprep.mubr.bf16.mxu0 %v19244_v6  ;;  %v8084_v63 = vpop.f32.mrb[206].mxu1  ;;  %v19352_v6 = vld [vmem:[#allocation41_spill] sm:$0xff]  ;;  %v19353_v32 = vld [vmem:[#allocation68_spill] sm:$0xff] }
 0x59b   :  { %v17643_v41 = vadd.f32 %v17522_v48, %v8082_v57  ;;  %v8085_v56 = vadd.f32 %v8084_v63, %v19350_v4  ;;  %v8086_v23 = vpop.f32.mrb[207].mxu1  ;;  %v8537_v48 = vsel %vm12242_vm2, %v10667_v16, %v8536_v21  ;;  %v19354_v57 = vld [vmem:[#allocation56_spill] sm:$0xff] }
 0x59c   :  { %v17646_v38 = vpop.f32.mrb[188].mxu0  ;;  %v8540_v23 = vsel %vm12242_vm2, %v8538_v42, %v8539_v33 }
 0x59d   :  { %19349 = vst [vmem:[#allocation70_spill] sm:$0xff] %v17643_v41  ;;  %v17648_v40 = vpop.f32.mrb[189].mxu0  ;;  %v17651_v46 = vadd.f32 %v17529_v7, %v8085_v56  ;;  %11732 = vmatmul.mubr.bf16.gmra.mrb[56].mxu1 %v19352_v6  ;;  %v10673_v63 = vcombine.low %v8537_v48, %v8540_v23  ;;  %v8501_v23 = vshll.u32 %v17633_v45, 16 }
 0x59e   :  { %v17654_v10 = vpop.f32.mrb[190].mxu0  ;;  %11735 = vmatprep.mubr.bf16.mxu1 %v19353_v32 }
 0x59f   :  { %19351 = vst [vmem:[#allocation102_spill] sm:$0xff] %v17651_v46  ;;  %v17657_v47 = vpop.f32.mrb[191].mxu0  ;;  %v19355_v46 = vld [vmem:[#allocation24_spill] sm:$0xff] }
 0x5a0   :  { %v8089_v4 = vpop.f32.mrb[208].mxu1 }
 0x5a1   :  { %8999 = vmatmul.mubr.bf16.gmra.mrb[40].mxu0 %v19245_v25  ;;  %v8090_v56 = vadd.f32 %v8089_v4, %v19354_v57  ;;  %v8091_v7 = vpop.f32.mrb[209].mxu1  ;;  %v19358_v57 = vld [vmem:[#allocation30_spill] sm:$0xff] }
 0x5a2   :  { %9006 = vmatprep.mubr.bf16.mxu0 %v19246_v5  ;;  %v8092_v6 = vpop.f32.mrb[210].mxu1  ;;  %v19357_v5 = vld [vmem:[#allocation110_spill] sm:$0xff] }
 0x5a3   :  { %v17667_v32 = vadd.f32 %v17542_v55, %v8090_v56  ;;  %v8093_v41 = vadd.f32 %v8092_v6, %v19355_v46  ;;  %v8094_v1 = vpop.f32.mrb[211].mxu1 }
 0x5a4   :  { %v17670_v16 = vpop.f32.mrb[192].mxu0  ;;  %v8498_v1 = vshrl.u32 %v17633_v45, 16 }
 0x5a5   :  { %v8794_v0 = vpop.f32.mrb[193].mxu0  ;;  %v17673_v33 = vadd.f32 %v17550_v19, %v8093_v41  ;;  %11736 = vmatmul.mubr.bf16.gmra.mrb[60].mxu1 %v10673_v63  ;;  %v8507_v19 = vshll.u32 %v17619_v39, 16  ;;  %v8511_v41 = vshrl.u32 %v17619_v39, 16 }
 0x5a6   :  { %v17675_v25 = vpop.f32.mrb[194].mxu0 }
 0x5a7   :  { %19356 = vst [vmem:[#allocation18_spill] sm:$0xff] %v17673_v33  ;;  %v8797_v21 = vpop.f32.mrb[195].mxu0 }
 0x5a8   :  { %v8097_v42 = vpop.f32.mrb[212].mxu1  ;;  %v8500_v21 = vrot.slane %v8498_v1, 4  ;;  %v19360_v1 = vld [vmem:[#allocation34_spill] sm:$0xff] }
 0x5a9   :  { %9007 = vmatmul.mubr.bf16.gmra.mrb[44].mxu0 %v16922_v51  ;;  %v8098_v48 = vadd.f32 %v8097_v42, %v19357_v5  ;;  %v8099_v55 = vpop.f32.mrb[213].mxu1  ;;  %v8503_v42 = vrot.slane %v8501_v23, 5  ;;  %v8509_v5 = vrot.slane %v8507_v19, 5 }
 0x5aa   :  { %9014 = vmatprep.mubr.bf16.mxu0 %v16929_v50  ;;  %v8100_v46 = vpop.f32.mrb[214].mxu1  ;;  %v8513_v55 = vrot.slane %v8511_v41, 4 }
 0x5ab   :  { %v17685_v4 = vadd.f32 %v17540_v44, %v8098_v48  ;;  %v8101_v56 = vadd.f32 %v8100_v46, %v19358_v57  ;;  %v8102_v51 = vpop.f32.mrb[215].mxu1  ;;  %v19359_v44 = vld [vmem:[#allocation85_spill] sm:$0xff] }
 0x5ac   :  { %v17688_v7 = vpop.f32.mrb[196].mxu0  ;;  %v8504_v51 = vor.u32 %v8503_v42, %v8500_v21 }
 0x5ad   :  { %v8802_v63 = vpop.f32.mrb[197].mxu0  ;;  %v17691_v50 = vadd.f32 %v17547_v14, %v8101_v56  ;;  %v8517_v14 = vshll.u32 %v17635_v59, 16 }
 0x5ae   :  { %v17693_v6 = vpop.f32.mrb[198].mxu0  ;;  %v8514_v63 = vor.u32 %v8513_v55, %v8509_v5 }
 0x5af   :  { %v8805_v0 = vpop.f32.mrb[199].mxu0  ;;  %v8519_v42 = vrot.slane %v8517_v14, 5 }
 0x5b0   :  { %v8105_v33 = vpop.f32.mrb[216].mxu1  ;;  %v8515_v21 = vrot.slane %v8514_v63, 4 }
 0x5b1   :  { %9015 = vmatmul.mubr.bf16.gmra.mrb[48].mxu0 %v16941_v52  ;;  %v8106_v48 = vadd.f32 %v8105_v33, %v19359_v44  ;;  %v8107_v46 = vpop.f32.mrb[217].mxu1  ;;  %v8505_v44 = vrot.slane %v8504_v51, 4  ;;  %v19363_v51 = vld [vmem:[#allocation42_spill] sm:$0xff] }
 0x5b2   :  { %9022 = vmatprep.mubr.bf16.mxu0 %v16944_v9  ;;  %v8108_v57 = vpop.f32.mrb[218].mxu1  ;;  %v19362_v46 = vld [vmem:[#allocation91_spill] sm:$0xff] }
 0x5b3   :  { %v17700_v56 = vadd.f32 %v17561_v34, %v8106_v48  ;;  %v8109_v23 = vadd.f32 %v8108_v57, %v19360_v1  ;;  %v8110_v19 = vpop.f32.mrb[219].mxu1  ;;  %v19361_v34 = vld [vmem:[#allocation31_spill] sm:$0xff]  ;;  %v8510_v1 = vsel %vm12498_vm5, %v8505_v44, %v8509_v5  ;;  %v19364_v44 = vld [vmem:[#allocation125_spill] sm:$0xff] }
 0x5b4   :  { %v17703_v41 = vpop.f32.mrb[200].mxu0 }
 0x5b5   :  { %v8810_v0 = vpop.f32.mrb[201].mxu0  ;;  %v17706_v52 = vadd.f32 %v17570_v49, %v8109_v23  ;;  %v8520_v49 = vsel %vm12498_vm5, %v8515_v21, %v8519_v42 }
 0x5b6   :  { %v17708_v33 = vpop.f32.mrb[202].mxu0 }
 0x5b7   :  { %v8813_v9 = vpop.f32.mrb[203].mxu0 }
 0x5b8   :  { %v8113_v55 = vpop.f32.mrb[220].mxu1 }
 0x5b9   :  { %9023 = vmatmul.mubr.bf16.gmra.mrb[52].mxu0 %v19256_v60  ;;  %v8114_v59 = vadd.f32 %v8113_v55, %v19361_v34  ;;  %v8115_v48 = vpop.f32.mrb[221].mxu1  ;;  %v10671_v55 = vcombine.low %v8510_v1, %v8520_v49  ;;  %v10669_v1 = vcombine.low %v17633_v45, %v17619_v39 }
 0x5ba   :  { %9030 = vmatprep.mubr.bf16.mxu0 %v19362_v46  ;;  %v8116_v57 = vpop.f32.mrb[222].mxu1  ;;  %v19366_v48 = vld [vmem:[#allocation65_spill] sm:$0xff] }
 0x5bb   :  { %v17718_v23 = vadd.f32 %v17559_v29, %v8114_v59  ;;  %v8117_v63 = vadd.f32 %v8116_v57, %v19363_v51  ;;  %v8118_v14 = vpop.f32.mrb[223].mxu1 }
 0x5bc   :  { %v17721_v19 = vpop.f32.mrb[204].mxu0 }
 0x5bd   :  { %v8818_v60 = vpop.f32.mrb[205].mxu0  ;;  %v17724_v0 = vadd.f32 %v17567_v20, %v8117_v63 }
 0x5be   :  { %v17726_v9 = vpop.f32.mrb[206].mxu0 }
 0x5bf   :  { %v8821_v34 = vpop.f32.mrb[207].mxu0 }
 0x5c0   :  { %v8121_v5 = vpop.f32.mrb[224].mxu1 }
 0x5c1   :  { %9031 = vmatmul.mubr.bf16.gmra.mrb[56].mxu0 %v19364_v44  ;;  %v8122_v21 = vadd.f32 %v8121_v5, %v19365_v27  ;;  %v8123_v29 = vpop.f32.mrb[225].mxu1  ;;  %v19368_v27 = vld [vmem:[#allocation47_spill] sm:$0xff] }
 0x5c2   :  { %9038 = vmatprep.mubr.bf16.mxu0 %v10671_v55  ;;  %v8124_v42 = vpop.f32.mrb[226].mxu1  ;;  %v19367_v55 = vld [vmem:[#allocation13_spill] sm:$0xff] }
 0x5c3   :  { %v17731_v59 = vadd.f32 %v17580_v54, %v8122_v21  ;;  %v8125_v46 = vadd.f32 %v8124_v42, %v19366_v48  ;;  %v8126_v57 = vpop.f32.mrb[227].mxu1 }
 0x5c4   :  { %v17734_v20 = vpop.f32.mrb[208].mxu0  ;;  %v19370_v57 = vld [vmem:[#allocation90_spill] sm:$0xff] }
 0x5c5   :  { %v8826_v51 = vpop.f32.mrb[209].mxu0  ;;  %v17739_v49 = vadd.f32 %v17588_v61, %v8125_v46 }
 0x5c6   :  { %v17741_v63 = vpop.f32.mrb[210].mxu0 }
 0x5c7   :  { %v8829_v14 = vpop.f32.mrb[211].mxu0 }
 0x5c8   :  { %v8129_v60 = vpop.f32.mrb[228].mxu1 }
 0x5c9   :  { %9039 = vmatmul.mubr.bf16.gmra.mrb[60].mxu0 %v10669_v1  ;;  %v8130_v54 = vadd.f32 %v8129_v60, %v19367_v55  ;;  %v8131_v34 = vpop.f32.mrb[229].mxu1 }
 0x5ca   :  { %v8132_v5 = vpop.f32.mrb[230].mxu1 }
 0x5cb   :  { %v17745_v44 = vadd.f32 %v17578_v43, %v8130_v54  ;;  %v8133_v21 = vadd.f32 %v8132_v5, %v19368_v27  ;;  %v8134_v29 = vpop.f32.mrb[231].mxu1 }
 0x5cc   :  { %v17748_v42 = vpop.f32.mrb[212].mxu0  ;;  %v19373_v29 = vld [vmem:[#allocation89_spill] sm:$0xff] }
 0x5cd   :  { %v8834_v39 = vpop.f32.mrb[213].mxu0  ;;  %v17751_v61 = vadd.f32 %v17585_v2, %v8133_v21 }
 0x5ce   :  { %v17753_v45 = vpop.f32.mrb[214].mxu0 }
 0x5cf   :  { %19369 = vst [vmem:[#allocation123_spill] sm:$0xff] %v17751_v61  ;;  %v8837_v48 = vpop.f32.mrb[215].mxu0 }
 0x5d0   :  { %v8137_v46 = vpop.f32.mrb[232].mxu1 }
 0x5d1   :  { %v8138_v51 = vadd.f32 %v8137_v46, %v19370_v57  ;;  %v8139_v1 = vpop.f32.mrb[233].mxu1  ;;  %v19375_v57 = vld [vmem:[#allocation96_spill] sm:$0xff] }
 0x5d2   :  { %v8140_v14 = vpop.f32.mrb[234].mxu1 }
 0x5d3   :  { %v17757_v43 = vadd.f32 %v17599_v36, %v8138_v51  ;;  %v8141_v60 = vadd.f32 %v8140_v14, %v17310_v35  ;;  %v8142_v55 = vpop.f32.mrb[235].mxu1 }
 0x5d4   :  { %v17760_v54 = vpop.f32.mrb[216].mxu0 }
 0x5d5   :  { %19371 = vst [vmem:[#allocation78_spill] sm:$0xff] %v17757_v43  ;;  %v8842_v34 = vpop.f32.mrb[217].mxu0  ;;  %v17763_v2 = vadd.f32 %v17608_v15, %v8141_v60 }
 0x5d6   :  { %v17765_v5 = vpop.f32.mrb[218].mxu0 }
 0x5d7   :  { %19372 = vst [vmem:[#allocation92_spill] sm:$0xff] %v17763_v2  ;;  %v8845_v27 = vpop.f32.mrb[219].mxu0 }
 0x5d8   :  { %v8145_v21 = vpop.f32.mrb[236].mxu1 }
 0x5d9   :  { %v8146_v39 = vadd.f32 %v8145_v21, %v19373_v29  ;;  %v8147_v48 = vpop.f32.mrb[237].mxu1 }
 0x5da   :  { %v8148_v46 = vpop.f32.mrb[238].mxu1 }
 0x5db   :  { %v17769_v36 = vadd.f32 %v17597_v62, %v8146_v39  ;;  %v8149_v35 = vadd.f32 %v8148_v46, %v19375_v57  ;;  %v8150_v51 = vpop.f32.mrb[239].mxu1 }
 0x5dc   :  { %v17772_v1 = vpop.f32.mrb[220].mxu0 }
 0x5dd   :  { %19374 = vst [vmem:[#allocation121_spill] sm:$0xff] %v17769_v36  ;;  %v8850_v14 = vpop.f32.mrb[221].mxu0  ;;  %v17775_v15 = vadd.f32 %v17605_v11, %v8149_v35  ;;  %v9400_v36 = vld [vmem:[#allocation3] sm:$0xff] }
 0x5de   :  { %v17777_v60 = vpop.f32.mrb[222].mxu0 }
 0x5df   :  { %19376 = vst [vmem:[#allocation93_spill] sm:$0xff] %v17775_v15  ;;  %v8853_v55 = vpop.f32.mrb[223].mxu0 }
 0x5e0   :  { %v8153_v34 = vpop.f32.mrb[240].mxu1 }
 0x5e1   :  { %v8154_v27 = vadd.f32 %v8153_v34, %v17330_v18  ;;  %v8155_v21 = vpop.f32.mrb[241].mxu1 }
 0x5e2   :  { %v8156_v29 = vpop.f32.mrb[242].mxu1 }
 0x5e3   :  { %v17781_v62 = vadd.f32 %v17621_v8, %v8154_v27  ;;  %v8157_v39 = vadd.f32 %v8156_v29, %v17334_v3  ;;  %v8158_v48 = vpop.f32.mrb[243].mxu1  ;;  %v19380_v27 = vld [vmem:[#allocation54_spill] sm:$0xff] }
 0x5e4   :  { %v17784_v46 = vpop.f32.mrb[224].mxu0 }
 0x5e5   :  { %19377 = vst [vmem:[#allocation53_spill] sm:$0xff] %v17781_v62  ;;  %v8858_v57 = vpop.f32.mrb[225].mxu0  ;;  %v17787_v11 = vadd.f32 %v17630_v31, %v8157_v39 }
 0x5e6   :  { %v17789_v35 = vpop.f32.mrb[226].mxu0 }
 0x5e7   :  { %19378 = vst [vmem:[#allocation72_spill] sm:$0xff] %v17787_v11  ;;  %v8861_v51 = vpop.f32.mrb[227].mxu0  ;;  %v19382_v11 = vld [vmem:[#allocation108_spill] sm:$0xff] }
 0x5e8   :  { %v8161_v14 = vpop.f32.mrb[244].mxu1 }
 0x5e9   :  { %v8162_v18 = vadd.f32 %v8161_v14, %v17341_v13  ;;  %v8163_v55 = vpop.f32.mrb[245].mxu1 }
 0x5ea   :  { %v8164_v34 = vpop.f32.mrb[246].mxu1 }
 0x5eb   :  { %v17793_v8 = vadd.f32 %v17617_v58, %v8162_v18  ;;  %v8165_v3 = vadd.f32 %v8164_v34, %v19380_v27  ;;  %v8166_v21 = vpop.f32.mrb[247].mxu1  ;;  %v19384_v18 = vld [vmem:[#allocation100_spill] sm:$0xff] }
 0x5ec   :  { %v17796_v29 = vpop.f32.mrb[228].mxu0 }
 0x5ed   :  { %19379 = vst [vmem:[#allocation19_spill] sm:$0xff] %v17793_v8  ;;  %v8866_v48 = vpop.f32.mrb[229].mxu0  ;;  %v17799_v31 = vadd.f32 %v17627_v17, %v8165_v3  ;;  %v19386_v8 = vld [vmem:[#allocation104_spill] sm:$0xff] }
 0x5ee   :  { %v17801_v39 = vpop.f32.mrb[230].mxu0 }
 0x5ef   :  { %19381 = vst [vmem:[#allocation45_spill] sm:$0xff] %v17799_v31  ;;  %v8869_v57 = vpop.f32.mrb[231].mxu0 }
 0x5f0   :  { %v8169_v51 = vpop.f32.mrb[248].mxu1 }
 0x5f1   :  { %v8170_v13 = vadd.f32 %v8169_v51, %v19382_v11  ;;  %v8171_v14 = vpop.f32.mrb[249].mxu1 }
 0x5f2   :  { %v8172_v55 = vpop.f32.mrb[250].mxu1 }
 0x5f3   :  { %v17805_v58 = vadd.f32 %v17648_v40, %v8170_v13  ;;  %v8173_v34 = vadd.f32 %v8172_v55, %v19384_v18  ;;  %v8174_v27 = vpop.f32.mrb[251].mxu1  ;;  %v19388_v13 = vld [vmem:[#allocation103_spill] sm:$0xff] }
 0x5f4   :  { %v17808_v21 = vpop.f32.mrb[232].mxu0 }
 0x5f5   :  { %19383 = vst [vmem:[#allocation57_spill] sm:$0xff] %v17805_v58  ;;  %v8874_v48 = vpop.f32.mrb[233].mxu0  ;;  %v17811_v17 = vadd.f32 %v17657_v47, %v8173_v34 }
 0x5f6   :  { %v17813_v3 = vpop.f32.mrb[234].mxu0 }
 0x5f7   :  { %19385 = vst [vmem:[#allocation59_spill] sm:$0xff] %v17811_v17  ;;  %v8877_v57 = vpop.f32.mrb[235].mxu0 }
 0x5f8   :  { %v8177_v31 = vpop.f32.mrb[252].mxu1 }
 0x5f9   :  { %v8178_v11 = vadd.f32 %v8177_v31, %v19386_v8  ;;  %v8179_v51 = vpop.f32.mrb[253].mxu1 }
 0x5fa   :  { %v8180_v14 = vpop.f32.mrb[254].mxu1 }
 0x5fb   :  { %v17817_v40 = vadd.f32 %v17646_v38, %v8178_v11  ;;  %v8181_v55 = vadd.f32 %v8180_v14, %v19388_v13  ;;  %v8182_v18 = vpop.f32.mrb[255].mxu1  ;;  %v17831_v38 = vld [vmem:[%s18159_s6] ss:$0 sm:$0xff] }
 0x5fc   :  { %v17820_v27 = vpop.f32.mrb[236].mxu0  ;;  %v19390_v14 = vld [vmem:[#allocation58_spill] sm:$0xff] }
 0x5fd   :  { %19387 = vst [vmem:[#allocation106_spill] sm:$0xff] %v17817_v40  ;;  %v8882_v48 = vpop.f32.mrb[237].mxu0  ;;  %v17823_v47 = vadd.f32 %v17654_v10, %v8181_v55 }
 0x5fe   :  { %v17825_v34 = vpop.f32.mrb[238].mxu0 }
 0x5ff   :  { %19389 = vst [vmem:[#allocation119_spill] sm:$0xff] %v17823_v47  ;;  %v8885_v57 = vpop.f32.mrb[239].mxu0 }
 0x600   :  { %v11677_v17 = vpop.f32.mrb[0].mxu1 }
 0x601   :  { %v9090_v8 = vadd.f32 %v11677_v17, %v17688_v7  ;;  %v9081_v31 = vpop.f32.mrb[1].mxu1  ;;  %v17841_v7 = vld [vmem:[%s18160_s7] ss:$0 sm:$0xff] }
 0x602   :  { %v9082_v11 = vadd.f32 %v9081_v31, %v17670_v16  ;;  %v11678_v51 = vpop.f32.mrb[2].mxu1  ;;  %v19391_v17 = vld [vmem:[#allocation22_spill] sm:$0xff] }
 0x603   :  { %v9338_v13 = vadd.f32 %v9090_v8, %v19390_v14  ;;  %v9093_v10 = vadd.f32 %v11678_v51, %v17693_v6  ;;  %v9084_v55 = vpop.f32.mrb[3].mxu1  ;;  %v19392_v31 = vld [vmem:[#allocation14_spill] sm:$0xff]  ;;  %v19393_v14 = vld [vmem:[#allocation109_spill] sm:$0xff] }
 0x604   :  { %v17836_v18 = vpop.f32.mrb[240].mxu0  ;;  %v9336_v48 = vadd.f32 %v9082_v11, %v19391_v17  ;;  %v9085_v57 = vadd.f32 %v9084_v55, %v17675_v25  ;;  %v9402_v6 = vld [vmem:[#allocation3 + $0x10] sm:$0xff] }
 0x605   :  { %v8890_v47 = vpop.f32.mrb[241].mxu0  ;;  %v9473_v16 = vmul.f32 %v17831_v38, %v9338_v13  ;;  %v9339_v40 = vadd.f32 %v9093_v10, %v19392_v31  ;;  %v9401_v31 = vld [vmem:[#allocation3 + $0x8] sm:$0xff] }
 0x606   :  { %v17847_v8 = vpop.f32.mrb[242].mxu0  ;;  %v9471_v51 = vmul.f32 %v17831_v38, %v9336_v48  ;;  %v9337_v58 = vadd.f32 %v9085_v57, %v19393_v14  ;;  %v9403_v47 = vld [vmem:[#allocation3 + $0x18] sm:$0xff] }
 0x607   :  { %v8893_v62 = vpop.f32.mrb[243].mxu0  ;;  %v9544_v15 = vadd.f32 %v17841_v7, %v9473_v16  ;;  %v9474_v11 = vmul.f32 %v17831_v38, %v9339_v40 }
 0x608   :  { %v9542_v25 = vadd.f32 %v17841_v7, %v9471_v51  ;;  %v9472_v13 = vmul.f32 %v17831_v38, %v9337_v58  ;;  %v11681_v55 = vpop.f32.mrb[4].mxu1 }
 0x609   :  { %v9608_v10 = vadd.f32 %v9544_v15, %v9402_v6  ;;  %v9545_v17 = vadd.f32 %v17841_v7, %v9474_v11  ;;  %v9106_v48 = vadd.f32 %v11681_v55, %v17721_v19  ;;  %v9097_v2 = vpop.f32.mrb[5].mxu1 }
 0x60a   :  { %v9606_v57 = vadd.f32 %v9542_v25, %v9400_v36  ;;  %v9543_v62 = vadd.f32 %v17841_v7, %v9472_v13  ;;  %v9098_v16 = vadd.f32 %v9097_v2, %v17703_v41  ;;  %v11682_v14 = vpop.f32.mrb[6].mxu1 }
 0x60b   :  { %v9609_v40 = vadd.f32 %v9545_v17, %v9403_v47  ;;  %v9342_v51 = vadd.f32 %v9106_v48, %v17404_v28  ;;  %v9109_v43 = vadd.f32 %v11682_v14, %v17726_v9  ;;  %v9100_v58 = vpop.f32.mrb[7].mxu1  ;;  %v9672_v36 = vmax.f32 %v9608_v10, 0.0  ;;  %v9406_v9 = vld [vmem:[#allocation3 + $0x30] sm:$0xff]  ;;  %v19394_v17 = vld [vmem:[#allocation25_spill] sm:$0xff] }
 0x60c   :  { %v17861_v61 = vpop.f32.mrb[244].mxu0  ;;  %v9607_v15 = vadd.f32 %v9543_v62, %v9401_v31  ;;  %v9340_v6 = vadd.f32 %v9098_v16, %v17408_v37  ;;  %v9101_v19 = vadd.f32 %v9100_v58, %v17708_v33  ;;  %v9670_v28 = vmax.f32 %v9606_v57, 0.0  ;;  %v9404_v62 = vld [vmem:[#allocation3 + $0x20] sm:$0xff]  ;;  %v9405_v58 = vld [vmem:[#allocation3 + $0x28] sm:$0xff] }
 0x60d   :  { %v8898_v11 = vpop.f32.mrb[245].mxu0  ;;  %v9673_v25 = vmax.f32 %v9609_v40, 0.0  ;;  %v9477_v13 = vmul.f32 %v17831_v38, %v9342_v51  ;;  %v9343_v41 = vadd.f32 %v9109_v43, %v17411_v26  ;;  %v9407_v26 = vld [vmem:[#allocation3 + $0x38] sm:$0xff] }
 0x60e   :  { %v17867_v2 = vpop.f32.mrb[246].mxu0  ;;  %v9671_v47 = vmax.f32 %v9607_v15, 0.0  ;;  %v9475_v55 = vmul.f32 %v17831_v38, %v9340_v6  ;;  %v9341_v31 = vadd.f32 %v9101_v19, %v19394_v17 }
 0x60f   :  { %v8901_v48 = vpop.f32.mrb[247].mxu0  ;;  %v10836_v37 = vpack.c.bf16 %v9673_v25, %v9672_v36  ;;  %v9548_v33 = vadd.f32 %v17841_v7, %v9477_v13  ;;  %v9478_v10 = vmul.f32 %v17831_v38, %v9343_v41 }
 0x610   :  { %v10831_v16 = vpack.c.bf16 %v9671_v47, %v9670_v28  ;;  %v9546_v14 = vadd.f32 %v17841_v7, %v9475_v55  ;;  %v9476_v43 = vmul.f32 %v17831_v38, %v9341_v31  ;;  %v11685_v57 = vpop.f32.mrb[8].mxu1 }
 0x611   :  { %10988 = vst [vmem:[#allocation8 + $0x8] sm:$0xff] %v10836_v37   ;;  %v9612_v40 = vadd.f32 %v9548_v33, %v9406_v9  ;;  %v9549_v51 = vadd.f32 %v17841_v7, %v9478_v10  ;;  %v9122_v15 = vadd.f32 %v11685_v57, %v17748_v42  ;;  %v9113_v6 = vpop.f32.mrb[9].mxu1 }
 0x612   :  { %10832 = vst [vmem:[#allocation8] sm:$0xff] %v10831_v16   ;;  %v9610_v19 = vadd.f32 %v9546_v14, %v9404_v62  ;;  %v9547_v11 = vadd.f32 %v17841_v7, %v9476_v43  ;;  %v9114_v36 = vadd.f32 %v9113_v6, %v17734_v20  ;;  %v11686_v25 = vpop.f32.mrb[10].mxu1  ;;  %v9408_v43 = vld [vmem:[#allocation3 + $0x40] sm:$0xff] }
 0x613   :  { %v9613_v13 = vadd.f32 %v9549_v51, %v9407_v26  ;;  %v9346_v41 = vadd.f32 %v9122_v15, %v17423_v24  ;;  %v9125_v28 = vadd.f32 %v11686_v25, %v17753_v45  ;;  %v9116_v47 = vpop.f32.mrb[11].mxu1  ;;  %v9676_v48 = vmax.f32 %v9612_v40, 0.0  ;;  %v9410_v45 = vld [vmem:[#allocation3 + $0x50] sm:$0xff] }
 0x614   :  { %v17881_v9 = vpop.f32.mrb[248].mxu0  ;;  %v9611_v55 = vadd.f32 %v9547_v11, %v9405_v58  ;;  %v9344_v17 = vadd.f32 %v9114_v36, %v17426_v22  ;;  %v9117_v42 = vadd.f32 %v9116_v47, %v17741_v63  ;;  %v9674_v24 = vmax.f32 %v9610_v19, 0.0  ;;  %v9409_v11 = vld [vmem:[#allocation3 + $0x48] sm:$0xff] }
 0x615   :  { %v8906_v31 = vpop.f32.mrb[249].mxu0  ;;  %v9677_v37 = vmax.f32 %v9613_v13, 0.0  ;;  %v9481_v33 = vmul.f32 %v17831_v38, %v9346_v41  ;;  %v9347_v20 = vadd.f32 %v9125_v28, %v17429_v30  ;;  %v9411_v30 = vld [vmem:[#allocation3 + $0x58] sm:$0xff] }
 0x616   :  { %v17887_v62 = vpop.f32.mrb[250].mxu0  ;;  %v9675_v10 = vmax.f32 %v9611_v55, 0.0  ;;  %v9479_v16 = vmul.f32 %v17831_v38, %v9344_v17  ;;  %v9345_v14 = vadd.f32 %v9117_v42, %v17432_v12 }
 0x617   :  { %v8909_v26 = vpop.f32.mrb[251].mxu0  ;;  %v10846_v22 = vpack.c.bf16 %v9677_v37, %v9676_v48  ;;  %v9552_v63 = vadd.f32 %v17841_v7, %v9481_v33  ;;  %v9482_v57 = vmul.f32 %v17831_v38, %v9347_v20  ;;  %v19395_v37 = vld [vmem:[#allocation32_spill] sm:$0xff] }
 0x618   :  { %v10841_v40 = vpack.c.bf16 %v9675_v10, %v9674_v24  ;;  %v9550_v51 = vadd.f32 %v17841_v7, %v9479_v16  ;;  %v9480_v58 = vmul.f32 %v17831_v38, %v9345_v14  ;;  %v11689_v15 = vpop.f32.mrb[12].mxu1 }
 0x619   :  { %10990 = vst [vmem:[#allocation8 + $0x18] sm:$0xff] %v10846_v22   ;;  %v9616_v6 = vadd.f32 %v9552_v63, %v9410_v45  ;;  %v9553_v19 = vadd.f32 %v17841_v7, %v9482_v57  ;;  %v9138_v12 = vadd.f32 %v11689_v15, %v17772_v1  ;;  %v9129_v36 = vpop.f32.mrb[13].mxu1  ;;  %v19397_v63 = vld [vmem:[#allocation17_spill] sm:$0xff] }
 0x61a   :  { %10989 = vst [vmem:[#allocation8 + $0x10] sm:$0xff] %v10841_v40   ;;  %v9614_v25 = vadd.f32 %v9550_v51, %v9408_v43  ;;  %v9551_v13 = vadd.f32 %v17841_v7, %v9480_v58  ;;  %v9130_v41 = vadd.f32 %v9129_v36, %v17760_v54  ;;  %v11690_v28 = vpop.f32.mrb[14].mxu1  ;;  %v19396_v54 = vld [vmem:[#allocation112_spill] sm:$0xff] }
 0x61b   :  { %v9617_v47 = vadd.f32 %v9553_v19, %v9411_v30  ;;  %v9350_v55 = vadd.f32 %v9138_v12, %v17442_v53  ;;  %v9141_v17 = vadd.f32 %v11690_v28, %v17777_v60  ;;  %v9132_v42 = vpop.f32.mrb[15].mxu1  ;;  %v9680_v24 = vmax.f32 %v9616_v6, 0.0  ;;  %v9414_v60 = vld [vmem:[#allocation3 + $0x70] sm:$0xff]  ;;  %v9412_v51 = vld [vmem:[#allocation3 + $0x60] sm:$0xff]  ;;  %v9415_v6 = vld [vmem:[#allocation3 + $0x78] sm:$0xff] }
 0x61c   :  { %v17901_v31 = vpop.f32.mrb[252].mxu0  ;;  %v9615_v48 = vadd.f32 %v9551_v13, %v9409_v11  ;;  %v9348_v33 = vadd.f32 %v9130_v41, %v19395_v37  ;;  %v9133_v1 = vadd.f32 %v9132_v42, %v17765_v5  ;;  %v9678_v53 = vmax.f32 %v9614_v25, 0.0  ;;  %v9413_v25 = vld [vmem:[#allocation3 + $0x68] sm:$0xff] }
 0x61d   :  { %v8914_v20 = vpop.f32.mrb[253].mxu0  ;;  %v9681_v10 = vmax.f32 %v9617_v47, 0.0  ;;  %v9485_v45 = vmul.f32 %v17831_v38, %v9350_v55  ;;  %v9351_v16 = vadd.f32 %v9141_v17, %v19396_v54 }
 0x61e   :  { %v17907_v14 = vpop.f32.mrb[254].mxu0  ;;  %v9679_v26 = vmax.f32 %v9615_v48, 0.0  ;;  %v9483_v22 = vmul.f32 %v17831_v38, %v9348_v33  ;;  %v9349_v43 = vadd.f32 %v9133_v1, %v19397_v63  ;;  %v19398_v48 = vld [vmem:[#allocation35_spill] sm:$0xff] }
 0x61f   :  { %v8917_v57 = vpop.f32.mrb[255].mxu0  ;;  %v10856_v40 = vpack.c.bf16 %v9681_v10, %v9680_v24  ;;  %v9556_v5 = vadd.f32 %v17841_v7, %v9485_v45  ;;  %v9486_v30 = vmul.f32 %v17831_v38, %v9351_v16  ;;  %v19399_v10 = vld [vmem:[#allocation33_spill] sm:$0xff] }
 0x620   :  { %v10851_v58 = vpack.c.bf16 %v9679_v26, %v9678_v53  ;;  %v9554_v15 = vadd.f32 %v17841_v7, %v9483_v22  ;;  %v9484_v19 = vmul.f32 %v17831_v38, %v9349_v43  ;;  %v11693_v11 = vpop.f32.mrb[16].mxu1 }
 0x621   :  { %10992 = vst [vmem:[#allocation8 + $0x28] sm:$0xff] %v10856_v40   ;;  %v9620_v12 = vadd.f32 %v9556_v5, %v9414_v60  ;;  %v9557_v36 = vadd.f32 %v17841_v7, %v9486_v30  ;;  %v9154_v13 = vadd.f32 %v11693_v11, %v17796_v29  ;;  %v9145_v41 = vpop.f32.mrb[17].mxu1  ;;  %v19401_v40 = vld [vmem:[#allocation127_spill] sm:$0xff] }
 0x622   :  { %10991 = vst [vmem:[#allocation8 + $0x20] sm:$0xff] %v10851_v58   ;;  %v9618_v28 = vadd.f32 %v9554_v15, %v9412_v51  ;;  %v9555_v47 = vadd.f32 %v17841_v7, %v9484_v19  ;;  %v9146_v55 = vadd.f32 %v9145_v41, %v17784_v46  ;;  %v11694_v17 = vpop.f32.mrb[18].mxu1  ;;  %v19400_v46 = vld [vmem:[#allocation111_spill] sm:$0xff]  ;;  %v9416_v58 = vld [vmem:[#allocation3 + $0x80] sm:$0xff]  ;;  %v9417_v41 = vld [vmem:[#allocation3 + $0x88] sm:$0xff] }
 0x623   :  { %v9621_v42 = vadd.f32 %v9557_v36, %v9415_v6  ;;  %v9354_v37 = vadd.f32 %v9154_v13, %v19398_v48  ;;  %v9157_v33 = vadd.f32 %v11694_v17, %v17801_v39  ;;  %v9148_v1 = vpop.f32.mrb[19].mxu1  ;;  %v9684_v16 = vmax.f32 %v9620_v12, 0.0  ;;  %v9418_v39 = vld [vmem:[#allocation3 + $0x90] sm:$0xff]  ;;  %v9419_v11 = vld [vmem:[#allocation3 + $0x98] sm:$0xff] }
 0x624   :  { %v17921_v20 = vpop.f32.mrb[0].mxu0  ;;  %v9619_v24 = vadd.f32 %v9555_v47, %v9413_v25  ;;  %v9352_v45 = vadd.f32 %v9146_v55, %v19399_v10  ;;  %v9149_v29 = vadd.f32 %v9148_v1, %v17789_v35  ;;  %v9682_v63 = vmax.f32 %v9618_v28, 0.0 }
 0x625   :  { %v8922_v54 = vpop.f32.mrb[1].mxu0  ;;  %v9685_v53 = vmax.f32 %v9621_v42, 0.0  ;;  %v9489_v26 = vmul.f32 %v17831_v38, %v9354_v37  ;;  %v9355_v60 = vadd.f32 %v9157_v33, %v19400_v46  ;;  %v19402_v33 = vld [vmem:[#allocation38_spill] sm:$0xff] }
 0x626   :  { %v17927_v22 = vpop.f32.mrb[2].mxu0  ;;  %v9683_v43 = vmax.f32 %v9619_v24, 0.0  ;;  %v9487_v57 = vmul.f32 %v17831_v38, %v9352_v45  ;;  %v9353_v5 = vadd.f32 %v9149_v29, %v19401_v40  ;;  %v19403_v54 = vld [vmem:[#allocation77_spill] sm:$0xff] }
 0x627   :  { %v8925_v51 = vpop.f32.mrb[3].mxu0  ;;  %v10866_v30 = vpack.c.bf16 %v9685_v53, %v9684_v16  ;;  %v9560_v35 = vadd.f32 %v17841_v7, %v9489_v26  ;;  %v9490_v15 = vmul.f32 %v17831_v38, %v9355_v60 }
 0x628   :  { %v10861_v6 = vpack.c.bf16 %v9683_v43, %v9682_v63  ;;  %v9558_v19 = vadd.f32 %v17841_v7, %v9487_v57  ;;  %v9488_v12 = vmul.f32 %v17831_v38, %v9353_v5  ;;  %v11697_v36 = vpop.f32.mrb[20].mxu1  ;;  %v19405_v5 = vld [vmem:[#allocation113_spill] sm:$0xff] }
 0x629   :  { %10994 = vst [vmem:[#allocation8 + $0x38] sm:$0xff] %v10866_v30   ;;  %v9624_v25 = vadd.f32 %v9560_v35, %v9418_v39  ;;  %v9561_v13 = vadd.f32 %v17841_v7, %v9490_v15  ;;  %v9170_v28 = vadd.f32 %v11697_v36, %v17820_v27  ;;  %v9161_v47 = vpop.f32.mrb[21].mxu1 }
 0x62a   :  { %10993 = vst [vmem:[#allocation8 + $0x30] sm:$0xff] %v10861_v6   ;;  %v9622_v55 = vadd.f32 %v9558_v19, %v9416_v58  ;;  %v9559_v17 = vadd.f32 %v17841_v7, %v9488_v12  ;;  %v9162_v42 = vadd.f32 %v9161_v47, %v17808_v21  ;;  %v11698_v48 = vpop.f32.mrb[22].mxu1  ;;  %v19404_v21 = vld [vmem:[#allocation116_spill] sm:$0xff] }
 0x62b   :  { %v9625_v37 = vadd.f32 %v9561_v13, %v9419_v11  ;;  %v9358_v1 = vadd.f32 %v9170_v28, %v19402_v33  ;;  %v9173_v24 = vadd.f32 %v11698_v48, %v17825_v34  ;;  %v9164_v10 = vpop.f32.mrb[23].mxu1  ;;  %v9688_v26 = vmax.f32 %v9624_v25, 0.0  ;;  %v9422_v34 = vld [vmem:[#allocation3 + $0xb0] sm:$0xff]  ;;  %v9420_v58 = vld [vmem:[#allocation3 + $0xa0] sm:$0xff]  ;;  %v9423_v11 = vld [vmem:[#allocation3 + $0xb8] sm:$0xff] }
 0x62c   :  { %v17941_v45 = vpop.f32.mrb[4].mxu0  ;;  %v9623_v29 = vadd.f32 %v9559_v17, %v9417_v41  ;;  %v9356_v16 = vadd.f32 %v9162_v42, %v19403_v54  ;;  %v9165_v27 = vadd.f32 %v9164_v10, %v17813_v3  ;;  %v9686_v39 = vmax.f32 %v9622_v55, 0.0  ;;  %v9421_v41 = vld [vmem:[#allocation3 + $0xa8] sm:$0xff]  ;;  %v19406_v33 = vld [vmem:[#allocation62_spill] sm:$0xff] }
 0x62d   :  { %v8930_v53 = vpop.f32.mrb[5].mxu0  ;;  %v9689_v46 = vmax.f32 %v9625_v37, 0.0  ;;  %v9493_v60 = vmul.f32 %v17831_v38, %v9358_v1  ;;  %v9359_v63 = vadd.f32 %v9173_v24, %v19404_v21 }
 0x62e   :  { %v17947_v43 = vpop.f32.mrb[6].mxu0  ;;  %v9687_v57 = vmax.f32 %v9623_v29, 0.0  ;;  %v9491_v40 = vmul.f32 %v17831_v38, %v9356_v16  ;;  %v9357_v51 = vadd.f32 %v9165_v27, %v19405_v5  ;;  %v19407_v16 = vld [vmem:[#allocation82_spill] sm:$0xff] }
 0x62f   :  { %v8933_v30 = vpop.f32.mrb[7].mxu0  ;;  %v10876_v35 = vpack.c.bf16 %v9689_v46, %v9688_v26  ;;  %v9564_v3 = vadd.f32 %v17841_v7, %v9493_v60  ;;  %v9494_v15 = vmul.f32 %v17831_v38, %v9359_v63 }
 0x630   :  { %v10871_v6 = vpack.c.bf16 %v9687_v57, %v9686_v39  ;;  %v9562_v19 = vadd.f32 %v17841_v7, %v9491_v40  ;;  %v9492_v12 = vmul.f32 %v17831_v38, %v9357_v51  ;;  %v11701_v36 = vpop.f32.mrb[24].mxu1  ;;  %v19409_v40 = vld [vmem:[#allocation115_spill] sm:$0xff] }
 0x631   :  { %10996 = vst [vmem:[#allocation8 + $0x48] sm:$0xff] %v10876_v35   ;;  %v9628_v25 = vadd.f32 %v9564_v3, %v9422_v34  ;;  %v9565_v13 = vadd.f32 %v17841_v7, %v9494_v15  ;;  %v9186_v28 = vadd.f32 %v11701_v36, %v17861_v61  ;;  %v9177_v47 = vpop.f32.mrb[25].mxu1  ;;  %v9424_v35 = vld [vmem:[#allocation3 + $0xc0] sm:$0xff] }
 0x632   :  { %10995 = vst [vmem:[#allocation8 + $0x40] sm:$0xff] %v10871_v6   ;;  %v9626_v55 = vadd.f32 %v9562_v19, %v9420_v58  ;;  %v9563_v17 = vadd.f32 %v17841_v7, %v9492_v12  ;;  %v9178_v42 = vadd.f32 %v9177_v47, %v17836_v18  ;;  %v11702_v48 = vpop.f32.mrb[26].mxu1  ;;  %v19408_v18 = vld [vmem:[#allocation28_spill] sm:$0xff]  ;;  %v9427_v6 = vld [vmem:[#allocation3 + $0xd8] sm:$0xff] }
 0x633   :  { %v9629_v37 = vadd.f32 %v9565_v13, %v9423_v11  ;;  %v9362_v1 = vadd.f32 %v9186_v28, %v19406_v33  ;;  %v9189_v24 = vadd.f32 %v11702_v48, %v17867_v2  ;;  %v9180_v10 = vpop.f32.mrb[27].mxu1  ;;  %v9692_v26 = vmax.f32 %v9628_v25, 0.0  ;;  %v9426_v2 = vld [vmem:[#allocation3 + $0xd0] sm:$0xff]  ;;  %v9425_v25 = vld [vmem:[#allocation3 + $0xc8] sm:$0xff]  ;;  %v19410_v48 = vld [vmem:[#allocation51_spill] sm:$0xff] }
 0x634   :  { %v17961_v29 = vpop.f32.mrb[8].mxu0  ;;  %v9627_v54 = vadd.f32 %v9563_v17, %v9421_v41  ;;  %v9360_v27 = vadd.f32 %v9178_v42, %v19407_v16  ;;  %v9181_v61 = vadd.f32 %v9180_v10, %v17847_v8  ;;  %v9690_v39 = vmax.f32 %v9626_v55, 0.0 }
 0x635   :  { %v8938_v53 = vpop.f32.mrb[9].mxu0  ;;  %v9693_v46 = vmax.f32 %v9629_v37, 0.0  ;;  %v9497_v60 = vmul.f32 %v17831_v38, %v9362_v1  ;;  %v9363_v21 = vadd.f32 %v9189_v24, %v19408_v18 }
 0x636   :  { %v17967_v63 = vpop.f32.mrb[10].mxu0  ;;  %v9691_v57 = vmax.f32 %v9627_v54, 0.0  ;;  %v9495_v34 = vmul.f32 %v17831_v38, %v9360_v27  ;;  %v9361_v5 = vadd.f32 %v9181_v61, %v19409_v40  ;;  %v19411_v54 = vld [vmem:[#allocation36_spill] sm:$0xff] }
 0x637   :  { %v8941_v51 = vpop.f32.mrb[11].mxu0  ;;  %v10886_v30 = vpack.c.bf16 %v9693_v46, %v9692_v26  ;;  %v9568_v8 = vadd.f32 %v17841_v7, %v9497_v60  ;;  %v9498_v3 = vmul.f32 %v17831_v38, %v9363_v21 }
 0x638   :  { %v10881_v58 = vpack.c.bf16 %v9691_v57, %v9690_v39  ;;  %v9566_v15 = vadd.f32 %v17841_v7, %v9495_v34  ;;  %v9496_v19 = vmul.f32 %v17831_v38, %v9361_v5  ;;  %v11705_v11 = vpop.f32.mrb[28].mxu1  ;;  %v19413_v57 = vld [vmem:[#allocation117_spill] sm:$0xff]  ;;  %v9428_v5 = vld [vmem:[#allocation3 + $0xe0] sm:$0xff] }
 0x639   :  { %10998 = vst [vmem:[#allocation8 + $0x58] sm:$0xff] %v10886_v30   ;;  %v9632_v12 = vadd.f32 %v9568_v8, %v9426_v2  ;;  %v9569_v36 = vadd.f32 %v17841_v7, %v9498_v3  ;;  %v9202_v13 = vadd.f32 %v11705_v11, %v17901_v31  ;;  %v9193_v41 = vpop.f32.mrb[29].mxu1 }
 0x63a   :  { %10997 = vst [vmem:[#allocation8 + $0x50] sm:$0xff] %v10881_v58   ;;  %v9630_v28 = vadd.f32 %v9566_v15, %v9424_v35  ;;  %v9567_v47 = vadd.f32 %v17841_v7, %v9496_v19  ;;  %v9194_v55 = vadd.f32 %v9193_v41, %v17881_v9  ;;  %v11706_v17 = vpop.f32.mrb[30].mxu1  ;;  %v19412_v9 = vld [vmem:[#allocation71_spill] sm:$0xff]  ;;  %v9429_v19 = vld [vmem:[#allocation3 + $0xe8] sm:$0xff] }
 0x63b   :  { %v9633_v42 = vadd.f32 %v9569_v36, %v9427_v6  ;;  %v9366_v37 = vadd.f32 %v9202_v13, %v19410_v48  ;;  %v9205_v33 = vadd.f32 %v11706_v17, %v17907_v14  ;;  %v9196_v1 = vpop.f32.mrb[31].mxu1  ;;  %v9696_v61 = vmax.f32 %v9632_v12, 0.0  ;;  %v9430_v14 = vld [vmem:[#allocation3 + $0xf0] sm:$0xff]  ;;  %v9431_v35 = vld [vmem:[#allocation3 + $0xf8] sm:$0xff] }
 0x63c   :  { %v17981_v24 = vpop.f32.mrb[12].mxu0  ;;  %v9631_v10 = vadd.f32 %v9567_v47, %v9425_v25  ;;  %v9364_v16 = vadd.f32 %v9194_v55, %v19411_v54  ;;  %v9197_v31 = vadd.f32 %v9196_v1, %v17887_v62  ;;  %v9694_v18 = vmax.f32 %v9630_v28, 0.0  ;;  %v19414_v47 = vld [vmem:[#allocation120_spill] sm:$0xff] }
 0x63d   :  { %v8946_v27 = vpop.f32.mrb[13].mxu0  ;;  %v9697_v53 = vmax.f32 %v9633_v42, 0.0  ;;  %v9501_v26 = vmul.f32 %v17831_v38, %v9366_v37  ;;  %v9367_v46 = vadd.f32 %v9205_v33, %v19412_v9  ;;  %v19415_v33 = vld [vmem:[#allocation88_spill] sm:$0xff] }
 0x63e   :  { %v17987_v60 = vpop.f32.mrb[14].mxu0  ;;  %v9695_v21 = vmax.f32 %v9631_v10, 0.0  ;;  %v9499_v39 = vmul.f32 %v17831_v38, %v9364_v16  ;;  %v9365_v2 = vadd.f32 %v9197_v31, %v19413_v57 }
 0x63f   :  { %v8949_v34 = vpop.f32.mrb[15].mxu0  ;;  %v10896_v40 = vpack.c.bf16 %v9697_v53, %v9696_v61  ;;  %v9572_v62 = vadd.f32 %v17841_v7, %v9501_v26  ;;  %v9502_v51 = vmul.f32 %v17831_v38, %v9367_v46  ;;  %v19417_v46 = vld [vmem:[#allocation98_spill] sm:$0xff] }
 0x640   :  { %v10891_v30 = vpack.c.bf16 %v9695_v21, %v9694_v18  ;;  %v9570_v8 = vadd.f32 %v17841_v7, %v9499_v39  ;;  %v9500_v3 = vmul.f32 %v17831_v38, %v9365_v2  ;;  %v11709_v58 = vpop.f32.mrb[32].mxu1  ;;  %v9432_v39 = vld [vmem:[#allocation3 + $0x100] sm:$0xff] }
 0x641   :  { %11000 = vst [vmem:[#allocation8 + $0x68] sm:$0xff] %v10896_v40   ;;  %v9636_v15 = vadd.f32 %v9572_v62, %v9430_v14  ;;  %v9573_v6 = vadd.f32 %v17841_v7, %v9502_v51  ;;  %v9218_v11 = vadd.f32 %v11709_v58, %v17941_v45  ;;  %v9209_v12 = vpop.f32.mrb[33].mxu1  ;;  %v9435_v40 = vld [vmem:[#allocation3 + $0x118] sm:$0xff] }
 0x642   :  { %10999 = vst [vmem:[#allocation8 + $0x60] sm:$0xff] %v10891_v30   ;;  %v9634_v36 = vadd.f32 %v9570_v8, %v9428_v5  ;;  %v9571_v25 = vadd.f32 %v17841_v7, %v9500_v3  ;;  %v9210_v13 = vadd.f32 %v9209_v12, %v17921_v20  ;;  %v11710_v41 = vpop.f32.mrb[34].mxu1  ;;  %v19416_v20 = vld [vmem:[#allocation99_spill] sm:$0xff]  ;;  %v9433_v8 = vld [vmem:[#allocation3 + $0x108] sm:$0xff]  ;;  %v19418_v12 = vld [vmem:[#allocation70_spill] sm:$0xff] }
 0x643   :  { %v9637_v28 = vadd.f32 %v9573_v6, %v9431_v35  ;;  %v9370_v55 = vadd.f32 %v9218_v11, %v19414_v47  ;;  %v9221_v17 = vadd.f32 %v11710_v41, %v17947_v43  ;;  %v9212_v42 = vpop.f32.mrb[35].mxu1  ;;  %v9700_v54 = vmax.f32 %v9636_v15, 0.0  ;;  %v9434_v43 = vld [vmem:[#allocation3 + $0x110] sm:$0xff] }
 0x644   :  { %v18001_v48 = vpop.f32.mrb[16].mxu0  ;;  %v9635_v37 = vadd.f32 %v9571_v25, %v9429_v19  ;;  %v9368_v1 = vadd.f32 %v9210_v13, %v19415_v33  ;;  %v9213_v45 = vadd.f32 %v9212_v42, %v17927_v22  ;;  %v9698_v53 = vmax.f32 %v9634_v36, 0.0  ;;  %v19419_v47 = vld [vmem:[#allocation126_spill] sm:$0xff] }
 0x645   :  { %v8954_v10 = vpop.f32.mrb[17].mxu0  ;;  %v9701_v16 = vmax.f32 %v9637_v28, 0.0  ;;  %v9505_v31 = vmul.f32 %v17831_v38, %v9370_v55  ;;  %v9371_v27 = vadd.f32 %v9221_v17, %v19416_v20 }
 0x646   :  { %v18007_v61 = vpop.f32.mrb[18].mxu0  ;;  %v9699_v26 = vmax.f32 %v9635_v37, 0.0  ;;  %v9503_v9 = vmul.f32 %v17831_v38, %v9368_v1  ;;  %v9369_v18 = vadd.f32 %v9213_v45, %v19417_v46  ;;  %v19420_v1 = vld [vmem:[#allocation102_spill] sm:$0xff] }
 0x647   :  { %v8957_v21 = vpop.f32.mrb[19].mxu0  ;;  %v10906_v14 = vpack.c.bf16 %v9701_v16, %v9700_v54  ;;  %v9576_v22 = vadd.f32 %v17841_v7, %v9505_v31  ;;  %v9506_v57 = vmul.f32 %v17831_v38, %v9371_v27  ;;  %v9438_v16 = vld [vmem:[#allocation3 + $0x130] sm:$0xff]  ;;  %v19421_v31 = vld [vmem:[#allocation97_spill] sm:$0xff] }
 0x648   :  { %v10901_v2 = vpack.c.bf16 %v9699_v26, %v9698_v53  ;;  %v9574_v34 = vadd.f32 %v17841_v7, %v9503_v9  ;;  %v9504_v62 = vmul.f32 %v17831_v38, %v9369_v18  ;;  %v11713_v5 = vpop.f32.mrb[36].mxu1  ;;  %v9439_v18 = vld [vmem:[#allocation3 + $0x138] sm:$0xff] }
 0x649   :  { %11002 = vst [vmem:[#allocation8 + $0x78] sm:$0xff] %v10906_v14   ;;  %v9640_v51 = vadd.f32 %v9576_v22, %v9434_v43  ;;  %v9577_v30 = vadd.f32 %v17841_v7, %v9506_v57  ;;  %v9234_v35 = vadd.f32 %v11713_v5, %v17981_v24  ;;  %v9225_v3 = vpop.f32.mrb[37].mxu1  ;;  %v9437_v57 = vld [vmem:[#allocation3 + $0x128] sm:$0xff] }
 0x64a   :  { %11001 = vst [vmem:[#allocation8 + $0x70] sm:$0xff] %v10901_v2   ;;  %v9638_v58 = vadd.f32 %v9574_v34, %v9432_v39  ;;  %v9575_v15 = vadd.f32 %v17841_v7, %v9504_v62  ;;  %v9226_v6 = vadd.f32 %v9225_v3, %v17961_v29  ;;  %v11714_v19 = vpop.f32.mrb[38].mxu1 }
 0x64b   :  { %v9641_v11 = vadd.f32 %v9577_v30, %v9435_v40  ;;  %v9374_v36 = vadd.f32 %v9234_v35, %v19418_v12  ;;  %v9237_v25 = vadd.f32 %v11714_v19, %v17987_v60  ;;  %v9228_v13 = vpop.f32.mrb[39].mxu1  ;;  %v9704_v42 = vmax.f32 %v9640_v51, 0.0 }
 0x64c   :  { %v8960_v41 = vpop.f32.mrb[20].mxu0  ;;  %v9639_v28 = vadd.f32 %v9575_v15, %v9433_v8  ;;  %v9372_v55 = vadd.f32 %v9226_v6, %v19419_v47  ;;  %v9229_v24 = vadd.f32 %v9228_v13, %v17967_v63  ;;  %v9702_v10 = vmax.f32 %v9638_v58, 0.0  ;;  %v9436_v63 = vld [vmem:[#allocation3 + $0x120] sm:$0xff]  ;;  %v9442_v47 = vld [vmem:[#allocation3 + $0x150] sm:$0xff] }
 0x64d   :  { %v8962_v17 = vpop.f32.mrb[21].mxu0  ;;  %v9705_v37 = vmax.f32 %v9641_v11, 0.0  ;;  %v9509_v33 = vmul.f32 %v17831_v38, %v9374_v36  ;;  %v9375_v29 = vadd.f32 %v9237_v25, %v19420_v1 }
 0x64e   :  { %v8963_v45 = vpop.f32.mrb[22].mxu0  ;;  %v9703_v54 = vmax.f32 %v9639_v28, 0.0  ;;  %v9507_v60 = vmul.f32 %v17831_v38, %v9372_v55  ;;  %v9373_v20 = vadd.f32 %v9229_v24, %v19421_v31  ;;  %v19422_v55 = vld [vmem:[#allocation18_spill] sm:$0xff] }
 0x64f   :  { %v8965_v27 = vpop.f32.mrb[23].mxu0  ;;  %v10916_v53 = vpack.c.bf16 %v9705_v37, %v9704_v42  ;;  %v9580_v26 = vadd.f32 %v17841_v7, %v9509_v33  ;;  %v9510_v43 = vmul.f32 %v17831_v38, %v9375_v29  ;;  %v9443_v29 = vld [vmem:[#allocation3 + $0x158] sm:$0xff] }
 0x650   :  { %v10911_v9 = vpack.c.bf16 %v9703_v54, %v9702_v10  ;;  %v9578_v46 = vadd.f32 %v17841_v7, %v9507_v60  ;;  %v9508_v21 = vmul.f32 %v17831_v38, %v9373_v20  ;;  %v11717_v14 = vpop.f32.mrb[40].mxu1 }
 0x651   :  { %11004 = vst [vmem:[#allocation8 + $0x88] sm:$0xff] %v10916_v53   ;;  %v9644_v22 = vadd.f32 %v9580_v26, %v9438_v16  ;;  %v9581_v39 = vadd.f32 %v17841_v7, %v9510_v43  ;;  %v9250_v2 = vadd.f32 %v11717_v14, %v8960_v41  ;;  %v9241_v34 = vpop.f32.mrb[41].mxu1  ;;  %v9441_v16 = vld [vmem:[#allocation3 + $0x148] sm:$0xff] }
 0x652   :  { %11003 = vst [vmem:[#allocation8 + $0x80] sm:$0xff] %v10911_v9   ;;  %v9642_v40 = vadd.f32 %v9578_v46, %v9436_v63  ;;  %v9579_v62 = vadd.f32 %v17841_v7, %v9508_v21  ;;  %v9242_v5 = vadd.f32 %v9241_v34, %v18001_v48  ;;  %v11718_v51 = vpop.f32.mrb[42].mxu1 }
 0x653   :  { %v9645_v30 = vadd.f32 %v9581_v39, %v9439_v18  ;;  %v9378_v8 = vadd.f32 %v9250_v2, %v17685_v4  ;;  %v9253_v35 = vadd.f32 %v11718_v51, %v8963_v45  ;;  %v9244_v3 = vpop.f32.mrb[43].mxu1  ;;  %v9708_v12 = vmax.f32 %v9644_v22, 0.0 }
 0x654   :  { %v8968_v58 = vpop.f32.mrb[24].mxu0  ;;  %v9643_v15 = vadd.f32 %v9579_v62, %v9437_v57  ;;  %v9376_v6 = vadd.f32 %v9242_v5, %v17667_v32  ;;  %v9245_v19 = vadd.f32 %v9244_v3, %v18007_v61  ;;  %v9706_v41 = vmax.f32 %v9642_v40, 0.0  ;;  %v9440_v61 = vld [vmem:[#allocation3 + $0x140] sm:$0xff] }
 0x655   :  { %v8970_v11 = vpop.f32.mrb[25].mxu0  ;;  %v9709_v36 = vmax.f32 %v9645_v30, 0.0  ;;  %v9513_v25 = vmul.f32 %v17831_v38, %v9378_v8  ;;  %v9379_v13 = vadd.f32 %v9253_v35, %v17691_v50  ;;  %v9444_v8 = vld [vmem:[#allocation3 + $0x160] sm:$0xff] }
 0x656   :  { %v8971_v48 = vpop.f32.mrb[26].mxu0  ;;  %v9707_v28 = vmax.f32 %v9643_v15, 0.0  ;;  %v9511_v4 = vmul.f32 %v17831_v38, %v9376_v6  ;;  %v9377_v24 = vadd.f32 %v9245_v19, %v19422_v55  ;;  %v9445_v19 = vld [vmem:[#allocation3 + $0x168] sm:$0xff] }
 0x657   :  { %v8973_v17 = vpop.f32.mrb[27].mxu0  ;;  %v10926_v42 = vpack.c.bf16 %v9709_v36, %v9708_v12  ;;  %v9584_v32 = vadd.f32 %v17841_v7, %v9513_v25  ;;  %v9514_v37 = vmul.f32 %v17831_v38, %v9379_v13  ;;  %v9446_v25 = vld [vmem:[#allocation3 + $0x170] sm:$0xff] }
 0x658   :  { %v10921_v33 = vpack.c.bf16 %v9707_v28, %v9706_v41  ;;  %v9582_v1 = vadd.f32 %v17841_v7, %v9511_v4  ;;  %v9512_v50 = vmul.f32 %v17831_v38, %v9377_v24  ;;  %v11721_v45 = vpop.f32.mrb[44].mxu1  ;;  %v9447_v41 = vld [vmem:[#allocation3 + $0x178] sm:$0xff] }
 0x659   :  { %11006 = vst [vmem:[#allocation8 + $0x98] sm:$0xff] %v10926_v42   ;;  %v9648_v10 = vadd.f32 %v9584_v32, %v9442_v47  ;;  %v9585_v54 = vadd.f32 %v17841_v7, %v9514_v37  ;;  %v9257_v60 = vpop.f32.mrb[45].mxu1 }
 0x65a   :  { %11005 = vst [vmem:[#allocation8 + $0x90] sm:$0xff] %v10921_v33   ;;  %v9646_v31 = vadd.f32 %v9582_v1, %v9440_v61  ;;  %v9583_v20 = vadd.f32 %v17841_v7, %v9512_v50  ;;  %v9258_v27 = vadd.f32 %v9257_v60, %v8968_v58  ;;  %v11722_v53 = vpop.f32.mrb[46].mxu1 }
 0x65b   :  { %v9649_v26 = vadd.f32 %v9585_v54, %v9443_v29  ;;  %v9260_v63 = vpop.f32.mrb[47].mxu1  ;;  %v9712_v14 = vmax.f32 %v9648_v10, 0.0 }
 0x65c   :  { %v8976_v43 = vpop.f32.mrb[28].mxu0  ;;  %v9647_v9 = vadd.f32 %v9583_v20, %v9441_v16  ;;  %v9380_v46 = vadd.f32 %v9258_v27, %v17700_v56  ;;  %v9261_v18 = vadd.f32 %v9260_v63, %v8971_v48  ;;  %v9710_v22 = vmax.f32 %v9646_v31, 0.0  ;;  %v9448_v31 = vld [vmem:[#allocation3 + $0x180] sm:$0xff]  ;;  %v9449_v63 = vld [vmem:[#allocation3 + $0x188] sm:$0xff] }
 0x65d   :  { %v8978_v21 = vpop.f32.mrb[29].mxu0  ;;  %v9713_v39 = vmax.f32 %v9649_v26, 0.0  ;;  %v9266_v57 = vadd.f32 %v11721_v45, %v8976_v43 }
 0x65e   :  { %v8979_v2 = vpop.f32.mrb[30].mxu0  ;;  %v9711_v34 = vmax.f32 %v9647_v9, 0.0  ;;  %v9515_v40 = vmul.f32 %v17831_v38, %v9380_v46  ;;  %v9381_v62 = vadd.f32 %v9261_v18, %v17706_v52 }
 0x65f   :  { %v9269_v5 = vadd.f32 %v11722_v53, %v8979_v2  ;;  %v8981_v51 = vpop.f32.mrb[31].mxu0  ;;  %v10936_v30 = vpack.c.bf16 %v9713_v39, %v9712_v14  ;;  %v9382_v35 = vadd.f32 %v9266_v57, %v17718_v23 }
 0x660   :  { %v10931_v3 = vpack.c.bf16 %v9711_v34, %v9710_v22  ;;  %v9586_v56 = vadd.f32 %v17841_v7, %v9515_v40  ;;  %v9516_v58 = vmul.f32 %v17831_v38, %v9381_v62  ;;  %v11725_v6 = vpop.f32.mrb[48].mxu1 }
 0x661   :  { %v9383_v15 = vadd.f32 %v9269_v5, %v17724_v0  ;;  %11008 = vst [vmem:[#allocation8 + $0xa8] sm:$0xff] %v10936_v30   ;;  %v9517_v11 = vmul.f32 %v17831_v38, %v9382_v35  ;;  %v9273_v12 = vpop.f32.mrb[49].mxu1  ;;  %v19423_v5 = vld [vmem:[#allocation123_spill] sm:$0xff] }
 0x662   :  { %11007 = vst [vmem:[#allocation8 + $0xa0] sm:$0xff] %v10931_v3   ;;  %v9650_v52 = vadd.f32 %v9586_v56, %v9444_v8  ;;  %v9587_v36 = vadd.f32 %v17841_v7, %v9516_v58  ;;  %v11726_v13 = vpop.f32.mrb[50].mxu1  ;;  %v9450_v8 = vld [vmem:[#allocation3 + $0x190] sm:$0xff] }
 0x663   :  { %v9518_v23 = vmul.f32 %v17831_v38, %v9383_v15  ;;  %v9588_v48 = vadd.f32 %v17841_v7, %v9517_v11  ;;  %v9276_v28 = vpop.f32.mrb[51].mxu1  ;;  %v9451_v15 = vld [vmem:[#allocation3 + $0x198] sm:$0xff] }
 0x664   :  { %v8984_v47 = vpop.f32.mrb[32].mxu0  ;;  %v9651_v0 = vadd.f32 %v9587_v36, %v9445_v19  ;;  %v9714_v17 = vmax.f32 %v9650_v52, 0.0 }
 0x665   :  { %v9589_v4 = vadd.f32 %v17841_v7, %v9518_v23  ;;  %v9274_v55 = vadd.f32 %v9273_v12, %v8984_v47  ;;  %v8986_v24 = vpop.f32.mrb[33].mxu0  ;;  %v9652_v42 = vadd.f32 %v9588_v48, %v9446_v25  ;;  %v18084_v12 = vld [vmem:[%s18160_s7] ss:$0 sm:$0xff]  ;;  %s12122_s7 = smov [#allocation8]  }
 0x666   :  { %v8987_v32 = vpop.f32.mrb[34].mxu0  ;;  %v9715_v61 = vmax.f32 %v9651_v0, 0.0  ;;  %s10059_s23 = sshll.u32 %s12122_s7, 4  ;;  %s10060_s23 = int_to_ptr.vmem [resolvable:$true] %s10059_s23 }
 0x667   :  { %v9653_v37 = vadd.f32 %v9589_v4, %v9447_v41  ;;  %v9384_v33 = vadd.f32 %v9274_v55, %v17731_v59  ;;  %v9277_v1 = vadd.f32 %v9276_v28, %v8987_v32  ;;  %v8989_v29 = vpop.f32.mrb[35].mxu0  ;;  %v9716_v50 = vmax.f32 %v9652_v42, 0.0  ;;  %v19425_v55 = vld [vmem:[#allocation92_spill] sm:$0xff]  ;;  %s12087_s24 = scalar_lea.vmem %s10060_s23, 4096  ;;  %p12092_p3 = scmp.lt.s32.totalorder %s10060_s23, %s10060_s23 }
 0x668   :  { %v10941_v45 = vpack.c.bf16 %v9715_v61, %v9714_v17  ;;  %v18062_v60 = vpop.f32.mrb[52].mxu1  ;;  %v9452_v42 = vld [vmem:[#allocation3 + $0x1a0] sm:$0xff]  ;;  %v9453_v29 = vld [vmem:[#allocation3 + $0x1a8] sm:$0xff]  ;;  %p12088_p2 = scmp.ne.s32.totalorder %s10060_s23, %s12087_s24  ;;  %p12093_p4 = scmp.lt.s32.totalorder %s12087_s24, %s12087_s24 }
 0x669   :  { %v9717_v10 = vmax.f32 %v9653_v37, 0.0  ;;  %v9519_v54 = vmul.f32 %v17831_v38, %v9384_v33  ;;  %v9385_v16 = vadd.f32 %v9277_v1, %v17739_v49  ;;  %v9289_v20 = vpop.f32.mrb[53].mxu1 }
 0x66a   :  { %11009 = vst [vmem:[#allocation8 + $0xb0] sm:$0xff] %v10941_v45   ;;  %v11730_v59 = vpop.f32.mrb[54].mxu1  ;;  %p12094_p5 = por %p12093_p4, %p12092_p3 }
 0x66b   :  { %v10946_v27 = vpack.c.bf16 %v9717_v10, %v9716_v50  ;;  %v9590_v53 = vadd.f32 %v17841_v7, %v9519_v54  ;;  %v9520_v26 = vmul.f32 %v17831_v38, %v9385_v16  ;;  %v9292_v43 = vpop.f32.mrb[55].mxu1  ;;  %v18071_v38 = vld [vmem:[%s18159_s6] ss:$0 sm:$0xff] }
 0x66c   :  { %v8992_v9 = vpop.f32.mrb[36].mxu0  ;;  %p12095_p6 = pnand %p12094_p5, %p12088_p2 }
 0x66d   :  { %11010 = vst [vmem:[#allocation8 + $0xb8] sm:$0xff] %v10946_v27   ;;  %v9654_v46 = vadd.f32 %v9590_v53, %v9448_v31  ;;  %v9591_v18 = vadd.f32 %v17841_v7, %v9520_v26  ;;  %v9282_v21 = vadd.f32 %v11725_v6, %v8992_v9  ;;  %v8994_v49 = vpop.f32.mrb[37].mxu0  ;;  %v19426_v53 = vld [vmem:[#allocation121_spill] sm:$0xff] }
 0x66e   :  { %v8995_v14 = vpop.f32.mrb[38].mxu0 }
 0x66f   :  { %v9655_v22 = vadd.f32 %v9591_v18, %v9449_v63  ;;  %v9386_v39 = vadd.f32 %v9282_v21, %v17745_v44  ;;  %v9285_v57 = vadd.f32 %v11726_v13, %v8995_v14  ;;  %v8997_v2 = vpop.f32.mrb[39].mxu0  ;;  %v9718_v34 = vmax.f32 %v9654_v46, 0.0  ;;  %v19424_v13 = vld [vmem:[#allocation78_spill] sm:$0xff]  ;;  %v19427_v21 = vld [vmem:[#allocation93_spill] sm:$0xff] }
 0x670   :  { %v18075_v30 = vpop.f32.mrb[56].mxu1  ;;  %v9454_v14 = vld [vmem:[#allocation3 + $0x1b0] sm:$0xff] }
 0x671   :  { %v9719_v40 = vmax.f32 %v9655_v22, 0.0  ;;  %v9521_v62 = vmul.f32 %v18071_v38, %v9386_v39  ;;  %v9387_v51 = vadd.f32 %v9285_v57, %v19423_v5  ;;  %v9305_v35 = vpop.f32.mrb[57].mxu1 }
 0x672   :  { %v18079_v58 = vpop.f32.mrb[58].mxu1 }
 0x673   :  { %v10951_v3 = vpack.c.bf16 %v9719_v40, %v9718_v34  ;;  %v9592_v44 = vadd.f32 %v17841_v7, %v9521_v62  ;;  %v9522_v56 = vmul.f32 %v18071_v38, %v9387_v51  ;;  %v9308_v6 = vpop.f32.mrb[59].mxu1 }
 0x674   :  { %v9000_v19 = vpop.f32.mrb[40].mxu0 }
 0x675   :  { %11011 = vst [vmem:[#allocation8 + $0xc0] sm:$0xff] %v10951_v3   ;;  %v9656_v11 = vadd.f32 %v9592_v44, %v9450_v8  ;;  %v9593_v52 = vadd.f32 %v18084_v12, %v9522_v56  ;;  %v9290_v36 = vadd.f32 %v9289_v20, %v9000_v19  ;;  %v9002_v25 = vpop.f32.mrb[41].mxu0  ;;  %v19428_v8 = vld [vmem:[#allocation53_spill] sm:$0xff] }
 0x676   :  { %v9003_v23 = vpop.f32.mrb[42].mxu0  ;;  %v9456_v25 = vld [vmem:[#allocation3 + $0x1c0] sm:$0xff] }
 0x677   :  { %v9657_v7 = vadd.f32 %v9593_v52, %v9451_v15  ;;  %v9388_v48 = vadd.f32 %v9290_v36, %v19424_v13  ;;  %v9293_v41 = vadd.f32 %v9292_v43, %v9003_v23  ;;  %v9005_v28 = vpop.f32.mrb[43].mxu0  ;;  %v9720_v47 = vmax.f32 %v9656_v11, 0.0  ;;  %v19429_v52 = vld [vmem:[#allocation72_spill] sm:$0xff] }
 0x678   :  { %v18090_v17 = vpop.f32.mrb[60].mxu1 }
 0x679   :  { %v9721_v0 = vmax.f32 %v9657_v7, 0.0  ;;  %v9523_v4 = vmul.f32 %v18071_v38, %v9388_v48  ;;  %v9389_v24 = vadd.f32 %v9293_v41, %v19425_v55  ;;  %v18092_v32 = vpop.f32.mrb[61].mxu1  ;;  %v19430_v55 = vld [vmem:[#allocation19_spill] sm:$0xff] }
 0x67a   :  { %v18096_v1 = vpop.f32.mrb[62].mxu1 }
 0x67b   :  { %v10956_v61 = vpack.c.bf16 %v9721_v0, %v9720_v47  ;;  %v9594_v37 = vadd.f32 %v18084_v12, %v9523_v4  ;;  %v9524_v33 = vmul.f32 %v18071_v38, %v9389_v24  ;;  %v18098_v45 = vpop.f32.mrb[63].mxu1 }
 0x67c   :  { %v9008_v50 = vpop.f32.mrb[44].mxu0 }
 0x67d   :  { %11012 = vst [vmem:[#allocation8 + $0xc8] sm:$0xff] %v10956_v61   ;;  %v9658_v10 = vadd.f32 %v9594_v37, %v9452_v42  ;;  %v9595_v54 = vadd.f32 %v18084_v12, %v9524_v33  ;;  %v9298_v16 = vadd.f32 %v18062_v60, %v9008_v50  ;;  %v9010_v31 = vpop.f32.mrb[45].mxu0  ;;  %v9455_v60 = vld [vmem:[#allocation3 + $0x1b8] sm:$0xff]  ;;  %v19431_v50 = vld [vmem:[#allocation45_spill] sm:$0xff] }
 0x67e   :  { %v9011_v20 = vpop.f32.mrb[46].mxu0 }
 0x67f   :  { %v9659_v27 = vadd.f32 %v9595_v54, %v9453_v29  ;;  %v9390_v26 = vadd.f32 %v9298_v16, %v19426_v53  ;;  %v9301_v63 = vadd.f32 %v11730_v59, %v9011_v20  ;;  %v9013_v43 = vpop.f32.mrb[47].mxu0  ;;  %v9722_v9 = vmax.f32 %v9658_v10, 0.0  ;;  %v9458_v54 = vld [vmem:[#allocation3 + $0x1d0] sm:$0xff]  ;;  %v9459_v20 = vld [vmem:[#allocation3 + $0x1d8] sm:$0xff] }
 0x681   :  { %v9723_v46 = vmax.f32 %v9659_v27, 0.0  ;;  %v9525_v18 = vmul.f32 %v18071_v38, %v9390_v26  ;;  %v9391_v49 = vadd.f32 %v9301_v63, %v19427_v21 }
 0x683   :  { %v10961_v22 = vpack.c.bf16 %v9723_v46, %v9722_v9  ;;  %v9596_v39 = vadd.f32 %v18084_v12, %v9525_v18  ;;  %v9526_v57 = vmul.f32 %v18071_v38, %v9391_v49  ;;  %v19432_v46 = vld [vmem:[#allocation57_spill] sm:$0xff] }
 0x684   :  { %v9016_v2 = vpop.f32.mrb[48].mxu0 }
 0x685   :  { %11013 = vst [vmem:[#allocation8 + $0xd0] sm:$0xff] %v10961_v22   ;;  %v9660_v34 = vadd.f32 %v9596_v39, %v9454_v14  ;;  %v9597_v40 = vadd.f32 %v18084_v12, %v9526_v57  ;;  %v9306_v59 = vadd.f32 %v9305_v35, %v9016_v2  ;;  %v9018_v62 = vpop.f32.mrb[49].mxu0  ;;  %v9457_v35 = vld [vmem:[#allocation3 + $0x1c8] sm:$0xff]  ;;  %v19433_v57 = vld [vmem:[#allocation59_spill] sm:$0xff]  ;;  %v9460_v2 = vld [vmem:[#allocation3 + $0x1e0] sm:$0xff] }
 0x686   :  { %v9019_v5 = vpop.f32.mrb[50].mxu0 }
 0x687   :  { %v9661_v51 = vadd.f32 %v9597_v40, %v9455_v60  ;;  %v9392_v3 = vadd.f32 %v9306_v59, %v19428_v8  ;;  %v9309_v44 = vadd.f32 %v9308_v6, %v9019_v5  ;;  %v9021_v56 = vpop.f32.mrb[51].mxu0  ;;  %v9724_v15 = vmax.f32 %v9660_v34, 0.0  ;;  %v9461_v59 = vld [vmem:[#allocation3 + $0x1e8] sm:$0xff] }
 0x688   :  { %v19434_v56 = vld [vmem:[#allocation106_spill] sm:$0xff] }
 0x689   :  { %v9725_v19 = vmax.f32 %v9661_v51, 0.0  ;;  %v9527_v11 = vmul.f32 %v18071_v38, %v9392_v3  ;;  %v9393_v36 = vadd.f32 %v9309_v44, %v19429_v52 }
 0x68b   :  { %v10966_v23 = vpack.c.bf16 %v9725_v19, %v9724_v15  ;;  %v9598_v7 = vadd.f32 %v18084_v12, %v9527_v11  ;;  %v9528_v13 = vmul.f32 %v18071_v38, %v9393_v36 }
 0x68c   :  { %v9024_v48 = vpop.f32.mrb[52].mxu0 }
 0x68d   :  { %11014 = vst [vmem:[#allocation8 + $0xd8] sm:$0xff] %v10966_v23   ;;  %v9662_v41 = vadd.f32 %v9598_v7, %v9456_v25  ;;  %v9599_v28 = vadd.f32 %v18084_v12, %v9528_v13  ;;  %v9314_v6 = vadd.f32 %v18075_v30, %v9024_v48  ;;  %v9026_v47 = vpop.f32.mrb[53].mxu0  ;;  %v19435_v23 = vld [vmem:[#allocation119_spill] sm:$0xff]  ;;  %v9462_v13 = vld [vmem:[#allocation3 + $0x1f0] sm:$0xff] }
 0x68e   :  { %v9027_v0 = vpop.f32.mrb[54].mxu0 }
 0x68f   :  { %v9663_v4 = vadd.f32 %v9599_v28, %v9457_v35  ;;  %v9394_v24 = vadd.f32 %v9314_v6, %v19430_v55  ;;  %v9317_v42 = vadd.f32 %v18079_v58, %v9027_v0  ;;  %v9029_v61 = vpop.f32.mrb[55].mxu0  ;;  %v9726_v37 = vmax.f32 %v9662_v41, 0.0  ;;  %v9463_v41 = vld [vmem:[#allocation3 + $0x1f8] sm:$0xff] }
 0x691   :  { %v9727_v33 = vmax.f32 %v9663_v4, 0.0  ;;  %v9529_v29 = vmul.f32 %v18071_v38, %v9394_v24  ;;  %v9395_v10 = vadd.f32 %v9317_v42, %v19431_v50 }
 0x693   :  { %v10971_v16 = vpack.c.bf16 %v9727_v33, %v9726_v37  ;;  %v9600_v31 = vadd.f32 %v18084_v12, %v9529_v29  ;;  %v9530_v30 = vmul.f32 %v18071_v38, %v9395_v10 }
 0x694   :  { %v9032_v27 = vpop.f32.mrb[56].mxu0 }
 0x695   :  { %11015 = vst [vmem:[#allocation8 + $0xe0] sm:$0xff] %v10971_v16   ;;  %v9664_v53 = vadd.f32 %v9600_v31, %v9458_v54  ;;  %v9601_v26 = vadd.f32 %v18084_v12, %v9530_v30  ;;  %v9322_v58 = vadd.f32 %v18092_v32, %v9032_v27  ;;  %v9034_v63 = vpop.f32.mrb[57].mxu0 }
 0x696   :  { %v9035_v43 = vpop.f32.mrb[58].mxu0 }
 0x697   :  { %v9665_v9 = vadd.f32 %v9601_v26, %v9459_v20  ;;  %v9396_v18 = vadd.f32 %v9322_v58, %v19432_v46  ;;  %v9325_v21 = vadd.f32 %v18098_v45, %v9035_v43  ;;  %v9037_v49 = vpop.f32.mrb[59].mxu0  ;;  %v9728_v14 = vmax.f32 %v9664_v53, 0.0 }
 0x699   :  { %v9729_v22 = vmax.f32 %v9665_v9, 0.0  ;;  %v9531_v39 = vmul.f32 %v18071_v38, %v9396_v18  ;;  %v9397_v60 = vadd.f32 %v9325_v21, %v19433_v57 }
 0x69b   :  { %v10976_v34 = vpack.c.bf16 %v9729_v22, %v9728_v14  ;;  %v9602_v40 = vadd.f32 %v18084_v12, %v9531_v39  ;;  %v9532_v32 = vmul.f32 %v18071_v38, %v9397_v60 }
 0x69c   :  { %v9040_v62 = vpop.f32.mrb[60].mxu0 }
 0x69d   :  { %11016 = vst [vmem:[#allocation8 + $0xe8] sm:$0xff] %v10976_v34   ;;  %v9666_v5 = vadd.f32 %v9602_v40, %v9460_v2  ;;  %v9603_v51 = vadd.f32 %v18084_v12, %v9532_v32  ;;  %v9330_v45 = vadd.f32 %v18090_v17, %v9040_v62  ;;  %v9042_v8 = vpop.f32.mrb[61].mxu0 }
 0x69e   :  { %v9043_v3 = vpop.f32.mrb[62].mxu0 }
 0x69f   :  { %v9667_v44 = vadd.f32 %v9603_v51, %v9461_v59  ;;  %v9398_v15 = vadd.f32 %v9330_v45, %v19434_v56  ;;  %v9333_v19 = vadd.f32 %v18096_v1, %v9043_v3  ;;  %v9045_v11 = vpop.f32.mrb[63].mxu0  ;;  %v9730_v52 = vmax.f32 %v9666_v5, 0.0 }
 0x6a1   :  { %v9731_v36 = vmax.f32 %v9667_v44, 0.0  ;;  %v9533_v25 = vmul.f32 %v18071_v38, %v9398_v15  ;;  %v9399_v7 = vadd.f32 %v9333_v19, %v19435_v23 }
 0x6a3   :  { %v10981_v35 = vpack.c.bf16 %v9731_v36, %v9730_v52  ;;  %v9604_v48 = vadd.f32 %v18084_v12, %v9533_v25  ;;  %v9534_v17 = vmul.f32 %v18071_v38, %v9399_v7 }
 0x6a5   :  { %11017 = vst [vmem:[#allocation8 + $0xf0] sm:$0xff] %v10981_v35   ;;  %v9668_v28 = vadd.f32 %v9604_v48, %v9462_v13  ;;  %v9605_v6 = vadd.f32 %v18084_v12, %v9534_v17 }
 0x6a7   :  { %v9669_v47 = vadd.f32 %v9605_v6, %v9463_v41  ;;  %v9732_v1 = vmax.f32 %v9668_v28, 0.0 }
 0x6a9   :  { %v9733_v0 = vmax.f32 %v9669_v47, 0.0 }
 0x6ab   :  { %v10986_v4 = vpack.c.bf16 %v9733_v0, %v9732_v1 }
 0x6ad   :  { %11018 = vst [vmem:[#allocation8 + $0xf8] sm:$0xff] %v10986_v4  }
 0x6ae   :  { %12098 = shalt.err (!%p12095_p6)
}
 0x6af   :  { %s12099_s26 = scalar_lea.hbm %s18161_s8, 4096 }
 0x6b0   :  { %p12100_p7 = scmp.ne.s32.totalorder %s18161_s8, %s12099_s26  ;;  %p12103_p8 = scmp.lt.u32.totalorder %s12099_s26, %s18161_s8 }
 0x6b2   :  { %p12105_p9 = pnand %p12103_p8, %p12100_p7 }
 0x6b4   :  { %12108 = shalt.err (!%p12105_p9)
}
 0x6b5   :  { %10065 = dma.vmem_to_hbm [thread:$0]  %s10060_s23, 4096, %s18161_s8, [#allocation5], %s12119_s1, %s12119_s1, %s12120_s28  }
 0x6b6   :  { %12113 = dma.done.wait [#allocation5], 4096  }
 0x6b7   :  { %12114 = vsyncadd [#allocation5], 4294963200 }
 0x6b8   :  { %10069 = vsyncpa [#allocation4], 1 }
 0x6b9   :  { %10070 = vsyncpa [#allocation7], 1 }
 0x6ba   :  { %10071 = vsyncpa [#allocation5], 1 }

</bundles_post_ra>
